<compile_context>
chip_gen: v7x
topology: tpu7x:2x2x1
jax: 0.10.0
libtpu: 0.0.40
codegen_flags: <defaults>
</compile_context>

<pallas_src>
from functools import partial

import jax
import jax.numpy as jnp
from jax import lax
from jax.experimental import pallas as pl
from jax.experimental.pallas import tpu as pltpu


# ----------------------------- tiling helper --------------------------------
def _pick_tile(dim, target, align):
    """Largest multiple of `align` <= target that divides dim, else full dim."""
    if dim <= target:
        return dim
    t = (target // align) * align
    while t >= align:
        if dim % t == 0:
            return t
        t -= align
    return dim


# ------------------------ fused Linear (+bias +GELU) -------------------------
def _gelu_tanh(x):
    # tanh-approx GELU (PyTorch nn.GELU() default is exact erf; diff ~1e-3).
    c = 0.7978845608028654  # sqrt(2/pi)
    return 0.5 * x * (1.0 + jnp.tanh(c * (x + 0.044715 * x * x * x)))


def _matmul_kernel(a_ref, b_ref, bias_ref, o_ref, acc_ref, *, activation):
    @pl.when(pl.program_id(2) == 0)
    def _init():
        acc_ref[...] = jnp.zeros_like(acc_ref)

    acc_ref[...] += jnp.dot(a_ref[...], b_ref[...],
                            preferred_element_type=jnp.float32)

    @pl.when(pl.program_id(2) == pl.num_programs(2) - 1)
    def _finish():
        r = acc_ref[...] + bias_ref[...]
        if activation == "gelu":
            r = _gelu_tanh(r)
        o_ref[...] = r.astype(o_ref.dtype)


def matmul(a, w, bias=None, activation=None):
    """(M,K)@(K,N)+bias, optional fused GELU. bf16 MXU inputs, f32 accumulate."""
    m, kdim = a.shape
    _, n = w.shape
    if bias is None:
        bias = jnp.zeros((n,), jnp.float32)
    bias = bias.reshape(1, n).astype(jnp.float32)

    tm = _pick_tile(m, 256, 16)
    tk = _pick_tile(kdim, 512, 128)
    tn = _pick_tile(n, 256, 128)

    return pl.pallas_call(
        partial(_matmul_kernel, activation=activation),
        out_shape=jax.ShapeDtypeStruct((m, n), jnp.float32),
        grid=(m // tm, n // tn, kdim // tk),
        in_specs=[
            pl.BlockSpec((tm, tk), lambda i, j, k: (i, k)),
            pl.BlockSpec((tk, tn), lambda i, j, k: (k, j)),
            pl.BlockSpec((1, tn), lambda i, j, k: (0, j)),
        ],
        out_specs=pl.BlockSpec((tm, tn), lambda i, j, k: (i, j)),
        scratch_shapes=[pltpu.VMEM((tm, tn), jnp.float32)],
        compiler_params=pltpu.CompilerParams(
            dimension_semantics=("parallel", "parallel", "arbitrary")),
    )(a.astype(jnp.bfloat16), w.astype(jnp.bfloat16), bias)


# ------------------------------- LayerNorm -----------------------------------
def _layernorm_kernel(x_ref, g_ref, b_ref, o_ref, *, eps):
    x = x_ref[...].astype(jnp.float32)
    mu = jnp.mean(x, axis=-1, keepdims=True)
    xc = x - mu
    var = jnp.mean(xc * xc, axis=-1, keepdims=True)
    inv = lax.rsqrt(var + eps)
    o_ref[...] = (xc * inv * g_ref[...] + b_ref[...]).astype(o_ref.dtype)


def layernorm(x2d, gamma, beta, eps=1e-5):
    m, d = x2d.shape
    tm = _pick_tile(m, 512, 8)
    g = gamma.reshape(1, d).astype(jnp.float32)
    b = beta.reshape(1, d).astype(jnp.float32)
    return pl.pallas_call(
        partial(_layernorm_kernel, eps=eps),
        out_shape=jax.ShapeDtypeStruct((m, d), jnp.float32),
        grid=(m // tm,),
        in_specs=[
            pl.BlockSpec((tm, d), lambda i: (i, 0)),
            pl.BlockSpec((1, d), lambda i: (0, 0)),
            pl.BlockSpec((1, d), lambda i: (0, 0)),
        ],
        out_specs=pl.BlockSpec((tm, d), lambda i: (i, 0)),
        compiler_params=pltpu.CompilerParams(dimension_semantics=("parallel",)),
    )(x2d, g, b)


# ------------------------- Nystrom attention core ----------------------------
def _softmax_lastdim(s):
    s = s - jnp.max(s, axis=-1, keepdims=True)
    e = jnp.exp(s)
    return e * pl.reciprocal(jnp.sum(e, axis=-1, keepdims=True), approx=True)


def _nystrom_attn_kernel(qkv_ref, wconv_ref, o_ref, *, heads, dim_head,
                         num_landmarks, pinv_iters, scale, conv_kernel):
    npad = qkv_ref.shape[0]
    inner = heads * dim_head
    m = num_landmarks
    l = npad // m

    # landmark pooling matrix  P[g, t] = 1/l  for  g*l <= t < (g+1)*l
    gr = lax.broadcasted_iota(jnp.int32, (m, npad), 0)
    tc = lax.broadcasted_iota(jnp.int32, (m, npad), 1)
    pool = jnp.where((tc >= gr * l) & (tc < (gr + 1) * l),
                     jnp.float32(1.0 / l), jnp.float32(0.0))

    # identity for the Moore-Penrose iteration
    ir = lax.broadcasted_iota(jnp.int32, (m, m), 0)
    ic = lax.broadcasted_iota(jnp.int32, (m, m), 1)
    eye = (ir == ic).astype(jnp.float32)

    # boundary masks for the depthwise conv (shared across heads)
    pad = conv_kernel // 2
    rid = lax.broadcasted_iota(jnp.int32, (npad, dim_head), 0)
    conv_masks = [(rid + (j - pad) >= 0) & (rid + (j - pad) < npad)
                  for j in range(conv_kernel)]

    dn = (((1,), (1,)), ((), ()))   # contract feature axes (no explicit .T)

    outs = []
    for h in range(heads):
        q = qkv_ref[:, h * dim_head:(h + 1) * dim_head] * scale           # (N, d)
        k = qkv_ref[:, inner + h * dim_head:inner + (h + 1) * dim_head]
        v = qkv_ref[:, 2 * inner + h * dim_head:2 * inner + (h + 1) * dim_head]

        q_l = jnp.dot(pool, q, preferred_element_type=jnp.float32)        # (m, d)
        k_l = jnp.dot(pool, k, preferred_element_type=jnp.float32)

        a1 = _softmax_lastdim(
            lax.dot_general(q, k_l, dn, preferred_element_type=jnp.float32))   # (N, m)
        a2 = _softmax_lastdim(
            lax.dot_general(q_l, k_l, dn, preferred_element_type=jnp.float32))  # (m, m)
        a3 = _softmax_lastdim(
            lax.dot_general(q_l, k, dn, preferred_element_type=jnp.float32))    # (m, N)

        # iterative Moore-Penrose pseudo-inverse of a2
        # TODO(synk): reference impl normalises z0 with a max over ALL
        # (batch, head) matrices; per-matrix max is used here (same fixpoint).
        ab = jnp.abs(a2)
        denom = (jnp.max(jnp.sum(ab, axis=-1, keepdims=True)) *
                 jnp.max(jnp.sum(ab, axis=-2, keepdims=True)))
        z = a2.T / denom
        for _ in range(pinv_iters):
            xz = jnp.dot(a2, z, preferred_element_type=jnp.float32)
            t = 11.0 * eye - xz
            t = 15.0 * eye - jnp.dot(xz, t, preferred_element_type=jnp.float32)
            t = 13.0 * eye - jnp.dot(xz, t, preferred_element_type=jnp.float32)
            z = 0.25 * jnp.dot(z, t, preferred_element_type=jnp.float32)

        t = jnp.dot(a3, v, preferred_element_type=jnp.float32)            # (m, d)
        t = jnp.dot(z, t, preferred_element_type=jnp.float32)             # (m, d)
        out_h = jnp.dot(a1, t, preferred_element_type=jnp.float32)        # (N, d)

        # depthwise residual conv over the token axis (zero-padded x-corr),
        # as K shifted-adds on the XLU instead of an (N, N) banded matmul.
        res = jnp.zeros_like(out_h)
        for j in range(conv_kernel):
            off = j - pad
            w = wconv_ref[h, j]
            shifted = pltpu.roll(v, (-off) % npad, 0)     # shifted[i] = v[i+off]
            res = res + jnp.where(conv_masks[j], shifted * w, 0.0)

        outs.append(out_h + res)

    # single lane-dense store of the (Npad, heads*dim_head) tile
    o_ref[...] = jnp.concatenate(outs, axis=1).astype(o_ref.dtype)


def nystrom_attention(qkv, w_conv, *, heads, dim_head, num_landmarks,
                      pinv_iterations, scale, conv_kernel):
    b, npad, _ = qkv.shape
    inner = heads * dim_head
    kern = partial(_nystrom_attn_kernel, heads=heads, dim_head=dim_head,
                   num_landmarks=num_landmarks, pinv_iters=pinv_iterations,
                   scale=scale, conv_kernel=conv_kernel)
    return pl.pallas_call(
        kern,
        out_shape=jax.ShapeDtypeStruct((b, npad, inner), jnp.float32),
        grid=(b,),
        in_specs=[
            pl.BlockSpec((None, npad, 3 * inner), lambda bi: (bi, 0, 0)),
            pl.BlockSpec(memory_space=pltpu.MemorySpace.SMEM),
        ],
        out_specs=pl.BlockSpec((None, npad, inner), lambda bi: (bi, 0, 0)),
        compiler_params=pltpu.CompilerParams(dimension_semantics=("parallel",)),
    )(qkv, w_conv.astype(jnp.float32))


# --------------------------- full model forward ------------------------------
def nystromformer_forward(x, layers, *, heads, dim_head, num_landmarks,
                          pinv_iterations, conv_kernel):
    b, n, dim = x.shape
    inner = heads * dim_head
    scale = dim_head ** (-0.5)
    m = num_landmarks
    pad = (m - n % m) % m
    npad = n + pad

    for p in layers:
        # ---- x = PreNorm(NystromAttention)(x) + x ----
        h = layernorm(x.reshape(b * n, dim), p["attn_ln_g"], p["attn_ln_b"])
        h = h.reshape(b, n, dim)
        if pad > 0:                                  # front-pad to multiple of m
            h = jnp.pad(h, ((0, 0), (pad, 0), (0, 0)))
        qkv = matmul(h.reshape(b * npad, dim), p["w_qkv_t"])     # bias-free
        qkv = qkv.reshape(b, npad, 3 * inner)
        att = nystrom_attention(qkv, p["w_conv"], heads=heads, dim_head=dim_head,
                                num_landmarks=m, pinv_iterations=pinv_iterations,
                                scale=scale, conv_kernel=conv_kernel)
        att = att[:, pad:]                           # == out[:, -n:]
        att = matmul(att.reshape(b * n, inner), p["w_out_t"], bias=p["b_out"])
        x = x + att.reshape(b, n, dim)

        # ---- x = PreNorm(FeedForward)(x) + x  (FeedForward has its own LN) ----
        f = layernorm(x.reshape(b * n, dim), p["ff_pre_ln_g"], p["ff_pre_ln_b"])
        f = layernorm(f, p["ff_ln_g"], p["ff_ln_b"])
        f = matmul(f, p["w_ff1_t"], bias=p["b_ff1"], activation="gelu")
        f = matmul(f, p["w_ff2_t"], bias=p["b_ff2"])
        x = x + f.reshape(b, n, dim)
    return x


# ----------------------------------- demo ------------------------------------
if __name__ == "__main__":
    depth = 2
    b, n, dim = 2, 64, 64
    heads, dim_head = 2, 32
    inner = heads * dim_head
    num_landmarks = 16
    pinv_iterations = 6
    conv_kernel = 7            # module default is 33; any odd K is supported
    ff_mult = 1

    key = jax.random.PRNGKey(0)

    def nrm(k, shape, s=0.05):
        return s * jax.random.normal(k, shape, dtype=jnp.float32)

    layers = []
    for i in range(depth):
        ks = jax.random.split(jax.random.fold_in(key, i), 16)
        layers.append(dict(
            attn_ln_g=1.0 + nrm(ks[0], (dim,)), attn_ln_b=nrm(ks[1], (dim,)),
            # to_qkv: nn.Linear(dim, 3*inner, bias=False) -> weight (3*inner, dim)
            w_qkv_t=nrm(ks[2], (3 * inner, dim), 0.2).T,
            # res_conv: nn.Conv2d(heads, heads, (K,1), groups=heads, bias=False)
            # torch weight (heads, 1, K, 1) stored flat as (heads, K)
            w_conv=nrm(ks[3], (heads, conv_kernel), 0.1),
            # to_out: nn.Linear(inner, dim)
            w_out_t=nrm(ks[4], (dim, inner)).T, b_out=nrm(ks[5], (dim,)),
            ff_pre_ln_g=1.0 + nrm(ks[6], (dim,)), ff_pre_ln_b=nrm(ks[7], (dim,)),
            ff_ln_g=1.0 + nrm(ks[8], (dim,)), ff_ln_b=nrm(ks[9], (dim,)),
            w_ff1_t=nrm(ks[10], (dim * ff_mult, dim)).T, b_ff1=nrm(ks[11], (dim * ff_mult,)),
            w_ff2_t=nrm(ks[12], (dim, dim * ff_mult)).T, b_ff2=nrm(ks[13], (dim,)),
        ))

    x = jax.random.normal(jax.random.fold_in(key, 99), (b, n, dim), dtype=jnp.float32)

    fwd = jax.jit(partial(nystromformer_forward, heads=heads, dim_head=dim_head,
                          num_landmarks=num_landmarks,
                          pinv_iterations=pinv_iterations,
                          conv_kernel=conv_kernel))
    out = fwd(x, layers)
    jax.block_until_ready(out)
    assert out.shape == (b, n, dim)
    print("KERNEL_OK")
</pallas_src>

<mosaic_0001>
module attributes {stable_mosaic.version = 11 : i64} {
  func.func @_layernorm_kernel(%arg0: i32, %arg1: memref<128x64xf32, #tpu.memory_space<vmem>>, %arg2: memref<1x64xf32, #tpu.memory_space<vmem>>, %arg3: memref<1x64xf32, #tpu.memory_space<vmem>>, %arg4: memref<128x64xf32, #tpu.memory_space<vmem>>) attributes {dimension_semantics = [#tpu.dimension_semantics<parallel>], iteration_bounds = array<i64: 1>, scalar_prefetch = 0 : i64, scratch_operands = 0 : i64, tpu.core_type = #tpu.core_type<tc>, window_params = [{transform_indices = @transform_0, window_bounds = array<i64: 128, 64>}, {pipeline_mode = #tpu.pipeline_mode<synchronous>, transform_indices = @transform_1, window_bounds = array<i64: 1, 64>}, {pipeline_mode = #tpu.pipeline_mode<synchronous>, transform_indices = @transform_2, window_bounds = array<i64: 1, 64>}, {transform_indices = @transform_3, window_bounds = array<i64: 128, 64>}]} {
    %c0 = arith.constant 0 : index
    %c0_0 = arith.constant 0 : index
    %0 = vector.load %arg1[%c0, %c0_0] : memref<128x64xf32, #tpu.memory_space<vmem>>, vector<128x64xf32>
    %cst = arith.constant dense<0.000000e+00> : vector<128xf32>
    %1 = vector.multi_reduction <add>, %0, %cst [1] : vector<128x64xf32> to vector<128xf32>
    %2 = vector.shape_cast %1 : vector<128xf32> to vector<128x1xf32>
    %cst_1 = arith.constant 6.400000e+01 : f32
    %3 = vector.broadcast %cst_1 : f32 to vector<128x1xf32>
    %4 = arith.divf %2, %3 : vector<128x1xf32>
    %5 = vector.broadcast %4 : vector<128x1xf32> to vector<128x64xf32>
    %6 = arith.subf %0, %5 : vector<128x64xf32>
    %7 = arith.mulf %6, %6 : vector<128x64xf32>
    %cst_2 = arith.constant dense<0.000000e+00> : vector<128xf32>
    %8 = vector.multi_reduction <add>, %7, %cst_2 [1] : vector<128x64xf32> to vector<128xf32>
    %9 = vector.shape_cast %8 : vector<128xf32> to vector<128x1xf32>
    %cst_3 = arith.constant 6.400000e+01 : f32
    %10 = vector.broadcast %cst_3 : f32 to vector<128x1xf32>
    %11 = arith.divf %9, %10 : vector<128x1xf32>
    %cst_4 = arith.constant 9.99999974E-6 : f32
    %12 = vector.broadcast %cst_4 : f32 to vector<128x1xf32>
    %13 = arith.addf %11, %12 : vector<128x1xf32>
    %14 = math.rsqrt %13 : vector<128x1xf32>
    %15 = vector.broadcast %14 : vector<128x1xf32> to vector<128x64xf32>
    %16 = arith.mulf %6, %15 : vector<128x64xf32>
    %c0_5 = arith.constant 0 : index
    %c0_6 = arith.constant 0 : index
    %17 = vector.load %arg2[%c0_5, %c0_6] : memref<1x64xf32, #tpu.memory_space<vmem>>, vector<1x64xf32>
    %18 = vector.broadcast %17 : vector<1x64xf32> to vector<128x64xf32>
    %19 = arith.mulf %16, %18 : vector<128x64xf32>
    %c0_7 = arith.constant 0 : index
    %c0_8 = arith.constant 0 : index
    %20 = vector.load %arg3[%c0_7, %c0_8] : memref<1x64xf32, #tpu.memory_space<vmem>>, vector<1x64xf32>
    %21 = vector.broadcast %20 : vector<1x64xf32> to vector<128x64xf32>
    %22 = arith.addf %19, %21 : vector<128x64xf32>
    %c0_9 = arith.constant 0 : index
    %c0_10 = arith.constant 0 : index
    %23 = vector.load %arg4[%c0_9, %c0_10] : memref<128x64xf32, #tpu.memory_space<vmem>>, vector<128x64xf32>
    tpu.vector_store %arg4[%c0_9, %c0_10], %22 {strides = array<i32>} : memref<128x64xf32, #tpu.memory_space<vmem>>, vector<128x64xf32>,
    return
  }
  func.func @transform_0(%arg0: i32) -> (i32, i32) {
    %c0_i32 = arith.constant 0 : i32
    %c0_i32_0 = arith.constant 0 : i32
    return %arg0, %c0_i32 : i32, i32
  }
  func.func @transform_1(%arg0: i32) -> (i32, i32) {
    %c0_i32 = arith.constant 0 : i32
    %c0_i32_0 = arith.constant 0 : i32
    %c0_i32_1 = arith.constant 0 : i32
    return %c0_i32, %c0_i32_0 : i32, i32
  }
  func.func @transform_2(%arg0: i32) -> (i32, i32) {
    %c0_i32 = arith.constant 0 : i32
    %c0_i32_0 = arith.constant 0 : i32
    %c0_i32_1 = arith.constant 0 : i32
    return %c0_i32, %c0_i32_0 : i32, i32
  }
  func.func @transform_3(%arg0: i32) -> (i32, i32) {
    %c0_i32 = arith.constant 0 : i32
    %c0_i32_0 = arith.constant 0 : i32
    return %arg0, %c0_i32 : i32, i32
  }
}

module attributes {stable_mosaic.version = 11 : i64} {
  func.func @_matmul_kernel(%arg0: i32, %arg1: i32, %arg2: i32, %arg3: memref<128x64xbf16, #tpu.memory_space<vmem>>, %arg4: memref<64x192xbf16, #tpu.memory_space<vmem>>, %arg5: memref<1x192xf32, #tpu.memory_space<vmem>>, %arg6: memref<128x192xf32, #tpu.memory_space<vmem>>, %arg7: memref<128x192xf32, #tpu.memory_space<vmem>>) attributes {dimension_semantics = [#tpu.dimension_semantics<parallel>, #tpu.dimension_semantics<parallel>, #tpu.dimension_semantics<arbitrary>], iteration_bounds = array<i64: 1, 1, 1>, scalar_prefetch = 0 : i64, scratch_operands = 1 : i64, tpu.core_type = #tpu.core_type<tc>, window_params = [{transform_indices = @transform_0, window_bounds = array<i64: 128, 64>}, {transform_indices = @transform_1, window_bounds = array<i64: 64, 192>}, {transform_indices = @transform_2, window_bounds = array<i64: 1, 192>}, {transform_indices = @transform_3, window_bounds = array<i64: 128, 192>}]} {
    %c0_i32 = arith.constant 0 : i32
    %0 = arith.cmpi eq, %arg2, %c0_i32 : i32
    %1 = arith.extui %0 : i1 to i32
    %c0_i32_0 = arith.constant 0 : i32
    %2 = arith.cmpi ne, %1, %c0_i32_0 : i32
    scf.if %2 {
      %cst_10 = arith.constant 0.000000e+00 : f32
      %12 = vector.broadcast %cst_10 : f32 to vector<128x192xf32>
      %c0_11 = arith.constant 0 : index
      %c0_12 = arith.constant 0 : index
      %13 = vector.load %arg7[%c0_11, %c0_12] : memref<128x192xf32, #tpu.memory_space<vmem>>, vector<128x192xf32>
      tpu.vector_store %arg7[%c0_11, %c0_12], %12 {strides = array<i32>} : memref<128x192xf32, #tpu.memory_space<vmem>>, vector<128x192xf32>,
    } else {
    }
    %c0 = arith.constant 0 : index
    %c0_1 = arith.constant 0 : index
    %3 = vector.load %arg7[%c0, %c0_1] : memref<128x192xf32, #tpu.memory_space<vmem>>, vector<128x192xf32>
    %c0_2 = arith.constant 0 : index
    %c0_3 = arith.constant 0 : index
    %4 = vector.load %arg3[%c0_2, %c0_3] : memref<128x64xbf16, #tpu.memory_space<vmem>>, vector<128x64xbf16>
    %c0_4 = arith.constant 0 : index
    %c0_5 = arith.constant 0 : index
    %5 = vector.load %arg4[%c0_4, %c0_5] : memref<64x192xbf16, #tpu.memory_space<vmem>>, vector<64x192xbf16>
    %cst = arith.constant dense<0.000000e+00> : vector<128x192xf32>
    %6 = tpu.matmul %4, %5, %cst {dimension_numbers = #tpu.dot_dimension_numbers<[1], [0], [0], [1], [0, 0, 1, 1], [], []>} : vector<128x64xbf16>, vector<64x192xbf16>, vector<128x192xf32> -> vector<128x192xf32>
    %7 = arith.addf %3, %6 : vector<128x192xf32>
    %c0_6 = arith.constant 0 : index
    %c0_7 = arith.constant 0 : index
    %8 = vector.load %arg7[%c0_6, %c0_7] : memref<128x192xf32, #tpu.memory_space<vmem>>, vector<128x192xf32>
    tpu.vector_store %arg7[%c0_6, %c0_7], %7 {strides = array<i32>} : memref<128x192xf32, #tpu.memory_space<vmem>>, vector<128x192xf32>,
    %c0_i32_8 = arith.constant 0 : i32
    %9 = arith.cmpi eq, %arg2, %c0_i32_8 : i32
    %10 = arith.extui %9 : i1 to i32
    %c0_i32_9 = arith.constant 0 : i32
    %11 = arith.cmpi ne, %10, %c0_i32_9 : i32
    scf.if %11 {
      %c0_10 = arith.constant 0 : index
      %c0_11 = arith.constant 0 : index
      %12 = vector.load %arg7[%c0_10, %c0_11] : memref<128x192xf32, #tpu.memory_space<vmem>>, vector<128x192xf32>
      %c0_12 = arith.constant 0 : index
      %c0_13 = arith.constant 0 : index
      %13 = vector.load %arg5[%c0_12, %c0_13] : memref<1x192xf32, #tpu.memory_space<vmem>>, vector<1x192xf32>
      %14 = vector.broadcast %13 : vector<1x192xf32> to vector<128x192xf32>
      %15 = arith.addf %12, %14 : vector<128x192xf32>
      %c0_14 = arith.constant 0 : index
      %c0_15 = arith.constant 0 : index
      %16 = vector.load %arg6[%c0_14, %c0_15] : memref<128x192xf32, #tpu.memory_space<vmem>>, vector<128x192xf32>
      tpu.vector_store %arg6[%c0_14, %c0_15], %15 {strides = array<i32>} : memref<128x192xf32, #tpu.memory_space<vmem>>, vector<128x192xf32>,
    } else {
    }
    return
  }
  func.func @transform_0(%arg0: i32, %arg1: i32, %arg2: i32) -> (i32, i32) {
    %c0_i32 = arith.constant 0 : i32
    return %arg0, %arg2 : i32, i32
  }
  func.func @transform_1(%arg0: i32, %arg1: i32, %arg2: i32) -> (i32, i32) {
    %c0_i32 = arith.constant 0 : i32
    return %arg2, %arg1 : i32, i32
  }
  func.func @transform_2(%arg0: i32, %arg1: i32, %arg2: i32) -> (i32, i32) {
    %c0_i32 = arith.constant 0 : i32
    %c0_i32_0 = arith.constant 0 : i32
    return %c0_i32, %arg1 : i32, i32
  }
  func.func @transform_3(%arg0: i32, %arg1: i32, %arg2: i32) -> (i32, i32) {
    %c0_i32 = arith.constant 0 : i32
    return %arg0, %arg1 : i32, i32
  }
}

module attributes {stable_mosaic.version = 11 : i64} {
  func.func @_matmul_kernel(%arg0: i32, %arg1: i32, %arg2: i32, %arg3: memref<128x64xbf16, #tpu.memory_space<vmem>>, %arg4: memref<64x64xbf16, #tpu.memory_space<vmem>>, %arg5: memref<1x64xf32, #tpu.memory_space<vmem>>, %arg6: memref<128x64xf32, #tpu.memory_space<vmem>>, %arg7: memref<128x64xf32, #tpu.memory_space<vmem>>) attributes {dimension_semantics = [#tpu.dimension_semantics<parallel>, #tpu.dimension_semantics<parallel>, #tpu.dimension_semantics<arbitrary>], iteration_bounds = array<i64: 1, 1, 1>, scalar_prefetch = 0 : i64, scratch_operands = 1 : i64, tpu.core_type = #tpu.core_type<tc>, window_params = [{transform_indices = @transform_0, window_bounds = array<i64: 128, 64>}, {transform_indices = @transform_1, window_bounds = array<i64: 64, 64>}, {transform_indices = @transform_2, window_bounds = array<i64: 1, 64>}, {transform_indices = @transform_3, window_bounds = array<i64: 128, 64>}]} {
    %c0_i32 = arith.constant 0 : i32
    %0 = arith.cmpi eq, %arg2, %c0_i32 : i32
    %1 = arith.extui %0 : i1 to i32
    %c0_i32_0 = arith.constant 0 : i32
    %2 = arith.cmpi ne, %1, %c0_i32_0 : i32
    scf.if %2 {
      %cst_10 = arith.constant 0.000000e+00 : f32
      %12 = vector.broadcast %cst_10 : f32 to vector<128x64xf32>
      %c0_11 = arith.constant 0 : index
      %c0_12 = arith.constant 0 : index
      %13 = vector.load %arg7[%c0_11, %c0_12] : memref<128x64xf32, #tpu.memory_space<vmem>>, vector<128x64xf32>
      tpu.vector_store %arg7[%c0_11, %c0_12], %12 {strides = array<i32>} : memref<128x64xf32, #tpu.memory_space<vmem>>, vector<128x64xf32>,
    } else {
    }
    %c0 = arith.constant 0 : index
    %c0_1 = arith.constant 0 : index
    %3 = vector.load %arg7[%c0, %c0_1] : memref<128x64xf32, #tpu.memory_space<vmem>>, vector<128x64xf32>
    %c0_2 = arith.constant 0 : index
    %c0_3 = arith.constant 0 : index
    %4 = vector.load %arg3[%c0_2, %c0_3] : memref<128x64xbf16, #tpu.memory_space<vmem>>, vector<128x64xbf16>
    %c0_4 = arith.constant 0 : index
    %c0_5 = arith.constant 0 : index
    %5 = vector.load %arg4[%c0_4, %c0_5] : memref<64x64xbf16, #tpu.memory_space<vmem>>, vector<64x64xbf16>
    %cst = arith.constant dense<0.000000e+00> : vector<128x64xf32>
    %6 = tpu.matmul %4, %5, %cst {dimension_numbers = #tpu.dot_dimension_numbers<[1], [0], [0], [1], [0, 0, 1, 1], [], []>} : vector<128x64xbf16>, vector<64x64xbf16>, vector<128x64xf32> -> vector<128x64xf32>
    %7 = arith.addf %3, %6 : vector<128x64xf32>
    %c0_6 = arith.constant 0 : index
    %c0_7 = arith.constant 0 : index
    %8 = vector.load %arg7[%c0_6, %c0_7] : memref<128x64xf32, #tpu.memory_space<vmem>>, vector<128x64xf32>
    tpu.vector_store %arg7[%c0_6, %c0_7], %7 {strides = array<i32>} : memref<128x64xf32, #tpu.memory_space<vmem>>, vector<128x64xf32>,
    %c0_i32_8 = arith.constant 0 : i32
    %9 = arith.cmpi eq, %arg2, %c0_i32_8 : i32
    %10 = arith.extui %9 : i1 to i32
    %c0_i32_9 = arith.constant 0 : i32
    %11 = arith.cmpi ne, %10, %c0_i32_9 : i32
    scf.if %11 {
      %c0_10 = arith.constant 0 : index
      %c0_11 = arith.constant 0 : index
      %12 = vector.load %arg7[%c0_10, %c0_11] : memref<128x64xf32, #tpu.memory_space<vmem>>, vector<128x64xf32>
      %c0_12 = arith.constant 0 : index
      %c0_13 = arith.constant 0 : index
      %13 = vector.load %arg5[%c0_12, %c0_13] : memref<1x64xf32, #tpu.memory_space<vmem>>, vector<1x64xf32>
      %14 = vector.broadcast %13 : vector<1x64xf32> to vector<128x64xf32>
      %15 = arith.addf %12, %14 : vector<128x64xf32>
      %c0_14 = arith.constant 0 : index
      %c0_15 = arith.constant 0 : index
      %16 = vector.load %arg6[%c0_14, %c0_15] : memref<128x64xf32, #tpu.memory_space<vmem>>, vector<128x64xf32>
      tpu.vector_store %arg6[%c0_14, %c0_15], %15 {strides = array<i32>} : memref<128x64xf32, #tpu.memory_space<vmem>>, vector<128x64xf32>,
    } else {
    }
    return
  }
  func.func @transform_0(%arg0: i32, %arg1: i32, %arg2: i32) -> (i32, i32) {
    %c0_i32 = arith.constant 0 : i32
    return %arg0, %arg2 : i32, i32
  }
  func.func @transform_1(%arg0: i32, %arg1: i32, %arg2: i32) -> (i32, i32) {
    %c0_i32 = arith.constant 0 : i32
    return %arg2, %arg1 : i32, i32
  }
  func.func @transform_2(%arg0: i32, %arg1: i32, %arg2: i32) -> (i32, i32) {
    %c0_i32 = arith.constant 0 : i32
    %c0_i32_0 = arith.constant 0 : i32
    return %c0_i32, %arg1 : i32, i32
  }
  func.func @transform_3(%arg0: i32, %arg1: i32, %arg2: i32) -> (i32, i32) {
    %c0_i32 = arith.constant 0 : i32
    return %arg0, %arg1 : i32, i32
  }
}

module attributes {stable_mosaic.version = 11 : i64} {
  func.func @_nystrom_attn_kernel(%arg0: i32, %arg1: memref<1x64x192xf32, #tpu.memory_space<vmem>>, %arg2: memref<2x7xf32, #tpu.memory_space<smem>>, %arg3: memref<1x64x64xf32, #tpu.memory_space<vmem>>) attributes {dimension_semantics = [#tpu.dimension_semantics<parallel>], iteration_bounds = array<i64: 2>, scalar_prefetch = 0 : i64, scratch_operands = 0 : i64, tpu.core_type = #tpu.core_type<tc>, window_params = [{transform_indices = @transform_0, window_bounds = array<i64: 1, 64, 192>}, {transform_indices = @transform_1, window_bounds = array<i64: 2, 7>}, {transform_indices = @transform_2, window_bounds = array<i64: 1, 64, 64>}]} {
    %0 = tpu.iota {dimensions = array<i32: 0>} : vector<16x64xi32>
    %1 = tpu.iota {dimensions = array<i32: 1>} : vector<16x64xi32>
    %c4_i32 = arith.constant 4 : i32
    %2 = vector.broadcast %c4_i32 : i32 to vector<16x64xi32>
    %3 = arith.muli %0, %2 : vector<16x64xi32>
    %4 = arith.cmpi sge, %1, %3 : vector<16x64xi32>
    %c1_i32 = arith.constant 1 : i32
    %5 = vector.broadcast %c1_i32 : i32 to vector<16x64xi32>
    %6 = arith.addi %0, %5 : vector<16x64xi32>
    %c4_i32_0 = arith.constant 4 : i32
    %7 = vector.broadcast %c4_i32_0 : i32 to vector<16x64xi32>
    %8 = arith.muli %6, %7 : vector<16x64xi32>
    %9 = arith.cmpi slt, %1, %8 : vector<16x64xi32>
    %10 = arith.andi %4, %9 : vector<16x64xi1>
    %cst = arith.constant 2.500000e-01 : f32
    %cst_1 = arith.constant 0.000000e+00 : f32
    %11 = vector.broadcast %cst : f32 to vector<16x64xf32>
    %12 = vector.broadcast %cst_1 : f32 to vector<16x64xf32>
    %13 = arith.select %10, %11, %12 : vector<16x64xi1>, vector<16x64xf32>
    %14 = tpu.iota {dimensions = array<i32: 0>} : vector<16x16xi32>
    %15 = tpu.iota {dimensions = array<i32: 1>} : vector<16x16xi32>
    %16 = arith.cmpi eq, %14, %15 : vector<16x16xi32>
    %17 = arith.extui %16 : vector<16x16xi1> to vector<16x16xi32>
    %18 = arith.sitofp %17 : vector<16x16xi32> to vector<16x16xf32>
    %19 = tpu.iota {dimensions = array<i32: 0>} : vector<64x32xi32>
    %c-3_i32 = arith.constant -3 : i32
    %20 = vector.broadcast %c-3_i32 : i32 to vector<64x32xi32>
    %21 = arith.addi %19, %20 : vector<64x32xi32>
    %c0_i32 = arith.constant 0 : i32
    %22 = vector.broadcast %c0_i32 : i32 to vector<64x32xi32>
    %23 = arith.cmpi sge, %21, %22 : vector<64x32xi32>
    %c-3_i32_2 = arith.constant -3 : i32
    %24 = vector.broadcast %c-3_i32_2 : i32 to vector<64x32xi32>
    %25 = arith.addi %19, %24 : vector<64x32xi32>
    %c64_i32 = arith.constant 64 : i32
    %26 = vector.broadcast %c64_i32 : i32 to vector<64x32xi32>
    %27 = arith.cmpi slt, %25, %26 : vector<64x32xi32>
    %28 = arith.andi %23, %27 : vector<64x32xi1>
    %c-2_i32 = arith.constant -2 : i32
    %29 = vector.broadcast %c-2_i32 : i32 to vector<64x32xi32>
    %30 = arith.addi %19, %29 : vector<64x32xi32>
    %c0_i32_3 = arith.constant 0 : i32
    %31 = vector.broadcast %c0_i32_3 : i32 to vector<64x32xi32>
    %32 = arith.cmpi sge, %30, %31 : vector<64x32xi32>
    %c-2_i32_4 = arith.constant -2 : i32
    %33 = vector.broadcast %c-2_i32_4 : i32 to vector<64x32xi32>
    %34 = arith.addi %19, %33 : vector<64x32xi32>
    %c64_i32_5 = arith.constant 64 : i32
    %35 = vector.broadcast %c64_i32_5 : i32 to vector<64x32xi32>
    %36 = arith.cmpi slt, %34, %35 : vector<64x32xi32>
    %37 = arith.andi %32, %36 : vector<64x32xi1>
    %c-1_i32 = arith.constant -1 : i32
    %38 = vector.broadcast %c-1_i32 : i32 to vector<64x32xi32>
    %39 = arith.addi %19, %38 : vector<64x32xi32>
    %c0_i32_6 = arith.constant 0 : i32
    %40 = vector.broadcast %c0_i32_6 : i32 to vector<64x32xi32>
    %41 = arith.cmpi sge, %39, %40 : vector<64x32xi32>
    %c-1_i32_7 = arith.constant -1 : i32
    %42 = vector.broadcast %c-1_i32_7 : i32 to vector<64x32xi32>
    %43 = arith.addi %19, %42 : vector<64x32xi32>
    %c64_i32_8 = arith.constant 64 : i32
    %44 = vector.broadcast %c64_i32_8 : i32 to vector<64x32xi32>
    %45 = arith.cmpi slt, %43, %44 : vector<64x32xi32>
    %46 = arith.andi %41, %45 : vector<64x32xi1>
    %c0_i32_9 = arith.constant 0 : i32
    %47 = vector.broadcast %c0_i32_9 : i32 to vector<64x32xi32>
    %48 = arith.addi %19, %47 : vector<64x32xi32>
    %c0_i32_10 = arith.constant 0 : i32
    %49 = vector.broadcast %c0_i32_10 : i32 to vector<64x32xi32>
    %50 = arith.cmpi sge, %48, %49 : vector<64x32xi32>
    %c0_i32_11 = arith.constant 0 : i32
    %51 = vector.broadcast %c0_i32_11 : i32 to vector<64x32xi32>
    %52 = arith.addi %19, %51 : vector<64x32xi32>
    %c64_i32_12 = arith.constant 64 : i32
    %53 = vector.broadcast %c64_i32_12 : i32 to vector<64x32xi32>
    %54 = arith.cmpi slt, %52, %53 : vector<64x32xi32>
    %55 = arith.andi %50, %54 : vector<64x32xi1>
    %c1_i32_13 = arith.constant 1 : i32
    %56 = vector.broadcast %c1_i32_13 : i32 to vector<64x32xi32>
    %57 = arith.addi %19, %56 : vector<64x32xi32>
    %c0_i32_14 = arith.constant 0 : i32
    %58 = vector.broadcast %c0_i32_14 : i32 to vector<64x32xi32>
    %59 = arith.cmpi sge, %57, %58 : vector<64x32xi32>
    %c1_i32_15 = arith.constant 1 : i32
    %60 = vector.broadcast %c1_i32_15 : i32 to vector<64x32xi32>
    %61 = arith.addi %19, %60 : vector<64x32xi32>
    %c64_i32_16 = arith.constant 64 : i32
    %62 = vector.broadcast %c64_i32_16 : i32 to vector<64x32xi32>
    %63 = arith.cmpi slt, %61, %62 : vector<64x32xi32>
    %64 = arith.andi %59, %63 : vector<64x32xi1>
    %c2_i32 = arith.constant 2 : i32
    %65 = vector.broadcast %c2_i32 : i32 to vector<64x32xi32>
    %66 = arith.addi %19, %65 : vector<64x32xi32>
    %c0_i32_17 = arith.constant 0 : i32
    %67 = vector.broadcast %c0_i32_17 : i32 to vector<64x32xi32>
    %68 = arith.cmpi sge, %66, %67 : vector<64x32xi32>
    %c2_i32_18 = arith.constant 2 : i32
    %69 = vector.broadcast %c2_i32_18 : i32 to vector<64x32xi32>
    %70 = arith.addi %19, %69 : vector<64x32xi32>
    %c64_i32_19 = arith.constant 64 : i32
    %71 = vector.broadcast %c64_i32_19 : i32 to vector<64x32xi32>
    %72 = arith.cmpi slt, %70, %71 : vector<64x32xi32>
    %73 = arith.andi %68, %72 : vector<64x32xi1>
    %c3_i32 = arith.constant 3 : i32
    %74 = vector.broadcast %c3_i32 : i32 to vector<64x32xi32>
    %75 = arith.addi %19, %74 : vector<64x32xi32>
    %c0_i32_20 = arith.constant 0 : i32
    %76 = vector.broadcast %c0_i32_20 : i32 to vector<64x32xi32>
    %77 = arith.cmpi sge, %75, %76 : vector<64x32xi32>
    %c3_i32_21 = arith.constant 3 : i32
    %78 = vector.broadcast %c3_i32_21 : i32 to vector<64x32xi32>
    %79 = arith.addi %19, %78 : vector<64x32xi32>
    %c64_i32_22 = arith.constant 64 : i32
    %80 = vector.broadcast %c64_i32_22 : i32 to vector<64x32xi32>
    %81 = arith.cmpi slt, %79, %80 : vector<64x32xi32>
    %82 = arith.andi %77, %81 : vector<64x32xi1>
    %c0 = arith.constant 0 : index
    %c0_23 = arith.constant 0 : index
    %c0_24 = arith.constant 0 : index
    %83 = vector.load %arg1[%c0, %c0_23, %c0_24] : memref<1x64x192xf32, #tpu.memory_space<vmem>>, vector<1x64x32xf32>
    %84 = vector.shape_cast %83 : vector<1x64x32xf32> to vector<64x32xf32>
    %cst_25 = arith.constant 0.176776692 : f32
    %85 = vector.broadcast %cst_25 : f32 to vector<64x32xf32>
    %86 = arith.mulf %84, %85 : vector<64x32xf32>
    %c0_26 = arith.constant 0 : index
    %c0_27 = arith.constant 0 : index
    %c64 = arith.constant 64 : index
    %87 = vector.load %arg1[%c0_26, %c0_27, %c64] : memref<1x64x192xf32, #tpu.memory_space<vmem>>, vector<1x64x32xf32>
    %88 = vector.shape_cast %87 : vector<1x64x32xf32> to vector<64x32xf32>
    %c0_28 = arith.constant 0 : index
    %c0_29 = arith.constant 0 : index
    %c128 = arith.constant 128 : index
    %89 = vector.load %arg1[%c0_28, %c0_29, %c128] : memref<1x64x192xf32, #tpu.memory_space<vmem>>, vector<1x64x32xf32>
    %90 = vector.shape_cast %89 : vector<1x64x32xf32> to vector<64x32xf32>
    %cst_30 = arith.constant dense<0.000000e+00> : vector<16x32xf32>
    %91 = tpu.matmul %13, %86, %cst_30 {dimension_numbers = #tpu.dot_dimension_numbers<[1], [0], [0], [1], [0, 0, 1, 1], [], []>} : vector<16x64xf32>, vector<64x32xf32>, vector<16x32xf32> -> vector<16x32xf32>
    %cst_31 = arith.constant dense<0.000000e+00> : vector<16x32xf32>
    %92 = tpu.matmul %13, %88, %cst_31 {dimension_numbers = #tpu.dot_dimension_numbers<[1], [0], [0], [1], [0, 0, 1, 1], [], []>} : vector<16x64xf32>, vector<64x32xf32>, vector<16x32xf32> -> vector<16x32xf32>
    %cst_32 = arith.constant dense<0.000000e+00> : vector<64x16xf32>
    %93 = tpu.matmul %86, %92, %cst_32 {dimension_numbers = #tpu.dot_dimension_numbers<[1], [1], [0], [0], [0, 0, 1, 0], [], []>} : vector<64x32xf32>, vector<16x32xf32>, vector<64x16xf32> -> vector<64x16xf32>
    %cst_33 = arith.constant dense<0xFF800000> : vector<64xf32>
    %94 = vector.multi_reduction <maximumf>, %93, %cst_33 [1] : vector<64x16xf32> to vector<64xf32>
    %95 = vector.shape_cast %94 : vector<64xf32> to vector<64x1xf32>
    %96 = vector.broadcast %95 : vector<64x1xf32> to vector<64x16xf32>
    %97 = arith.subf %93, %96 : vector<64x16xf32>
    %98 = math.exp %97 : vector<64x16xf32>
    %cst_34 = arith.constant dense<0.000000e+00> : vector<64xf32>
    %99 = vector.multi_reduction <add>, %98, %cst_34 [1] : vector<64x16xf32> to vector<64xf32>
    %100 = vector.shape_cast %99 : vector<64xf32> to vector<64x1xf32>
    %101 = tpu.reciprocal %100 {approx = true} : vector<64x1xf32> -> vector<64x1xf32>
    %102 = vector.broadcast %101 : vector<64x1xf32> to vector<64x16xf32>
    %103 = arith.mulf %98, %102 : vector<64x16xf32>
    %cst_35 = arith.constant dense<0.000000e+00> : vector<16x16xf32>
    %104 = tpu.matmul %91, %92, %cst_35 {dimension_numbers = #tpu.dot_dimension_numbers<[1], [1], [0], [0], [0, 0, 1, 0], [], []>} : vector<16x32xf32>, vector<16x32xf32>, vector<16x16xf32> -> vector<16x16xf32>
    %cst_36 = arith.constant dense<0xFF800000> : vector<16xf32>
    %105 = vector.multi_reduction <maximumf>, %104, %cst_36 [1] : vector<16x16xf32> to vector<16xf32>
    %106 = vector.shape_cast %105 : vector<16xf32> to vector<16x1xf32>
    %107 = vector.broadcast %106 : vector<16x1xf32> to vector<16x16xf32>
    %108 = arith.subf %104, %107 : vector<16x16xf32>
    %109 = math.exp %108 : vector<16x16xf32>
    %cst_37 = arith.constant dense<0.000000e+00> : vector<16xf32>
    %110 = vector.multi_reduction <add>, %109, %cst_37 [1] : vector<16x16xf32> to vector<16xf32>
    %111 = vector.shape_cast %110 : vector<16xf32> to vector<16x1xf32>
    %112 = tpu.reciprocal %111 {approx = true} : vector<16x1xf32> -> vector<16x1xf32>
    %113 = vector.broadcast %112 : vector<16x1xf32> to vector<16x16xf32>
    %114 = arith.mulf %109, %113 : vector<16x16xf32>
    %cst_38 = arith.constant dense<0.000000e+00> : vector<16x64xf32>
    %115 = tpu.matmul %91, %88, %cst_38 {dimension_numbers = #tpu.dot_dimension_numbers<[1], [1], [0], [0], [0, 0, 1, 0], [], []>} : vector<16x32xf32>, vector<64x32xf32>, vector<16x64xf32> -> vector<16x64xf32>
    %cst_39 = arith.constant dense<0xFF800000> : vector<16xf32>
    %116 = vector.multi_reduction <maximumf>, %115, %cst_39 [1] : vector<16x64xf32> to vector<16xf32>
    %117 = vector.shape_cast %116 : vector<16xf32> to vector<16x1xf32>
    %118 = vector.broadcast %117 : vector<16x1xf32> to vector<16x64xf32>
    %119 = arith.subf %115, %118 : vector<16x64xf32>
    %120 = math.exp %119 : vector<16x64xf32>
    %cst_40 = arith.constant dense<0.000000e+00> : vector<16xf32>
    %121 = vector.multi_reduction <add>, %120, %cst_40 [1] : vector<16x64xf32> to vector<16xf32>
    %122 = vector.shape_cast %121 : vector<16xf32> to vector<16x1xf32>
    %123 = tpu.reciprocal %122 {approx = true} : vector<16x1xf32> -> vector<16x1xf32>
    %124 = vector.broadcast %123 : vector<16x1xf32> to vector<16x64xf32>
    %125 = arith.mulf %120, %124 : vector<16x64xf32>
    %126 = math.absf %114 : vector<16x16xf32>
    %cst_41 = arith.constant dense<0.000000e+00> : vector<16xf32>
    %127 = vector.multi_reduction <add>, %126, %cst_41 [1] : vector<16x16xf32> to vector<16xf32>
    %128 = vector.shape_cast %127 : vector<16xf32> to vector<16x1xf32>
    %129 = vector.shape_cast %128 : vector<16x1xf32> to vector<1x16x1xf32>
    %cst_42 = arith.constant dense<0xFF800000> : vector<1xf32>
    %130 = vector.multi_reduction <maximumf>, %129, %cst_42 [1, 2] : vector<1x16x1xf32> to vector<1xf32>
    %131 = vector.shape_cast %130 : vector<1xf32> to vector<1x1x1xf32>
    %132 = vector.extract %131[0, 0, 0] : f32 from vector<1x1x1xf32>
    %cst_43 = arith.constant dense<0.000000e+00> : vector<16xf32>
    %133 = vector.multi_reduction <add>, %126, %cst_43 [0] : vector<16x16xf32> to vector<16xf32>
    %134 = vector.shape_cast %133 : vector<16xf32> to vector<1x16xf32>
    %135 = vector.shape_cast %134 : vector<1x16xf32> to vector<1x1x16xf32>
    %cst_44 = arith.constant dense<0xFF800000> : vector<1xf32>
    %136 = vector.multi_reduction <maximumf>, %135, %cst_44 [1, 2] : vector<1x1x16xf32> to vector<1xf32>
    %137 = vector.shape_cast %136 : vector<1xf32> to vector<1x1x1xf32>
    %138 = vector.extract %137[0, 0, 0] : f32 from vector<1x1x1xf32>
    %139 = arith.mulf %132, %138 : f32
    %140 = tpu.transpose %114, [1, 0] : vector<16x16xf32> -> vector<16x16xf32>
    %141 = vector.broadcast %139 : f32 to vector<16x16xf32>
    %142 = arith.divf %140, %141 : vector<16x16xf32>
    %cst_45 = arith.constant dense<0.000000e+00> : vector<16x16xf32>
    %143 = tpu.matmul %114, %142, %cst_45 {dimension_numbers = #tpu.dot_dimension_numbers<[1], [0], [0], [1], [0, 0, 1, 1], [], []>} : vector<16x16xf32>, vector<16x16xf32>, vector<16x16xf32> -> vector<16x16xf32>
    %cst_46 = arith.constant 1.100000e+01 : f32
    %144 = vector.broadcast %cst_46 : f32 to vector<16x16xf32>
    %145 = arith.mulf %144, %18 : vector<16x16xf32>
    %146 = arith.subf %145, %143 : vector<16x16xf32>
    %cst_47 = arith.constant 1.500000e+01 : f32
    %147 = vector.broadcast %cst_47 : f32 to vector<16x16xf32>
    %148 = arith.mulf %147, %18 : vector<16x16xf32>
    %cst_48 = arith.constant dense<0.000000e+00> : vector<16x16xf32>
    %149 = tpu.matmul %143, %146, %cst_48 {dimension_numbers = #tpu.dot_dimension_numbers<[1], [0], [0], [1], [0, 0, 1, 1], [], []>} : vector<16x16xf32>, vector<16x16xf32>, vector<16x16xf32> -> vector<16x16xf32>
    %150 = arith.subf %148, %149 : vector<16x16xf32>
    %cst_49 = arith.constant 1.300000e+01 : f32
    %151 = vector.broadcast %cst_49 : f32 to vector<16x16xf32>
    %152 = arith.mulf %151, %18 : vector<16x16xf32>
    %cst_50 = arith.constant dense<0.000000e+00> : vector<16x16xf32>
    %153 = tpu.matmul %143, %150, %cst_50 {dimension_numbers = #tpu.dot_dimension_numbers<[1], [0], [0], [1], [0, 0, 1, 1], [], []>} : vector<16x16xf32>, vector<16x16xf32>, vector<16x16xf32> -> vector<16x16xf32>
    %154 = arith.subf %152, %153 : vector<16x16xf32>
    %cst_51 = arith.constant dense<0.000000e+00> : vector<16x16xf32>
    %155 = tpu.matmul %142, %154, %cst_51 {dimension_numbers = #tpu.dot_dimension_numbers<[1], [0], [0], [1], [0, 0, 1, 1], [], []>} : vector<16x16xf32>, vector<16x16xf32>, vector<16x16xf32> -> vector<16x16xf32>
    %cst_52 = arith.constant 2.500000e-01 : f32
    %156 = vector.broadcast %cst_52 : f32 to vector<16x16xf32>
    %157 = arith.mulf %156, %155 : vector<16x16xf32>
    %cst_53 = arith.constant dense<0.000000e+00> : vector<16x16xf32>
    %158 = tpu.matmul %114, %157, %cst_53 {dimension_numbers = #tpu.dot_dimension_numbers<[1], [0], [0], [1], [0, 0, 1, 1], [], []>} : vector<16x16xf32>, vector<16x16xf32>, vector<16x16xf32> -> vector<16x16xf32>
    %cst_54 = arith.constant 1.100000e+01 : f32
    %159 = vector.broadcast %cst_54 : f32 to vector<16x16xf32>
    %160 = arith.mulf %159, %18 : vector<16x16xf32>
    %161 = arith.subf %160, %158 : vector<16x16xf32>
    %cst_55 = arith.constant 1.500000e+01 : f32
    %162 = vector.broadcast %cst_55 : f32 to vector<16x16xf32>
    %163 = arith.mulf %162, %18 : vector<16x16xf32>
    %cst_56 = arith.constant dense<0.000000e+00> : vector<16x16xf32>
    %164 = tpu.matmul %158, %161, %cst_56 {dimension_numbers = #tpu.dot_dimension_numbers<[1], [0], [0], [1], [0, 0, 1, 1], [], []>} : vector<16x16xf32>, vector<16x16xf32>, vector<16x16xf32> -> vector<16x16xf32>
    %165 = arith.subf %163, %164 : vector<16x16xf32>
    %cst_57 = arith.constant 1.300000e+01 : f32
    %166 = vector.broadcast %cst_57 : f32 to vector<16x16xf32>
    %167 = arith.mulf %166, %18 : vector<16x16xf32>
    %cst_58 = arith.constant dense<0.000000e+00> : vector<16x16xf32>
    %168 = tpu.matmul %158, %165, %cst_58 {dimension_numbers = #tpu.dot_dimension_numbers<[1], [0], [0], [1], [0, 0, 1, 1], [], []>} : vector<16x16xf32>, vector<16x16xf32>, vector<16x16xf32> -> vector<16x16xf32>
    %169 = arith.subf %167, %168 : vector<16x16xf32>
    %cst_59 = arith.constant dense<0.000000e+00> : vector<16x16xf32>
    %170 = tpu.matmul %157, %169, %cst_59 {dimension_numbers = #tpu.dot_dimension_numbers<[1], [0], [0], [1], [0, 0, 1, 1], [], []>} : vector<16x16xf32>, vector<16x16xf32>, vector<16x16xf32> -> vector<16x16xf32>
    %cst_60 = arith.constant 2.500000e-01 : f32
    %171 = vector.broadcast %cst_60 : f32 to vector<16x16xf32>
    %172 = arith.mulf %171, %170 : vector<16x16xf32>
    %cst_61 = arith.constant dense<0.000000e+00> : vector<16x16xf32>
    %173 = tpu.matmul %114, %172, %cst_61 {dimension_numbers = #tpu.dot_dimension_numbers<[1], [0], [0], [1], [0, 0, 1, 1], [], []>} : vector<16x16xf32>, vector<16x16xf32>, vector<16x16xf32> -> vector<16x16xf32>
    %cst_62 = arith.constant 1.100000e+01 : f32
    %174 = vector.broadcast %cst_62 : f32 to vector<16x16xf32>
    %175 = arith.mulf %174, %18 : vector<16x16xf32>
    %176 = arith.subf %175, %173 : vector<16x16xf32>
    %cst_63 = arith.constant 1.500000e+01 : f32
    %177 = vector.broadcast %cst_63 : f32 to vector<16x16xf32>
    %178 = arith.mulf %177, %18 : vector<16x16xf32>
    %cst_64 = arith.constant dense<0.000000e+00> : vector<16x16xf32>
    %179 = tpu.matmul %173, %176, %cst_64 {dimension_numbers = #tpu.dot_dimension_numbers<[1], [0], [0], [1], [0, 0, 1, 1], [], []>} : vector<16x16xf32>, vector<16x16xf32>, vector<16x16xf32> -> vector<16x16xf32>
    %180 = arith.subf %178, %179 : vector<16x16xf32>
    %cst_65 = arith.constant 1.300000e+01 : f32
    %181 = vector.broadcast %cst_65 : f32 to vector<16x16xf32>
    %182 = arith.mulf %181, %18 : vector<16x16xf32>
    %cst_66 = arith.constant dense<0.000000e+00> : vector<16x16xf32>
    %183 = tpu.matmul %173, %180, %cst_66 {dimension_numbers = #tpu.dot_dimension_numbers<[1], [0], [0], [1], [0, 0, 1, 1], [], []>} : vector<16x16xf32>, vector<16x16xf32>, vector<16x16xf32> -> vector<16x16xf32>
    %184 = arith.subf %182, %183 : vector<16x16xf32>
    %cst_67 = arith.constant dense<0.000000e+00> : vector<16x16xf32>
    %185 = tpu.matmul %172, %184, %cst_67 {dimension_numbers = #tpu.dot_dimension_numbers<[1], [0], [0], [1], [0, 0, 1, 1], [], []>} : vector<16x16xf32>, vector<16x16xf32>, vector<16x16xf32> -> vector<16x16xf32>
    %cst_68 = arith.constant 2.500000e-01 : f32
    %186 = vector.broadcast %cst_68 : f32 to vector<16x16xf32>
    %187 = arith.mulf %186, %185 : vector<16x16xf32>
    %cst_69 = arith.constant dense<0.000000e+00> : vector<16x16xf32>
    %188 = tpu.matmul %114, %187, %cst_69 {dimension_numbers = #tpu.dot_dimension_numbers<[1], [0], [0], [1], [0, 0, 1, 1], [], []>} : vector<16x16xf32>, vector<16x16xf32>, vector<16x16xf32> -> vector<16x16xf32>
    %cst_70 = arith.constant 1.100000e+01 : f32
    %189 = vector.broadcast %cst_70 : f32 to vector<16x16xf32>
    %190 = arith.mulf %189, %18 : vector<16x16xf32>
    %191 = arith.subf %190, %188 : vector<16x16xf32>
    %cst_71 = arith.constant 1.500000e+01 : f32
    %192 = vector.broadcast %cst_71 : f32 to vector<16x16xf32>
    %193 = arith.mulf %192, %18 : vector<16x16xf32>
    %cst_72 = arith.constant dense<0.000000e+00> : vector<16x16xf32>
    %194 = tpu.matmul %188, %191, %cst_72 {dimension_numbers = #tpu.dot_dimension_numbers<[1], [0], [0], [1], [0, 0, 1, 1], [], []>} : vector<16x16xf32>, vector<16x16xf32>, vector<16x16xf32> -> vector<16x16xf32>
    %195 = arith.subf %193, %194 : vector<16x16xf32>
    %cst_73 = arith.constant 1.300000e+01 : f32
    %196 = vector.broadcast %cst_73 : f32 to vector<16x16xf32>
    %197 = arith.mulf %196, %18 : vector<16x16xf32>
    %cst_74 = arith.constant dense<0.000000e+00> : vector<16x16xf32>
    %198 = tpu.matmul %188, %195, %cst_74 {dimension_numbers = #tpu.dot_dimension_numbers<[1], [0], [0], [1], [0, 0, 1, 1], [], []>} : vector<16x16xf32>, vector<16x16xf32>, vector<16x16xf32> -> vector<16x16xf32>
    %199 = arith.subf %197, %198 : vector<16x16xf32>
    %cst_75 = arith.constant dense<0.000000e+00> : vector<16x16xf32>
    %200 = tpu.matmul %187, %199, %cst_75 {dimension_numbers = #tpu.dot_dimension_numbers<[1], [0], [0], [1], [0, 0, 1, 1], [], []>} : vector<16x16xf32>, vector<16x16xf32>, vector<16x16xf32> -> vector<16x16xf32>
    %cst_76 = arith.constant 2.500000e-01 : f32
    %201 = vector.broadcast %cst_76 : f32 to vector<16x16xf32>
    %202 = arith.mulf %201, %200 : vector<16x16xf32>
    %cst_77 = arith.constant dense<0.000000e+00> : vector<16x16xf32>
    %203 = tpu.matmul %114, %202, %cst_77 {dimension_numbers = #tpu.dot_dimension_numbers<[1], [0], [0], [1], [0, 0, 1, 1], [], []>} : vector<16x16xf32>, vector<16x16xf32>, vector<16x16xf32> -> vector<16x16xf32>
    %cst_78 = arith.constant 1.100000e+01 : f32
    %204 = vector.broadcast %cst_78 : f32 to vector<16x16xf32>
    %205 = arith.mulf %204, %18 : vector<16x16xf32>
    %206 = arith.subf %205, %203 : vector<16x16xf32>
    %cst_79 = arith.constant 1.500000e+01 : f32
    %207 = vector.broadcast %cst_79 : f32 to vector<16x16xf32>
    %208 = arith.mulf %207, %18 : vector<16x16xf32>
    %cst_80 = arith.constant dense<0.000000e+00> : vector<16x16xf32>
    %209 = tpu.matmul %203, %206, %cst_80 {dimension_numbers = #tpu.dot_dimension_numbers<[1], [0], [0], [1], [0, 0, 1, 1], [], []>} : vector<16x16xf32>, vector<16x16xf32>, vector<16x16xf32> -> vector<16x16xf32>
    %210 = arith.subf %208, %209 : vector<16x16xf32>
    %cst_81 = arith.constant 1.300000e+01 : f32
    %211 = vector.broadcast %cst_81 : f32 to vector<16x16xf32>
    %212 = arith.mulf %211, %18 : vector<16x16xf32>
    %cst_82 = arith.constant dense<0.000000e+00> : vector<16x16xf32>
    %213 = tpu.matmul %203, %210, %cst_82 {dimension_numbers = #tpu.dot_dimension_numbers<[1], [0], [0], [1], [0, 0, 1, 1], [], []>} : vector<16x16xf32>, vector<16x16xf32>, vector<16x16xf32> -> vector<16x16xf32>
    %214 = arith.subf %212, %213 : vector<16x16xf32>
    %cst_83 = arith.constant dense<0.000000e+00> : vector<16x16xf32>
    %215 = tpu.matmul %202, %214, %cst_83 {dimension_numbers = #tpu.dot_dimension_numbers<[1], [0], [0], [1], [0, 0, 1, 1], [], []>} : vector<16x16xf32>, vector<16x16xf32>, vector<16x16xf32> -> vector<16x16xf32>
    %cst_84 = arith.constant 2.500000e-01 : f32
    %216 = vector.broadcast %cst_84 : f32 to vector<16x16xf32>
    %217 = arith.mulf %216, %215 : vector<16x16xf32>
    %cst_85 = arith.constant dense<0.000000e+00> : vector<16x16xf32>
    %218 = tpu.matmul %114, %217, %cst_85 {dimension_numbers = #tpu.dot_dimension_numbers<[1], [0], [0], [1], [0, 0, 1, 1], [], []>} : vector<16x16xf32>, vector<16x16xf32>, vector<16x16xf32> -> vector<16x16xf32>
    %cst_86 = arith.constant 1.100000e+01 : f32
    %219 = vector.broadcast %cst_86 : f32 to vector<16x16xf32>
    %220 = arith.mulf %219, %18 : vector<16x16xf32>
    %221 = arith.subf %220, %218 : vector<16x16xf32>
    %cst_87 = arith.constant 1.500000e+01 : f32
    %222 = vector.broadcast %cst_87 : f32 to vector<16x16xf32>
    %223 = arith.mulf %222, %18 : vector<16x16xf32>
    %cst_88 = arith.constant dense<0.000000e+00> : vector<16x16xf32>
    %224 = tpu.matmul %218, %221, %cst_88 {dimension_numbers = #tpu.dot_dimension_numbers<[1], [0], [0], [1], [0, 0, 1, 1], [], []>} : vector<16x16xf32>, vector<16x16xf32>, vector<16x16xf32> -> vector<16x16xf32>
    %225 = arith.subf %223, %224 : vector<16x16xf32>
    %cst_89 = arith.constant 1.300000e+01 : f32
    %226 = vector.broadcast %cst_89 : f32 to vector<16x16xf32>
    %227 = arith.mulf %226, %18 : vector<16x16xf32>
    %cst_90 = arith.constant dense<0.000000e+00> : vector<16x16xf32>
    %228 = tpu.matmul %218, %225, %cst_90 {dimension_numbers = #tpu.dot_dimension_numbers<[1], [0], [0], [1], [0, 0, 1, 1], [], []>} : vector<16x16xf32>, vector<16x16xf32>, vector<16x16xf32> -> vector<16x16xf32>
    %229 = arith.subf %227, %228 : vector<16x16xf32>
    %cst_91 = arith.constant dense<0.000000e+00> : vector<16x16xf32>
    %230 = tpu.matmul %217, %229, %cst_91 {dimension_numbers = #tpu.dot_dimension_numbers<[1], [0], [0], [1], [0, 0, 1, 1], [], []>} : vector<16x16xf32>, vector<16x16xf32>, vector<16x16xf32> -> vector<16x16xf32>
    %cst_92 = arith.constant 2.500000e-01 : f32
    %231 = vector.broadcast %cst_92 : f32 to vector<16x16xf32>
    %232 = arith.mulf %231, %230 : vector<16x16xf32>
    %cst_93 = arith.constant dense<0.000000e+00> : vector<16x32xf32>
    %233 = tpu.matmul %125, %90, %cst_93 {dimension_numbers = #tpu.dot_dimension_numbers<[1], [0], [0], [1], [0, 0, 1, 1], [], []>} : vector<16x64xf32>, vector<64x32xf32>, vector<16x32xf32> -> vector<16x32xf32>
    %cst_94 = arith.constant dense<0.000000e+00> : vector<16x32xf32>
    %234 = tpu.matmul %232, %233, %cst_94 {dimension_numbers = #tpu.dot_dimension_numbers<[1], [0], [0], [1], [0, 0, 1, 1], [], []>} : vector<16x16xf32>, vector<16x32xf32>, vector<16x32xf32> -> vector<16x32xf32>
    %cst_95 = arith.constant dense<0.000000e+00> : vector<64x32xf32>
    %235 = tpu.matmul %103, %234, %cst_95 {dimension_numbers = #tpu.dot_dimension_numbers<[1], [0], [0], [1], [0, 0, 1, 1], [], []>} : vector<64x16xf32>, vector<16x32xf32>, vector<64x32xf32> -> vector<64x32xf32>
    %cst_96 = arith.constant 0.000000e+00 : f32
    %236 = vector.broadcast %cst_96 : f32 to vector<64x32xf32>
    %c0_97 = arith.constant 0 : index
    %c0_98 = arith.constant 0 : index
    %237 = memref.load %arg2[%c0_97, %c0_98] : memref<2x7xf32, #tpu.memory_space<smem>>
    %c3_i32_99 = arith.constant 3 : i32
    %238 = tpu.dynamic_rotate %90 by %c3_i32_99 dim 0 : vector<64x32xf32>, i32 -> vector<64x32xf32>
    %239 = vector.broadcast %237 : f32 to vector<64x32xf32>
    %240 = arith.mulf %238, %239 : vector<64x32xf32>
    %cst_100 = arith.constant 0.000000e+00 : f32
    %241 = vector.broadcast %cst_100 : f32 to vector<64x32xf32>
    %242 = arith.select %28, %240, %241 : vector<64x32xi1>, vector<64x32xf32>
    %243 = arith.addf %236, %242 : vector<64x32xf32>
    %c0_101 = arith.constant 0 : index
    %c1 = arith.constant 1 : index
    %244 = memref.load %arg2[%c0_101, %c1] : memref<2x7xf32, #tpu.memory_space<smem>>
    %c2_i32_102 = arith.constant 2 : i32
    %245 = tpu.dynamic_rotate %90 by %c2_i32_102 dim 0 : vector<64x32xf32>, i32 -> vector<64x32xf32>
    %246 = vector.broadcast %244 : f32 to vector<64x32xf32>
    %247 = arith.mulf %245, %246 : vector<64x32xf32>
    %cst_103 = arith.constant 0.000000e+00 : f32
    %248 = vector.broadcast %cst_103 : f32 to vector<64x32xf32>
    %249 = arith.select %37, %247, %248 : vector<64x32xi1>, vector<64x32xf32>
    %250 = arith.addf %243, %249 : vector<64x32xf32>
    %c0_104 = arith.constant 0 : index
    %c2 = arith.constant 2 : index
    %251 = memref.load %arg2[%c0_104, %c2] : memref<2x7xf32, #tpu.memory_space<smem>>
    %c1_i32_105 = arith.constant 1 : i32
    %252 = tpu.dynamic_rotate %90 by %c1_i32_105 dim 0 : vector<64x32xf32>, i32 -> vector<64x32xf32>
    %253 = vector.broadcast %251 : f32 to vector<64x32xf32>
    %254 = arith.mulf %252, %253 : vector<64x32xf32>
    %cst_106 = arith.constant 0.000000e+00 : f32
    %255 = vector.broadcast %cst_106 : f32 to vector<64x32xf32>
    %256 = arith.select %46, %254, %255 : vector<64x32xi1>, vector<64x32xf32>
    %257 = arith.addf %250, %256 : vector<64x32xf32>
    %c0_107 = arith.constant 0 : index
    %c3 = arith.constant 3 : index
    %258 = memref.load %arg2[%c0_107, %c3] : memref<2x7xf32, #tpu.memory_space<smem>>
    %c0_i32_108 = arith.constant 0 : i32
    %259 = tpu.dynamic_rotate %90 by %c0_i32_108 dim 0 : vector<64x32xf32>, i32 -> vector<64x32xf32>
    %260 = vector.broadcast %258 : f32 to vector<64x32xf32>
    %261 = arith.mulf %259, %260 : vector<64x32xf32>
    %cst_109 = arith.constant 0.000000e+00 : f32
    %262 = vector.broadcast %cst_109 : f32 to vector<64x32xf32>
    %263 = arith.select %55, %261, %262 : vector<64x32xi1>, vector<64x32xf32>
    %264 = arith.addf %257, %263 : vector<64x32xf32>
    %c0_110 = arith.constant 0 : index
    %c4 = arith.constant 4 : index
    %265 = memref.load %arg2[%c0_110, %c4] : memref<2x7xf32, #tpu.memory_space<smem>>
    %c63_i32 = arith.constant 63 : i32
    %266 = tpu.dynamic_rotate %90 by %c63_i32 dim 0 : vector<64x32xf32>, i32 -> vector<64x32xf32>
    %267 = vector.broadcast %265 : f32 to vector<64x32xf32>
    %268 = arith.mulf %266, %267 : vector<64x32xf32>
    %cst_111 = arith.constant 0.000000e+00 : f32
    %269 = vector.broadcast %cst_111 : f32 to vector<64x32xf32>
    %270 = arith.select %64, %268, %269 : vector<64x32xi1>, vector<64x32xf32>
    %271 = arith.addf %264, %270 : vector<64x32xf32>
    %c0_112 = arith.constant 0 : index
    %c5 = arith.constant 5 : index
    %272 = memref.load %arg2[%c0_112, %c5] : memref<2x7xf32, #tpu.memory_space<smem>>
    %c62_i32 = arith.constant 62 : i32
    %273 = tpu.dynamic_rotate %90 by %c62_i32 dim 0 : vector<64x32xf32>, i32 -> vector<64x32xf32>
    %274 = vector.broadcast %272 : f32 to vector<64x32xf32>
    %275 = arith.mulf %273, %274 : vector<64x32xf32>
    %cst_113 = arith.constant 0.000000e+00 : f32
    %276 = vector.broadcast %cst_113 : f32 to vector<64x32xf32>
    %277 = arith.select %73, %275, %276 : vector<64x32xi1>, vector<64x32xf32>
    %278 = arith.addf %271, %277 : vector<64x32xf32>
    %c0_114 = arith.constant 0 : index
    %c6 = arith.constant 6 : index
    %279 = memref.load %arg2[%c0_114, %c6] : memref<2x7xf32, #tpu.memory_space<smem>>
    %c61_i32 = arith.constant 61 : i32
    %280 = tpu.dynamic_rotate %90 by %c61_i32 dim 0 : vector<64x32xf32>, i32 -> vector<64x32xf32>
    %281 = vector.broadcast %279 : f32 to vector<64x32xf32>
    %282 = arith.mulf %280, %281 : vector<64x32xf32>
    %cst_115 = arith.constant 0.000000e+00 : f32
    %283 = vector.broadcast %cst_115 : f32 to vector<64x32xf32>
    %284 = arith.select %82, %282, %283 : vector<64x32xi1>, vector<64x32xf32>
    %285 = arith.addf %278, %284 : vector<64x32xf32>
    %286 = arith.addf %235, %285 : vector<64x32xf32>
    %c0_116 = arith.constant 0 : index
    %c0_117 = arith.constant 0 : index
    %c32 = arith.constant 32 : index
    %287 = vector.load %arg1[%c0_116, %c0_117, %c32] : memref<1x64x192xf32, #tpu.memory_space<vmem>>, vector<1x64x32xf32>
    %288 = vector.shape_cast %287 : vector<1x64x32xf32> to vector<64x32xf32>
    %cst_118 = arith.constant 0.176776692 : f32
    %289 = vector.broadcast %cst_118 : f32 to vector<64x32xf32>
    %290 = arith.mulf %288, %289 : vector<64x32xf32>
    %c0_119 = arith.constant 0 : index
    %c0_120 = arith.constant 0 : index
    %c96 = arith.constant 96 : index
    %291 = vector.load %arg1[%c0_119, %c0_120, %c96] : memref<1x64x192xf32, #tpu.memory_space<vmem>>, vector<1x64x32xf32>
    %292 = vector.shape_cast %291 : vector<1x64x32xf32> to vector<64x32xf32>
    %c0_121 = arith.constant 0 : index
    %c0_122 = arith.constant 0 : index
    %c160 = arith.constant 160 : index
    %293 = vector.load %arg1[%c0_121, %c0_122, %c160] : memref<1x64x192xf32, #tpu.memory_space<vmem>>, vector<1x64x32xf32>
    %294 = vector.shape_cast %293 : vector<1x64x32xf32> to vector<64x32xf32>
    %cst_123 = arith.constant dense<0.000000e+00> : vector<16x32xf32>
    %295 = tpu.matmul %13, %290, %cst_123 {dimension_numbers = #tpu.dot_dimension_numbers<[1], [0], [0], [1], [0, 0, 1, 1], [], []>} : vector<16x64xf32>, vector<64x32xf32>, vector<16x32xf32> -> vector<16x32xf32>
    %cst_124 = arith.constant dense<0.000000e+00> : vector<16x32xf32>
    %296 = tpu.matmul %13, %292, %cst_124 {dimension_numbers = #tpu.dot_dimension_numbers<[1], [0], [0], [1], [0, 0, 1, 1], [], []>} : vector<16x64xf32>, vector<64x32xf32>, vector<16x32xf32> -> vector<16x32xf32>
    %cst_125 = arith.constant dense<0.000000e+00> : vector<64x16xf32>
    %297 = tpu.matmul %290, %296, %cst_125 {dimension_numbers = #tpu.dot_dimension_numbers<[1], [1], [0], [0], [0, 0, 1, 0], [], []>} : vector<64x32xf32>, vector<16x32xf32>, vector<64x16xf32> -> vector<64x16xf32>
    %cst_126 = arith.constant dense<0xFF800000> : vector<64xf32>
    %298 = vector.multi_reduction <maximumf>, %297, %cst_126 [1] : vector<64x16xf32> to vector<64xf32>
    %299 = vector.shape_cast %298 : vector<64xf32> to vector<64x1xf32>
    %300 = vector.broadcast %299 : vector<64x1xf32> to vector<64x16xf32>
    %301 = arith.subf %297, %300 : vector<64x16xf32>
    %302 = math.exp %301 : vector<64x16xf32>
    %cst_127 = arith.constant dense<0.000000e+00> : vector<64xf32>
    %303 = vector.multi_reduction <add>, %302, %cst_127 [1] : vector<64x16xf32> to vector<64xf32>
    %304 = vector.shape_cast %303 : vector<64xf32> to vector<64x1xf32>
    %305 = tpu.reciprocal %304 {approx = true} : vector<64x1xf32> -> vector<64x1xf32>
    %306 = vector.broadcast %305 : vector<64x1xf32> to vector<64x16xf32>
    %307 = arith.mulf %302, %306 : vector<64x16xf32>
    %cst_128 = arith.constant dense<0.000000e+00> : vector<16x16xf32>
    %308 = tpu.matmul %295, %296, %cst_128 {dimension_numbers = #tpu.dot_dimension_numbers<[1], [1], [0], [0], [0, 0, 1, 0], [], []>} : vector<16x32xf32>, vector<16x32xf32>, vector<16x16xf32> -> vector<16x16xf32>
    %cst_129 = arith.constant dense<0xFF800000> : vector<16xf32>
    %309 = vector.multi_reduction <maximumf>, %308, %cst_129 [1] : vector<16x16xf32> to vector<16xf32>
    %310 = vector.shape_cast %309 : vector<16xf32> to vector<16x1xf32>
    %311 = vector.broadcast %310 : vector<16x1xf32> to vector<16x16xf32>
    %312 = arith.subf %308, %311 : vector<16x16xf32>
    %313 = math.exp %312 : vector<16x16xf32>
    %cst_130 = arith.constant dense<0.000000e+00> : vector<16xf32>
    %314 = vector.multi_reduction <add>, %313, %cst_130 [1] : vector<16x16xf32> to vector<16xf32>
    %315 = vector.shape_cast %314 : vector<16xf32> to vector<16x1xf32>
    %316 = tpu.reciprocal %315 {approx = true} : vector<16x1xf32> -> vector<16x1xf32>
    %317 = vector.broadcast %316 : vector<16x1xf32> to vector<16x16xf32>
    %318 = arith.mulf %313, %317 : vector<16x16xf32>
    %cst_131 = arith.constant dense<0.000000e+00> : vector<16x64xf32>
    %319 = tpu.matmul %295, %292, %cst_131 {dimension_numbers = #tpu.dot_dimension_numbers<[1], [1], [0], [0], [0, 0, 1, 0], [], []>} : vector<16x32xf32>, vector<64x32xf32>, vector<16x64xf32> -> vector<16x64xf32>
    %cst_132 = arith.constant dense<0xFF800000> : vector<16xf32>
    %320 = vector.multi_reduction <maximumf>, %319, %cst_132 [1] : vector<16x64xf32> to vector<16xf32>
    %321 = vector.shape_cast %320 : vector<16xf32> to vector<16x1xf32>
    %322 = vector.broadcast %321 : vector<16x1xf32> to vector<16x64xf32>
    %323 = arith.subf %319, %322 : vector<16x64xf32>
    %324 = math.exp %323 : vector<16x64xf32>
    %cst_133 = arith.constant dense<0.000000e+00> : vector<16xf32>
    %325 = vector.multi_reduction <add>, %324, %cst_133 [1] : vector<16x64xf32> to vector<16xf32>
    %326 = vector.shape_cast %325 : vector<16xf32> to vector<16x1xf32>
    %327 = tpu.reciprocal %326 {approx = true} : vector<16x1xf32> -> vector<16x1xf32>
    %328 = vector.broadcast %327 : vector<16x1xf32> to vector<16x64xf32>
    %329 = arith.mulf %324, %328 : vector<16x64xf32>
    %330 = math.absf %318 : vector<16x16xf32>
    %cst_134 = arith.constant dense<0.000000e+00> : vector<16xf32>
    %331 = vector.multi_reduction <add>, %330, %cst_134 [1] : vector<16x16xf32> to vector<16xf32>
    %332 = vector.shape_cast %331 : vector<16xf32> to vector<16x1xf32>
    %333 = vector.shape_cast %332 : vector<16x1xf32> to vector<1x16x1xf32>
    %cst_135 = arith.constant dense<0xFF800000> : vector<1xf32>
    %334 = vector.multi_reduction <maximumf>, %333, %cst_135 [1, 2] : vector<1x16x1xf32> to vector<1xf32>
    %335 = vector.shape_cast %334 : vector<1xf32> to vector<1x1x1xf32>
    %336 = vector.extract %335[0, 0, 0] : f32 from vector<1x1x1xf32>
    %cst_136 = arith.constant dense<0.000000e+00> : vector<16xf32>
    %337 = vector.multi_reduction <add>, %330, %cst_136 [0] : vector<16x16xf32> to vector<16xf32>
    %338 = vector.shape_cast %337 : vector<16xf32> to vector<1x16xf32>
    %339 = vector.shape_cast %338 : vector<1x16xf32> to vector<1x1x16xf32>
    %cst_137 = arith.constant dense<0xFF800000> : vector<1xf32>
    %340 = vector.multi_reduction <maximumf>, %339, %cst_137 [1, 2] : vector<1x1x16xf32> to vector<1xf32>
    %341 = vector.shape_cast %340 : vector<1xf32> to vector<1x1x1xf32>
    %342 = vector.extract %341[0, 0, 0] : f32 from vector<1x1x1xf32>
    %343 = arith.mulf %336, %342 : f32
    %344 = tpu.transpose %318, [1, 0] : vector<16x16xf32> -> vector<16x16xf32>
    %345 = vector.broadcast %343 : f32 to vector<16x16xf32>
    %346 = arith.divf %344, %345 : vector<16x16xf32>
    %cst_138 = arith.constant dense<0.000000e+00> : vector<16x16xf32>
    %347 = tpu.matmul %318, %346, %cst_138 {dimension_numbers = #tpu.dot_dimension_numbers<[1], [0], [0], [1], [0, 0, 1, 1], [], []>} : vector<16x16xf32>, vector<16x16xf32>, vector<16x16xf32> -> vector<16x16xf32>
    %cst_139 = arith.constant 1.100000e+01 : f32
    %348 = vector.broadcast %cst_139 : f32 to vector<16x16xf32>
    %349 = arith.mulf %348, %18 : vector<16x16xf32>
    %350 = arith.subf %349, %347 : vector<16x16xf32>
    %cst_140 = arith.constant 1.500000e+01 : f32
    %351 = vector.broadcast %cst_140 : f32 to vector<16x16xf32>
    %352 = arith.mulf %351, %18 : vector<16x16xf32>
    %cst_141 = arith.constant dense<0.000000e+00> : vector<16x16xf32>
    %353 = tpu.matmul %347, %350, %cst_141 {dimension_numbers = #tpu.dot_dimension_numbers<[1], [0], [0], [1], [0, 0, 1, 1], [], []>} : vector<16x16xf32>, vector<16x16xf32>, vector<16x16xf32> -> vector<16x16xf32>
    %354 = arith.subf %352, %353 : vector<16x16xf32>
    %cst_142 = arith.constant 1.300000e+01 : f32
    %355 = vector.broadcast %cst_142 : f32 to vector<16x16xf32>
    %356 = arith.mulf %355, %18 : vector<16x16xf32>
    %cst_143 = arith.constant dense<0.000000e+00> : vector<16x16xf32>
    %357 = tpu.matmul %347, %354, %cst_143 {dimension_numbers = #tpu.dot_dimension_numbers<[1], [0], [0], [1], [0, 0, 1, 1], [], []>} : vector<16x16xf32>, vector<16x16xf32>, vector<16x16xf32> -> vector<16x16xf32>
    %358 = arith.subf %356, %357 : vector<16x16xf32>
    %cst_144 = arith.constant dense<0.000000e+00> : vector<16x16xf32>
    %359 = tpu.matmul %346, %358, %cst_144 {dimension_numbers = #tpu.dot_dimension_numbers<[1], [0], [0], [1], [0, 0, 1, 1], [], []>} : vector<16x16xf32>, vector<16x16xf32>, vector<16x16xf32> -> vector<16x16xf32>
    %cst_145 = arith.constant 2.500000e-01 : f32
    %360 = vector.broadcast %cst_145 : f32 to vector<16x16xf32>
    %361 = arith.mulf %360, %359 : vector<16x16xf32>
    %cst_146 = arith.constant dense<0.000000e+00> : vector<16x16xf32>
    %362 = tpu.matmul %318, %361, %cst_146 {dimension_numbers = #tpu.dot_dimension_numbers<[1], [0], [0], [1], [0, 0, 1, 1], [], []>} : vector<16x16xf32>, vector<16x16xf32>, vector<16x16xf32> -> vector<16x16xf32>
    %cst_147 = arith.constant 1.100000e+01 : f32
    %363 = vector.broadcast %cst_147 : f32 to vector<16x16xf32>
    %364 = arith.mulf %363, %18 : vector<16x16xf32>
    %365 = arith.subf %364, %362 : vector<16x16xf32>
    %cst_148 = arith.constant 1.500000e+01 : f32
    %366 = vector.broadcast %cst_148 : f32 to vector<16x16xf32>
    %367 = arith.mulf %366, %18 : vector<16x16xf32>
    %cst_149 = arith.constant dense<0.000000e+00> : vector<16x16xf32>
    %368 = tpu.matmul %362, %365, %cst_149 {dimension_numbers = #tpu.dot_dimension_numbers<[1], [0], [0], [1], [0, 0, 1, 1], [], []>} : vector<16x16xf32>, vector<16x16xf32>, vector<16x16xf32> -> vector<16x16xf32>
    %369 = arith.subf %367, %368 : vector<16x16xf32>
    %cst_150 = arith.constant 1.300000e+01 : f32
    %370 = vector.broadcast %cst_150 : f32 to vector<16x16xf32>
    %371 = arith.mulf %370, %18 : vector<16x16xf32>
    %cst_151 = arith.constant dense<0.000000e+00> : vector<16x16xf32>
    %372 = tpu.matmul %362, %369, %cst_151 {dimension_numbers = #tpu.dot_dimension_numbers<[1], [0], [0], [1], [0, 0, 1, 1], [], []>} : vector<16x16xf32>, vector<16x16xf32>, vector<16x16xf32> -> vector<16x16xf32>
    %373 = arith.subf %371, %372 : vector<16x16xf32>
    %cst_152 = arith.constant dense<0.000000e+00> : vector<16x16xf32>
    %374 = tpu.matmul %361, %373, %cst_152 {dimension_numbers = #tpu.dot_dimension_numbers<[1], [0], [0], [1], [0, 0, 1, 1], [], []>} : vector<16x16xf32>, vector<16x16xf32>, vector<16x16xf32> -> vector<16x16xf32>
    %cst_153 = arith.constant 2.500000e-01 : f32
    %375 = vector.broadcast %cst_153 : f32 to vector<16x16xf32>
    %376 = arith.mulf %375, %374 : vector<16x16xf32>
    %cst_154 = arith.constant dense<0.000000e+00> : vector<16x16xf32>
    %377 = tpu.matmul %318, %376, %cst_154 {dimension_numbers = #tpu.dot_dimension_numbers<[1], [0], [0], [1], [0, 0, 1, 1], [], []>} : vector<16x16xf32>, vector<16x16xf32>, vector<16x16xf32> -> vector<16x16xf32>
    %cst_155 = arith.constant 1.100000e+01 : f32
    %378 = vector.broadcast %cst_155 : f32 to vector<16x16xf32>
    %379 = arith.mulf %378, %18 : vector<16x16xf32>
    %380 = arith.subf %379, %377 : vector<16x16xf32>
    %cst_156 = arith.constant 1.500000e+01 : f32
    %381 = vector.broadcast %cst_156 : f32 to vector<16x16xf32>
    %382 = arith.mulf %381, %18 : vector<16x16xf32>
    %cst_157 = arith.constant dense<0.000000e+00> : vector<16x16xf32>
    %383 = tpu.matmul %377, %380, %cst_157 {dimension_numbers = #tpu.dot_dimension_numbers<[1], [0], [0], [1], [0, 0, 1, 1], [], []>} : vector<16x16xf32>, vector<16x16xf32>, vector<16x16xf32> -> vector<16x16xf32>
    %384 = arith.subf %382, %383 : vector<16x16xf32>
    %cst_158 = arith.constant 1.300000e+01 : f32
    %385 = vector.broadcast %cst_158 : f32 to vector<16x16xf32>
    %386 = arith.mulf %385, %18 : vector<16x16xf32>
    %cst_159 = arith.constant dense<0.000000e+00> : vector<16x16xf32>
    %387 = tpu.matmul %377, %384, %cst_159 {dimension_numbers = #tpu.dot_dimension_numbers<[1], [0], [0], [1], [0, 0, 1, 1], [], []>} : vector<16x16xf32>, vector<16x16xf32>, vector<16x16xf32> -> vector<16x16xf32>
    %388 = arith.subf %386, %387 : vector<16x16xf32>
    %cst_160 = arith.constant dense<0.000000e+00> : vector<16x16xf32>
    %389 = tpu.matmul %376, %388, %cst_160 {dimension_numbers = #tpu.dot_dimension_numbers<[1], [0], [0], [1], [0, 0, 1, 1], [], []>} : vector<16x16xf32>, vector<16x16xf32>, vector<16x16xf32> -> vector<16x16xf32>
    %cst_161 = arith.constant 2.500000e-01 : f32
    %390 = vector.broadcast %cst_161 : f32 to vector<16x16xf32>
    %391 = arith.mulf %390, %389 : vector<16x16xf32>
    %cst_162 = arith.constant dense<0.000000e+00> : vector<16x16xf32>
    %392 = tpu.matmul %318, %391, %cst_162 {dimension_numbers = #tpu.dot_dimension_numbers<[1], [0], [0], [1], [0, 0, 1, 1], [], []>} : vector<16x16xf32>, vector<16x16xf32>, vector<16x16xf32> -> vector<16x16xf32>
    %cst_163 = arith.constant 1.100000e+01 : f32
    %393 = vector.broadcast %cst_163 : f32 to vector<16x16xf32>
    %394 = arith.mulf %393, %18 : vector<16x16xf32>
    %395 = arith.subf %394, %392 : vector<16x16xf32>
    %cst_164 = arith.constant 1.500000e+01 : f32
    %396 = vector.broadcast %cst_164 : f32 to vector<16x16xf32>
    %397 = arith.mulf %396, %18 : vector<16x16xf32>
    %cst_165 = arith.constant dense<0.000000e+00> : vector<16x16xf32>
    %398 = tpu.matmul %392, %395, %cst_165 {dimension_numbers = #tpu.dot_dimension_numbers<[1], [0], [0], [1], [0, 0, 1, 1], [], []>} : vector<16x16xf32>, vector<16x16xf32>, vector<16x16xf32> -> vector<16x16xf32>
    %399 = arith.subf %397, %398 : vector<16x16xf32>
    %cst_166 = arith.constant 1.300000e+01 : f32
    %400 = vector.broadcast %cst_166 : f32 to vector<16x16xf32>
    %401 = arith.mulf %400, %18 : vector<16x16xf32>
    %cst_167 = arith.constant dense<0.000000e+00> : vector<16x16xf32>
    %402 = tpu.matmul %392, %399, %cst_167 {dimension_numbers = #tpu.dot_dimension_numbers<[1], [0], [0], [1], [0, 0, 1, 1], [], []>} : vector<16x16xf32>, vector<16x16xf32>, vector<16x16xf32> -> vector<16x16xf32>
    %403 = arith.subf %401, %402 : vector<16x16xf32>
    %cst_168 = arith.constant dense<0.000000e+00> : vector<16x16xf32>
    %404 = tpu.matmul %391, %403, %cst_168 {dimension_numbers = #tpu.dot_dimension_numbers<[1], [0], [0], [1], [0, 0, 1, 1], [], []>} : vector<16x16xf32>, vector<16x16xf32>, vector<16x16xf32> -> vector<16x16xf32>
    %cst_169 = arith.constant 2.500000e-01 : f32
    %405 = vector.broadcast %cst_169 : f32 to vector<16x16xf32>
    %406 = arith.mulf %405, %404 : vector<16x16xf32>
    %cst_170 = arith.constant dense<0.000000e+00> : vector<16x16xf32>
    %407 = tpu.matmul %318, %406, %cst_170 {dimension_numbers = #tpu.dot_dimension_numbers<[1], [0], [0], [1], [0, 0, 1, 1], [], []>} : vector<16x16xf32>, vector<16x16xf32>, vector<16x16xf32> -> vector<16x16xf32>
    %cst_171 = arith.constant 1.100000e+01 : f32
    %408 = vector.broadcast %cst_171 : f32 to vector<16x16xf32>
    %409 = arith.mulf %408, %18 : vector<16x16xf32>
    %410 = arith.subf %409, %407 : vector<16x16xf32>
    %cst_172 = arith.constant 1.500000e+01 : f32
    %411 = vector.broadcast %cst_172 : f32 to vector<16x16xf32>
    %412 = arith.mulf %411, %18 : vector<16x16xf32>
    %cst_173 = arith.constant dense<0.000000e+00> : vector<16x16xf32>
    %413 = tpu.matmul %407, %410, %cst_173 {dimension_numbers = #tpu.dot_dimension_numbers<[1], [0], [0], [1], [0, 0, 1, 1], [], []>} : vector<16x16xf32>, vector<16x16xf32>, vector<16x16xf32> -> vector<16x16xf32>
    %414 = arith.subf %412, %413 : vector<16x16xf32>
    %cst_174 = arith.constant 1.300000e+01 : f32
    %415 = vector.broadcast %cst_174 : f32 to vector<16x16xf32>
    %416 = arith.mulf %415, %18 : vector<16x16xf32>
    %cst_175 = arith.constant dense<0.000000e+00> : vector<16x16xf32>
    %417 = tpu.matmul %407, %414, %cst_175 {dimension_numbers = #tpu.dot_dimension_numbers<[1], [0], [0], [1], [0, 0, 1, 1], [], []>} : vector<16x16xf32>, vector<16x16xf32>, vector<16x16xf32> -> vector<16x16xf32>
    %418 = arith.subf %416, %417 : vector<16x16xf32>
    %cst_176 = arith.constant dense<0.000000e+00> : vector<16x16xf32>
    %419 = tpu.matmul %406, %418, %cst_176 {dimension_numbers = #tpu.dot_dimension_numbers<[1], [0], [0], [1], [0, 0, 1, 1], [], []>} : vector<16x16xf32>, vector<16x16xf32>, vector<16x16xf32> -> vector<16x16xf32>
    %cst_177 = arith.constant 2.500000e-01 : f32
    %420 = vector.broadcast %cst_177 : f32 to vector<16x16xf32>
    %421 = arith.mulf %420, %419 : vector<16x16xf32>
    %cst_178 = arith.constant dense<0.000000e+00> : vector<16x16xf32>
    %422 = tpu.matmul %318, %421, %cst_178 {dimension_numbers = #tpu.dot_dimension_numbers<[1], [0], [0], [1], [0, 0, 1, 1], [], []>} : vector<16x16xf32>, vector<16x16xf32>, vector<16x16xf32> -> vector<16x16xf32>
    %cst_179 = arith.constant 1.100000e+01 : f32
    %423 = vector.broadcast %cst_179 : f32 to vector<16x16xf32>
    %424 = arith.mulf %423, %18 : vector<16x16xf32>
    %425 = arith.subf %424, %422 : vector<16x16xf32>
    %cst_180 = arith.constant 1.500000e+01 : f32
    %426 = vector.broadcast %cst_180 : f32 to vector<16x16xf32>
    %427 = arith.mulf %426, %18 : vector<16x16xf32>
    %cst_181 = arith.constant dense<0.000000e+00> : vector<16x16xf32>
    %428 = tpu.matmul %422, %425, %cst_181 {dimension_numbers = #tpu.dot_dimension_numbers<[1], [0], [0], [1], [0, 0, 1, 1], [], []>} : vector<16x16xf32>, vector<16x16xf32>, vector<16x16xf32> -> vector<16x16xf32>
    %429 = arith.subf %427, %428 : vector<16x16xf32>
    %cst_182 = arith.constant 1.300000e+01 : f32
    %430 = vector.broadcast %cst_182 : f32 to vector<16x16xf32>
    %431 = arith.mulf %430, %18 : vector<16x16xf32>
    %cst_183 = arith.constant dense<0.000000e+00> : vector<16x16xf32>
    %432 = tpu.matmul %422, %429, %cst_183 {dimension_numbers = #tpu.dot_dimension_numbers<[1], [0], [0], [1], [0, 0, 1, 1], [], []>} : vector<16x16xf32>, vector<16x16xf32>, vector<16x16xf32> -> vector<16x16xf32>
    %433 = arith.subf %431, %432 : vector<16x16xf32>
    %cst_184 = arith.constant dense<0.000000e+00> : vector<16x16xf32>
    %434 = tpu.matmul %421, %433, %cst_184 {dimension_numbers = #tpu.dot_dimension_numbers<[1], [0], [0], [1], [0, 0, 1, 1], [], []>} : vector<16x16xf32>, vector<16x16xf32>, vector<16x16xf32> -> vector<16x16xf32>
    %cst_185 = arith.constant 2.500000e-01 : f32
    %435 = vector.broadcast %cst_185 : f32 to vector<16x16xf32>
    %436 = arith.mulf %435, %434 : vector<16x16xf32>
    %cst_186 = arith.constant dense<0.000000e+00> : vector<16x32xf32>
    %437 = tpu.matmul %329, %294, %cst_186 {dimension_numbers = #tpu.dot_dimension_numbers<[1], [0], [0], [1], [0, 0, 1, 1], [], []>} : vector<16x64xf32>, vector<64x32xf32>, vector<16x32xf32> -> vector<16x32xf32>
    %cst_187 = arith.constant dense<0.000000e+00> : vector<16x32xf32>
    %438 = tpu.matmul %436, %437, %cst_187 {dimension_numbers = #tpu.dot_dimension_numbers<[1], [0], [0], [1], [0, 0, 1, 1], [], []>} : vector<16x16xf32>, vector<16x32xf32>, vector<16x32xf32> -> vector<16x32xf32>
    %cst_188 = arith.constant dense<0.000000e+00> : vector<64x32xf32>
    %439 = tpu.matmul %307, %438, %cst_188 {dimension_numbers = #tpu.dot_dimension_numbers<[1], [0], [0], [1], [0, 0, 1, 1], [], []>} : vector<64x16xf32>, vector<16x32xf32>, vector<64x32xf32> -> vector<64x32xf32>
    %cst_189 = arith.constant 0.000000e+00 : f32
    %440 = vector.broadcast %cst_189 : f32 to vector<64x32xf32>
    %c1_190 = arith.constant 1 : index
    %c0_191 = arith.constant 0 : index
    %441 = memref.load %arg2[%c1_190, %c0_191] : memref<2x7xf32, #tpu.memory_space<smem>>
    %c3_i32_192 = arith.constant 3 : i32
    %442 = tpu.dynamic_rotate %294 by %c3_i32_192 dim 0 : vector<64x32xf32>, i32 -> vector<64x32xf32>
    %443 = vector.broadcast %441 : f32 to vector<64x32xf32>
    %444 = arith.mulf %442, %443 : vector<64x32xf32>
    %cst_193 = arith.constant 0.000000e+00 : f32
    %445 = vector.broadcast %cst_193 : f32 to vector<64x32xf32>
    %446 = arith.select %28, %444, %445 : vector<64x32xi1>, vector<64x32xf32>
    %447 = arith.addf %440, %446 : vector<64x32xf32>
    %c1_194 = arith.constant 1 : index
    %c1_195 = arith.constant 1 : index
    %448 = memref.load %arg2[%c1_194, %c1_195] : memref<2x7xf32, #tpu.memory_space<smem>>
    %c2_i32_196 = arith.constant 2 : i32
    %449 = tpu.dynamic_rotate %294 by %c2_i32_196 dim 0 : vector<64x32xf32>, i32 -> vector<64x32xf32>
    %450 = vector.broadcast %448 : f32 to vector<64x32xf32>
    %451 = arith.mulf %449, %450 : vector<64x32xf32>
    %cst_197 = arith.constant 0.000000e+00 : f32
    %452 = vector.broadcast %cst_197 : f32 to vector<64x32xf32>
    %453 = arith.select %37, %451, %452 : vector<64x32xi1>, vector<64x32xf32>
    %454 = arith.addf %447, %453 : vector<64x32xf32>
    %c1_198 = arith.constant 1 : index
    %c2_199 = arith.constant 2 : index
    %455 = memref.load %arg2[%c1_198, %c2_199] : memref<2x7xf32, #tpu.memory_space<smem>>
    %c1_i32_200 = arith.constant 1 : i32
    %456 = tpu.dynamic_rotate %294 by %c1_i32_200 dim 0 : vector<64x32xf32>, i32 -> vector<64x32xf32>
    %457 = vector.broadcast %455 : f32 to vector<64x32xf32>
    %458 = arith.mulf %456, %457 : vector<64x32xf32>
    %cst_201 = arith.constant 0.000000e+00 : f32
    %459 = vector.broadcast %cst_201 : f32 to vector<64x32xf32>
    %460 = arith.select %46, %458, %459 : vector<64x32xi1>, vector<64x32xf32>
    %461 = arith.addf %454, %460 : vector<64x32xf32>
    %c1_202 = arith.constant 1 : index
    %c3_203 = arith.constant 3 : index
    %462 = memref.load %arg2[%c1_202, %c3_203] : memref<2x7xf32, #tpu.memory_space<smem>>
    %c0_i32_204 = arith.constant 0 : i32
    %463 = tpu.dynamic_rotate %294 by %c0_i32_204 dim 0 : vector<64x32xf32>, i32 -> vector<64x32xf32>
    %464 = vector.broadcast %462 : f32 to vector<64x32xf32>
    %465 = arith.mulf %463, %464 : vector<64x32xf32>
    %cst_205 = arith.constant 0.000000e+00 : f32
    %466 = vector.broadcast %cst_205 : f32 to vector<64x32xf32>
    %467 = arith.select %55, %465, %466 : vector<64x32xi1>, vector<64x32xf32>
    %468 = arith.addf %461, %467 : vector<64x32xf32>
    %c1_206 = arith.constant 1 : index
    %c4_207 = arith.constant 4 : index
    %469 = memref.load %arg2[%c1_206, %c4_207] : memref<2x7xf32, #tpu.memory_space<smem>>
    %c63_i32_208 = arith.constant 63 : i32
    %470 = tpu.dynamic_rotate %294 by %c63_i32_208 dim 0 : vector<64x32xf32>, i32 -> vector<64x32xf32>
    %471 = vector.broadcast %469 : f32 to vector<64x32xf32>
    %472 = arith.mulf %470, %471 : vector<64x32xf32>
    %cst_209 = arith.constant 0.000000e+00 : f32
    %473 = vector.broadcast %cst_209 : f32 to vector<64x32xf32>
    %474 = arith.select %64, %472, %473 : vector<64x32xi1>, vector<64x32xf32>
    %475 = arith.addf %468, %474 : vector<64x32xf32>
    %c1_210 = arith.constant 1 : index
    %c5_211 = arith.constant 5 : index
    %476 = memref.load %arg2[%c1_210, %c5_211] : memref<2x7xf32, #tpu.memory_space<smem>>
    %c62_i32_212 = arith.constant 62 : i32
    %477 = tpu.dynamic_rotate %294 by %c62_i32_212 dim 0 : vector<64x32xf32>, i32 -> vector<64x32xf32>
    %478 = vector.broadcast %476 : f32 to vector<64x32xf32>
    %479 = arith.mulf %477, %478 : vector<64x32xf32>
    %cst_213 = arith.constant 0.000000e+00 : f32
    %480 = vector.broadcast %cst_213 : f32 to vector<64x32xf32>
    %481 = arith.select %73, %479, %480 : vector<64x32xi1>, vector<64x32xf32>
    %482 = arith.addf %475, %481 : vector<64x32xf32>
    %c1_214 = arith.constant 1 : index
    %c6_215 = arith.constant 6 : index
    %483 = memref.load %arg2[%c1_214, %c6_215] : memref<2x7xf32, #tpu.memory_space<smem>>
    %c61_i32_216 = arith.constant 61 : i32
    %484 = tpu.dynamic_rotate %294 by %c61_i32_216 dim 0 : vector<64x32xf32>, i32 -> vector<64x32xf32>
    %485 = vector.broadcast %483 : f32 to vector<64x32xf32>
    %486 = arith.mulf %484, %485 : vector<64x32xf32>
    %cst_217 = arith.constant 0.000000e+00 : f32
    %487 = vector.broadcast %cst_217 : f32 to vector<64x32xf32>
    %488 = arith.select %82, %486, %487 : vector<64x32xi1>, vector<64x32xf32>
    %489 = arith.addf %482, %488 : vector<64x32xf32>
    %490 = arith.addf %439, %489 : vector<64x32xf32>
    %491 = tpu.concatenate %286, %490 in 1 : vector<64x32xf32>, vector<64x32xf32> -> vector<64x64xf32>
    %c0_218 = arith.constant 0 : index
    %c0_219 = arith.constant 0 : index
    %c0_220 = arith.constant 0 : index
    %492 = vector.load %arg3[%c0_218, %c0_219, %c0_220] : memref<1x64x64xf32, #tpu.memory_space<vmem>>, vector<1x64x64xf32>
    %493 = vector.shape_cast %492 : vector<1x64x64xf32> to vector<64x64xf32>
    %494 = vector.shape_cast %491 : vector<64x64xf32> to vector<1x64x64xf32>
    tpu.vector_store %arg3[%c0_218, %c0_219, %c0_220], %494 {strides = array<i32>} : memref<1x64x64xf32, #tpu.memory_space<vmem>>, vector<1x64x64xf32>,
    return
  }
  func.func @transform_0(%arg0: i32) -> (i32, i32, i32) {
    %c0_i32 = arith.constant 0 : i32
    %c0_i32_0 = arith.constant 0 : i32
    %c0_i32_1 = arith.constant 0 : i32
    return %arg0, %c0_i32, %c0_i32_0 : i32, i32, i32
  }
  func.func @transform_1(%arg0: i32) -> (i32, i32) {
    %c0_i32 = arith.constant 0 : i32
    %c0_i32_0 = arith.constant 0 : i32
    %c0_i32_1 = arith.constant 0 : i32
    return %c0_i32, %c0_i32_0 : i32, i32
  }
  func.func @transform_2(%arg0: i32) -> (i32, i32, i32) {
    %c0_i32 = arith.constant 0 : i32
    %c0_i32_0 = arith.constant 0 : i32
    %c0_i32_1 = arith.constant 0 : i32
    return %arg0, %c0_i32, %c0_i32_0 : i32, i32, i32
  }
}

module attributes {stable_mosaic.version = 11 : i64} {
  func.func @_layernorm_kernel(%arg0: i32, %arg1: memref<128x64xf32, #tpu.memory_space<vmem>>, %arg2: memref<1x64xf32, #tpu.memory_space<vmem>>, %arg3: memref<1x64xf32, #tpu.memory_space<vmem>>, %arg4: memref<128x64xf32, #tpu.memory_space<vmem>>) attributes {dimension_semantics = [#tpu.dimension_semantics<parallel>], iteration_bounds = array<i64: 1>, scalar_prefetch = 0 : i64, scratch_operands = 0 : i64, tpu.core_type = #tpu.core_type<tc>, window_params = [{transform_indices = @transform_0, window_bounds = array<i64: 128, 64>}, {pipeline_mode = #tpu.pipeline_mode<synchronous>, transform_indices = @transform_1, window_bounds = array<i64: 1, 64>}, {pipeline_mode = #tpu.pipeline_mode<synchronous>, transform_indices = @transform_2, window_bounds = array<i64: 1, 64>}, {transform_indices = @transform_3, window_bounds = array<i64: 128, 64>}]} {
    %c0 = arith.constant 0 : index
    %c0_0 = arith.constant 0 : index
    %0 = vector.load %arg1[%c0, %c0_0] : memref<128x64xf32, #tpu.memory_space<vmem>>, vector<128x64xf32>
    %cst = arith.constant dense<0.000000e+00> : vector<128xf32>
    %1 = vector.multi_reduction <add>, %0, %cst [1] : vector<128x64xf32> to vector<128xf32>
    %2 = vector.shape_cast %1 : vector<128xf32> to vector<128x1xf32>
    %cst_1 = arith.constant 6.400000e+01 : f32
    %3 = vector.broadcast %cst_1 : f32 to vector<128x1xf32>
    %4 = arith.divf %2, %3 : vector<128x1xf32>
    %5 = vector.broadcast %4 : vector<128x1xf32> to vector<128x64xf32>
    %6 = arith.subf %0, %5 : vector<128x64xf32>
    %7 = arith.mulf %6, %6 : vector<128x64xf32>
    %cst_2 = arith.constant dense<0.000000e+00> : vector<128xf32>
    %8 = vector.multi_reduction <add>, %7, %cst_2 [1] : vector<128x64xf32> to vector<128xf32>
    %9 = vector.shape_cast %8 : vector<128xf32> to vector<128x1xf32>
    %cst_3 = arith.constant 6.400000e+01 : f32
    %10 = vector.broadcast %cst_3 : f32 to vector<128x1xf32>
    %11 = arith.divf %9, %10 : vector<128x1xf32>
    %cst_4 = arith.constant 9.99999974E-6 : f32
    %12 = vector.broadcast %cst_4 : f32 to vector<128x1xf32>
    %13 = arith.addf %11, %12 : vector<128x1xf32>
    %14 = math.rsqrt %13 : vector<128x1xf32>
    %15 = vector.broadcast %14 : vector<128x1xf32> to vector<128x64xf32>
    %16 = arith.mulf %6, %15 : vector<128x64xf32>
    %c0_5 = arith.constant 0 : index
    %c0_6 = arith.constant 0 : index
    %17 = vector.load %arg2[%c0_5, %c0_6] : memref<1x64xf32, #tpu.memory_space<vmem>>, vector<1x64xf32>
    %18 = vector.broadcast %17 : vector<1x64xf32> to vector<128x64xf32>
    %19 = arith.mulf %16, %18 : vector<128x64xf32>
    %c0_7 = arith.constant 0 : index
    %c0_8 = arith.constant 0 : index
    %20 = vector.load %arg3[%c0_7, %c0_8] : memref<1x64xf32, #tpu.memory_space<vmem>>, vector<1x64xf32>
    %21 = vector.broadcast %20 : vector<1x64xf32> to vector<128x64xf32>
    %22 = arith.addf %19, %21 : vector<128x64xf32>
    %c0_9 = arith.constant 0 : index
    %c0_10 = arith.constant 0 : index
    %23 = vector.load %arg4[%c0_9, %c0_10] : memref<128x64xf32, #tpu.memory_space<vmem>>, vector<128x64xf32>
    tpu.vector_store %arg4[%c0_9, %c0_10], %22 {strides = array<i32>} : memref<128x64xf32, #tpu.memory_space<vmem>>, vector<128x64xf32>,
    return
  }
  func.func @transform_0(%arg0: i32) -> (i32, i32) {
    %c0_i32 = arith.constant 0 : i32
    %c0_i32_0 = arith.constant 0 : i32
    return %arg0, %c0_i32 : i32, i32
  }
  func.func @transform_1(%arg0: i32) -> (i32, i32) {
    %c0_i32 = arith.constant 0 : i32
    %c0_i32_0 = arith.constant 0 : i32
    %c0_i32_1 = arith.constant 0 : i32
    return %c0_i32, %c0_i32_0 : i32, i32
  }
  func.func @transform_2(%arg0: i32) -> (i32, i32) {
    %c0_i32 = arith.constant 0 : i32
    %c0_i32_0 = arith.constant 0 : i32
    %c0_i32_1 = arith.constant 0 : i32
    return %c0_i32, %c0_i32_0 : i32, i32
  }
  func.func @transform_3(%arg0: i32) -> (i32, i32) {
    %c0_i32 = arith.constant 0 : i32
    %c0_i32_0 = arith.constant 0 : i32
    return %arg0, %c0_i32 : i32, i32
  }
}

module attributes {stable_mosaic.version = 11 : i64} {
  func.func @_matmul_kernel(%arg0: i32, %arg1: i32, %arg2: i32, %arg3: memref<128x64xbf16, #tpu.memory_space<vmem>>, %arg4: memref<64x64xbf16, #tpu.memory_space<vmem>>, %arg5: memref<1x64xf32, #tpu.memory_space<vmem>>, %arg6: memref<128x64xf32, #tpu.memory_space<vmem>>, %arg7: memref<128x64xf32, #tpu.memory_space<vmem>>) attributes {dimension_semantics = [#tpu.dimension_semantics<parallel>, #tpu.dimension_semantics<parallel>, #tpu.dimension_semantics<arbitrary>], iteration_bounds = array<i64: 1, 1, 1>, scalar_prefetch = 0 : i64, scratch_operands = 1 : i64, tpu.core_type = #tpu.core_type<tc>, window_params = [{transform_indices = @transform_0, window_bounds = array<i64: 128, 64>}, {transform_indices = @transform_1, window_bounds = array<i64: 64, 64>}, {transform_indices = @transform_2, window_bounds = array<i64: 1, 64>}, {transform_indices = @transform_3, window_bounds = array<i64: 128, 64>}]} {
    %c0_i32 = arith.constant 0 : i32
    %0 = arith.cmpi eq, %arg2, %c0_i32 : i32
    %1 = arith.extui %0 : i1 to i32
    %c0_i32_0 = arith.constant 0 : i32
    %2 = arith.cmpi ne, %1, %c0_i32_0 : i32
    scf.if %2 {
      %cst_10 = arith.constant 0.000000e+00 : f32
      %12 = vector.broadcast %cst_10 : f32 to vector<128x64xf32>
      %c0_11 = arith.constant 0 : index
      %c0_12 = arith.constant 0 : index
      %13 = vector.load %arg7[%c0_11, %c0_12] : memref<128x64xf32, #tpu.memory_space<vmem>>, vector<128x64xf32>
      tpu.vector_store %arg7[%c0_11, %c0_12], %12 {strides = array<i32>} : memref<128x64xf32, #tpu.memory_space<vmem>>, vector<128x64xf32>,
    } else {
    }
    %c0 = arith.constant 0 : index
    %c0_1 = arith.constant 0 : index
    %3 = vector.load %arg7[%c0, %c0_1] : memref<128x64xf32, #tpu.memory_space<vmem>>, vector<128x64xf32>
    %c0_2 = arith.constant 0 : index
    %c0_3 = arith.constant 0 : index
    %4 = vector.load %arg3[%c0_2, %c0_3] : memref<128x64xbf16, #tpu.memory_space<vmem>>, vector<128x64xbf16>
    %c0_4 = arith.constant 0 : index
    %c0_5 = arith.constant 0 : index
    %5 = vector.load %arg4[%c0_4, %c0_5] : memref<64x64xbf16, #tpu.memory_space<vmem>>, vector<64x64xbf16>
    %cst = arith.constant dense<0.000000e+00> : vector<128x64xf32>
    %6 = tpu.matmul %4, %5, %cst {dimension_numbers = #tpu.dot_dimension_numbers<[1], [0], [0], [1], [0, 0, 1, 1], [], []>} : vector<128x64xbf16>, vector<64x64xbf16>, vector<128x64xf32> -> vector<128x64xf32>
    %7 = arith.addf %3, %6 : vector<128x64xf32>
    %c0_6 = arith.constant 0 : index
    %c0_7 = arith.constant 0 : index
    %8 = vector.load %arg7[%c0_6, %c0_7] : memref<128x64xf32, #tpu.memory_space<vmem>>, vector<128x64xf32>
    tpu.vector_store %arg7[%c0_6, %c0_7], %7 {strides = array<i32>} : memref<128x64xf32, #tpu.memory_space<vmem>>, vector<128x64xf32>,
    %c0_i32_8 = arith.constant 0 : i32
    %9 = arith.cmpi eq, %arg2, %c0_i32_8 : i32
    %10 = arith.extui %9 : i1 to i32
    %c0_i32_9 = arith.constant 0 : i32
    %11 = arith.cmpi ne, %10, %c0_i32_9 : i32
    scf.if %11 {
      %c0_10 = arith.constant 0 : index
      %c0_11 = arith.constant 0 : index
      %12 = vector.load %arg7[%c0_10, %c0_11] : memref<128x64xf32, #tpu.memory_space<vmem>>, vector<128x64xf32>
      %c0_12 = arith.constant 0 : index
      %c0_13 = arith.constant 0 : index
      %13 = vector.load %arg5[%c0_12, %c0_13] : memref<1x64xf32, #tpu.memory_space<vmem>>, vector<1x64xf32>
      %14 = vector.broadcast %13 : vector<1x64xf32> to vector<128x64xf32>
      %15 = arith.addf %12, %14 : vector<128x64xf32>
      %cst_14 = arith.constant 5.000000e-01 : f32
      %16 = vector.broadcast %cst_14 : f32 to vector<128x64xf32>
      %17 = arith.mulf %16, %15 : vector<128x64xf32>
      %cst_15 = arith.constant 4.471500e-02 : f32
      %18 = vector.broadcast %cst_15 : f32 to vector<128x64xf32>
      %19 = arith.mulf %18, %15 : vector<128x64xf32>
      %20 = arith.mulf %19, %15 : vector<128x64xf32>
      %21 = arith.mulf %20, %15 : vector<128x64xf32>
      %22 = arith.addf %15, %21 : vector<128x64xf32>
      %cst_16 = arith.constant 0.797884583 : f32
      %23 = vector.broadcast %cst_16 : f32 to vector<128x64xf32>
      %24 = arith.mulf %23, %22 : vector<128x64xf32>
      %25 = math.tanh %24 : vector<128x64xf32>
      %cst_17 = arith.constant 1.000000e+00 : f32
      %26 = vector.broadcast %cst_17 : f32 to vector<128x64xf32>
      %27 = arith.addf %26, %25 : vector<128x64xf32>
      %28 = arith.mulf %17, %27 : vector<128x64xf32>
      %c0_18 = arith.constant 0 : index
      %c0_19 = arith.constant 0 : index
      %29 = vector.load %arg6[%c0_18, %c0_19] : memref<128x64xf32, #tpu.memory_space<vmem>>, vector<128x64xf32>
      tpu.vector_store %arg6[%c0_18, %c0_19], %28 {strides = array<i32>} : memref<128x64xf32, #tpu.memory_space<vmem>>, vector<128x64xf32>,
    } else {
    }
    return
  }
  func.func @transform_0(%arg0: i32, %arg1: i32, %arg2: i32) -> (i32, i32) {
    %c0_i32 = arith.constant 0 : i32
    return %arg0, %arg2 : i32, i32
  }
  func.func @transform_1(%arg0: i32, %arg1: i32, %arg2: i32) -> (i32, i32) {
    %c0_i32 = arith.constant 0 : i32
    return %arg2, %arg1 : i32, i32
  }
  func.func @transform_2(%arg0: i32, %arg1: i32, %arg2: i32) -> (i32, i32) {
    %c0_i32 = arith.constant 0 : i32
    %c0_i32_0 = arith.constant 0 : i32
    return %c0_i32, %arg1 : i32, i32
  }
  func.func @transform_3(%arg0: i32, %arg1: i32, %arg2: i32) -> (i32, i32) {
    %c0_i32 = arith.constant 0 : i32
    return %arg0, %arg1 : i32, i32
  }
}

</mosaic_0001>

<bundles_post_ra>
// kernel: nystromformer_forward.16
= control target key start
LH: loop header
LB: loop body
LE: loop exit
PB: predicated region body
PF: predicated region fallthrough
CT: control target
= control target key end

     0   :  { %8 = vsyncpa [#allocation3], 0  ;;  %s382_s12 = smov [#allocation2]   ;;  %s675_s0 = inlined_call_operand.hbm [shape: f32[128,64], index: 0, kind: input, shape index: {}]   ;;  %s676_s1 = inlined_call_operand.vmem [shape: f32[1,64], index: 1, kind: input, shape index: {}]   ;;  %s677_s2 = inlined_call_operand.vmem [shape: f32[1,64], index: 2, kind: input, shape index: {}]   ;;  %s678_s3 = inlined_call_operand.vmem [shape: f32[128,64], index: 3, kind: output, shape index: {}]  }
   0x1   :  { %s14_s13 = sshll.u32 %s382_s12, 4  ;;  %s358_s16 = scalar_lea.hbm %s675_s0, 2048  ;;  %s15_s13 = int_to_ptr.vmem [resolvable:$true] %s14_s13 }
   0x2   :  { %p359_p0 = scmp.ne.s32.totalorder %s675_s0, %s358_s16  ;;  %p362_p1 = scmp.lt.u32.totalorder %s358_s16, %s675_s0 }
   0x4   :  { %p364_p2 = pnand %p362_p1, %p359_p0 }
   0x6   :  { %367 = shalt.err (!%p364_p2)
}
   0x7   :  { %s368_s21 = scalar_lea.vmem %s15_s13, 2048  ;;  %p373_p4 = scmp.lt.s32.totalorder %s15_s13, %s15_s13 }
   0x8   :  { %p369_p3 = scmp.ne.s32.totalorder %s15_s13, %s368_s21  ;;  %p374_p5 = scmp.lt.s32.totalorder %s368_s21, %s368_s21 }
   0xa   :  { %p375_p6 = por %p374_p5, %p373_p4 }
   0xc   :  { %p376_p7 = pnand %p375_p6, %p369_p3 }
   0xe   :  { %379 = shalt.err (!%p376_p7)
}
   0xf   :  { %s383_s22 = smov 128   ;;  %s384_s23 = smov 8  }
  0x10   :  { %20 = dma.hbm_to_vmem [thread:$0]  %s675_s0, 2048, %s15_s13, [#allocation3], %s383_s22, %s383_s22, %s384_s23  }
  0x11   :  { %380 = dma.done.wait [#allocation3], 2048  }
  0x12   :  { %381 = vsyncadd [#allocation3], 4294965248  ;;  %vm44_vm0 = vcmask 523264   ;;  %v28_v0 = vld [vmem:[#allocation2] sm:$0xff]  ;;  %v30_v1 = vld [vmem:[#allocation2 + $0x10] sm:$0xff] }
  0x13   :  { %v29_v2 = vld [vmem:[#allocation2 + $0x8] sm:$0xff]  ;;  %v45_v3 = vsel %vm44_vm0, %v28_v0, 0.0  ;;  %v51_v4 = vsel %vm44_vm0, %v30_v1, 0.0  ;;  %v31_v5 = vld [vmem:[#allocation2 + $0x18] sm:$0xff]  ;;  %v32_v8 = vld [vmem:[#allocation2 + $0x20] sm:$0xff] }
  0x14   :  { %46 = vadd.xlane.f32.xlu0 %v45_v3  ;;  %52 = vadd.xlane.f32.xlu1 %v51_v4  ;;  %v48_v6 = vsel %vm44_vm0, %v29_v2, 0.0  ;;  %v54_v7 = vsel %vm44_vm0, %v31_v5, 0.0  ;;  %v33_v9 = vld [vmem:[#allocation2 + $0x28] sm:$0xff]  ;;  %v57_v10 = vsel %vm44_vm0, %v32_v8, 0.0  ;;  %v423_v12 = vld [vmem:[#allocation2 + $0x30] sm:$0xff]  ;;  %v425_v13 = vld [vmem:[#allocation2 + $0x38] sm:$0xff] }
  0x15   :  { %v60_v11 = vsel %vm44_vm0, %v33_v9, 0.0  ;;  %v63_v14 = vsel %vm44_vm0, %v423_v12, 0.0  ;;  %v66_v15 = vsel %vm44_vm0, %v425_v13, 0.0  ;;  %v431_v16 = vld [vmem:[#allocation2 + $0x40] sm:$0xff]  ;;  %v433_v17 = vld [vmem:[#allocation2 + $0x48] sm:$0xff]  ;;  %v439_v20 = vld [vmem:[#allocation2 + $0x50] sm:$0xff] }
  0x16   :  { %v69_v18 = vsel %vm44_vm0, %v431_v16, 0.0  ;;  %v72_v19 = vsel %vm44_vm0, %v433_v17, 0.0  ;;  %v441_v21 = vld [vmem:[#allocation2 + $0x58] sm:$0xff]  ;;  %v75_v22 = vsel %vm44_vm0, %v439_v20, 0.0  ;;  %v447_v24 = vld [vmem:[#allocation2 + $0x60] sm:$0xff]  ;;  %v449_v25 = vld [vmem:[#allocation2 + $0x68] sm:$0xff] }
  0x17   :  { %v78_v23 = vsel %vm44_vm0, %v441_v21, 0.0  ;;  %v81_v26 = vsel %vm44_vm0, %v447_v24, 0.0  ;;  %v84_v27 = vsel %vm44_vm0, %v449_v25, 0.0  ;;  %v455_v28 = vld [vmem:[#allocation2 + $0x70] sm:$0xff]  ;;  %v457_v29 = vld [vmem:[#allocation2 + $0x78] sm:$0xff] }
  0x18   :  { %49 = vadd.xlane.f32.xlu0 %v48_v6  ;;  %55 = vadd.xlane.f32.xlu1 %v54_v7  ;;  %v87_v30 = vsel %vm44_vm0, %v455_v28, 0.0  ;;  %v90_v31 = vsel %vm44_vm0, %v457_v29, 0.0 }
  0x1c   :  { %58 = vadd.xlane.f32.xlu0 %v57_v10  ;;  %61 = vadd.xlane.f32.xlu1 %v60_v11 }
  0x20   :  { %64 = vadd.xlane.f32.xlu0 %v63_v14  ;;  %67 = vadd.xlane.f32.xlu1 %v66_v15 }
  0x24   :  { %70 = vadd.xlane.f32.xlu0 %v69_v18  ;;  %73 = vadd.xlane.f32.xlu1 %v72_v19 }
  0x28   :  { %76 = vadd.xlane.f32.xlu0 %v75_v22  ;;  %79 = vadd.xlane.f32.xlu1 %v78_v23 }
  0x2c   :  { %82 = vadd.xlane.f32.xlu0 %v81_v26  ;;  %85 = vadd.xlane.f32.xlu1 %v84_v27 }
  0x30   :  { %88 = vadd.xlane.f32.xlu0 %v87_v30  ;;  %91 = vadd.xlane.f32.xlu1 %v90_v31 }
  0xa1   :  { %v47_v32 = vpop.xlane.xlu0 %46  ;;  %v53_v33 = vpop.xlane.xlu1 %52 }
  0xa2   :  { %v94_v34 = vmul.f32 0.015625, %v47_v32  ;;  %v96_v35 = vmul.f32 0.015625, %v53_v33 }
  0xa4   :  { %v463_v36 = vsub.f32 %v28_v0, %v94_v34  ;;  %v465_v37 = vsub.f32 %v30_v1, %v96_v35 }
  0xa5   :  { %v50_v38 = vpop.xlane.xlu0 %49  ;;  %v56_v39 = vpop.xlane.xlu1 %55 }
  0xa6   :  { %v95_v40 = vmul.f32 0.015625, %v50_v38  ;;  %v97_v41 = vmul.f32 0.015625, %v56_v39  ;;  %v126_v42 = vmul.f32 %v463_v36, %v463_v36  ;;  %v128_v43 = vmul.f32 %v465_v37, %v465_v37 }
  0xa8   :  { %v471_v44 = vsub.f32 %v29_v2, %v95_v40  ;;  %v473_v45 = vsub.f32 %v31_v5, %v97_v41  ;;  %v142_v46 = vsel %vm44_vm0, %v126_v42, 0.0  ;;  %v148_v49 = vsel %vm44_vm0, %v128_v43, 0.0 }
  0xa9   :  { %143 = vadd.xlane.f32.xlu0 %v142_v46  ;;  %v59_v47 = vpop.xlane.xlu0 %58  ;;  %v62_v48 = vpop.xlane.xlu1 %61 }
  0xaa   :  { %v98_v50 = vmul.f32 0.015625, %v59_v47  ;;  %v99_v51 = vmul.f32 0.015625, %v62_v48  ;;  %v127_v52 = vmul.f32 %v471_v44, %v471_v44  ;;  %v129_v53 = vmul.f32 %v473_v45, %v473_v45 }
  0xac   :  { %v481_v54 = vsub.f32 %v32_v8, %v98_v50  ;;  %v483_v55 = vsub.f32 %v33_v9, %v99_v51  ;;  %v145_v56 = vsel %vm44_vm0, %v127_v52, 0.0  ;;  %v151_v59 = vsel %vm44_vm0, %v129_v53, 0.0 }
  0xad   :  { %149 = vadd.xlane.f32.xlu0 %v148_v49  ;;  %146 = vadd.xlane.f32.xlu1 %v145_v56  ;;  %v65_v57 = vpop.xlane.xlu0 %64  ;;  %v68_v58 = vpop.xlane.xlu1 %67 }
  0xae   :  { %v100_v60 = vmul.f32 0.015625, %v65_v57  ;;  %v101_v61 = vmul.f32 0.015625, %v68_v58  ;;  %v130_v62 = vmul.f32 %v481_v54, %v481_v54  ;;  %v131_v63 = vmul.f32 %v483_v55, %v483_v55 }
  0xb0   :  { %v492_v0 = vsub.f32 %v423_v12, %v100_v60  ;;  %v495_v1 = vsub.f32 %v425_v13, %v101_v61  ;;  %v154_v2 = vsel %vm44_vm0, %v130_v62, 0.0  ;;  %v157_v5 = vsel %vm44_vm0, %v131_v63, 0.0 }
  0xb1   :  { %152 = vadd.xlane.f32.xlu1 %v151_v59  ;;  %155 = vadd.xlane.f32.xlu0 %v154_v2  ;;  %v71_v3 = vpop.xlane.xlu0 %70  ;;  %v74_v4 = vpop.xlane.xlu1 %73 }
  0xb2   :  { %v102_v6 = vmul.f32 0.015625, %v71_v3  ;;  %v103_v7 = vmul.f32 0.015625, %v74_v4  ;;  %v132_v8 = vmul.f32 %v492_v0, %v492_v0  ;;  %v133_v9 = vmul.f32 %v495_v1, %v495_v1 }
  0xb4   :  { %v504_v10 = vsub.f32 %v431_v16, %v102_v6  ;;  %v507_v11 = vsub.f32 %v433_v17, %v103_v7  ;;  %v160_v12 = vsel %vm44_vm0, %v132_v8, 0.0  ;;  %v163_v15 = vsel %vm44_vm0, %v133_v9, 0.0 }
  0xb5   :  { %158 = vadd.xlane.f32.xlu1 %v157_v5  ;;  %161 = vadd.xlane.f32.xlu0 %v160_v12  ;;  %v77_v13 = vpop.xlane.xlu0 %76  ;;  %v80_v14 = vpop.xlane.xlu1 %79 }
  0xb6   :  { %v104_v18 = vmul.f32 0.015625, %v77_v13  ;;  %v105_v19 = vmul.f32 0.015625, %v80_v14  ;;  %v134_v22 = vmul.f32 %v504_v10, %v504_v10  ;;  %v135_v16 = vmul.f32 %v507_v11, %v507_v11  ;;  %v556_v14 = vld [vmem:[%s676_s1] ss:$0 sm:$0xff] }
  0xb8   :  { %v516_v23 = vsub.f32 %v439_v20, %v104_v18  ;;  %v519_v17 = vsub.f32 %v441_v21, %v105_v19  ;;  %v166_v26 = vsel %vm44_vm0, %v134_v22, 0.0  ;;  %v169_v31 = vsel %vm44_vm0, %v135_v16, 0.0 }
  0xb9   :  { %164 = vadd.xlane.f32.xlu1 %v163_v15  ;;  %167 = vadd.xlane.f32.xlu0 %v166_v26  ;;  %v83_v27 = vpop.xlane.xlu0 %82  ;;  %v86_v30 = vpop.xlane.xlu1 %85  ;;  %v562_v26 = vld [vmem:[%s677_s2] ss:$0 sm:$0xff] }
  0xba   :  { %v106_v32 = vmul.f32 0.015625, %v83_v27  ;;  %v107_v33 = vmul.f32 0.015625, %v86_v30  ;;  %v136_v34 = vmul.f32 %v516_v23, %v516_v23  ;;  %v137_v20 = vmul.f32 %v519_v17, %v519_v17 }
  0xbc   :  { %v528_v35 = vsub.f32 %v447_v24, %v106_v32  ;;  %v531_v21 = vsub.f32 %v449_v25, %v107_v33  ;;  %v172_v38 = vsel %vm44_vm0, %v136_v34, 0.0  ;;  %v175_v41 = vsel %vm44_vm0, %v137_v20, 0.0 }
  0xbd   :  { %170 = vadd.xlane.f32.xlu1 %v169_v31  ;;  %173 = vadd.xlane.f32.xlu0 %v172_v38  ;;  %v89_v39 = vpop.xlane.xlu0 %88  ;;  %v92_v40 = vpop.xlane.xlu1 %91 }
  0xbe   :  { %v108_v42 = vmul.f32 0.015625, %v89_v39  ;;  %v109_v43 = vmul.f32 0.015625, %v92_v40  ;;  %v138_v46 = vmul.f32 %v528_v35, %v528_v35  ;;  %v139_v24 = vmul.f32 %v531_v21, %v531_v21 }
  0xc0   :  { %v540_v47 = vsub.f32 %v455_v28, %v108_v42  ;;  %v543_v25 = vsub.f32 %v457_v29, %v109_v43  ;;  %v178_v48 = vsel %vm44_vm0, %v138_v46, 0.0  ;;  %v181_v49 = vsel %vm44_vm0, %v139_v24, 0.0 }
  0xc1   :  { %176 = vadd.xlane.f32.xlu1 %v175_v41  ;;  %179 = vadd.xlane.f32.xlu0 %v178_v48 }
  0xc2   :  { %v140_v50 = vmul.f32 %v540_v47, %v540_v47  ;;  %v141_v51 = vmul.f32 %v543_v25, %v543_v25 }
  0xc4   :  { %v184_v52 = vsel %vm44_vm0, %v140_v50, 0.0  ;;  %v187_v28 = vsel %vm44_vm0, %v141_v51, 0.0 }
  0xc5   :  { %182 = vadd.xlane.f32.xlu1 %v181_v49  ;;  %185 = vadd.xlane.f32.xlu0 %v184_v52 }
  0xc9   :  { %188 = vadd.xlane.f32.xlu1 %v187_v28 }
 0x136   :  { %v144_v29 = vpop.xlane.xlu0 %143 }
 0x137   :  { %v190_v53 = vmul.f32 0.015625, %v144_v29 }
 0x139   :  { %v206_v56 = vadd.f32 1e-05, %v190_v53 }
 0x13a   :  { %v147_v57 = vpop.xlane.xlu1 %146  ;;  %v150_v58 = vpop.xlane.xlu0 %149 }
 0x13b   :  { %326 = vrsqrt.f32 %v206_v56  ;;  %v191_v59 = vmul.f32 0.015625, %v147_v57  ;;  %v192_v60 = vmul.f32 0.015625, %v150_v58 }
 0x13d   :  { %v207_v61 = vadd.f32 1e-05, %v191_v59  ;;  %v208_v62 = vadd.f32 1e-05, %v192_v60 }
 0x13e   :  { %v153_v63 = vpop.xlane.xlu1 %152  ;;  %v156_v2 = vpop.xlane.xlu0 %155 }
 0x13f   :  { %328 = vrsqrt.f32 %v207_v61  ;;  %v193_v3 = vmul.f32 0.015625, %v153_v63  ;;  %v194_v4 = vmul.f32 0.015625, %v156_v2 }
 0x140   :  { %330 = vrsqrt.f32 %v208_v62 }
 0x141   :  { %v209_v5 = vadd.f32 1e-05, %v193_v3  ;;  %v210_v6 = vadd.f32 1e-05, %v194_v4 }
 0x142   :  { %v159_v7 = vpop.xlane.xlu1 %158  ;;  %v162_v8 = vpop.xlane.xlu0 %161 }
 0x143   :  { %332 = vrsqrt.f32 %v209_v5  ;;  %v195_v9 = vmul.f32 0.015625, %v159_v7  ;;  %v196_v12 = vmul.f32 0.015625, %v162_v8 }
 0x144   :  { %334 = vrsqrt.f32 %v210_v6 }
 0x145   :  { %v327_v13 = vpop.eup %326  ;;  %v211_v15 = vadd.f32 1e-05, %v195_v9  ;;  %v212_v18 = vadd.f32 1e-05, %v196_v12 }
 0x146   :  { %v238_v19 = vmul.f32 %v327_v13, %v463_v36  ;;  %v165_v22 = vpop.xlane.xlu1 %164  ;;  %v168_v16 = vpop.xlane.xlu0 %167 }
 0x147   :  { %336 = vrsqrt.f32 %v211_v15  ;;  %v197_v27 = vmul.f32 0.015625, %v165_v22  ;;  %v198_v30 = vmul.f32 0.015625, %v168_v16 }
 0x148   :  { %v261_v31 = vmul.f32 %v556_v14, %v238_v19  ;;  %338 = vrsqrt.f32 %v212_v18 }
 0x149   :  { %v329_v32 = vpop.eup %328  ;;  %v213_v33 = vadd.f32 1e-05, %v197_v27  ;;  %v214_v34 = vadd.f32 1e-05, %v198_v30 }
 0x14a   :  { %v331_v20 = vpop.eup %330  ;;  %v284_v38 = vadd.f32 %v562_v26, %v261_v31  ;;  %v239_v36 = vmul.f32 %v329_v32, %v471_v44  ;;  %v171_v39 = vpop.xlane.xlu1 %170 }
 0x14b   :  { %v174_v40 = vpop.xlane.xlu0 %173  ;;  %v240_v41 = vmul.f32 %v331_v20, %v465_v37  ;;  %340 = vrsqrt.f32 %v213_v33  ;;  %v199_v42 = vmul.f32 0.015625, %v171_v39 }
 0x14c   :  { %v200_v43 = vmul.f32 0.015625, %v174_v40  ;;  %300 = vst.msk [vmem:[%s678_s3] sm:$0xff] %vm44_vm0, %v284_v38  ;;  %v262_v46 = vmul.f32 %v556_v14, %v239_v36  ;;  %342 = vrsqrt.f32 %v214_v34 }
 0x14d   :  { %v333_v24 = vpop.eup %332  ;;  %v263_v48 = vmul.f32 %v556_v14, %v240_v41  ;;  %v215_v49 = vadd.f32 1e-05, %v199_v42 }
 0x14e   :  { %v216_v44 = vadd.f32 1e-05, %v200_v43  ;;  %v335_v50 = vpop.eup %334  ;;  %v285_v51 = vadd.f32 %v562_v26, %v262_v46  ;;  %v241_v37 = vmul.f32 %v333_v24, %v473_v45  ;;  %v177_v52 = vpop.xlane.xlu1 %176 }
 0x14f   :  { %v180_v28 = vpop.xlane.xlu0 %179  ;;  %v286_v29 = vadd.f32 %v562_v26, %v263_v48  ;;  %v242_v53 = vmul.f32 %v335_v50, %v481_v54  ;;  %344 = vrsqrt.f32 %v215_v49  ;;  %v201_v56 = vmul.f32 0.015625, %v177_v52 }
 0x150   :  { %301 = vst.msk [vmem:[%s678_s3 + $0x8] sm:$0xff] %vm44_vm0, %v285_v51  ;;  %v264_v57 = vmul.f32 %v556_v14, %v241_v37  ;;  %346 = vrsqrt.f32 %v216_v44  ;;  %v202_v58 = vmul.f32 0.015625, %v180_v28 }
 0x151   :  { %v337_v59 = vpop.eup %336  ;;  %302 = vst.msk [vmem:[%s678_s3 + $0x10] sm:$0xff] %vm44_vm0, %v286_v29  ;;  %v265_v45 = vmul.f32 %v556_v14, %v242_v53  ;;  %v217_v54 = vadd.f32 1e-05, %v201_v56 }
 0x152   :  { %v339_v60 = vpop.eup %338  ;;  %v287_v61 = vadd.f32 %v562_v26, %v264_v57  ;;  %v243_v62 = vmul.f32 %v337_v59, %v483_v55  ;;  %v218_v63 = vadd.f32 1e-05, %v202_v58  ;;  %v183_v2 = vpop.xlane.xlu1 %182 }
 0x153   :  { %v186_v3 = vpop.xlane.xlu0 %185  ;;  %v288_v4 = vadd.f32 %v562_v26, %v265_v45  ;;  %v244_v5 = vmul.f32 %v339_v60, %v492_v0  ;;  %348 = vrsqrt.f32 %v217_v54  ;;  %v203_v6 = vmul.f32 0.015625, %v183_v2 }
 0x154   :  { %303 = vst.msk [vmem:[%s678_s3 + $0x18] sm:$0xff] %vm44_vm0, %v287_v61  ;;  %v266_v7 = vmul.f32 %v556_v14, %v243_v62  ;;  %350 = vrsqrt.f32 %v218_v63  ;;  %v204_v8 = vmul.f32 0.015625, %v186_v3 }
 0x155   :  { %v341_v9 = vpop.eup %340  ;;  %304 = vst.msk [vmem:[%s678_s3 + $0x20] sm:$0xff] %vm44_vm0, %v288_v4  ;;  %v267_v55 = vmul.f32 %v556_v14, %v244_v5  ;;  %v219_v0 = vadd.f32 1e-05, %v203_v6 }
 0x156   :  { %v343_v12 = vpop.eup %342  ;;  %v289_v13 = vadd.f32 %v562_v26, %v266_v7  ;;  %v245_v15 = vmul.f32 %v341_v9, %v495_v1  ;;  %v220_v18 = vadd.f32 1e-05, %v204_v8  ;;  %v189_v19 = vpop.xlane.xlu1 %188 }
 0x157   :  { %v290_v22 = vadd.f32 %v562_v26, %v267_v55  ;;  %v246_v16 = vmul.f32 %v343_v12, %v504_v10  ;;  %352 = vrsqrt.f32 %v219_v0  ;;  %v205_v27 = vmul.f32 0.015625, %v189_v19 }
 0x158   :  { %305 = vst.msk [vmem:[%s678_s3 + $0x28] sm:$0xff] %vm44_vm0, %v289_v13  ;;  %v268_v30 = vmul.f32 %v556_v14, %v245_v15  ;;  %354 = vrsqrt.f32 %v220_v18 }
 0x159   :  { %v345_v31 = vpop.eup %344  ;;  %306 = vst.msk [vmem:[%s678_s3 + $0x30] sm:$0xff] %vm44_vm0, %v290_v22  ;;  %v269_v1 = vmul.f32 %v556_v14, %v246_v16  ;;  %v221_v32 = vadd.f32 1e-05, %v205_v27 }
 0x15a   :  { %v347_v10 = vpop.eup %346  ;;  %v291_v33 = vadd.f32 %v562_v26, %v268_v30  ;;  %v247_v34 = vmul.f32 %v345_v31, %v507_v11 }
 0x15b   :  { %v292_v20 = vadd.f32 %v562_v26, %v269_v1  ;;  %v248_v38 = vmul.f32 %v347_v10, %v516_v23  ;;  %356 = vrsqrt.f32 %v221_v32 }
 0x15c   :  { %307 = vst.msk [vmem:[%s678_s3 + $0x38] sm:$0xff] %vm44_vm0, %v291_v33  ;;  %v270_v36 = vmul.f32 %v556_v14, %v247_v34 }
 0x15d   :  { %v349_v39 = vpop.eup %348  ;;  %308 = vst.msk [vmem:[%s678_s3 + $0x40] sm:$0xff] %vm44_vm0, %v292_v20  ;;  %v271_v11 = vmul.f32 %v556_v14, %v248_v38 }
 0x15e   :  { %v351_v40 = vpop.eup %350  ;;  %v293_v41 = vadd.f32 %v562_v26, %v270_v36  ;;  %v249_v23 = vmul.f32 %v349_v39, %v519_v17 }
 0x15f   :  { %v294_v42 = vadd.f32 %v562_v26, %v271_v11  ;;  %v250_v43 = vmul.f32 %v351_v40, %v528_v35 }
 0x160   :  { %309 = vst.msk [vmem:[%s678_s3 + $0x48] sm:$0xff] %vm44_vm0, %v293_v41  ;;  %v272_v46 = vmul.f32 %v556_v14, %v249_v23 }
 0x161   :  { %v353_v24 = vpop.eup %352  ;;  %310 = vst.msk [vmem:[%s678_s3 + $0x50] sm:$0xff] %vm44_vm0, %v294_v42  ;;  %v273_v48 = vmul.f32 %v556_v14, %v250_v43 }
 0x162   :  { %v355_v17 = vpop.eup %354  ;;  %v295_v49 = vadd.f32 %v562_v26, %v272_v46  ;;  %v251_v35 = vmul.f32 %v353_v24, %v531_v21 }
 0x163   :  { %v296_v44 = vadd.f32 %v562_v26, %v273_v48  ;;  %v252_v50 = vmul.f32 %v355_v17, %v540_v47 }
 0x164   :  { %311 = vst.msk [vmem:[%s678_s3 + $0x58] sm:$0xff] %vm44_vm0, %v295_v49  ;;  %v274_v51 = vmul.f32 %v556_v14, %v251_v35 }
 0x165   :  { %v357_v37 = vpop.eup %356  ;;  %312 = vst.msk [vmem:[%s678_s3 + $0x60] sm:$0xff] %vm44_vm0, %v296_v44  ;;  %v275_v52 = vmul.f32 %v556_v14, %v252_v50 }
 0x166   :  { %v297_v21 = vadd.f32 %v562_v26, %v274_v51  ;;  %v253_v28 = vmul.f32 %v357_v37, %v543_v25 }
 0x167   :  { %v298_v47 = vadd.f32 %v562_v26, %v275_v52 }
 0x168   :  { %313 = vst.msk [vmem:[%s678_s3 + $0x68] sm:$0xff] %vm44_vm0, %v297_v21  ;;  %v276_v29 = vmul.f32 %v556_v14, %v253_v28 }
 0x169   :  { %314 = vst.msk [vmem:[%s678_s3 + $0x70] sm:$0xff] %vm44_vm0, %v298_v47 }
 0x16a   :  { %v299_v53 = vadd.f32 %v562_v26, %v276_v29 }
 0x16c   :  { %315 = vst.msk [vmem:[%s678_s3 + $0x78] sm:$0xff] %vm44_vm0, %v299_v53 }
 0x16d   :  { %320 = vsyncpa [#allocation3], 1 }

// kernel: nystromformer_forward.17
= control target key start
LH: loop header
LB: loop body
LE: loop exit
PB: predicated region body
PF: predicated region fallthrough
CT: control target
= control target key end

     0   :  { %vm20_vm0 = vcmask 523264   ;;  %v559_v1 = vmov 0   ;;  %v560_v2 = vmov 0.0   ;;  %v427_v18 = vlaneseq  ;;  %s820_s1 = inlined_call_operand.vmem [shape: bf16[64,192], index: 1, kind: input, shape index: {}]   ;;  %s821_s0 = inlined_call_operand.vmem [shape: bf16[128,64], index: 0, kind: input, shape index: {}]   ;;  %s822_s2 = inlined_call_operand.vmem [shape: f32[1,192], index: 2, kind: input, shape index: {}]   ;;  %s823_s3 = inlined_call_operand.vmem [shape: f32[128,192], index: 3, kind: output, shape index: {}]  }
   0x1   :  { %v539_v0 = vld [vmem:[%s820_s1 + $0x4] ss:$8 sps:$4 sm:$0xff]   ;;  %245 = vmatprep.mubr.bf16.mxu0 %v559_v1  ;;  %285 = vmatprep.mubr.bf16.mxu1 %v559_v1  ;;  %21 = vst.msk [vmem:[#allocation2 + $0x8] sm:$0xff] %vm20_vm0, %v560_v2  ;;  %23 = vst.msk [vmem:[#allocation2 + $0x18] sm:$0xff] %vm20_vm0, %v560_v2  ;;  %v541_v3 = vld [vmem:[%s820_s1] ss:$8 sps:$4 sm:$0xff]  }
   0x2   :  { %25 = vst.msk [vmem:[#allocation2 + $0x28] sm:$0xff] %vm20_vm0, %v560_v2  ;;  %27 = vst.msk [vmem:[#allocation2 + $0x38] sm:$0xff] %vm20_vm0, %v560_v2  ;;  %213 = vmatprep.subr.bf16.mxu0 %v539_v0  ;;  %529 = vmatprep.subr.bf16.mxu1 %v539_v0  ;;  %v542_v4 = vld [vmem:[%s820_s1 + $0x14] ss:$8 sps:$4 sm:$0xff]   ;;  %v544_v5 = vld [vmem:[%s820_s1 + $0x10] ss:$8 sps:$4 sm:$0xff]  }
   0x3   :  { %29 = vst.msk [vmem:[#allocation2 + $0x48] sm:$0xff] %vm20_vm0, %v560_v2  ;;  %31 = vst.msk [vmem:[#allocation2 + $0x58] sm:$0xff] %vm20_vm0, %v560_v2  ;;  %214 = vmatpush1.bf16.msra.mxu0 %v541_v3  ;;  %533 = vmatpush1.bf16.msra.mxu1 %v541_v3  ;;  %v545_v6 = vld [vmem:[%s820_s1 + $0x24] ss:$8 sps:$4 sm:$0xff]   ;;  %v547_v7 = vld [vmem:[%s820_s1 + $0x20] ss:$8 sps:$4 sm:$0xff]  }
   0x4   :  { %33 = vst.msk [vmem:[#allocation2 + $0x68] sm:$0xff] %vm20_vm0, %v560_v2  ;;  %35 = vst.msk [vmem:[#allocation2 + $0x78] sm:$0xff] %vm20_vm0, %v560_v2  ;;  %215 = vmatprep.subr.bf16.mxu0 %v542_v4  ;;  %530 = vmatprep.subr.bf16.mxu1 %v542_v4  ;;  %v548_v8 = vld [vmem:[%s820_s1 + $0x34] ss:$8 sps:$4 sm:$0xff]   ;;  %v550_v9 = vld [vmem:[%s820_s1 + $0x30] ss:$8 sps:$4 sm:$0xff]  }
   0x5   :  { %37 = vst.msk [vmem:[#allocation2 + $0x88] sm:$0xff] %vm20_vm0, %v560_v2  ;;  %39 = vst.msk [vmem:[#allocation2 + $0x98] sm:$0xff] %vm20_vm0, %v560_v2  ;;  %v551_v10 = vld [vmem:[%s821_s0] sm:$0xff]   ;;  %v553_v12 = vld [vmem:[%s821_s0 + $0x8] sm:$0xff]   ;;  %v428_v19 = vshrl.u32 %v427_v18, 7 }
   0x6   :  { %41 = vst.msk [vmem:[#allocation2 + $0xa8] sm:$0xff] %vm20_vm0, %v560_v2  ;;  %43 = vst.msk [vmem:[#allocation2 + $0xb8] sm:$0xff] %vm20_vm0, %v560_v2  ;;  %v552_v11 = vld [vmem:[%s821_s0 + $0x20] sm:$0xff]   ;;  %v554_v13 = vld [vmem:[%s821_s0 + $0x28] sm:$0xff]  }
   0x7   :  { %45 = vst.msk [vmem:[#allocation2 + $0xc8] sm:$0xff] %vm20_vm0, %v560_v2  ;;  %47 = vst.msk [vmem:[#allocation2 + $0xd8] sm:$0xff] %vm20_vm0, %v560_v2  ;;  %216 = vmatpush1.bf16.msra.mxu0 %v544_v5  ;;  %534 = vmatpush1.bf16.msra.mxu1 %v544_v5  ;;  %v555_v14 = vld [vmem:[%s821_s0 + $0x10] sm:$0xff]   ;;  %v557_v16 = vld [vmem:[%s821_s0 + $0x18] sm:$0xff]   ;;  %v429_v20 = vsub.s32 0, %v428_v19  ;;  %v433_v39 = vsub.s32 1, %v428_v19 }
   0x8   :  { %49 = vst.msk [vmem:[#allocation2 + $0xe8] sm:$0xff] %vm20_vm0, %v560_v2  ;;  %51 = vst.msk [vmem:[#allocation2 + $0xf8] sm:$0xff] %vm20_vm0, %v560_v2  ;;  %217 = vmatprep.subr.bf16.mxu0 %v545_v6  ;;  %531 = vmatprep.subr.bf16.mxu1 %v545_v6  ;;  %v556_v15 = vld [vmem:[%s821_s0 + $0x30] sm:$0xff]   ;;  %v558_v17 = vld [vmem:[%s821_s0 + $0x38] sm:$0xff]  }
   0x9   :  { %v425_v21 = vld [vmem:[%s822_s2] sm:$0x3]  ;;  %v53_v23 = vld [vmem:[#allocation2 + $0x8] sm:$0xff]  ;;  %v55_v29 = vld [vmem:[#allocation2 + $0x18] sm:$0xff] }
   0xa   :  { %v656_v22 = vrot.slane %v425_v21, %v429_v20  ;;  %v57_v44 = vld [vmem:[#allocation2 + $0x28] sm:$0xff]  ;;  %v678_v46 = vrot.slane %v425_v21, %v433_v39  ;;  %v59_v51 = vld [vmem:[#allocation2 + $0x38] sm:$0xff] }
   0xb   :  { %218 = vmatpush1.bf16.msra.mxu0 %v547_v7  ;;  %535 = vmatpush1.bf16.msra.mxu1 %v547_v7 }
   0xc   :  { %219 = vmatprep.subr.bf16.mxu0 %v548_v8  ;;  %532 = vmatprep.subr.bf16.mxu1 %v548_v8  ;;  %v69_v24 = vld [vmem:[#allocation2 + $0x88] sm:$0xff]  ;;  %v71_v30 = vld [vmem:[#allocation2 + $0x98] sm:$0xff] }
   0xd   :  { %v73_v45 = vld [vmem:[#allocation2 + $0xa8] sm:$0xff]  ;;  %v75_v52 = vld [vmem:[#allocation2 + $0xb8] sm:$0xff] }
   0xf   :  { %220 = vmatpush1.bf16.msra.mxu0 %v550_v9  ;;  %536 = vmatpush1.bf16.msra.mxu1 %v550_v9  ;;  %v61_v9 = vld [vmem:[#allocation2 + $0x48] sm:$0xff] }
  0x10   :  { %v81_v39 = vld [vmem:[#allocation2 + $0xe8] sm:$0xff] }
  0x12   :  { %521 = vmatmul.mubr.msk.bf16.vlgmr.msra.gmra.mrb[0].mxu0 %vm20_vm0, %v551_v10  ;;  %525 = vmatmul.mubr.msk.bf16.vlgmr.msra.gmra.mrb[0].mxu1 %vm20_vm0, %v552_v11  ;;  %v77_v10 = vld [vmem:[#allocation2 + $0xc8] sm:$0xff] }
  0x13   :  { %255 = vmatprep.mubr.bf16.mxu0 %v559_v1  ;;  %295 = vmatprep.mubr.bf16.mxu1 %v559_v1 }
  0x1a   :  { %522 = vmatmul.mubr.msk.bf16.gmra.mrb[4].mxu0 %vm20_vm0, %v553_v12  ;;  %526 = vmatmul.mubr.msk.bf16.gmra.mrb[4].mxu1 %vm20_vm0, %v554_v13 }
  0x1b   :  { %265 = vmatprep.mubr.bf16.mxu0 %v559_v1  ;;  %305 = vmatprep.mubr.bf16.mxu1 %v559_v1 }
  0x22   :  { %523 = vmatmul.mubr.msk.bf16.gmra.mrb[8].mxu0 %vm20_vm0, %v555_v14  ;;  %527 = vmatmul.mubr.msk.bf16.gmra.mrb[8].mxu1 %vm20_vm0, %v556_v15  ;;  %v63_v15 = vld [vmem:[#allocation2 + $0x58] sm:$0xff] }
  0x23   :  { %275 = vmatprep.mubr.bf16.mxu0 %v559_v1  ;;  %315 = vmatprep.mubr.bf16.mxu1 %v559_v1 }
  0x2a   :  { %524 = vmatmul.mubr.msk.bf16.gmra.mrb[12].mxu0 %vm20_vm0, %v557_v16  ;;  %528 = vmatmul.mubr.msk.bf16.gmra.mrb[12].mxu1 %vm20_vm0, %v558_v17  ;;  %v79_v16 = vld [vmem:[#allocation2 + $0xd8] sm:$0xff] }
  0xe5   :  { %v247_v25 = vpop.f32.mrb[0].mxu0  ;;  %v287_v26 = vpop.f32.mrb[0].mxu1 }
  0xe6   :  { %v249_v27 = vpop.f32.mrb[1].mxu0  ;;  %v289_v28 = vpop.f32.mrb[1].mxu1  ;;  %v437_v35 = vadd.f32 %v656_v22, %v247_v25  ;;  %v453_v36 = vadd.f32 %v656_v22, %v287_v26 }
  0xe7   :  { %v327_v31 = vadd.f32 %v249_v27, %v53_v23  ;;  %v343_v32 = vadd.f32 %v289_v28, %v69_v24  ;;  %v251_v33 = vpop.f32.mrb[2].mxu0  ;;  %v291_v34 = vpop.f32.mrb[2].mxu1 }
  0xe8   :  { %v253_v37 = vpop.f32.mrb[3].mxu0  ;;  %v293_v38 = vpop.f32.mrb[3].mxu1  ;;  %469 = vst [vmem:[%s823_s3] sm:$0xff] %v437_v35  ;;  %485 = vst [vmem:[%s823_s3 + $0x80] sm:$0xff] %v453_v36  ;;  %v439_v42 = vadd.f32 %v656_v22, %v251_v33  ;;  %v455_v43 = vadd.f32 %v656_v22, %v291_v34 }
  0xe9   :  { %359 = vst.msk [vmem:[#allocation2 + $0x8] sm:$0xff] %vm20_vm0, %v327_v31  ;;  %375 = vst.msk [vmem:[#allocation2 + $0x88] sm:$0xff] %vm20_vm0, %v343_v32  ;;  %v329_v40 = vadd.f32 %v253_v37, %v55_v29  ;;  %v345_v41 = vadd.f32 %v293_v38, %v71_v30  ;;  %v65_v38 = vld [vmem:[#allocation2 + $0x68] sm:$0xff] }
  0xea   :  { %471 = vst [vmem:[%s823_s3 + $0x10] sm:$0xff] %v439_v42  ;;  %487 = vst [vmem:[%s823_s3 + $0x90] sm:$0xff] %v455_v43 }
  0xeb   :  { %361 = vst.msk [vmem:[#allocation2 + $0x18] sm:$0xff] %vm20_vm0, %v329_v40  ;;  %377 = vst.msk [vmem:[#allocation2 + $0x98] sm:$0xff] %vm20_vm0, %v345_v41 }
  0xed   :  { %v257_v47 = vpop.f32.mrb[4].mxu0  ;;  %v297_v48 = vpop.f32.mrb[4].mxu1 }
  0xee   :  { %v259_v49 = vpop.f32.mrb[5].mxu0  ;;  %v299_v50 = vpop.f32.mrb[5].mxu1  ;;  %v441_v59 = vadd.f32 %v656_v22, %v257_v47  ;;  %v457_v60 = vadd.f32 %v656_v22, %v297_v48 }
  0xef   :  { %v331_v53 = vadd.f32 %v259_v49, %v57_v44  ;;  %v347_v54 = vadd.f32 %v299_v50, %v73_v45  ;;  %v261_v55 = vpop.f32.mrb[6].mxu0  ;;  %v301_v56 = vpop.f32.mrb[6].mxu1  ;;  %v67_v44 = vld [vmem:[#allocation2 + $0x78] sm:$0xff] }
  0xf0   :  { %v394_v57 = vld [vmem:[#allocation2 + $0x8] sm:$0xff]  ;;  %v263_v61 = vpop.f32.mrb[7].mxu0  ;;  %v303_v62 = vpop.f32.mrb[7].mxu1  ;;  %473 = vst [vmem:[%s823_s3 + $0x20] sm:$0xff] %v441_v59  ;;  %489 = vst [vmem:[%s823_s3 + $0xa0] sm:$0xff] %v457_v60  ;;  %v443_v5 = vadd.f32 %v656_v22, %v261_v55  ;;  %v459_v6 = vadd.f32 %v656_v22, %v301_v56  ;;  %v83_v45 = vld [vmem:[#allocation2 + $0xf8] sm:$0xff] }
  0xf1   :  { %v410_v58 = vld [vmem:[#allocation2 + $0x88] sm:$0xff]  ;;  %v438_v63 = vadd.f32 %v678_v46, %v394_v57  ;;  %363 = vst.msk [vmem:[#allocation2 + $0x28] sm:$0xff] %vm20_vm0, %v331_v53  ;;  %379 = vst.msk [vmem:[#allocation2 + $0xa8] sm:$0xff] %vm20_vm0, %v347_v54  ;;  %v333_v1 = vadd.f32 %v263_v61, %v59_v51  ;;  %v349_v2 = vadd.f32 %v303_v62, %v75_v52 }
  0xf2   :  { %v454_v0 = vadd.f32 %v678_v46, %v410_v58  ;;  %v396_v3 = vld [vmem:[#allocation2 + $0x18] sm:$0xff]  ;;  %475 = vst [vmem:[%s823_s3 + $0x30] sm:$0xff] %v443_v5  ;;  %491 = vst [vmem:[%s823_s3 + $0xb0] sm:$0xff] %v459_v6 }
  0xf3   :  { %v412_v4 = vld [vmem:[#allocation2 + $0x98] sm:$0xff]  ;;  %470 = vst.msk [vmem:[%s823_s3 + $0x8] sm:$0xff] %vm20_vm0, %v438_v63  ;;  %v440_v7 = vadd.f32 %v678_v46, %v396_v3  ;;  %365 = vst.msk [vmem:[#allocation2 + $0x38] sm:$0xff] %vm20_vm0, %v333_v1 }
  0xf4   :  { %486 = vst.msk [vmem:[%s823_s3 + $0x88] sm:$0xff] %vm20_vm0, %v454_v0  ;;  %v456_v8 = vadd.f32 %v678_v46, %v412_v4  ;;  %381 = vst.msk [vmem:[#allocation2 + $0xb8] sm:$0xff] %vm20_vm0, %v349_v2 }
  0xf5   :  { %472 = vst.msk [vmem:[%s823_s3 + $0x18] sm:$0xff] %vm20_vm0, %v440_v7  ;;  %v267_v11 = vpop.f32.mrb[8].mxu0  ;;  %v307_v12 = vpop.f32.mrb[8].mxu1 }
  0xf6   :  { %488 = vst.msk [vmem:[%s823_s3 + $0x98] sm:$0xff] %vm20_vm0, %v456_v8  ;;  %v269_v13 = vpop.f32.mrb[9].mxu0  ;;  %v309_v14 = vpop.f32.mrb[9].mxu1  ;;  %v445_v24 = vadd.f32 %v656_v22, %v267_v11  ;;  %v461_v25 = vadd.f32 %v656_v22, %v307_v12 }
  0xf7   :  { %v335_v17 = vadd.f32 %v269_v13, %v61_v9  ;;  %v351_v18 = vadd.f32 %v309_v14, %v77_v10  ;;  %v271_v19 = vpop.f32.mrb[10].mxu0  ;;  %v311_v20 = vpop.f32.mrb[10].mxu1 }
  0xf8   :  { %v398_v21 = vld [vmem:[#allocation2 + $0x28] sm:$0xff]  ;;  %v273_v26 = vpop.f32.mrb[11].mxu0  ;;  %v313_v27 = vpop.f32.mrb[11].mxu1  ;;  %477 = vst [vmem:[%s823_s3 + $0x40] sm:$0xff] %v445_v24  ;;  %493 = vst [vmem:[%s823_s3 + $0xc0] sm:$0xff] %v461_v25  ;;  %v447_v34 = vadd.f32 %v656_v22, %v271_v19  ;;  %v463_v35 = vadd.f32 %v656_v22, %v311_v20 }
  0xf9   :  { %v414_v23 = vld [vmem:[#allocation2 + $0xa8] sm:$0xff]  ;;  %v442_v28 = vadd.f32 %v678_v46, %v398_v21  ;;  %367 = vst.msk [vmem:[#allocation2 + $0x48] sm:$0xff] %vm20_vm0, %v335_v17  ;;  %383 = vst.msk [vmem:[#allocation2 + $0xc8] sm:$0xff] %vm20_vm0, %v351_v18  ;;  %v337_v30 = vadd.f32 %v273_v26, %v63_v15  ;;  %v353_v31 = vadd.f32 %v313_v27, %v79_v16 }
  0xfa   :  { %v458_v29 = vadd.f32 %v678_v46, %v414_v23  ;;  %v400_v32 = vld [vmem:[#allocation2 + $0x38] sm:$0xff]  ;;  %479 = vst [vmem:[%s823_s3 + $0x50] sm:$0xff] %v447_v34  ;;  %495 = vst [vmem:[%s823_s3 + $0xd0] sm:$0xff] %v463_v35 }
  0xfb   :  { %v416_v33 = vld [vmem:[#allocation2 + $0xb8] sm:$0xff]  ;;  %474 = vst.msk [vmem:[%s823_s3 + $0x28] sm:$0xff] %vm20_vm0, %v442_v28  ;;  %v444_v36 = vadd.f32 %v678_v46, %v400_v32  ;;  %369 = vst.msk [vmem:[#allocation2 + $0x58] sm:$0xff] %vm20_vm0, %v337_v30 }
  0xfc   :  { %490 = vst.msk [vmem:[%s823_s3 + $0xa8] sm:$0xff] %vm20_vm0, %v458_v29  ;;  %v460_v37 = vadd.f32 %v678_v46, %v416_v33  ;;  %385 = vst.msk [vmem:[#allocation2 + $0xd8] sm:$0xff] %vm20_vm0, %v353_v31 }
  0xfd   :  { %476 = vst.msk [vmem:[%s823_s3 + $0x38] sm:$0xff] %vm20_vm0, %v444_v36  ;;  %v277_v40 = vpop.f32.mrb[12].mxu0  ;;  %v317_v41 = vpop.f32.mrb[12].mxu1 }
  0xfe   :  { %492 = vst.msk [vmem:[%s823_s3 + $0xb8] sm:$0xff] %vm20_vm0, %v460_v37  ;;  %v279_v42 = vpop.f32.mrb[13].mxu0  ;;  %v319_v43 = vpop.f32.mrb[13].mxu1  ;;  %v449_v53 = vadd.f32 %v656_v22, %v277_v40  ;;  %v465_v54 = vadd.f32 %v656_v22, %v317_v41 }
  0xff   :  { %v339_v47 = vadd.f32 %v279_v42, %v65_v38  ;;  %v355_v48 = vadd.f32 %v319_v43, %v81_v39  ;;  %v281_v49 = vpop.f32.mrb[14].mxu0  ;;  %v321_v50 = vpop.f32.mrb[14].mxu1 }
 0x100   :  { %v402_v51 = vld [vmem:[#allocation2 + $0x48] sm:$0xff]  ;;  %v283_v55 = vpop.f32.mrb[15].mxu0  ;;  %v323_v56 = vpop.f32.mrb[15].mxu1  ;;  %481 = vst [vmem:[%s823_s3 + $0x60] sm:$0xff] %v449_v53  ;;  %497 = vst [vmem:[%s823_s3 + $0xe0] sm:$0xff] %v465_v54  ;;  %v451_v63 = vadd.f32 %v656_v22, %v281_v49  ;;  %v467_v0 = vadd.f32 %v656_v22, %v321_v50 }
 0x101   :  { %v418_v52 = vld [vmem:[#allocation2 + $0xc8] sm:$0xff]  ;;  %v446_v57 = vadd.f32 %v678_v46, %v402_v51  ;;  %371 = vst.msk [vmem:[#allocation2 + $0x68] sm:$0xff] %vm20_vm0, %v339_v47  ;;  %387 = vst.msk [vmem:[#allocation2 + $0xe8] sm:$0xff] %vm20_vm0, %v355_v48  ;;  %v341_v59 = vadd.f32 %v283_v55, %v67_v44  ;;  %v357_v60 = vadd.f32 %v323_v56, %v83_v45 }
 0x102   :  { %v462_v58 = vadd.f32 %v678_v46, %v418_v52  ;;  %v404_v61 = vld [vmem:[#allocation2 + $0x58] sm:$0xff]  ;;  %483 = vst [vmem:[%s823_s3 + $0x70] sm:$0xff] %v451_v63  ;;  %499 = vst [vmem:[%s823_s3 + $0xf0] sm:$0xff] %v467_v0 }
 0x103   :  { %v420_v62 = vld [vmem:[#allocation2 + $0xd8] sm:$0xff]  ;;  %478 = vst.msk [vmem:[%s823_s3 + $0x48] sm:$0xff] %vm20_vm0, %v446_v57  ;;  %v448_v1 = vadd.f32 %v678_v46, %v404_v61  ;;  %373 = vst.msk [vmem:[#allocation2 + $0x78] sm:$0xff] %vm20_vm0, %v341_v59 }
 0x104   :  { %494 = vst.msk [vmem:[%s823_s3 + $0xc8] sm:$0xff] %vm20_vm0, %v462_v58  ;;  %v464_v2 = vadd.f32 %v678_v46, %v420_v62  ;;  %389 = vst.msk [vmem:[#allocation2 + $0xf8] sm:$0xff] %vm20_vm0, %v357_v60 }
 0x105   :  { %480 = vst.msk [vmem:[%s823_s3 + $0x58] sm:$0xff] %vm20_vm0, %v448_v1 }
 0x106   :  { %496 = vst.msk [vmem:[%s823_s3 + $0xd8] sm:$0xff] %vm20_vm0, %v464_v2 }
 0x108   :  { %v406_v22 = vld [vmem:[#allocation2 + $0x68] sm:$0xff] }
 0x109   :  { %v422_v3 = vld [vmem:[#allocation2 + $0xe8] sm:$0xff]  ;;  %v450_v4 = vadd.f32 %v678_v46, %v406_v22 }
 0x10a   :  { %v466_v5 = vadd.f32 %v678_v46, %v422_v3  ;;  %v408_v6 = vld [vmem:[#allocation2 + $0x78] sm:$0xff] }
 0x10b   :  { %v424_v7 = vld [vmem:[#allocation2 + $0xf8] sm:$0xff]  ;;  %482 = vst.msk [vmem:[%s823_s3 + $0x68] sm:$0xff] %vm20_vm0, %v450_v4  ;;  %v452_v8 = vadd.f32 %v678_v46, %v408_v6 }
 0x10c   :  { %498 = vst.msk [vmem:[%s823_s3 + $0xe8] sm:$0xff] %vm20_vm0, %v466_v5  ;;  %v468_v9 = vadd.f32 %v678_v46, %v424_v7 }
 0x10d   :  { %484 = vst.msk [vmem:[%s823_s3 + $0x78] sm:$0xff] %vm20_vm0, %v452_v8 }
 0x10e   :  { %500 = vst.msk [vmem:[%s823_s3 + $0xf8] sm:$0xff] %vm20_vm0, %v468_v9 }

// kernel: nystromformer_forward.19
= control target key start
LH: loop header
LB: loop body
LE: loop exit
PB: predicated region body
PF: predicated region fallthrough
CT: control target
= control target key end

     0   :  { %vm19_vm0 = vcmask 523264   ;;  %v434_v1 = vmov 0.0   ;;  %s616_s1 = inlined_call_operand.vmem [shape: bf16[64,64], index: 1, kind: input, shape index: {}]   ;;  %s617_s0 = inlined_call_operand.vmem [shape: bf16[128,64], index: 0, kind: input, shape index: {}]   ;;  %s618_s2 = inlined_call_operand.vmem [shape: f32[1,64], index: 2, kind: input, shape index: {}]   ;;  %s619_s3 = inlined_call_operand.vmem [shape: f32[128,64], index: 3, kind: output, shape index: {}]  }
   0x1   :  { %v422_v0 = vld [vmem:[%s616_s1] sm:$0xff]   ;;  %22 = vst.msk [vmem:[#allocation2 + $0x10] sm:$0xff] %vm19_vm0, %v434_v1  ;;  %20 = vst.msk [vmem:[#allocation2] sm:$0xff] %vm19_vm0, %v434_v1  ;;  %v423_v2 = vld [vmem:[%s616_s1 + $0x8] sm:$0xff]  }
   0x2   :  { %21 = vst.msk [vmem:[#allocation2 + $0x8] sm:$0xff] %vm19_vm0, %v434_v1  ;;  %23 = vst.msk [vmem:[#allocation2 + $0x18] sm:$0xff] %vm19_vm0, %v434_v1  ;;  %389 = vmatprep.subr.bf16.mxu0 %v422_v0  ;;  %413 = vmatprep.subr.bf16.mxu1 %v422_v0  ;;  %v424_v3 = vld [vmem:[%s616_s1 + $0x10] sm:$0xff]   ;;  %v426_v4 = vld [vmem:[%s617_s0] sm:$0xff]  }
   0x3   :  { %24 = vst.msk [vmem:[#allocation2 + $0x20] sm:$0xff] %vm19_vm0, %v434_v1  ;;  %25 = vst.msk [vmem:[#allocation2 + $0x28] sm:$0xff] %vm19_vm0, %v434_v1  ;;  %390 = vmatpush3.bf16.msra.mxu0 %v422_v0  ;;  %417 = vmatpush3.bf16.msra.mxu1 %v422_v0  ;;  %v427_v5 = vld [vmem:[%s617_s0 + $0x20] sm:$0xff]   ;;  %v425_v6 = vld [vmem:[%s616_s1 + $0x18] sm:$0xff]  }
   0x4   :  { %26 = vst.msk [vmem:[#allocation2 + $0x30] sm:$0xff] %vm19_vm0, %v434_v1  ;;  %27 = vst.msk [vmem:[#allocation2 + $0x38] sm:$0xff] %vm19_vm0, %v434_v1  ;;  %391 = vmatprep.subr.bf16.mxu0 %v423_v2  ;;  %414 = vmatprep.subr.bf16.mxu1 %v423_v2  ;;  %v428_v7 = vld [vmem:[%s617_s0 + $0x8] sm:$0xff]   ;;  %v430_v9 = vld [vmem:[%s617_s0 + $0x10] sm:$0xff]  }
   0x5   :  { %28 = vst.msk [vmem:[#allocation2 + $0x40] sm:$0xff] %vm19_vm0, %v434_v1  ;;  %29 = vst.msk [vmem:[#allocation2 + $0x48] sm:$0xff] %vm19_vm0, %v434_v1  ;;  %397 = vmatprep.mubr.msk.bf16.mxu0 %vm19_vm0, %v426_v4  ;;  %405 = vmatprep.mubr.msk.bf16.mxu1 %vm19_vm0, %v427_v5  ;;  %v429_v8 = vld [vmem:[%s617_s0 + $0x28] sm:$0xff]   ;;  %v431_v10 = vld [vmem:[%s617_s0 + $0x30] sm:$0xff]  }
   0x6   :  { %30 = vst.msk [vmem:[#allocation2 + $0x50] sm:$0xff] %vm19_vm0, %v434_v1  ;;  %31 = vst.msk [vmem:[#allocation2 + $0x58] sm:$0xff] %vm19_vm0, %v434_v1  ;;  %v432_v11 = vld [vmem:[%s617_s0 + $0x18] sm:$0xff]   ;;  %v526_v41 = vld [vmem:[%s618_s2] ss:$0 sm:$0xff] }
   0x7   :  { %32 = vst.msk [vmem:[#allocation2 + $0x60] sm:$0xff] %vm19_vm0, %v434_v1  ;;  %33 = vst.msk [vmem:[#allocation2 + $0x68] sm:$0xff] %vm19_vm0, %v434_v1  ;;  %392 = vmatpush3.bf16.msra.mxu0 %v423_v2  ;;  %418 = vmatpush3.bf16.msra.mxu1 %v423_v2  ;;  %v433_v12 = vld [vmem:[%s617_s0 + $0x38] sm:$0xff]  }
   0x8   :  { %34 = vst.msk [vmem:[#allocation2 + $0x70] sm:$0xff] %vm19_vm0, %v434_v1  ;;  %35 = vst.msk [vmem:[#allocation2 + $0x78] sm:$0xff] %vm19_vm0, %v434_v1  ;;  %393 = vmatprep.subr.bf16.mxu0 %v424_v3  ;;  %415 = vmatprep.subr.bf16.mxu1 %v424_v3  ;;  %v38_v13 = vld [vmem:[#allocation2 + $0x10] sm:$0xff]  ;;  %v36_v15 = vld [vmem:[#allocation2] sm:$0xff] }
   0x9   :  { %v39_v19 = vld [vmem:[#allocation2 + $0x18] sm:$0xff]  ;;  %v37_v25 = vld [vmem:[#allocation2 + $0x8] sm:$0xff] }
   0xa   :  { %v40_v39 = vld [vmem:[#allocation2 + $0x20] sm:$0xff]  ;;  %v41_v50 = vld [vmem:[#allocation2 + $0x28] sm:$0xff] }
   0xb   :  { %394 = vmatpush3.bf16.msra.mxu0 %v424_v3  ;;  %419 = vmatpush3.bf16.msra.mxu1 %v424_v3  ;;  %v42_v37 = vld [vmem:[#allocation2 + $0x30] sm:$0xff]  ;;  %v43_v44 = vld [vmem:[#allocation2 + $0x38] sm:$0xff] }
   0xc   :  { %395 = vmatprep.subr.bf16.mxu0 %v425_v6  ;;  %416 = vmatprep.subr.bf16.mxu1 %v425_v6  ;;  %v44_v16 = vld [vmem:[#allocation2 + $0x40] sm:$0xff]  ;;  %v45_v26 = vld [vmem:[#allocation2 + $0x48] sm:$0xff] }
   0xd   :  { %v46_v14 = vld [vmem:[#allocation2 + $0x50] sm:$0xff]  ;;  %v47_v20 = vld [vmem:[#allocation2 + $0x58] sm:$0xff] }
   0xe   :  { %v48_v40 = vld [vmem:[#allocation2 + $0x60] sm:$0xff]  ;;  %v49_v51 = vld [vmem:[#allocation2 + $0x68] sm:$0xff] }
   0xf   :  { %396 = vmatpush3.bf16.msra.mxu0 %v425_v6  ;;  %420 = vmatpush3.bf16.msra.mxu1 %v425_v6  ;;  %v50_v38 = vld [vmem:[#allocation2 + $0x70] sm:$0xff]  ;;  %v51_v45 = vld [vmem:[#allocation2 + $0x78] sm:$0xff] }
  0x12   :  { %398 = vmatmul.mubr.msk.bf16.vlgmr.msra.gmra.mrb[0].mxu0 %vm19_vm0, %v428_v7  ;;  %406 = vmatmul.mubr.msk.bf16.vlgmr.msra.gmra.mrb[0].mxu1 %vm19_vm0, %v429_v8 }
  0x13   :  { %401 = vmatprep.mubr.msk.bf16.mxu0 %vm19_vm0, %v430_v9  ;;  %409 = vmatprep.mubr.msk.bf16.mxu1 %vm19_vm0, %v431_v10 }
  0x1a   :  { %402 = vmatmul.mubr.msk.bf16.gmra.mrb[4].mxu0 %vm19_vm0, %v432_v11  ;;  %410 = vmatmul.mubr.msk.bf16.gmra.mrb[4].mxu1 %vm19_vm0, %v433_v12 }
  0xe5   :  { %v399_v17 = vpop.f32.mrb[0].mxu0  ;;  %v407_v18 = vpop.f32.mrb[0].mxu1 }
  0xe6   :  { %v264_v21 = vadd.f32 %v399_v17, %v38_v13  ;;  %v272_v22 = vadd.f32 %v407_v18, %v46_v14  ;;  %v199_v23 = vpop.f32.mrb[1].mxu0  ;;  %v231_v24 = vpop.f32.mrb[1].mxu1 }
  0xe7   :  { %v262_v27 = vadd.f32 %v199_v23, %v36_v15  ;;  %v270_v28 = vadd.f32 %v231_v24, %v44_v16  ;;  %v400_v29 = vpop.f32.mrb[2].mxu0  ;;  %v408_v30 = vpop.f32.mrb[2].mxu1 }
  0xe8   :  { %280 = vst.msk [vmem:[#allocation2 + $0x10] sm:$0xff] %vm19_vm0, %v264_v21  ;;  %288 = vst.msk [vmem:[#allocation2 + $0x50] sm:$0xff] %vm19_vm0, %v272_v22  ;;  %v265_v31 = vadd.f32 %v400_v29, %v39_v19  ;;  %v273_v32 = vadd.f32 %v408_v30, %v47_v20  ;;  %v202_v33 = vpop.f32.mrb[3].mxu0  ;;  %v234_v34 = vpop.f32.mrb[3].mxu1 }
  0xe9   :  { %278 = vst.msk [vmem:[#allocation2] sm:$0xff] %vm19_vm0, %v262_v27  ;;  %286 = vst.msk [vmem:[#allocation2 + $0x40] sm:$0xff] %vm19_vm0, %v270_v28  ;;  %v263_v35 = vadd.f32 %v202_v33, %v37_v25  ;;  %v271_v36 = vadd.f32 %v234_v34, %v45_v26 }
  0xea   :  { %281 = vst.msk [vmem:[#allocation2 + $0x18] sm:$0xff] %vm19_vm0, %v265_v31  ;;  %289 = vst.msk [vmem:[#allocation2 + $0x58] sm:$0xff] %vm19_vm0, %v273_v32 }
  0xeb   :  { %279 = vst.msk [vmem:[#allocation2 + $0x8] sm:$0xff] %vm19_vm0, %v263_v35  ;;  %287 = vst.msk [vmem:[#allocation2 + $0x48] sm:$0xff] %vm19_vm0, %v271_v36 }
  0xed   :  { %v403_v42 = vpop.f32.mrb[4].mxu0  ;;  %v411_v43 = vpop.f32.mrb[4].mxu1 }
  0xee   :  { %v268_v46 = vadd.f32 %v403_v42, %v42_v37  ;;  %v276_v47 = vadd.f32 %v411_v43, %v50_v38  ;;  %v215_v48 = vpop.f32.mrb[5].mxu0  ;;  %v247_v49 = vpop.f32.mrb[5].mxu1 }
  0xef   :  { %v299_v52 = vld [vmem:[#allocation2 + $0x10] sm:$0xff]  ;;  %v266_v54 = vadd.f32 %v215_v48, %v40_v39  ;;  %v274_v55 = vadd.f32 %v247_v49, %v48_v40  ;;  %v404_v56 = vpop.f32.mrb[6].mxu0  ;;  %v412_v57 = vpop.f32.mrb[6].mxu1 }
  0xf0   :  { %v307_v53 = vld [vmem:[#allocation2 + $0x50] sm:$0xff]  ;;  %v322_v58 = vadd.f32 %v526_v41, %v299_v52  ;;  %v297_v60 = vld [vmem:[#allocation2] sm:$0xff]  ;;  %284 = vst.msk [vmem:[#allocation2 + $0x30] sm:$0xff] %vm19_vm0, %v268_v46  ;;  %292 = vst.msk [vmem:[#allocation2 + $0x70] sm:$0xff] %vm19_vm0, %v276_v47  ;;  %v269_v62 = vadd.f32 %v404_v56, %v43_v44  ;;  %v277_v63 = vadd.f32 %v412_v57, %v51_v45  ;;  %v218_v0 = vpop.f32.mrb[7].mxu0  ;;  %v250_v1 = vpop.f32.mrb[7].mxu1 }
  0xf1   :  { %v330_v59 = vadd.f32 %v526_v41, %v307_v53  ;;  %v305_v61 = vld [vmem:[#allocation2 + $0x40] sm:$0xff]  ;;  %v320_v2 = vadd.f32 %v526_v41, %v297_v60  ;;  %v300_v4 = vld [vmem:[#allocation2 + $0x18] sm:$0xff]  ;;  %282 = vst.msk [vmem:[#allocation2 + $0x20] sm:$0xff] %vm19_vm0, %v266_v54  ;;  %290 = vst.msk [vmem:[#allocation2 + $0x60] sm:$0xff] %vm19_vm0, %v274_v55  ;;  %v267_v6 = vadd.f32 %v218_v0, %v41_v50 }
  0xf2   :  { %v328_v3 = vadd.f32 %v526_v41, %v305_v61  ;;  %v308_v5 = vld [vmem:[#allocation2 + $0x58] sm:$0xff]  ;;  %v275_v7 = vadd.f32 %v250_v1, %v49_v51  ;;  %338 = vst.msk [vmem:[%s619_s3 + $0x10] sm:$0xff] %vm19_vm0, %v322_v58  ;;  %v323_v8 = vadd.f32 %v526_v41, %v300_v4  ;;  %v298_v10 = vld [vmem:[#allocation2 + $0x8] sm:$0xff]  ;;  %285 = vst.msk [vmem:[#allocation2 + $0x38] sm:$0xff] %vm19_vm0, %v269_v62 }
  0xf3   :  { %346 = vst.msk [vmem:[%s619_s3 + $0x50] sm:$0xff] %vm19_vm0, %v330_v59  ;;  %v331_v9 = vadd.f32 %v526_v41, %v308_v5  ;;  %v306_v11 = vld [vmem:[#allocation2 + $0x48] sm:$0xff]  ;;  %293 = vst.msk [vmem:[#allocation2 + $0x78] sm:$0xff] %vm19_vm0, %v277_v63  ;;  %v321_v12 = vadd.f32 %v526_v41, %v298_v10 }
  0xf4   :  { %336 = vst.msk [vmem:[%s619_s3] sm:$0xff] %vm19_vm0, %v320_v2  ;;  %344 = vst.msk [vmem:[%s619_s3 + $0x40] sm:$0xff] %vm19_vm0, %v328_v3  ;;  %v329_v13 = vadd.f32 %v526_v41, %v306_v11 }
  0xf5   :  { %283 = vst.msk [vmem:[#allocation2 + $0x28] sm:$0xff] %vm19_vm0, %v267_v6  ;;  %291 = vst.msk [vmem:[#allocation2 + $0x68] sm:$0xff] %vm19_vm0, %v275_v7 }
  0xf6   :  { %339 = vst.msk [vmem:[%s619_s3 + $0x18] sm:$0xff] %vm19_vm0, %v323_v8  ;;  %347 = vst.msk [vmem:[%s619_s3 + $0x58] sm:$0xff] %vm19_vm0, %v331_v9 }
  0xf7   :  { %337 = vst.msk [vmem:[%s619_s3 + $0x8] sm:$0xff] %vm19_vm0, %v321_v12  ;;  %345 = vst.msk [vmem:[%s619_s3 + $0x48] sm:$0xff] %vm19_vm0, %v329_v13  ;;  %v303_v14 = vld [vmem:[#allocation2 + $0x30] sm:$0xff] }
  0xf8   :  { %v311_v15 = vld [vmem:[#allocation2 + $0x70] sm:$0xff]  ;;  %v326_v16 = vadd.f32 %v526_v41, %v303_v14  ;;  %v301_v18 = vld [vmem:[#allocation2 + $0x20] sm:$0xff] }
  0xf9   :  { %v334_v17 = vadd.f32 %v526_v41, %v311_v15  ;;  %v309_v19 = vld [vmem:[#allocation2 + $0x60] sm:$0xff]  ;;  %v324_v20 = vadd.f32 %v526_v41, %v301_v18  ;;  %v304_v22 = vld [vmem:[#allocation2 + $0x38] sm:$0xff] }
  0xfa   :  { %v332_v21 = vadd.f32 %v526_v41, %v309_v19  ;;  %v312_v23 = vld [vmem:[#allocation2 + $0x78] sm:$0xff]  ;;  %342 = vst.msk [vmem:[%s619_s3 + $0x30] sm:$0xff] %vm19_vm0, %v326_v16  ;;  %v327_v24 = vadd.f32 %v526_v41, %v304_v22 }
  0xfb   :  { %350 = vst.msk [vmem:[%s619_s3 + $0x70] sm:$0xff] %vm19_vm0, %v334_v17  ;;  %v335_v25 = vadd.f32 %v526_v41, %v312_v23  ;;  %340 = vst.msk [vmem:[%s619_s3 + $0x20] sm:$0xff] %vm19_vm0, %v324_v20 }
  0xfc   :  { %v302_v26 = vld [vmem:[#allocation2 + $0x28] sm:$0xff]  ;;  %348 = vst.msk [vmem:[%s619_s3 + $0x60] sm:$0xff] %vm19_vm0, %v332_v21  ;;  %343 = vst.msk [vmem:[%s619_s3 + $0x38] sm:$0xff] %vm19_vm0, %v327_v24 }
  0xfd   :  { %v310_v27 = vld [vmem:[#allocation2 + $0x68] sm:$0xff]  ;;  %v325_v28 = vadd.f32 %v526_v41, %v302_v26  ;;  %351 = vst.msk [vmem:[%s619_s3 + $0x78] sm:$0xff] %vm19_vm0, %v335_v25 }
  0xfe   :  { %v333_v29 = vadd.f32 %v526_v41, %v310_v27 }
  0xff   :  { %341 = vst.msk [vmem:[%s619_s3 + $0x28] sm:$0xff] %vm19_vm0, %v325_v28 }
 0x100   :  { %349 = vst.msk [vmem:[%s619_s3 + $0x68] sm:$0xff] %vm19_vm0, %v333_v29 }

// kernel: nystromformer_forward.20
= control target key start
LH: loop header
LB: loop body
LE: loop exit
PB: predicated region body
PF: predicated region fallthrough
CT: control target
= control target key end

     0   :  { %vm30_vm0 = vcmask 523264   ;;  %s666_s0 = inlined_call_operand.vmem [shape: f32[128,64], index: 0, kind: input, shape index: {}]   ;;  %s667_s1 = inlined_call_operand.vmem [shape: f32[1,64], index: 1, kind: input, shape index: {}]   ;;  %s668_s2 = inlined_call_operand.vmem [shape: f32[1,64], index: 2, kind: input, shape index: {}]   ;;  %s669_s3 = inlined_call_operand.vmem [shape: f32[128,64], index: 3, kind: output, shape index: {}]  }
   0x1   :  { %v14_v0 = vld [vmem:[%s666_s0] sm:$0xff]  ;;  %v16_v1 = vld [vmem:[%s666_s0 + $0x10] sm:$0xff]  ;;  %v15_v2 = vld [vmem:[%s666_s0 + $0x8] sm:$0xff] }
   0x2   :  { %v31_v3 = vsel %vm30_vm0, %v14_v0, 0.0  ;;  %v37_v4 = vsel %vm30_vm0, %v16_v1, 0.0  ;;  %v17_v5 = vld [vmem:[%s666_s0 + $0x18] sm:$0xff]  ;;  %v34_v6 = vsel %vm30_vm0, %v15_v2, 0.0  ;;  %v18_v8 = vld [vmem:[%s666_s0 + $0x20] sm:$0xff]  ;;  %v19_v9 = vld [vmem:[%s666_s0 + $0x28] sm:$0xff] }
   0x3   :  { %32 = vadd.xlane.f32.xlu0 %v31_v3  ;;  %38 = vadd.xlane.f32.xlu1 %v37_v4  ;;  %v40_v7 = vsel %vm30_vm0, %v17_v5, 0.0  ;;  %v43_v10 = vsel %vm30_vm0, %v18_v8, 0.0  ;;  %v46_v11 = vsel %vm30_vm0, %v19_v9, 0.0  ;;  %v387_v12 = vld [vmem:[%s666_s0 + $0x30] sm:$0xff]  ;;  %v392_v13 = vld [vmem:[%s666_s0 + $0x38] sm:$0xff]  ;;  %v401_v16 = vld [vmem:[%s666_s0 + $0x40] sm:$0xff] }
   0x4   :  { %v49_v14 = vsel %vm30_vm0, %v387_v12, 0.0  ;;  %v52_v15 = vsel %vm30_vm0, %v392_v13, 0.0  ;;  %v406_v17 = vld [vmem:[%s666_s0 + $0x48] sm:$0xff]  ;;  %v55_v18 = vsel %vm30_vm0, %v401_v16, 0.0  ;;  %v415_v20 = vld [vmem:[%s666_s0 + $0x50] sm:$0xff]  ;;  %v420_v21 = vld [vmem:[%s666_s0 + $0x58] sm:$0xff] }
   0x5   :  { %v58_v19 = vsel %vm30_vm0, %v406_v17, 0.0  ;;  %v61_v22 = vsel %vm30_vm0, %v415_v20, 0.0  ;;  %v64_v23 = vsel %vm30_vm0, %v420_v21, 0.0  ;;  %v429_v24 = vld [vmem:[%s666_s0 + $0x60] sm:$0xff]  ;;  %v434_v25 = vld [vmem:[%s666_s0 + $0x68] sm:$0xff]  ;;  %v443_v28 = vld [vmem:[%s666_s0 + $0x70] sm:$0xff] }
   0x6   :  { %v67_v26 = vsel %vm30_vm0, %v429_v24, 0.0  ;;  %v70_v27 = vsel %vm30_vm0, %v434_v25, 0.0  ;;  %v448_v29 = vld [vmem:[%s666_s0 + $0x78] sm:$0xff]  ;;  %v73_v30 = vsel %vm30_vm0, %v443_v28, 0.0 }
   0x7   :  { %35 = vadd.xlane.f32.xlu0 %v34_v6  ;;  %41 = vadd.xlane.f32.xlu1 %v40_v7  ;;  %v76_v31 = vsel %vm30_vm0, %v448_v29, 0.0 }
   0xb   :  { %44 = vadd.xlane.f32.xlu0 %v43_v10  ;;  %47 = vadd.xlane.f32.xlu1 %v46_v11 }
   0xf   :  { %50 = vadd.xlane.f32.xlu0 %v49_v14  ;;  %53 = vadd.xlane.f32.xlu1 %v52_v15 }
  0x13   :  { %56 = vadd.xlane.f32.xlu0 %v55_v18  ;;  %59 = vadd.xlane.f32.xlu1 %v58_v19 }
  0x17   :  { %62 = vadd.xlane.f32.xlu0 %v61_v22  ;;  %65 = vadd.xlane.f32.xlu1 %v64_v23 }
  0x1b   :  { %68 = vadd.xlane.f32.xlu0 %v67_v26  ;;  %71 = vadd.xlane.f32.xlu1 %v70_v27 }
  0x1f   :  { %74 = vadd.xlane.f32.xlu0 %v73_v30  ;;  %77 = vadd.xlane.f32.xlu1 %v76_v31 }
  0x90   :  { %v33_v32 = vpop.xlane.xlu0 %32  ;;  %v39_v33 = vpop.xlane.xlu1 %38 }
  0x91   :  { %v80_v34 = vmul.f32 0.015625, %v33_v32  ;;  %v82_v35 = vmul.f32 0.015625, %v39_v33 }
  0x93   :  { %v454_v36 = vsub.f32 %v14_v0, %v80_v34  ;;  %v456_v37 = vsub.f32 %v16_v1, %v82_v35 }
  0x94   :  { %v36_v38 = vpop.xlane.xlu0 %35  ;;  %v42_v39 = vpop.xlane.xlu1 %41 }
  0x95   :  { %v81_v40 = vmul.f32 0.015625, %v36_v38  ;;  %v83_v41 = vmul.f32 0.015625, %v42_v39  ;;  %v112_v42 = vmul.f32 %v454_v36, %v454_v36  ;;  %v114_v43 = vmul.f32 %v456_v37, %v456_v37 }
  0x97   :  { %v462_v44 = vsub.f32 %v15_v2, %v81_v40  ;;  %v464_v45 = vsub.f32 %v17_v5, %v83_v41  ;;  %v128_v46 = vsel %vm30_vm0, %v112_v42, 0.0  ;;  %v134_v49 = vsel %vm30_vm0, %v114_v43, 0.0 }
  0x98   :  { %129 = vadd.xlane.f32.xlu0 %v128_v46  ;;  %v45_v47 = vpop.xlane.xlu0 %44  ;;  %v48_v48 = vpop.xlane.xlu1 %47 }
  0x99   :  { %v84_v50 = vmul.f32 0.015625, %v45_v47  ;;  %v85_v51 = vmul.f32 0.015625, %v48_v48  ;;  %v113_v52 = vmul.f32 %v462_v44, %v462_v44  ;;  %v115_v53 = vmul.f32 %v464_v45, %v464_v45 }
  0x9b   :  { %v472_v54 = vsub.f32 %v18_v8, %v84_v50  ;;  %v474_v55 = vsub.f32 %v19_v9, %v85_v51  ;;  %v131_v56 = vsel %vm30_vm0, %v113_v52, 0.0  ;;  %v137_v59 = vsel %vm30_vm0, %v115_v53, 0.0 }
  0x9c   :  { %135 = vadd.xlane.f32.xlu0 %v134_v49  ;;  %132 = vadd.xlane.f32.xlu1 %v131_v56  ;;  %v51_v57 = vpop.xlane.xlu0 %50  ;;  %v54_v58 = vpop.xlane.xlu1 %53 }
  0x9d   :  { %v86_v60 = vmul.f32 0.015625, %v51_v57  ;;  %v87_v61 = vmul.f32 0.015625, %v54_v58  ;;  %v116_v62 = vmul.f32 %v472_v54, %v472_v54  ;;  %v117_v63 = vmul.f32 %v474_v55, %v474_v55 }
  0x9f   :  { %v483_v0 = vsub.f32 %v387_v12, %v86_v60  ;;  %v486_v1 = vsub.f32 %v392_v13, %v87_v61  ;;  %v140_v2 = vsel %vm30_vm0, %v116_v62, 0.0  ;;  %v143_v5 = vsel %vm30_vm0, %v117_v63, 0.0 }
  0xa0   :  { %138 = vadd.xlane.f32.xlu1 %v137_v59  ;;  %141 = vadd.xlane.f32.xlu0 %v140_v2  ;;  %v57_v3 = vpop.xlane.xlu0 %56  ;;  %v60_v4 = vpop.xlane.xlu1 %59 }
  0xa1   :  { %v88_v6 = vmul.f32 0.015625, %v57_v3  ;;  %v89_v7 = vmul.f32 0.015625, %v60_v4  ;;  %v118_v8 = vmul.f32 %v483_v0, %v483_v0  ;;  %v119_v9 = vmul.f32 %v486_v1, %v486_v1 }
  0xa3   :  { %v495_v10 = vsub.f32 %v401_v16, %v88_v6  ;;  %v498_v11 = vsub.f32 %v406_v17, %v89_v7  ;;  %v146_v12 = vsel %vm30_vm0, %v118_v8, 0.0  ;;  %v149_v15 = vsel %vm30_vm0, %v119_v9, 0.0 }
  0xa4   :  { %144 = vadd.xlane.f32.xlu1 %v143_v5  ;;  %147 = vadd.xlane.f32.xlu0 %v146_v12  ;;  %v63_v13 = vpop.xlane.xlu0 %62  ;;  %v66_v14 = vpop.xlane.xlu1 %65 }
  0xa5   :  { %v90_v18 = vmul.f32 0.015625, %v63_v13  ;;  %v91_v19 = vmul.f32 0.015625, %v66_v14  ;;  %v120_v22 = vmul.f32 %v495_v10, %v495_v10  ;;  %v121_v16 = vmul.f32 %v498_v11, %v498_v11  ;;  %v547_v14 = vld [vmem:[%s667_s1] ss:$0 sm:$0xff] }
  0xa7   :  { %v507_v23 = vsub.f32 %v415_v20, %v90_v18  ;;  %v510_v17 = vsub.f32 %v420_v21, %v91_v19  ;;  %v152_v26 = vsel %vm30_vm0, %v120_v22, 0.0  ;;  %v155_v31 = vsel %vm30_vm0, %v121_v16, 0.0 }
  0xa8   :  { %150 = vadd.xlane.f32.xlu1 %v149_v15  ;;  %153 = vadd.xlane.f32.xlu0 %v152_v26  ;;  %v69_v27 = vpop.xlane.xlu0 %68  ;;  %v72_v30 = vpop.xlane.xlu1 %71  ;;  %v553_v26 = vld [vmem:[%s668_s2] ss:$0 sm:$0xff] }
  0xa9   :  { %v92_v32 = vmul.f32 0.015625, %v69_v27  ;;  %v93_v33 = vmul.f32 0.015625, %v72_v30  ;;  %v122_v34 = vmul.f32 %v507_v23, %v507_v23  ;;  %v123_v20 = vmul.f32 %v510_v17, %v510_v17 }
  0xab   :  { %v519_v35 = vsub.f32 %v429_v24, %v92_v32  ;;  %v522_v21 = vsub.f32 %v434_v25, %v93_v33  ;;  %v158_v38 = vsel %vm30_vm0, %v122_v34, 0.0  ;;  %v161_v41 = vsel %vm30_vm0, %v123_v20, 0.0 }
  0xac   :  { %156 = vadd.xlane.f32.xlu1 %v155_v31  ;;  %159 = vadd.xlane.f32.xlu0 %v158_v38  ;;  %v75_v39 = vpop.xlane.xlu0 %74  ;;  %v78_v40 = vpop.xlane.xlu1 %77 }
  0xad   :  { %v94_v42 = vmul.f32 0.015625, %v75_v39  ;;  %v95_v43 = vmul.f32 0.015625, %v78_v40  ;;  %v124_v46 = vmul.f32 %v519_v35, %v519_v35  ;;  %v125_v24 = vmul.f32 %v522_v21, %v522_v21 }
  0xaf   :  { %v531_v47 = vsub.f32 %v443_v28, %v94_v42  ;;  %v534_v25 = vsub.f32 %v448_v29, %v95_v43  ;;  %v164_v48 = vsel %vm30_vm0, %v124_v46, 0.0  ;;  %v167_v49 = vsel %vm30_vm0, %v125_v24, 0.0 }
  0xb0   :  { %162 = vadd.xlane.f32.xlu1 %v161_v41  ;;  %165 = vadd.xlane.f32.xlu0 %v164_v48 }
  0xb1   :  { %v126_v50 = vmul.f32 %v531_v47, %v531_v47  ;;  %v127_v51 = vmul.f32 %v534_v25, %v534_v25 }
  0xb3   :  { %v170_v52 = vsel %vm30_vm0, %v126_v50, 0.0  ;;  %v173_v28 = vsel %vm30_vm0, %v127_v51, 0.0 }
  0xb4   :  { %168 = vadd.xlane.f32.xlu1 %v167_v49  ;;  %171 = vadd.xlane.f32.xlu0 %v170_v52 }
  0xb8   :  { %174 = vadd.xlane.f32.xlu1 %v173_v28 }
 0x125   :  { %v130_v29 = vpop.xlane.xlu0 %129 }
 0x126   :  { %v176_v53 = vmul.f32 0.015625, %v130_v29 }
 0x128   :  { %v192_v56 = vadd.f32 1e-05, %v176_v53 }
 0x129   :  { %v133_v57 = vpop.xlane.xlu1 %132  ;;  %v136_v58 = vpop.xlane.xlu0 %135 }
 0x12a   :  { %308 = vrsqrt.f32 %v192_v56  ;;  %v177_v59 = vmul.f32 0.015625, %v133_v57  ;;  %v178_v60 = vmul.f32 0.015625, %v136_v58 }
 0x12c   :  { %v193_v61 = vadd.f32 1e-05, %v177_v59  ;;  %v194_v62 = vadd.f32 1e-05, %v178_v60 }
 0x12d   :  { %v139_v63 = vpop.xlane.xlu1 %138  ;;  %v142_v2 = vpop.xlane.xlu0 %141 }
 0x12e   :  { %310 = vrsqrt.f32 %v193_v61  ;;  %v179_v3 = vmul.f32 0.015625, %v139_v63  ;;  %v180_v4 = vmul.f32 0.015625, %v142_v2 }
 0x12f   :  { %312 = vrsqrt.f32 %v194_v62 }
 0x130   :  { %v195_v5 = vadd.f32 1e-05, %v179_v3  ;;  %v196_v6 = vadd.f32 1e-05, %v180_v4 }
 0x131   :  { %v145_v7 = vpop.xlane.xlu1 %144  ;;  %v148_v8 = vpop.xlane.xlu0 %147 }
 0x132   :  { %314 = vrsqrt.f32 %v195_v5  ;;  %v181_v9 = vmul.f32 0.015625, %v145_v7  ;;  %v182_v12 = vmul.f32 0.015625, %v148_v8 }
 0x133   :  { %316 = vrsqrt.f32 %v196_v6 }
 0x134   :  { %v309_v13 = vpop.eup %308  ;;  %v197_v15 = vadd.f32 1e-05, %v181_v9  ;;  %v198_v18 = vadd.f32 1e-05, %v182_v12 }
 0x135   :  { %v224_v19 = vmul.f32 %v309_v13, %v454_v36  ;;  %v151_v22 = vpop.xlane.xlu1 %150  ;;  %v154_v16 = vpop.xlane.xlu0 %153 }
 0x136   :  { %318 = vrsqrt.f32 %v197_v15  ;;  %v183_v27 = vmul.f32 0.015625, %v151_v22  ;;  %v184_v30 = vmul.f32 0.015625, %v154_v16 }
 0x137   :  { %v247_v31 = vmul.f32 %v547_v14, %v224_v19  ;;  %320 = vrsqrt.f32 %v198_v18 }
 0x138   :  { %v311_v32 = vpop.eup %310  ;;  %v199_v33 = vadd.f32 1e-05, %v183_v27  ;;  %v200_v34 = vadd.f32 1e-05, %v184_v30 }
 0x139   :  { %v313_v20 = vpop.eup %312  ;;  %v270_v38 = vadd.f32 %v553_v26, %v247_v31  ;;  %v225_v36 = vmul.f32 %v311_v32, %v462_v44  ;;  %v157_v39 = vpop.xlane.xlu1 %156 }
 0x13a   :  { %v160_v40 = vpop.xlane.xlu0 %159  ;;  %v226_v41 = vmul.f32 %v313_v20, %v456_v37  ;;  %322 = vrsqrt.f32 %v199_v33  ;;  %v185_v42 = vmul.f32 0.015625, %v157_v39 }
 0x13b   :  { %v186_v43 = vmul.f32 0.015625, %v160_v40  ;;  %286 = vst.msk [vmem:[%s669_s3] sm:$0xff] %vm30_vm0, %v270_v38  ;;  %v248_v46 = vmul.f32 %v547_v14, %v225_v36  ;;  %324 = vrsqrt.f32 %v200_v34 }
 0x13c   :  { %v315_v24 = vpop.eup %314  ;;  %v249_v48 = vmul.f32 %v547_v14, %v226_v41  ;;  %v201_v49 = vadd.f32 1e-05, %v185_v42 }
 0x13d   :  { %v202_v44 = vadd.f32 1e-05, %v186_v43  ;;  %v317_v50 = vpop.eup %316  ;;  %v271_v51 = vadd.f32 %v553_v26, %v248_v46  ;;  %v227_v37 = vmul.f32 %v315_v24, %v464_v45  ;;  %v163_v52 = vpop.xlane.xlu1 %162 }
 0x13e   :  { %v166_v28 = vpop.xlane.xlu0 %165  ;;  %v272_v29 = vadd.f32 %v553_v26, %v249_v48  ;;  %v228_v53 = vmul.f32 %v317_v50, %v472_v54  ;;  %326 = vrsqrt.f32 %v201_v49  ;;  %v187_v56 = vmul.f32 0.015625, %v163_v52 }
 0x13f   :  { %287 = vst.msk [vmem:[%s669_s3 + $0x8] sm:$0xff] %vm30_vm0, %v271_v51  ;;  %v250_v57 = vmul.f32 %v547_v14, %v227_v37  ;;  %328 = vrsqrt.f32 %v202_v44  ;;  %v188_v58 = vmul.f32 0.015625, %v166_v28 }
 0x140   :  { %v319_v59 = vpop.eup %318  ;;  %288 = vst.msk [vmem:[%s669_s3 + $0x10] sm:$0xff] %vm30_vm0, %v272_v29  ;;  %v251_v45 = vmul.f32 %v547_v14, %v228_v53  ;;  %v203_v54 = vadd.f32 1e-05, %v187_v56 }
 0x141   :  { %v321_v60 = vpop.eup %320  ;;  %v273_v61 = vadd.f32 %v553_v26, %v250_v57  ;;  %v229_v62 = vmul.f32 %v319_v59, %v474_v55  ;;  %v204_v63 = vadd.f32 1e-05, %v188_v58  ;;  %v169_v2 = vpop.xlane.xlu1 %168 }
 0x142   :  { %v172_v3 = vpop.xlane.xlu0 %171  ;;  %v274_v4 = vadd.f32 %v553_v26, %v251_v45  ;;  %v230_v5 = vmul.f32 %v321_v60, %v483_v0  ;;  %330 = vrsqrt.f32 %v203_v54  ;;  %v189_v6 = vmul.f32 0.015625, %v169_v2 }
 0x143   :  { %289 = vst.msk [vmem:[%s669_s3 + $0x18] sm:$0xff] %vm30_vm0, %v273_v61  ;;  %v252_v7 = vmul.f32 %v547_v14, %v229_v62  ;;  %332 = vrsqrt.f32 %v204_v63  ;;  %v190_v8 = vmul.f32 0.015625, %v172_v3 }
 0x144   :  { %v323_v9 = vpop.eup %322  ;;  %290 = vst.msk [vmem:[%s669_s3 + $0x20] sm:$0xff] %vm30_vm0, %v274_v4  ;;  %v253_v55 = vmul.f32 %v547_v14, %v230_v5  ;;  %v205_v0 = vadd.f32 1e-05, %v189_v6 }
 0x145   :  { %v325_v12 = vpop.eup %324  ;;  %v275_v13 = vadd.f32 %v553_v26, %v252_v7  ;;  %v231_v15 = vmul.f32 %v323_v9, %v486_v1  ;;  %v206_v18 = vadd.f32 1e-05, %v190_v8  ;;  %v175_v19 = vpop.xlane.xlu1 %174 }
 0x146   :  { %v276_v22 = vadd.f32 %v553_v26, %v253_v55  ;;  %v232_v16 = vmul.f32 %v325_v12, %v495_v10  ;;  %334 = vrsqrt.f32 %v205_v0  ;;  %v191_v27 = vmul.f32 0.015625, %v175_v19 }
 0x147   :  { %291 = vst.msk [vmem:[%s669_s3 + $0x28] sm:$0xff] %vm30_vm0, %v275_v13  ;;  %v254_v30 = vmul.f32 %v547_v14, %v231_v15  ;;  %336 = vrsqrt.f32 %v206_v18 }
 0x148   :  { %v327_v31 = vpop.eup %326  ;;  %292 = vst.msk [vmem:[%s669_s3 + $0x30] sm:$0xff] %vm30_vm0, %v276_v22  ;;  %v255_v1 = vmul.f32 %v547_v14, %v232_v16  ;;  %v207_v32 = vadd.f32 1e-05, %v191_v27 }
 0x149   :  { %v329_v10 = vpop.eup %328  ;;  %v277_v33 = vadd.f32 %v553_v26, %v254_v30  ;;  %v233_v34 = vmul.f32 %v327_v31, %v498_v11 }
 0x14a   :  { %v278_v20 = vadd.f32 %v553_v26, %v255_v1  ;;  %v234_v38 = vmul.f32 %v329_v10, %v507_v23  ;;  %338 = vrsqrt.f32 %v207_v32 }
 0x14b   :  { %293 = vst.msk [vmem:[%s669_s3 + $0x38] sm:$0xff] %vm30_vm0, %v277_v33  ;;  %v256_v36 = vmul.f32 %v547_v14, %v233_v34 }
 0x14c   :  { %v331_v39 = vpop.eup %330  ;;  %294 = vst.msk [vmem:[%s669_s3 + $0x40] sm:$0xff] %vm30_vm0, %v278_v20  ;;  %v257_v11 = vmul.f32 %v547_v14, %v234_v38 }
 0x14d   :  { %v333_v40 = vpop.eup %332  ;;  %v279_v41 = vadd.f32 %v553_v26, %v256_v36  ;;  %v235_v23 = vmul.f32 %v331_v39, %v510_v17 }
 0x14e   :  { %v280_v42 = vadd.f32 %v553_v26, %v257_v11  ;;  %v236_v43 = vmul.f32 %v333_v40, %v519_v35 }
 0x14f   :  { %295 = vst.msk [vmem:[%s669_s3 + $0x48] sm:$0xff] %vm30_vm0, %v279_v41  ;;  %v258_v46 = vmul.f32 %v547_v14, %v235_v23 }
 0x150   :  { %v335_v24 = vpop.eup %334  ;;  %296 = vst.msk [vmem:[%s669_s3 + $0x50] sm:$0xff] %vm30_vm0, %v280_v42  ;;  %v259_v48 = vmul.f32 %v547_v14, %v236_v43 }
 0x151   :  { %v337_v17 = vpop.eup %336  ;;  %v281_v49 = vadd.f32 %v553_v26, %v258_v46  ;;  %v237_v35 = vmul.f32 %v335_v24, %v522_v21 }
 0x152   :  { %v282_v44 = vadd.f32 %v553_v26, %v259_v48  ;;  %v238_v50 = vmul.f32 %v337_v17, %v531_v47 }
 0x153   :  { %297 = vst.msk [vmem:[%s669_s3 + $0x58] sm:$0xff] %vm30_vm0, %v281_v49  ;;  %v260_v51 = vmul.f32 %v547_v14, %v237_v35 }
 0x154   :  { %v339_v37 = vpop.eup %338  ;;  %298 = vst.msk [vmem:[%s669_s3 + $0x60] sm:$0xff] %vm30_vm0, %v282_v44  ;;  %v261_v52 = vmul.f32 %v547_v14, %v238_v50 }
 0x155   :  { %v283_v21 = vadd.f32 %v553_v26, %v260_v51  ;;  %v239_v28 = vmul.f32 %v339_v37, %v534_v25 }
 0x156   :  { %v284_v47 = vadd.f32 %v553_v26, %v261_v52 }
 0x157   :  { %299 = vst.msk [vmem:[%s669_s3 + $0x68] sm:$0xff] %vm30_vm0, %v283_v21  ;;  %v262_v29 = vmul.f32 %v547_v14, %v239_v28 }
 0x158   :  { %300 = vst.msk [vmem:[%s669_s3 + $0x70] sm:$0xff] %vm30_vm0, %v284_v47 }
 0x159   :  { %v285_v53 = vadd.f32 %v553_v26, %v262_v29 }
 0x15b   :  { %301 = vst.msk [vmem:[%s669_s3 + $0x78] sm:$0xff] %vm30_vm0, %v285_v53 }

// kernel: nystromformer_forward.22
= control target key start
LH: loop header
LB: loop body
LE: loop exit
PB: predicated region body
PF: predicated region fallthrough
CT: control target
= control target key end

     0   :  { %vm19_vm0 = vcmask 523264   ;;  %v610_v1 = vmov 0.0   ;;  %s893_s1 = inlined_call_operand.vmem [shape: bf16[64,64], index: 1, kind: input, shape index: {}]   ;;  %s894_s0 = inlined_call_operand.vmem [shape: bf16[128,64], index: 0, kind: input, shape index: {}]   ;;  %s895_s2 = inlined_call_operand.vmem [shape: f32[1,64], index: 2, kind: input, shape index: {}]   ;;  %s896_s3 = inlined_call_operand.vmem [shape: f32[128,64], index: 3, kind: output, shape index: {}]  }
   0x1   :  { %v566_v0 = vld [vmem:[%s893_s1] sm:$0xff]   ;;  %22 = vst.msk [vmem:[#allocation2 + $0x10] sm:$0xff] %vm19_vm0, %v610_v1  ;;  %20 = vst.msk [vmem:[#allocation2] sm:$0xff] %vm19_vm0, %v610_v1  ;;  %v567_v2 = vld [vmem:[%s893_s1 + $0x8] sm:$0xff]  }
   0x2   :  { %21 = vst.msk [vmem:[#allocation2 + $0x8] sm:$0xff] %vm19_vm0, %v610_v1  ;;  %23 = vst.msk [vmem:[#allocation2 + $0x18] sm:$0xff] %vm19_vm0, %v610_v1  ;;  %533 = vmatprep.subr.bf16.mxu0 %v566_v0  ;;  %557 = vmatprep.subr.bf16.mxu1 %v566_v0  ;;  %v568_v3 = vld [vmem:[%s893_s1 + $0x10] sm:$0xff]   ;;  %v570_v4 = vld [vmem:[%s894_s0] sm:$0xff]  }
   0x3   :  { %24 = vst.msk [vmem:[#allocation2 + $0x20] sm:$0xff] %vm19_vm0, %v610_v1  ;;  %25 = vst.msk [vmem:[#allocation2 + $0x28] sm:$0xff] %vm19_vm0, %v610_v1  ;;  %534 = vmatpush3.bf16.msra.mxu0 %v566_v0  ;;  %561 = vmatpush3.bf16.msra.mxu1 %v566_v0  ;;  %v571_v5 = vld [vmem:[%s894_s0 + $0x20] sm:$0xff]   ;;  %v569_v6 = vld [vmem:[%s893_s1 + $0x18] sm:$0xff]  }
   0x4   :  { %26 = vst.msk [vmem:[#allocation2 + $0x30] sm:$0xff] %vm19_vm0, %v610_v1  ;;  %27 = vst.msk [vmem:[#allocation2 + $0x38] sm:$0xff] %vm19_vm0, %v610_v1  ;;  %535 = vmatprep.subr.bf16.mxu0 %v567_v2  ;;  %558 = vmatprep.subr.bf16.mxu1 %v567_v2  ;;  %v572_v7 = vld [vmem:[%s894_s0 + $0x8] sm:$0xff]   ;;  %v574_v9 = vld [vmem:[%s894_s0 + $0x10] sm:$0xff]  }
   0x5   :  { %28 = vst.msk [vmem:[#allocation2 + $0x40] sm:$0xff] %vm19_vm0, %v610_v1  ;;  %29 = vst.msk [vmem:[#allocation2 + $0x48] sm:$0xff] %vm19_vm0, %v610_v1  ;;  %541 = vmatprep.mubr.msk.bf16.mxu0 %vm19_vm0, %v570_v4  ;;  %549 = vmatprep.mubr.msk.bf16.mxu1 %vm19_vm0, %v571_v5  ;;  %v573_v8 = vld [vmem:[%s894_s0 + $0x28] sm:$0xff]   ;;  %v575_v10 = vld [vmem:[%s894_s0 + $0x30] sm:$0xff]  }
   0x6   :  { %30 = vst.msk [vmem:[#allocation2 + $0x50] sm:$0xff] %vm19_vm0, %v610_v1  ;;  %31 = vst.msk [vmem:[#allocation2 + $0x58] sm:$0xff] %vm19_vm0, %v610_v1  ;;  %v576_v11 = vld [vmem:[%s894_s0 + $0x18] sm:$0xff]   ;;  %v702_v41 = vld [vmem:[%s895_s2] ss:$0 sm:$0xff] }
   0x7   :  { %32 = vst.msk [vmem:[#allocation2 + $0x60] sm:$0xff] %vm19_vm0, %v610_v1  ;;  %33 = vst.msk [vmem:[#allocation2 + $0x68] sm:$0xff] %vm19_vm0, %v610_v1  ;;  %536 = vmatpush3.bf16.msra.mxu0 %v567_v2  ;;  %562 = vmatpush3.bf16.msra.mxu1 %v567_v2  ;;  %v577_v12 = vld [vmem:[%s894_s0 + $0x38] sm:$0xff]  }
   0x8   :  { %34 = vst.msk [vmem:[#allocation2 + $0x70] sm:$0xff] %vm19_vm0, %v610_v1  ;;  %35 = vst.msk [vmem:[#allocation2 + $0x78] sm:$0xff] %vm19_vm0, %v610_v1  ;;  %537 = vmatprep.subr.bf16.mxu0 %v568_v3  ;;  %559 = vmatprep.subr.bf16.mxu1 %v568_v3  ;;  %v38_v13 = vld [vmem:[#allocation2 + $0x10] sm:$0xff]  ;;  %v36_v15 = vld [vmem:[#allocation2] sm:$0xff] }
   0x9   :  { %v39_v19 = vld [vmem:[#allocation2 + $0x18] sm:$0xff]  ;;  %v37_v25 = vld [vmem:[#allocation2 + $0x8] sm:$0xff] }
   0xa   :  { %v40_v39 = vld [vmem:[#allocation2 + $0x20] sm:$0xff]  ;;  %v41_v50 = vld [vmem:[#allocation2 + $0x28] sm:$0xff] }
   0xb   :  { %538 = vmatpush3.bf16.msra.mxu0 %v568_v3  ;;  %563 = vmatpush3.bf16.msra.mxu1 %v568_v3  ;;  %v42_v37 = vld [vmem:[#allocation2 + $0x30] sm:$0xff]  ;;  %v43_v44 = vld [vmem:[#allocation2 + $0x38] sm:$0xff] }
   0xc   :  { %539 = vmatprep.subr.bf16.mxu0 %v569_v6  ;;  %560 = vmatprep.subr.bf16.mxu1 %v569_v6  ;;  %v44_v16 = vld [vmem:[#allocation2 + $0x40] sm:$0xff]  ;;  %v45_v26 = vld [vmem:[#allocation2 + $0x48] sm:$0xff] }
   0xd   :  { %v46_v14 = vld [vmem:[#allocation2 + $0x50] sm:$0xff]  ;;  %v47_v20 = vld [vmem:[#allocation2 + $0x58] sm:$0xff] }
   0xe   :  { %v48_v40 = vld [vmem:[#allocation2 + $0x60] sm:$0xff]  ;;  %v49_v51 = vld [vmem:[#allocation2 + $0x68] sm:$0xff] }
   0xf   :  { %540 = vmatpush3.bf16.msra.mxu0 %v569_v6  ;;  %564 = vmatpush3.bf16.msra.mxu1 %v569_v6  ;;  %v50_v38 = vld [vmem:[#allocation2 + $0x70] sm:$0xff]  ;;  %v51_v45 = vld [vmem:[#allocation2 + $0x78] sm:$0xff] }
  0x12   :  { %542 = vmatmul.mubr.msk.bf16.vlgmr.msra.gmra.mrb[0].mxu0 %vm19_vm0, %v572_v7  ;;  %550 = vmatmul.mubr.msk.bf16.vlgmr.msra.gmra.mrb[0].mxu1 %vm19_vm0, %v573_v8 }
  0x13   :  { %545 = vmatprep.mubr.msk.bf16.mxu0 %vm19_vm0, %v574_v9  ;;  %553 = vmatprep.mubr.msk.bf16.mxu1 %vm19_vm0, %v575_v10 }
  0x1a   :  { %546 = vmatmul.mubr.msk.bf16.gmra.mrb[4].mxu0 %vm19_vm0, %v576_v11  ;;  %554 = vmatmul.mubr.msk.bf16.gmra.mrb[4].mxu1 %vm19_vm0, %v577_v12 }
  0xe5   :  { %v543_v17 = vpop.f32.mrb[0].mxu0  ;;  %v551_v18 = vpop.f32.mrb[0].mxu1 }
  0xe6   :  { %v264_v21 = vadd.f32 %v543_v17, %v38_v13  ;;  %v272_v22 = vadd.f32 %v551_v18, %v46_v14  ;;  %v199_v23 = vpop.f32.mrb[1].mxu0  ;;  %v231_v24 = vpop.f32.mrb[1].mxu1 }
  0xe7   :  { %v262_v27 = vadd.f32 %v199_v23, %v36_v15  ;;  %v270_v28 = vadd.f32 %v231_v24, %v44_v16  ;;  %v544_v29 = vpop.f32.mrb[2].mxu0  ;;  %v552_v30 = vpop.f32.mrb[2].mxu1 }
  0xe8   :  { %280 = vst.msk [vmem:[#allocation2 + $0x10] sm:$0xff] %vm19_vm0, %v264_v21  ;;  %288 = vst.msk [vmem:[#allocation2 + $0x50] sm:$0xff] %vm19_vm0, %v272_v22  ;;  %v265_v31 = vadd.f32 %v544_v29, %v39_v19  ;;  %v273_v32 = vadd.f32 %v552_v30, %v47_v20  ;;  %v202_v33 = vpop.f32.mrb[3].mxu0  ;;  %v234_v34 = vpop.f32.mrb[3].mxu1 }
  0xe9   :  { %278 = vst.msk [vmem:[#allocation2] sm:$0xff] %vm19_vm0, %v262_v27  ;;  %286 = vst.msk [vmem:[#allocation2 + $0x40] sm:$0xff] %vm19_vm0, %v270_v28  ;;  %v263_v35 = vadd.f32 %v202_v33, %v37_v25  ;;  %v271_v36 = vadd.f32 %v234_v34, %v45_v26 }
  0xea   :  { %281 = vst.msk [vmem:[#allocation2 + $0x18] sm:$0xff] %vm19_vm0, %v265_v31  ;;  %289 = vst.msk [vmem:[#allocation2 + $0x58] sm:$0xff] %vm19_vm0, %v273_v32 }
  0xeb   :  { %279 = vst.msk [vmem:[#allocation2 + $0x8] sm:$0xff] %vm19_vm0, %v263_v35  ;;  %287 = vst.msk [vmem:[#allocation2 + $0x48] sm:$0xff] %vm19_vm0, %v271_v36 }
  0xed   :  { %v547_v42 = vpop.f32.mrb[4].mxu0  ;;  %v555_v43 = vpop.f32.mrb[4].mxu1 }
  0xee   :  { %v268_v46 = vadd.f32 %v547_v42, %v42_v37  ;;  %v276_v47 = vadd.f32 %v555_v43, %v50_v38  ;;  %v215_v48 = vpop.f32.mrb[5].mxu0  ;;  %v247_v49 = vpop.f32.mrb[5].mxu1 }
  0xef   :  { %v299_v52 = vld [vmem:[#allocation2 + $0x10] sm:$0xff]  ;;  %v266_v54 = vadd.f32 %v215_v48, %v40_v39  ;;  %v274_v55 = vadd.f32 %v247_v49, %v48_v40  ;;  %v548_v56 = vpop.f32.mrb[6].mxu0  ;;  %v556_v57 = vpop.f32.mrb[6].mxu1 }
  0xf0   :  { %v307_v53 = vld [vmem:[#allocation2 + $0x50] sm:$0xff]  ;;  %v322_v58 = vadd.f32 %v702_v41, %v299_v52  ;;  %v297_v60 = vld [vmem:[#allocation2] sm:$0xff]  ;;  %284 = vst.msk [vmem:[#allocation2 + $0x30] sm:$0xff] %vm19_vm0, %v268_v46  ;;  %292 = vst.msk [vmem:[#allocation2 + $0x70] sm:$0xff] %vm19_vm0, %v276_v47  ;;  %v269_v62 = vadd.f32 %v548_v56, %v43_v44  ;;  %v277_v63 = vadd.f32 %v556_v57, %v51_v45  ;;  %v218_v0 = vpop.f32.mrb[7].mxu0  ;;  %v250_v1 = vpop.f32.mrb[7].mxu1 }
  0xf1   :  { %v706_v59 = vadd.f32 %v702_v41, %v307_v53  ;;  %v305_v61 = vld [vmem:[#allocation2 + $0x40] sm:$0xff]  ;;  %v711_v2 = vadd.f32 %v702_v41, %v297_v60  ;;  %v300_v4 = vld [vmem:[#allocation2 + $0x18] sm:$0xff]  ;;  %282 = vst.msk [vmem:[#allocation2 + $0x20] sm:$0xff] %vm19_vm0, %v266_v54  ;;  %290 = vst.msk [vmem:[#allocation2 + $0x60] sm:$0xff] %vm19_vm0, %v274_v55  ;;  %v267_v6 = vadd.f32 %v218_v0, %v41_v50 }
  0xf2   :  { %v714_v3 = vadd.f32 %v702_v41, %v305_v61  ;;  %v308_v5 = vld [vmem:[#allocation2 + $0x58] sm:$0xff]  ;;  %v275_v7 = vadd.f32 %v250_v1, %v49_v51  ;;  %v354_v8 = vmul.f32 0.044715, %v322_v58  ;;  %285 = vst.msk [vmem:[#allocation2 + $0x38] sm:$0xff] %vm19_vm0, %v269_v62  ;;  %293 = vst.msk [vmem:[#allocation2 + $0x78] sm:$0xff] %vm19_vm0, %v277_v63  ;;  %v727_v14 = vadd.f32 %v702_v41, %v300_v4  ;;  %v298_v16 = vld [vmem:[#allocation2 + $0x8] sm:$0xff] }
  0xf3   :  { %v362_v9 = vmul.f32 0.044715, %v706_v59  ;;  %v352_v10 = vmul.f32 0.044715, %v711_v2  ;;  %283 = vst.msk [vmem:[#allocation2 + $0x28] sm:$0xff] %vm19_vm0, %v267_v6  ;;  %v730_v15 = vadd.f32 %v702_v41, %v308_v5  ;;  %v735_v19 = vadd.f32 %v702_v41, %v298_v16  ;;  %v306_v20 = vld [vmem:[#allocation2 + $0x48] sm:$0xff] }
  0xf4   :  { %v360_v11 = vmul.f32 0.044715, %v714_v3  ;;  %291 = vst.msk [vmem:[#allocation2 + $0x68] sm:$0xff] %vm19_vm0, %v275_v7  ;;  %v370_v12 = vmul.f32 %v354_v8, %v322_v58  ;;  %v355_v23 = vmul.f32 0.044715, %v727_v14  ;;  %v745_v30 = vadd.f32 %v702_v41, %v306_v20 }
  0xf5   :  { %v378_v13 = vmul.f32 %v362_v9, %v706_v59  ;;  %v368_v17 = vmul.f32 %v352_v10, %v711_v2  ;;  %v363_v26 = vmul.f32 0.044715, %v730_v15  ;;  %v353_v34 = vmul.f32 0.044715, %v735_v19 }
  0xf6   :  { %v376_v18 = vmul.f32 %v360_v11, %v714_v3  ;;  %v386_v21 = vmul.f32 %v370_v12, %v322_v58  ;;  %v371_v29 = vmul.f32 %v355_v23, %v727_v14  ;;  %v751_v36 = vmul.f32 0.5, %v322_v58 }
  0xf7   :  { %v394_v22 = vmul.f32 %v378_v13, %v706_v59  ;;  %v384_v24 = vmul.f32 %v368_v17, %v711_v2  ;;  %v379_v33 = vmul.f32 %v363_v26, %v730_v15  ;;  %v303_v35 = vld [vmem:[#allocation2 + $0x30] sm:$0xff]  ;;  %v369_v45 = vmul.f32 %v353_v34, %v735_v19 }
  0xf8   :  { %v392_v25 = vmul.f32 %v376_v18, %v714_v3  ;;  %v402_v27 = vadd.f32 %v386_v21, %v322_v58  ;;  %v387_v39 = vmul.f32 %v371_v29, %v727_v14  ;;  %v311_v40 = vld [vmem:[#allocation2 + $0x70] sm:$0xff]  ;;  %v361_v47 = vmul.f32 0.044715, %v745_v30  ;;  %v301_v55 = vld [vmem:[#allocation2 + $0x20] sm:$0xff] }
  0xf9   :  { %v410_v28 = vadd.f32 %v394_v22, %v706_v59  ;;  %v400_v31 = vadd.f32 %v384_v24, %v711_v2  ;;  %v395_v44 = vmul.f32 %v379_v33, %v730_v15  ;;  %v759_v48 = vadd.f32 %v702_v41, %v303_v35  ;;  %v309_v60 = vld [vmem:[#allocation2 + $0x60] sm:$0xff]  ;;  %v304_v61 = vld [vmem:[#allocation2 + $0x38] sm:$0xff] }
  0xfa   :  { %v408_v32 = vadd.f32 %v392_v25, %v714_v3  ;;  %v418_v37 = vmul.f32 0.7978846, %v402_v27  ;;  %v403_v46 = vadd.f32 %v387_v39, %v727_v14  ;;  %v385_v50 = vmul.f32 %v369_v45, %v735_v19  ;;  %v312_v21 = vld [vmem:[#allocation2 + $0x78] sm:$0xff] }
  0xfb   :  { %v426_v38 = vmul.f32 0.7978846, %v410_v28  ;;  %v416_v42 = vmul.f32 0.7978846, %v400_v31  ;;  %v411_v49 = vadd.f32 %v395_v44, %v730_v15  ;;  %v764_v51 = vadd.f32 %v702_v41, %v311_v40  ;;  %v302_v44 = vld [vmem:[#allocation2 + $0x28] sm:$0xff] }
  0xfc   :  { %v424_v43 = vmul.f32 0.7978846, %v408_v32  ;;  %578 = vtanh.f32 %v418_v37  ;;  %v346_v52 = vmul.f32 0.5, %v706_v59  ;;  %v419_v53 = vmul.f32 0.7978846, %v403_v46 }
  0xfd   :  { %580 = vtanh.f32 %v426_v38  ;;  %v377_v54 = vmul.f32 %v361_v47, %v745_v30  ;;  %v427_v56 = vmul.f32 0.7978846, %v411_v49  ;;  %v401_v57 = vadd.f32 %v385_v50, %v735_v19 }
  0xfe   :  { %582 = vtanh.f32 %v416_v42  ;;  %v358_v58 = vmul.f32 0.044715, %v759_v48  ;;  %v336_v62 = vmul.f32 0.5, %v711_v2  ;;  %v366_v59 = vmul.f32 0.044715, %v764_v51 }
  0xff   :  { %584 = vtanh.f32 %v424_v43  ;;  %v393_v63 = vmul.f32 %v377_v54, %v745_v30  ;;  %v417_v0 = vmul.f32 0.7978846, %v401_v57  ;;  %v775_v4 = vadd.f32 %v702_v41, %v301_v55  ;;  %v310_v55 = vld [vmem:[#allocation2 + $0x68] sm:$0xff] }
 0x100   :  { %586 = vtanh.f32 %v419_v53  ;;  %v374_v1 = vmul.f32 %v358_v58, %v759_v48  ;;  %v382_v6 = vmul.f32 %v366_v59, %v764_v51  ;;  %v780_v7 = vadd.f32 %v702_v41, %v309_v60 }
 0x101   :  { %588 = vtanh.f32 %v427_v56  ;;  %v409_v5 = vadd.f32 %v393_v63, %v745_v30  ;;  %v783_v2 = vadd.f32 %v702_v41, %v304_v61  ;;  %v344_v8 = vmul.f32 0.5, %v714_v3 }
 0x102   :  { %590 = vtanh.f32 %v417_v0  ;;  %v390_v9 = vmul.f32 %v374_v1, %v759_v48  ;;  %v356_v10 = vmul.f32 0.044715, %v775_v4  ;;  %v339_v11 = vmul.f32 0.5, %v727_v14 }
 0x103   :  { %v425_v12 = vmul.f32 0.7978846, %v409_v5  ;;  %v398_v13 = vmul.f32 %v382_v6, %v764_v51  ;;  %v364_v16 = vmul.f32 0.044715, %v780_v7  ;;  %v347_v17 = vmul.f32 0.5, %v730_v15 }
 0x104   :  { %v406_v18 = vadd.f32 %v390_v9, %v759_v48  ;;  %v372_v20 = vmul.f32 %v356_v10, %v775_v4  ;;  %v359_v3 = vmul.f32 0.044715, %v783_v2  ;;  %v337_v23 = vmul.f32 0.5, %v735_v19 }
 0x105   :  { %592 = vtanh.f32 %v425_v12  ;;  %v414_v14 = vadd.f32 %v398_v13, %v764_v51  ;;  %v380_v24 = vmul.f32 %v364_v16, %v780_v7  ;;  %v802_v34 = vadd.f32 %v702_v41, %v312_v21 }
 0x106   :  { %v579_v22 = vpop.eup %578  ;;  %v422_v27 = vmul.f32 0.7978846, %v406_v18  ;;  %v388_v15 = vmul.f32 %v372_v20, %v775_v4  ;;  %v375_v28 = vmul.f32 %v359_v3, %v783_v2  ;;  %v823_v60 = vadd.f32 %v702_v41, %v302_v44 }
 0x107   :  { %v581_v25 = vpop.eup %580  ;;  %v450_v26 = vadd.f32 1.0, %v579_v22  ;;  %v430_v32 = vmul.f32 0.7978846, %v414_v14  ;;  %v396_v33 = vmul.f32 %v380_v24, %v780_v7  ;;  %v367_v54 = vmul.f32 0.044715, %v802_v34 }
 0x108   :  { %v583_v29 = vpop.eup %582  ;;  %v458_v31 = vadd.f32 1.0, %v581_v25  ;;  %594 = vtanh.f32 %v422_v27  ;;  %v404_v38 = vadd.f32 %v388_v15, %v775_v4  ;;  %v391_v49 = vmul.f32 %v375_v28, %v783_v2 }
 0x109   :  { %v585_v19 = vpop.eup %584  ;;  %v466_v35 = vmul.f32 %v450_v26, %v751_v36  ;;  %v448_v37 = vadd.f32 1.0, %v583_v29  ;;  %596 = vtanh.f32 %v430_v32  ;;  %v412_v43 = vadd.f32 %v396_v33, %v780_v7 }
 0x10a   :  { %v587_v39 = vpop.eup %586  ;;  %v474_v40 = vmul.f32 %v458_v31, %v346_v52  ;;  %v456_v42 = vadd.f32 1.0, %v585_v19  ;;  %v420_v36 = vmul.f32 0.7978846, %v404_v38  ;;  %v407_v58 = vadd.f32 %v391_v49, %v783_v2 }
 0x10b   :  { %v589_v45 = vpop.eup %588  ;;  %482 = vst.msk [vmem:[%s896_s3 + $0x10] sm:$0xff] %vm19_vm0, %v466_v35  ;;  %v464_v46 = vmul.f32 %v448_v37, %v336_v62  ;;  %v451_v47 = vadd.f32 1.0, %v587_v39  ;;  %v428_v53 = vmul.f32 0.7978846, %v412_v43  ;;  %v383_v63 = vmul.f32 %v367_v54, %v802_v34 }
 0x10c   :  { %490 = vst.msk [vmem:[%s896_s3 + $0x50] sm:$0xff] %vm19_vm0, %v474_v40  ;;  %v472_v50 = vmul.f32 %v456_v42, %v344_v8  ;;  %v459_v52 = vadd.f32 1.0, %v589_v45  ;;  %v591_v56 = vpop.eup %590  ;;  %598 = vtanh.f32 %v420_v36  ;;  %v423_v59 = vmul.f32 0.7978846, %v407_v58 }
 0x10d   :  { %480 = vst.msk [vmem:[%s896_s3] sm:$0xff] %vm19_vm0, %v464_v46  ;;  %v467_v57 = vmul.f32 %v451_v47, %v339_v11  ;;  %v449_v62 = vadd.f32 1.0, %v591_v56  ;;  %600 = vtanh.f32 %v428_v53  ;;  %v357_v0 = vmul.f32 0.044715, %v823_v60 }
 0x10e   :  { %488 = vst.msk [vmem:[%s896_s3 + $0x40] sm:$0xff] %vm19_vm0, %v472_v50  ;;  %v475_v61 = vmul.f32 %v459_v52, %v347_v17  ;;  %v333_v1 = vadd.f32 %v702_v41, %v310_v55  ;;  %v399_v8 = vmul.f32 %v383_v63, %v802_v34  ;;  %v345_v9 = vmul.f32 0.5, %v745_v30 }
 0x10f   :  { %483 = vst.msk [vmem:[%s896_s3 + $0x18] sm:$0xff] %vm19_vm0, %v467_v57  ;;  %v593_v5 = vpop.eup %592  ;;  %v465_v6 = vmul.f32 %v449_v62, %v337_v23  ;;  %602 = vtanh.f32 %v423_v59  ;;  %v373_v11 = vmul.f32 %v357_v0, %v823_v60  ;;  %v342_v20 = vmul.f32 0.5, %v759_v48 }
 0x110   :  { %491 = vst.msk [vmem:[%s896_s3 + $0x58] sm:$0xff] %vm19_vm0, %v475_v61  ;;  %v457_v10 = vadd.f32 1.0, %v593_v5  ;;  %v415_v41 = vadd.f32 %v399_v8, %v802_v34  ;;  %v365_v12 = vmul.f32 0.044715, %v333_v1  ;;  %v350_v22 = vmul.f32 0.5, %v764_v51 }
 0x111   :  { %481 = vst.msk [vmem:[%s896_s3 + $0x8] sm:$0xff] %vm19_vm0, %v465_v6  ;;  %v389_v17 = vmul.f32 %v373_v11, %v823_v60  ;;  %v340_v28 = vmul.f32 0.5, %v775_v4  ;;  %v348_v51 = vmul.f32 0.5, %v780_v7  ;;  %v343_v4 = vmul.f32 0.5, %v783_v2 }
 0x112   :  { %v595_v13 = vpop.eup %594  ;;  %v473_v16 = vmul.f32 %v457_v10, %v345_v9  ;;  %v431_v3 = vmul.f32 0.7978846, %v415_v41  ;;  %v381_v21 = vmul.f32 %v365_v12, %v333_v1  ;;  %v351_v40 = vmul.f32 0.5, %v802_v34 }
 0x113   :  { %v597_v18 = vpop.eup %596  ;;  %v454_v30 = vadd.f32 1.0, %v595_v13  ;;  %v405_v14 = vadd.f32 %v389_v17, %v823_v60  ;;  %v341_v2 = vmul.f32 0.5, %v823_v60  ;;  %v349_v36 = vmul.f32 0.5, %v333_v1 }
 0x114   :  { %489 = vst.msk [vmem:[%s896_s3 + $0x48] sm:$0xff] %vm19_vm0, %v473_v16  ;;  %v462_v23 = vadd.f32 1.0, %v597_v18  ;;  %604 = vtanh.f32 %v431_v3  ;;  %v397_v25 = vmul.f32 %v381_v21, %v333_v1 }
 0x115   :  { %v470_v24 = vmul.f32 %v454_v30, %v342_v20  ;;  %v421_v15 = vmul.f32 0.7978846, %v405_v14 }
 0x116   :  { %v599_v26 = vpop.eup %598  ;;  %v478_v27 = vmul.f32 %v462_v23, %v350_v22  ;;  %v413_v31 = vadd.f32 %v397_v25, %v333_v1 }
 0x117   :  { %v601_v48 = vpop.eup %600  ;;  %486 = vst.msk [vmem:[%s896_s3 + $0x30] sm:$0xff] %vm19_vm0, %v470_v24  ;;  %v452_v29 = vadd.f32 1.0, %v599_v26  ;;  %606 = vtanh.f32 %v421_v15 }
 0x118   :  { %494 = vst.msk [vmem:[%s896_s3 + $0x70] sm:$0xff] %vm19_vm0, %v478_v27  ;;  %v460_v32 = vadd.f32 1.0, %v601_v48  ;;  %v429_v19 = vmul.f32 0.7978846, %v413_v31 }
 0x119   :  { %v468_v33 = vmul.f32 %v452_v29, %v340_v28  ;;  %v603_v35 = vpop.eup %602 }
 0x11a   :  { %v476_v37 = vmul.f32 %v460_v32, %v348_v51  ;;  %v455_v38 = vadd.f32 1.0, %v603_v35  ;;  %608 = vtanh.f32 %v429_v19 }
 0x11b   :  { %484 = vst.msk [vmem:[%s896_s3 + $0x20] sm:$0xff] %vm19_vm0, %v468_v33 }
 0x11c   :  { %492 = vst.msk [vmem:[%s896_s3 + $0x60] sm:$0xff] %vm19_vm0, %v476_v37  ;;  %v471_v7 = vmul.f32 %v455_v38, %v343_v4 }
 0x11e   :  { %v605_v39 = vpop.eup %604  ;;  %487 = vst.msk [vmem:[%s896_s3 + $0x38] sm:$0xff] %vm19_vm0, %v471_v7 }
 0x11f   :  { %v463_v42 = vadd.f32 1.0, %v605_v39 }
 0x121   :  { %v607_v43 = vpop.eup %606  ;;  %v479_v44 = vmul.f32 %v463_v42, %v351_v40 }
 0x122   :  { %v453_v45 = vadd.f32 1.0, %v607_v43 }
 0x123   :  { %495 = vst.msk [vmem:[%s896_s3 + $0x78] sm:$0xff] %vm19_vm0, %v479_v44 }
 0x124   :  { %v609_v46 = vpop.eup %608  ;;  %v469_v47 = vmul.f32 %v453_v45, %v341_v2 }
 0x125   :  { %v461_v49 = vadd.f32 1.0, %v609_v46 }
 0x126   :  { %485 = vst.msk [vmem:[%s896_s3 + $0x28] sm:$0xff] %vm19_vm0, %v469_v47 }
 0x127   :  { %v477_v34 = vmul.f32 %v461_v49, %v349_v36 }
 0x129   :  { %493 = vst.msk [vmem:[%s896_s3 + $0x68] sm:$0xff] %vm19_vm0, %v477_v34 }

// kernel: nystromformer_forward.18
= control target key start
LH: loop header
LB: loop body
LE: loop exit
PB: predicated region body
PF: predicated region fallthrough
CT: control target
= control target key end

     0   :  { %7 = vsyncpa [#allocation3], 0  ;;  %s8687_s9 = smov 0   ;;  %s10253_s0 = inlined_call_operand.vmem [shape: f32[2,64,192], index: 0, kind: input, shape index: {}]   ;;  %s10254_s1 = inlined_call_operand.vmem [shape: f32[2,7], index: 1, kind: input, shape index: {}]   ;;  %s10255_s2 = inlined_call_operand.vmem [shape: f32[2,64,64], index: 2, kind: output, shape index: {}]  }
   0x1 LB: > { %s6963_s10 = sadd.s32 4294967295, %s8665_s9   ;;  %p6965_p0 = scmp.ge.s32.totalorder %s8665_s9, 1  ;;  %s8665_s9 = sphi %s8687_s9, %s13_s9  }
   0x2   : > { %p91_p1 = scmp.lt.s32.totalorder %s8665_s9, 3  ;;  %s104_s13 = sshll.u32 %s10254_s1, 4  ;;  %s105_s13 = int_to_ptr.vmem [resolvable:$true] %s104_s13 }
   0x3   : > { %p8469_p3 = scmp.eq.s32.totalorder %s6963_s10, 0  ;;  %s8640_s15 = scalar_lea.vmem %s105_s13, 32 }
   0x4   : > { %p8698_p2 = pnand %p6965_p0, %p91_p1  ;;  %p8641_p6 = scmp.ne.s32.totalorder %s105_s13, %s8640_s15 }
   0x5   : > { %p8648_p10 = scmp.lt.s32.totalorder %s105_s13, %s105_s13  ;;  %p8649_p11 = scmp.lt.s32.totalorder %s8640_s15, %s8640_s15 }
   0x6   : > { %p8465_p4 = pneg %p8698_p2 }
   0x7   : > { %p8650_p12 = por %p8649_p11, %p8648_p10 }
   0x8   : > { %p8466_p5 = pnand %p8469_p3, %p8465_p4 }
   0xa   : > { %p8642_p7 = pneg %p8466_p5 }
   0xc   : > { %p8643_p8 = pnand %p8642_p7, %p8641_p6 }
   0xe   : > { %p8644_p9 = pneg %p8643_p8 }
  0x10   : > { %p8651_p13 = pnand %p8650_p12, %p8644_p9 }
  0x12   : > { %8654 = shalt.err (!%p8651_p13)
}
  0x13   : > { %s8667_s16 = smov [#allocation2]   ;;  %125 = sbr.rel (%p8698_p2) target bundleno = 13535 (0x34df), region = 28 }
  0x14   : > { %8468 = dma.vmem_to_smem (!%p8466_p5), %s105_s13, 32, %s8667_s16, [#allocation3]  }
  0x1a   : > { %8660 = dma.done.wait (%p8469_p3), [#allocation3], 32  }
  0x1b   : > { %8662 = vsyncadd (%p8469_p3), [#allocation3], 4294967264 }
  0x1c   : > { %131 = sfence }
  0x1d   : > { %p148_p0 = scmp.lt.s32.totalorder %s6963_s10, 1  ;;  %v158_v0 = vlaneseq  ;;  %s8668_s21 = smov 64   ;;  %v8669_v29 = vmov 0.0   ;;  %vm427_vm4 = vcmask 523264   ;;  %vm616_vm9 = vcmask 261120  }
  0x1e   : > { %vm8782_vm10 = vmpackc.low %vm616_vm9, %vm616_vm9  ;;  %vm752_vm11 = vcmask 130048   ;;  %s8670_s25 = smov 32   ;;  %s8671_s26 = smov 96  }
  0x1f   : > { %s10300_s10 = smov (!%p148_p0, %s6963_s10), 1  ;;  %v8717_v1 = vshrl.u32 %v158_v0, 7  ;;  %v162_v19 = vand.u32 127, %v158_v0  ;;  %s7150_s30 = sld [smem:[#allocation2 + $0x80]] }
  0x20   : > { %s7167_s17 = sshll.u32 %s10300_s10, 7  ;;  %s7151_s3 = sld [smem:[#allocation2 + $0x81]] }
  0x21   : > { %s8715_s20 = scalar_lea.vmem %s10253_s0, %s7167_s17  ;;  %v160_v13 = vadd.s32 8, %v8717_v1  ;;  %v163_v20 = vmul.u32 4, %v8717_v1  ;;  %v167_v21 = vadd.s32 1, %v8717_v1  ;;  %vm177_vm1 = vcmp.eq.s32.totalorder %v8717_v1, %v162_v19  ;;  %s7152_s4 = sld [smem:[#allocation2 + $0x82]] }
  0x22   : > { %v403_v2 = vld [vmem:[%s8715_s20] sm:$0xff]  ;;  %v404_v3 = vld [vmem:[%s8715_s20 + $0x10] sm:$0xff]  ;;  %v8751_v30 = vsel %vm177_vm1, 1.0, %v8669_v29  ;;  %vm3224_vm12 = vcmp.lt.s32.totalorder %v8717_v1, 3  ;;  %vm3267_vm13 = vcmp.lt.s32.totalorder %v8717_v1, 2  ;;  %s7153_s5 = sld [smem:[#allocation2 + $0x83]] }
  0x23   : > { %v405_v4 = vld [vmem:[%s8715_s20 + $0x20] sm:$0xff]  ;;  %v8484_v5 = vpack.i.bf16 %v404_v3, %v403_v2  ;;  %v406_v6 = vld [vmem:[%s8715_s20 + $0x30] sm:$0xff]  ;;  %v8725_v9 = vmul.f32 0.17677669, %v403_v2  ;;  %v8730_v15 = vmul.f32 0.17677669, %v404_v3  ;;  %vm8746_vm0 = vcmp.ge.s32.totalorder %v162_v19, %v163_v20 }
  0x24   : > { %v407_v7 = vld [vmem:[%s8715_s20 + $0x40] sm:$0xff]  ;;  %v408_v8 = vld [vmem:[%s8715_s20 + $0x50] sm:$0xff]  ;;  %v8489_v14 = vpack.i.bf16 %v406_v6, %v405_v4  ;;  %v8732_v16 = vmul.f32 0.17677669, %v405_v4  ;;  %v8734_v17 = vmul.f32 0.17677669, %v406_v6  ;;  %vm178_vm2 = vcmp.eq.s32.totalorder %v160_v13, %v162_v19 }
  0x25   : > { %v8494_v10 = vpack.i.bf16 %v408_v8, %v407_v7  ;;  %v409_v11 = vld [vmem:[%s8715_s20 + $0x60] sm:$0xff]  ;;  %v410_v12 = vld [vmem:[%s8715_s20 + $0x70] sm:$0xff]  ;;  %8485 = vrot.lane.b32.xlu0 %v8484_v5, %s8668_s21  ;;  %v8738_v22 = vmul.f32 0.17677669, %v408_v8  ;;  %v8740_v23 = vmul.f32 0.17677669, %v407_v7  ;;  %v8077_v24 = vpack.c.bf16 %v8730_v15, %v8725_v9 }
  0x26   : > { %v8499_v18 = vpack.i.bf16 %v410_v12, %v409_v11  ;;  %v8081_v25 = vpack.c.bf16 %v8734_v17, %v8732_v16  ;;  %v169_v27 = vmul.u32 4, %v167_v21  ;;  %v168_v28 = vadd.s32 1, %v160_v13  ;;  %s7154_s6 = sld [smem:[#allocation2 + $0x84]]  ;;  %s7155_s7 = sld [smem:[#allocation2 + $0x85]] }
  0x27   : > { %8495 = vrot.lane.b32.xlu1 %v8494_v10, %s8668_s21  ;;  %8078 = vmatprep.subr.bf16.mxu0 %v8077_v24  ;;  %v8753_v31 = vsel %vm178_vm2, 1.0, %v8669_v29  ;;  %v8085_v32 = vpack.c.bf16 %v8738_v22, %v8740_v23  ;;  %v8763_v34 = vmul.f32 0.17677669, %v409_v11  ;;  %v8765_v35 = vmul.f32 0.17677669, %v410_v12  ;;  %s9599_s8 = sld [smem:[#allocation2 + $0x86]] }
  0x28   : > { %8080 = vmatpush3.bf16.msra.mxu0 %v8077_v24  ;;  %vm171_vm3 = vcmp.lt.s32.totalorder %v162_v19, %v169_v27  ;;  %v164_v36 = vmul.u32 4, %v160_v13  ;;  %v170_v37 = vmul.u32 4, %v168_v28  ;;  %vm3310_vm14 = vcmp.lt.s32.totalorder %v8717_v1, 1  ;;  %s3215_s11 = sld [smem:[#allocation2]]  ;;  %s7056_s12 = sld [smem:[#allocation2 + $0x1]] }
  0x29   : > { %8490 = vrot.lane.b32.xlu0 %v8489_v14, %s8668_s21  ;;  %8082 = vmatprep.subr.bf16.mxu0 %v8081_v25  ;;  %vm173_vm5 = vmand %vm8746_vm0, %vm171_vm3  ;;  %v8089_v38 = vpack.c.bf16 %v8765_v35, %v8763_v34  ;;  %vm3379_vm1 = vcmp.lt.s32.totalorder %v8717_v1, 7  ;;  %vm3422_vm3 = vcmp.lt.s32.totalorder %v8717_v1, 6  ;;  %s7057_s13 = sld [smem:[#allocation2 + $0x2]]  ;;  %s7058_s14 = sld [smem:[#allocation2 + $0x3]] }
  0x2a   : > { %v8759_v33 = vsel %vm173_vm5, 0.25, %v8669_v29  ;;  %vm166_vm6 = vcmp.ge.s32.totalorder %v162_v19, %v164_v36  ;;  %vm172_vm7 = vcmp.lt.s32.totalorder %v162_v19, %v170_v37  ;;  %vm3465_vm5 = vcmp.lt.s32.totalorder %v8717_v1, 5  ;;  %s7059_s15 = sld [smem:[#allocation2 + $0x4]]  ;;  %s7060_s16 = sld [smem:[#allocation2 + $0x5]] }
  0x2b   : > { %8500 = vrot.lane.b32.xlu1 %v8499_v18, %s8668_s21  ;;  %7532 = vmatprep.mubr.msk.f32.mxu1 %vm427_vm4, %v8759_v33  ;;  %vm174_vm8 = vmand %vm166_vm6, %vm172_vm7  ;;  %s7061_s17 = sld [smem:[#allocation2 + $0x6]]  ;;  %s7168_s18 = sshll.u32 %s10300_s10, 6 }
  0x2c   : > { %7513 = vmatprep.mubr.msk.f32.mxu0 %vm427_vm4, %v8759_v33  ;;  %8084 = vmatpush3.bf16.msra.mxu0 %v8081_v25  ;;  %v8771_v39 = vsel %vm174_vm8, 0.25, %v8669_v29 }
  0x2d   : > { %8086 = vmatprep.subr.bf16.mxu0 %v8085_v32 }
  0x30   : > { %8088 = vmatpush3.bf16.msra.mxu0 %v8085_v32 }
  0x31   : > { %8090 = vmatprep.subr.bf16.mxu0 %v8089_v38 }
  0x34   : > { %8092 = vmatpush3.bf16.msra.mxu0 %v8089_v38 }
  0x37   : > { %7514 = vmatmul.mubr.msk.f32.vlgmr.msra.gmra.mrb[0].mxu0 %vm427_vm4, %v8771_v39 }
  0x38   : > { %7539 = vmatprep.mubr.msk.f32.mxu0 %vm616_vm9, %v8725_v9 }
  0x97   : > { %v8486_v40 = vpop.permute.xlu0 %8485 }
  0x98   : > { %v8488_v41 = vunpack.i.h.bf16 %v8486_v40  ;;  %v8487_v42 = vunpack.i.l.bf16 %v8486_v40 }
  0x99   : > { %v8496_v43 = vpop.permute.xlu1 %8495 }
  0x9a   : > { %v8093_v44 = vpack.c.bf16 %v8488_v41, %v8487_v42  ;;  %v8498_v45 = vunpack.i.h.bf16 %v8496_v43  ;;  %v8497_v46 = vunpack.i.l.bf16 %v8496_v43 }
  0x9b   : > { %v8491_v47 = vpop.permute.xlu0 %8490 }
  0x9c   : > { %v8493_v48 = vunpack.i.h.bf16 %v8491_v47  ;;  %v8492_v49 = vunpack.i.l.bf16 %v8491_v47  ;;  %8094 = vmatprep.subr.bf16.mxu1 %v8093_v44  ;;  %v8101_v52 = vpack.c.bf16 %v8498_v45, %v8497_v46 }
  0x9d   : > { %v8501_v50 = vpop.permute.xlu1 %8500  ;;  %8096 = vmatpush3.bf16.msra.mxu1 %v8093_v44 }
  0x9e   : > { %v8097_v51 = vpack.c.bf16 %v8493_v48, %v8492_v49  ;;  %v8503_v53 = vunpack.i.h.bf16 %v8501_v50  ;;  %v8502_v54 = vunpack.i.l.bf16 %v8501_v50 }
  0xa0   : > { %8098 = vmatprep.subr.bf16.mxu1 %v8097_v51  ;;  %v8105_v55 = vpack.c.bf16 %v8503_v53, %v8502_v54 }
  0xa1   : > { %8100 = vmatpush3.bf16.msra.mxu1 %v8097_v51 }
  0xa2   : > { %8102 = vmatprep.subr.bf16.mxu1 %v8101_v52 }
  0xa5   : > { %8104 = vmatpush3.bf16.msra.mxu1 %v8101_v52 }
  0xa6   : > { %8106 = vmatprep.subr.bf16.mxu1 %v8105_v55 }
  0xa9   : > { %8108 = vmatpush3.bf16.msra.mxu1 %v8105_v55 }
  0xac   : > { %7533 = vmatmul.mubr.msk.f32.vlgmr.msra.gmra.mrb[0].mxu1 %vm427_vm4, %v8771_v39 }
 0x10a   : > { %v7515_v56 = vpop.f32.mrb[0].mxu0 }
 0x10b   : > { %v500_v57 = vpop.f32.mrb[1].mxu0 }
 0x10c   : > { %7555 = vmatprep.mubr.msk.f32.mxu1 %vm616_vm9, %v500_v57 }
 0x17f   : > { %v7534_v58 = vpop.f32.mrb[0].mxu1 }
 0x180   : > { %v607_v59 = vpop.f32.mrb[1].mxu1 }
 0x181   : > { %v8109_v61 = vpack.c.bf16 %v7534_v58, %v607_v59 }
 0x183   : > { %8111 = vmatprep.subr.msk.bf16.mxu0 %vm8782_vm10, %v8109_v61  ;;  %8117 = vmatprep.subr.msk.bf16.mxu1 %vm8782_vm10, %v8109_v61 }
 0x184   : > { %8114 = vmatpush3.bf16.xpose.msk.msra.mxu0 %vm8782_vm10, %v8109_v61  ;;  %8120 = vmatpush3.bf16.xpose.msk.msra.mxu1 %vm8782_vm10, %v8109_v61 }
 0x185   : > { %8123 = vmatprep.subr.msk.bf16.mxu0 %vm8782_vm10, %v8093_v44 }
 0x18b   : > { %7540 = vmatmul.mubr.msk.f32.vlgmr.msra.gmra.mrb[2].mxu0 %vm616_vm9, %v8730_v15  ;;  %7556 = vmatmul.mubr.msk.f32.vlgmr.msra.gmra.mrb[2].mxu1 %vm616_vm9, %v7515_v56 }
 0x18c   : > { %8126 = vmatpush3.bf16.xpose.msk.msra.mxu0 %vm8782_vm10, %v8093_v44  ;;  %7542 = vmatprep.mubr.msk.f32.mxu0 %vm616_vm9, %v8732_v16 }
 0x18d   : > { %8129 = vmatprep.subr.msk.bf16.mxu0 %vm8782_vm10, %v8097_v51 }
 0x18f   : > { %7543 = vmatmul.mubr.msk.f32.gmra.mrb[4].mxu0 %vm616_vm9, %v8734_v17 }
 0x190   : > { %7545 = vmatprep.mubr.msk.f32.mxu0 %vm616_vm9, %v8740_v23 }
 0x193   : > { %7546 = vmatmul.mubr.msk.f32.gmra.mrb[6].mxu0 %vm616_vm9, %v8738_v22 }
 0x194   : > { %8132 = vmatpush3.bf16.xpose.msk.msra.mxu0 %vm8782_vm10, %v8097_v51  ;;  %7548 = vmatprep.mubr.msk.f32.mxu0 %vm616_vm9, %v8763_v34 }
 0x195   : > { %8135 = vmatprep.subr.msk.bf16.mxu0 %vm8782_vm10, %v8101_v52 }
 0x197   : > { %7549 = vmatmul.mubr.msk.f32.gmra.mrb[8].mxu0 %vm616_vm9, %v8765_v35 }
 0x198   : > { %7574 = vmatprep.mubr.msk.f32.mxu0 %vm616_vm9, %v500_v57 }
 0x19c   : > { %8138 = vmatpush3.bf16.xpose.msk.msra.mxu0 %vm8782_vm10, %v8101_v52 }
 0x19d   : > { %8141 = vmatprep.subr.msk.bf16.mxu0 %vm8782_vm10, %v8105_v55 }
 0x1a4   : > { %8144 = vmatpush3.bf16.xpose.msk.msra.mxu0 %vm8782_vm10, %v8105_v55 }
 0x1ab   : > { %7575 = vmatmul.mubr.msk.f32.vlgmr.msra.gmra.mrb[10].mxu0 %vm616_vm9, %v7515_v56 }
 0x25e   : > { %v7557_v62 = vpop.f32.mrb[2].mxu1  ;;  %v8827_v63 = vpop.f32.mrb[2].mxu0 }
 0x25f   : > { %v913_v0 = vpop.f32.mrb[3].mxu1  ;;  %v925_v2 = vsel %vm752_vm11, %v7557_v62, -inf  ;;  %v8830_v3 = vpop.f32.mrb[3].mxu0 }
 0x260   : > { %926 = vmax.xlane.f32.xlu1 %v925_v2  ;;  %v922_v4 = vsel %vm752_vm11, %v913_v0, -inf }
 0x261   : > { %923 = vmax.xlane.f32.xlu0 %v922_v4 }
 0x262   : > { %v8833_v5 = vpop.f32.mrb[4].mxu0 }
 0x263   : > { %v8835_v6 = vpop.f32.mrb[5].mxu0 }
 0x266   : > { %v8837_v7 = vpop.f32.mrb[6].mxu0 }
 0x267   : > { %v8839_v8 = vpop.f32.mrb[7].mxu0 }
 0x26a   : > { %v8841_v10 = vpop.f32.mrb[8].mxu0 }
 0x26b   : > { %v8843_v11 = vpop.f32.mrb[9].mxu0 }
 0x27e   : > { %v8845_v12 = vpop.f32.mrb[10].mxu0 }
 0x27f   : > { %v1026_v13 = vpop.f32.mrb[11].mxu0  ;;  %v1038_v54 = vsel %vm427_vm4, %v8845_v12, -inf }
 0x280   : > { %v1035_v53 = vsel %vm427_vm4, %v1026_v13, -inf }
 0x2ed   : > { %v927_v14 = vpop.xlane.xlu1 %926 }
 0x2ee   : > { %v929_v18 = vsub.f32 %v7557_v62, %v927_v14  ;;  %v924_v19 = vpop.xlane.xlu0 %923 }
 0x2ef   : > { %v928_v20 = vsub.f32 %v913_v0, %v924_v19 }
 0x2f0   : > { %v932_v21 = vmul.f32 1.442695, %v929_v18 }
 0x2f1   : > { %v930_v24 = vmul.f32 1.442695, %v928_v20 }
 0x2f3   : > { %8524 = vpow2.f32 %v930_v24 }
 0x2f4   : > { %8526 = vpow2.f32 %v932_v21 }
 0x2fd   : > { %v8525_v25 = vpop.eup %8524 }
 0x2fe   : > { %v934_v26 = vsel %vm752_vm11, %v8525_v25, 0.0  ;;  %v8527_v27 = vpop.eup %8526 }
 0x2ff   : > { %935 = vadd.xlane.f32.xlu0 %v934_v26  ;;  %v937_v28 = vsel %vm752_vm11, %v8527_v27, 0.0 }
 0x303   : > { %938 = vadd.xlane.f32.xlu0 %v937_v28 }
 0x38c   : > { %v936_v29 = vpop.xlane.xlu0 %935 }
 0x38d   : > { %8528 = vrcp.f32 %v936_v29 }
 0x390   : > { %v939_v32 = vpop.xlane.xlu0 %938 }
 0x391   : > { %8530 = vrcp.f32 %v939_v32 }
 0x397   : > { %v8529_v36 = vpop.eup %8528 }
 0x398   : > { %v8849_v37 = vmul.f32 %v8529_v36, %v8525_v25 }
 0x39a   : > { %7581 = vmatprep.mubr.msk.f32.mxu1 %vm752_vm11, %v8849_v37  ;;  %7637 = vmatprep.mubr.msk.f32.mxu0 %vm752_vm11, %v8849_v37  ;;  %v1057_v38 = vand.u32 2147483647, %v8849_v37 }
 0x39b   : > { %v8531_v40 = vpop.eup %8530 }
 0x39c   : > { %v8856_v41 = vmul.f32 %v8531_v40, %v8527_v27  ;;  %v1059_v42 = vsel %vm752_vm11, %v1057_v38, 0.0 }
 0x39d   : > { %1060 = vadd.xlane.f32.xlu1 %v1059_v42 }
 0x39e   : > { %v1058_v43 = vand.u32 2147483647, %v8856_v41 }
 0x3a0   : > { %v1062_v44 = vsel %vm752_vm11, %v1058_v43, 0.0  ;;  %v8882_v43 = vmul.f32 11.0, %v8751_v30 }
 0x3a1   : > { %1063 = vadd.xlane.f32.xlu0 %v1062_v44  ;;  %v1073_v45 = vadd.f32 %v1062_v44, %v1059_v42  ;;  %v8879_v42 = vmul.f32 11.0, %v8753_v31 }
 0x3a3   : > { %v1074_v46 = vrot.slane %v1073_v45, 4 }
 0x3a5   : > { %v1075_v47 = vadd.f32 %v1074_v46, %v1073_v45 }
 0x3a7   : > { %v1076_v48 = vrot.slane %v1075_v47, 2 }
 0x3a9   : > { %v1077_v49 = vadd.f32 %v1076_v48, %v1075_v47 }
 0x3ab   : > { %v1078_v50 = vrot.slane %v1077_v49, 1 }
 0x3ad   : > { %v1079_v51 = vadd.f32 %v1078_v50, %v1077_v49  ;;  %v8890_v49 = vmul.f32 15.0, %v8753_v31  ;;  %v8893_v50 = vmul.f32 15.0, %v8751_v30 }
 0x3af   : > { %v1080_v52 = vsel %vm752_vm11, %v1079_v51, -inf }
 0x3b0   : > { %1081 = vmax.xlane.f32.xlu1 %v1080_v52 }
 0x3b4   : > { %1036 = vmax.xlane.f32.xlu1 %v1035_v53 }
 0x3b8   : > { %1039 = vmax.xlane.f32.xlu1 %v1038_v54 }
 0x3ce   : > { %1085 = vxpose.xlu0.b32.start [1/2] (short) (narrow) %v8849_v37, 16 }
 0x3d2   : > { %1086 = vxpose.xlu0.b32.end [2/2] (short) (narrow) %v8856_v41, 16 }
 0x42a   : > { %v1061_v55 = vpop.xlane.xlu1 %1060 }
 0x42e   : > { %v1064_v56 = vpop.xlane.xlu0 %1063 }
 0x42f   : > { %v1065_v57 = vmax.f32 %v1061_v55, %v1064_v56  ;;  %v8900_v56 = vmul.f32 13.0, %v8753_v31 }
 0x431   : > { %v1066_v58 = vrot.slane %v1065_v57, 4 }
 0x433   : > { %v1067_v59 = vmax.f32 %v1065_v57, %v1066_v58  ;;  %v8903_v57 = vmul.f32 13.0, %v8751_v30 }
 0x435   : > { %v1068_v61 = vrot.slane %v1067_v59, 2 }
 0x437   : > { %v1069_v62 = vmax.f32 %v1067_v59, %v1068_v61 }
 0x439   : > { %v1070_v0 = vrot.slane %v1069_v62, 1 }
 0x43b   : > { %v1071_v2 = vmax.f32 %v1069_v62, %v1070_v0 }
 0x43d   : > { %8453 = vpush %v1071_v2  ;;  %v1082_v4 = vpop.xlane.xlu1 %1081 }
 0x43e   : > { %8455 = vpush %v1082_v4 }
 0x441   : > { %v1037_v14 = vpop.xlane.xlu1 %1036 }
 0x442   : > { %v1041_v18 = vsub.f32 %v1026_v13, %v1037_v14 }
 0x444   : > { %v1043_v19 = vmul.f32 1.442695, %v1041_v18 }
 0x445   : > { %v1040_v20 = vpop.xlane.xlu1 %1039 }
 0x446   : > { %8532 = vpow2.f32 %v1043_v19  ;;  %v1042_v21 = vsub.f32 %v8845_v12, %v1040_v20 }
 0x448   : > { %v1045_v24 = vmul.f32 1.442695, %v1042_v21 }
 0x44a   : > { %8534 = vpow2.f32 %v1045_v24 }
 0x44e   : > { %v1101_v12 = vpop.trf.xlu0 }
 0x450   : > { %v8868_v25 = vpop.eup %8532 }
 0x451   : > { %v1047_v26 = vsel %vm427_vm4, %v8868_v25, 0.0 }
 0x452   : > { %1048 = vadd.xlane.f32.xlu1 %v1047_v26  ;;  %v1102_v29 = vpop.trf.xlu0 }
 0x454   : > { %v8872_v27 = vpop.eup %8534 }
 0x455   : > { %v1050_v28 = vsel %vm427_vm4, %v8872_v27, 0.0 }
 0x456   : > { %1051 = vadd.xlane.f32.xlu1 %v1050_v28 }
 0x46e   : > { %s8454_s22 = spop %8453 }
 0x46f   : > { %s8456_s23 = spop %8455 }
 0x470   : > { %s1084_s24 = smul.f32 %s8456_s23, %s8454_s22 }
 0x472   : > { %v1117_v13 = vstv %s1084_s24 }
 0x473   : > { %8536 = vrcp.f32 %v1117_v13 }
 0x47d   : > { %v8537_v32 = vpop.eup %8536 }
 0x47e   : > { %v1119_v36 = vmul.f32 %v8537_v32, %v1101_v12  ;;  %v1120_v38 = vmul.f32 %v8537_v32, %v1102_v29  ;;  %v753_v32 = vsel %vm752_vm11, %v8830_v3, -inf }
 0x47f   : > { %754 = vmax.xlane.f32.xlu1 %v753_v32 }
 0x480   : > { %v8145_v40 = vpack.c.bf16 %v1120_v38, %v1119_v36 }
 0x482   : > { %8146 = vmatprep.subr.bf16.mxu1 %v8145_v40 }
 0x483   : > { %8148 = vmatpush3.bf16.msra.mxu1 %v8145_v40  ;;  %v762_v40 = vsel %vm752_vm11, %v8833_v5, -inf }
 0x486   : > { %7582 = vmatmul.mubr.msk.f32.vlgmr.msra.gmra.mrb[4].mxu1 %vm752_vm11, %v8856_v41 }
 0x559   : > { %v7583_v44 = vpop.f32.mrb[4].mxu1 }
 0x55a   : > { %v1205_v45 = vsub.f32 %v8879_v42, %v7583_v44  ;;  %v1193_v46 = vpop.f32.mrb[5].mxu1 }
 0x55b   : > { %v1204_v47 = vsub.f32 %v8882_v43, %v1193_v46  ;;  %7588 = vmatprep.mubr.msk.f32.mxu1 %vm752_vm11, %v1193_v46 }
 0x55d   : > { %v8149_v48 = vpack.c.bf16 %v1205_v45, %v1204_v47  ;;  %v768_v45 = vsel %vm752_vm11, %v8837_v7, -inf  ;;  %v774_v47 = vsel %vm752_vm11, %v8841_v10, -inf }
 0x55f   : > { %8150 = vmatprep.subr.bf16.mxu1 %v8149_v48 }
 0x560   : > { %8152 = vmatpush3.bf16.msra.mxu1 %v8149_v48 }
 0x563   : > { %7589 = vmatmul.mubr.msk.f32.vlgmr.msra.gmra.mrb[6].mxu1 %vm752_vm11, %v7583_v44 }
 0x564   : > { %7595 = vmatprep.mubr.msk.f32.mxu1 %vm752_vm11, %v1193_v46  ;;  %v771_v46 = vsel %vm752_vm11, %v8843_v11, -inf }
 0x636   : > { %v7590_v51 = vpop.f32.mrb[6].mxu1 }
 0x637   : > { %v1290_v52 = vsub.f32 %v8890_v49, %v7590_v51  ;;  %v1280_v53 = vpop.f32.mrb[7].mxu1 }
 0x638   : > { %v1289_v54 = vsub.f32 %v8893_v50, %v1280_v53 }
 0x63a   : > { %v8153_v55 = vpack.c.bf16 %v1290_v52, %v1289_v54 }
 0x63c   : > { %8154 = vmatprep.subr.bf16.mxu1 %v8153_v55 }
 0x63d   : > { %8156 = vmatpush3.bf16.msra.mxu1 %v8153_v55  ;;  %v8940_v55 = vpop.xlane.xlu1 %1048 }
 0x640   : > { %7596 = vmatmul.mubr.msk.f32.vlgmr.msra.gmra.mrb[8].mxu1 %vm752_vm11, %v7583_v44  ;;  %v765_v44 = vsel %vm752_vm11, %v8839_v8, -inf }
 0x641   : > { %7602 = vmatprep.mubr.msk.f32.mxu1 %vm752_vm11, %v1119_v36  ;;  %v756_v36 = vsel %vm752_vm11, %v8827_v63, -inf }
 0x642   : > { %757 = vmax.xlane.f32.xlu1 %v756_v36 }
 0x713   : > { %v7597_v58 = vpop.f32.mrb[8].mxu1 }
 0x714   : > { %v1369_v59 = vsub.f32 %v8900_v56, %v7597_v58  ;;  %v1359_v61 = vpop.f32.mrb[9].mxu1  ;;  %v8942_v58 = vpop.xlane.xlu1 %1051 }
 0x715   : > { %v1368_v62 = vsub.f32 %v8903_v57, %v1359_v61 }
 0x717   : > { %v8157_v0 = vpack.c.bf16 %v1369_v59, %v1368_v62 }
 0x718   : > { %v755_v59 = vpop.xlane.xlu1 %754 }
 0x719   : > { %8158 = vmatprep.subr.bf16.mxu1 %v8157_v0  ;;  %v777_v61 = vsub.f32 %v8830_v3, %v755_v59 }
 0x71a   : > { %8160 = vmatpush3.bf16.msra.mxu1 %v8157_v0 }
 0x71b   : > { %v785_v62 = vmul.f32 1.442695, %v777_v61 }
 0x71c   : > { %v758_v0 = vpop.xlane.xlu1 %757 }
 0x71d   : > { %7603 = vmatmul.mubr.msk.f32.vlgmr.msra.gmra.mrb[10].mxu1 %vm752_vm11, %v1120_v38  ;;  %v759_v38 = vsel %vm752_vm11, %v8835_v6, -inf  ;;  %8538 = vpow2.f32 %v785_v62 }
 0x71e   : > { %7609 = vmatprep.mubr.msk.f32.mxu1 %vm752_vm11, %v8849_v37  ;;  %760 = vmax.xlane.f32.xlu1 %v759_v38 }
 0x722   : > { %763 = vmax.xlane.f32.xlu1 %v762_v40 }
 0x726   : > { %766 = vmax.xlane.f32.xlu1 %v765_v44 }
 0x72a   : > { %769 = vmax.xlane.f32.xlu1 %v768_v45 }
 0x72e   : > { %772 = vmax.xlane.f32.xlu1 %v771_v46 }
 0x732   : > { %775 = vmax.xlane.f32.xlu1 %v774_v47 }
 0x7f0   : > { %v7604_v2 = vpop.f32.mrb[10].mxu1 }
 0x7f1   : > { %v1452_v31 = vmul.f32 0.25, %v7604_v2  ;;  %v1442_v4 = vpop.f32.mrb[11].mxu1  ;;  %v778_v2 = vsub.f32 %v8827_v63, %v758_v0 }
 0x7f2   : > { %v1451_v14 = vmul.f32 0.25, %v1442_v4 }
 0x7f3   : > { %v787_v4 = vmul.f32 1.442695, %v778_v2 }
 0x7f4   : > { %v8161_v30 = vpack.c.bf16 %v1452_v31, %v1451_v14 }
 0x7f5   : > { %8540 = vpow2.f32 %v787_v4 }
 0x7f6   : > { %8162 = vmatprep.subr.bf16.mxu1 %v8161_v30 }
 0x7f7   : > { %8164 = vmatpush3.bf16.msra.mxu1 %v8161_v30 }
 0x7fa   : > { %7610 = vmatmul.mubr.msk.f32.vlgmr.msra.gmra.mrb[12].mxu1 %vm752_vm11, %v8856_v41 }
 0x8cd   : > { %v7611_v18 = vpop.f32.mrb[12].mxu1 }
 0x8ce   : > { %v1529_v19 = vsub.f32 %v8879_v42, %v7611_v18  ;;  %v1519_v20 = vpop.f32.mrb[13].mxu1 }
 0x8cf   : > { %v1528_v21 = vsub.f32 %v8882_v43, %v1519_v20  ;;  %7616 = vmatprep.mubr.msk.f32.mxu1 %vm752_vm11, %v1519_v20 }
 0x8d1   : > { %v8165_v24 = vpack.c.bf16 %v1529_v19, %v1528_v21 }
 0x8d3   : > { %8166 = vmatprep.subr.bf16.mxu1 %v8165_v24 }
 0x8d4   : > { %8168 = vmatpush3.bf16.msra.mxu1 %v8165_v24 }
 0x8d7   : > { %7617 = vmatmul.mubr.msk.f32.vlgmr.msra.gmra.mrb[14].mxu1 %vm752_vm11, %v7611_v18 }
 0x8d8   : > { %7623 = vmatprep.mubr.msk.f32.mxu1 %vm752_vm11, %v1519_v20  ;;  %v8948_v20 = vpop.eup %8538 }
 0x8d9   : > { %v801_v3 = vsel %vm752_vm11, %v8948_v20, 0.0 }
 0x8da   : > { %802 = vadd.xlane.f32.xlu0 %v801_v3 }
 0x9aa   : > { %v7618_v26 = vpop.f32.mrb[14].mxu1 }
 0x9ab   : > { %v1612_v28 = vsub.f32 %v8890_v49, %v7618_v26  ;;  %v1602_v13 = vpop.f32.mrb[15].mxu1  ;;  %v8953_v26 = vpop.eup %8540 }
 0x9ac   : > { %v1611_v12 = vsub.f32 %v8893_v50, %v1602_v13 }
 0x9ae   : > { %v8169_v29 = vpack.c.bf16 %v1612_v28, %v1611_v12 }
 0x9b0   : > { %8170 = vmatprep.subr.bf16.mxu1 %v8169_v29 }
 0x9b1   : > { %8172 = vmatpush3.bf16.msra.mxu1 %v8169_v29 }
 0x9b4   : > { %7624 = vmatmul.mubr.msk.f32.vlgmr.msra.gmra.mrb[16].mxu1 %vm752_vm11, %v7611_v18 }
 0x9b5   : > { %7630 = vmatprep.mubr.msk.f32.mxu1 %vm752_vm11, %v1451_v14  ;;  %v761_v14 = vpop.xlane.xlu1 %760 }
 0x9b6   : > { %v779_v30 = vsub.f32 %v8835_v6, %v761_v14  ;;  %v804_v6 = vsel %vm752_vm11, %v8953_v26, 0.0 }
 0x9b7   : > { %805 = vadd.xlane.f32.xlu1 %v804_v6 }
 0x9b8   : > { %v789_v18 = vmul.f32 1.442695, %v779_v30 }
 0x9b9   : > { %v764_v19 = vpop.xlane.xlu1 %763 }
 0x9ba   : > { %8542 = vpow2.f32 %v789_v18 }
 0x9bd   : > { %v767_v24 = vpop.xlane.xlu1 %766 }
 0x9be   : > { %v781_v63 = vsub.f32 %v8839_v8, %v767_v24 }
 0x9c0   : > { %v793_v28 = vmul.f32 1.442695, %v781_v63 }
 0x9c1   : > { %v770_v13 = vpop.xlane.xlu1 %769 }
 0x9c4   : > { %v8958_v12 = vpop.eup %8542 }
 0x9c5   : > { %v773_v32 = vpop.xlane.xlu1 %772  ;;  %v807_v36 = vsel %vm752_vm11, %v8958_v12, 0.0 }
 0x9c6   : > { %v783_v8 = vsub.f32 %v8843_v11, %v773_v32  ;;  %808 = vadd.xlane.f32.xlu1 %v807_v36 }
 0x9c8   : > { %v797_v40 = vmul.f32 1.442695, %v783_v8 }
 0x9c9   : > { %v776_v44 = vpop.xlane.xlu1 %775 }
 0xa87   : > { %v7625_v48 = vpop.f32.mrb[16].mxu1 }
 0xa88   : > { %v1689_v51 = vsub.f32 %v8900_v56, %v7625_v48  ;;  %v1679_v52 = vpop.f32.mrb[17].mxu1 }
 0xa89   : > { %v1688_v53 = vsub.f32 %v8903_v57, %v1679_v52 }
 0xa8b   : > { %v8173_v54 = vpack.c.bf16 %v1689_v51, %v1688_v53 }
 0xa8d   : > { %8174 = vmatprep.subr.bf16.mxu1 %v8173_v54 }
 0xa8e   : > { %8176 = vmatpush3.bf16.msra.mxu1 %v8173_v54 }
 0xa91   : > { %7631 = vmatmul.mubr.msk.f32.vlgmr.msra.gmra.mrb[18].mxu1 %vm752_vm11, %v1452_v31  ;;  %v780_v31 = vsub.f32 %v8833_v5, %v764_v19  ;;  %v782_v5 = vsub.f32 %v8837_v7, %v770_v13  ;;  %v784_v7 = vsub.f32 %v8841_v10, %v776_v44 }
 0xa93   : > { %v791_v21 = vmul.f32 1.442695, %v780_v31  ;;  %v795_v29 = vmul.f32 1.442695, %v782_v5  ;;  %v799_v47 = vmul.f32 1.442695, %v784_v7 }
 0xa95   : > { %8544 = vpow2.f32 %v791_v21 }
 0xa96   : > { %8546 = vpow2.f32 %v793_v28 }
 0xa97   : > { %8548 = vpow2.f32 %v795_v29 }
 0xa98   : > { %8550 = vpow2.f32 %v797_v40 }
 0xa99   : > { %8552 = vpow2.f32 %v799_v47 }
 0xa9a   : > { %8554 = vrcp.f32 %v8940_v55  ;;  %v9058_v55 = vld [vmem:[%s8715_s20 + $0x38] sm:$0xff] }
 0xa9b   : > { %8556 = vrcp.f32 %v8942_v58 }
 0xa9f   : > { %v8963_v38 = vpop.eup %8544 }
 0xaa0   : > { %v810_v45 = vsel %vm752_vm11, %v8963_v38, 0.0  ;;  %v8968_v46 = vpop.eup %8546 }
 0xaa1   : > { %811 = vadd.xlane.f32.xlu1 %v810_v45  ;;  %v813_v48 = vsel %vm752_vm11, %v8968_v46, 0.0  ;;  %v8972_v11 = vpop.eup %8548 }
 0xaa2   : > { %v816_v51 = vsel %vm752_vm11, %v8972_v11, 0.0  ;;  %v8976_v52 = vpop.eup %8550 }
 0xaa3   : > { %v819_v10 = vsel %vm752_vm11, %v8976_v52, 0.0  ;;  %v8980_v53 = vpop.eup %8552 }
 0xaa4   : > { %v822_v54 = vsel %vm752_vm11, %v8980_v53, 0.0 }
 0xaa5   : > { %814 = vadd.xlane.f32.xlu1 %v813_v48 }
 0xaa9   : > { %817 = vadd.xlane.f32.xlu1 %v816_v51 }
 0xaad   : > { %820 = vadd.xlane.f32.xlu1 %v819_v10 }
 0xab1   : > { %823 = vadd.xlane.f32.xlu1 %v822_v54 }
 0xb64   : > { %v7632_v59 = vpop.f32.mrb[18].mxu1 }
 0xb65   : > { %v1772_v61 = vmul.f32 0.25, %v7632_v59  ;;  %v1762_v62 = vpop.f32.mrb[19].mxu1 }
 0xb66   : > { %v1771_v0 = vmul.f32 0.25, %v1762_v62 }
 0xb68   : > { %v8177_v2 = vpack.c.bf16 %v1772_v61, %v1771_v0 }
 0xb6a   : > { %8178 = vmatprep.subr.bf16.mxu0 %v8177_v2 }
 0xb6b   : > { %8180 = vmatpush3.bf16.msra.mxu0 %v8177_v2 }
 0xb6e   : > { %7638 = vmatmul.mubr.msk.f32.vlgmr.msra.gmra.mrb[12].mxu0 %vm752_vm11, %v8856_v41 }
 0xc41   : > { %v7639_v4 = vpop.f32.mrb[12].mxu0 }
 0xc42   : > { %v1849_v14 = vsub.f32 %v8879_v42, %v7639_v4  ;;  %v1839_v30 = vpop.f32.mrb[13].mxu0 }
 0xc43   : > { %v1848_v18 = vsub.f32 %v8882_v43, %v1839_v30  ;;  %7644 = vmatprep.mubr.msk.f32.mxu1 %vm752_vm11, %v1839_v30  ;;  %7651 = vmatprep.mubr.msk.f32.mxu0 %vm752_vm11, %v1839_v30 }
 0xc45   : > { %v8181_v19 = vpack.c.bf16 %v1849_v14, %v1848_v18 }
 0xc47   : > { %8182 = vmatprep.subr.bf16.mxu1 %v8181_v19 }
 0xc48   : > { %8184 = vmatpush3.bf16.msra.mxu1 %v8181_v19 }
 0xc4b   : > { %7645 = vmatmul.mubr.msk.f32.vlgmr.msra.gmra.mrb[20].mxu1 %vm752_vm11, %v7639_v4 }
 0xc4c   : > { %7658 = vmatprep.mubr.msk.f32.mxu1 %vm752_vm11, %v1771_v0 }
 0xd1e   : > { %v7646_v31 = vpop.f32.mrb[20].mxu1 }
 0xd1f   : > { %v1932_v21 = vsub.f32 %v8890_v49, %v7646_v31  ;;  %v1922_v24 = vpop.f32.mrb[21].mxu1 }
 0xd20   : > { %v1931_v3 = vsub.f32 %v8893_v50, %v1922_v24 }
 0xd22   : > { %v8185_v63 = vpack.c.bf16 %v1932_v21, %v1931_v3 }
 0xd24   : > { %8186 = vmatprep.subr.bf16.mxu0 %v8185_v63 }
 0xd25   : > { %8188 = vmatpush3.bf16.msra.mxu0 %v8185_v63 }
 0xd28   : > { %7652 = vmatmul.mubr.msk.f32.vlgmr.msra.gmra.mrb[14].mxu0 %vm752_vm11, %v7639_v4 }
 0xd29   : > { %7665 = vmatprep.mubr.msk.f32.mxu0 %vm752_vm11, %v8849_v37 }
 0xdfb   : > { %v7653_v28 = vpop.f32.mrb[14].mxu0 }
 0xdfc   : > { %v2009_v6 = vsub.f32 %v8900_v56, %v7653_v28  ;;  %v1999_v13 = vpop.f32.mrb[15].mxu0 }
 0xdfd   : > { %v2008_v5 = vsub.f32 %v8903_v57, %v1999_v13 }
 0xdff   : > { %v8189_v29 = vpack.c.bf16 %v2009_v6, %v2008_v5 }
 0xe01   : > { %8190 = vmatprep.subr.bf16.mxu1 %v8189_v29 }
 0xe02   : > { %8192 = vmatpush3.bf16.msra.mxu1 %v8189_v29 }
 0xe05   : > { %7659 = vmatmul.mubr.msk.f32.vlgmr.msra.gmra.mrb[22].mxu1 %vm752_vm11, %v1772_v61 }
 0xed8   : > { %v7660_v32 = vpop.f32.mrb[22].mxu1 }
 0xed9   : > { %v2092_v36 = vmul.f32 0.25, %v7660_v32  ;;  %v2082_v8 = vpop.f32.mrb[23].mxu1 }
 0xeda   : > { %v2091_v40 = vmul.f32 0.25, %v2082_v8 }
 0xedc   : > { %v8193_v44 = vpack.c.bf16 %v2092_v36, %v2091_v40 }
 0xede   : > { %8194 = vmatprep.subr.bf16.mxu0 %v8193_v44 }
 0xedf   : > { %8196 = vmatpush3.bf16.msra.mxu0 %v8193_v44 }
 0xee2   : > { %7666 = vmatmul.mubr.msk.f32.vlgmr.msra.gmra.mrb[16].mxu0 %vm752_vm11, %v8856_v41 }
 0xfb5   : > { %v7667_v45 = vpop.f32.mrb[16].mxu0 }
 0xfb6   : > { %v2169_v7 = vsub.f32 %v8879_v42, %v7667_v45  ;;  %v2159_v47 = vpop.f32.mrb[17].mxu0 }
 0xfb7   : > { %v2168_v48 = vsub.f32 %v8882_v43, %v2159_v47  ;;  %7672 = vmatprep.mubr.msk.f32.mxu1 %vm752_vm11, %v2159_v47  ;;  %7679 = vmatprep.mubr.msk.f32.mxu0 %vm752_vm11, %v2159_v47 }
 0xfb9   : > { %v8197_v51 = vpack.c.bf16 %v2169_v7, %v2168_v48 }
 0xfbb   : > { %8198 = vmatprep.subr.bf16.mxu1 %v8197_v51 }
 0xfbc   : > { %8200 = vmatpush3.bf16.msra.mxu1 %v8197_v51 }
 0xfbf   : > { %7673 = vmatmul.mubr.msk.f32.vlgmr.msra.gmra.mrb[24].mxu1 %vm752_vm11, %v7667_v45 }
 0xfc0   : > { %7686 = vmatprep.mubr.msk.f32.mxu1 %vm752_vm11, %v2091_v40 }
0x1092   : > { %v7674_v10 = vpop.f32.mrb[24].mxu1 }
0x1093   : > { %v2252_v54 = vsub.f32 %v8890_v49, %v7674_v10  ;;  %v2242_v59 = vpop.f32.mrb[25].mxu1 }
0x1094   : > { %v2251_v61 = vsub.f32 %v8893_v50, %v2242_v59 }
0x1096   : > { %v8201_v62 = vpack.c.bf16 %v2252_v54, %v2251_v61 }
0x1098   : > { %8202 = vmatprep.subr.bf16.mxu0 %v8201_v62 }
0x1099   : > { %8204 = vmatpush3.bf16.msra.mxu0 %v8201_v62 }
0x109c   : > { %7680 = vmatmul.mubr.msk.f32.vlgmr.msra.gmra.mrb[18].mxu0 %vm752_vm11, %v7667_v45 }
0x109d   : > { %7693 = vmatprep.mubr.msk.f32.mxu0 %vm752_vm11, %v8849_v37 }
0x116f   : > { %v7681_v0 = vpop.f32.mrb[18].mxu0 }
0x1170   : > { %v2329_v2 = vsub.f32 %v8900_v56, %v7681_v0  ;;  %v2319_v4 = vpop.f32.mrb[19].mxu0 }
0x1171   : > { %v2328_v14 = vsub.f32 %v8903_v57, %v2319_v4 }
0x1173   : > { %v8205_v30 = vpack.c.bf16 %v2329_v2, %v2328_v14 }
0x1175   : > { %8206 = vmatprep.subr.bf16.mxu1 %v8205_v30 }
0x1176   : > { %8208 = vmatpush3.bf16.msra.mxu1 %v8205_v30  ;;  %v9046_v30 = vld [vmem:[%s8715_s20 + $0x8] sm:$0xff] }
0x1179   : > { %7687 = vmatmul.mubr.msk.f32.vlgmr.msra.gmra.mrb[26].mxu1 %vm752_vm11, %v2092_v36 }
0x124c   : > { %v7688_v18 = vpop.f32.mrb[26].mxu1 }
0x124d   : > { %v2412_v19 = vmul.f32 0.25, %v7688_v18  ;;  %v2402_v31 = vpop.f32.mrb[27].mxu1  ;;  %v9049_v18 = vld [vmem:[%s8715_s20 + $0x18] sm:$0xff] }
0x124e   : > { %v2411_v21 = vmul.f32 0.25, %v2402_v31 }
0x1250   : > { %v8209_v24 = vpack.c.bf16 %v2412_v19, %v2411_v21 }
0x1252   : > { %8210 = vmatprep.subr.bf16.mxu0 %v8209_v24 }
0x1253   : > { %8212 = vmatpush3.bf16.msra.mxu0 %v8209_v24  ;;  %v9055_v24 = vld [vmem:[%s8715_s20 + $0x28] sm:$0xff] }
0x1256   : > { %7694 = vmatmul.mubr.msk.f32.vlgmr.msra.gmra.mrb[20].mxu0 %vm752_vm11, %v8856_v41 }
0x1329   : > { %v7695_v3 = vpop.f32.mrb[20].mxu0 }
0x132a   : > { %v2489_v63 = vsub.f32 %v8879_v42, %v7695_v3  ;;  %v2479_v28 = vpop.f32.mrb[21].mxu0 }
0x132b   : > { %v2488_v6 = vsub.f32 %v8882_v43, %v2479_v28  ;;  %7700 = vmatprep.mubr.msk.f32.mxu1 %vm752_vm11, %v2479_v28  ;;  %7707 = vmatprep.mubr.msk.f32.mxu0 %vm752_vm11, %v2479_v28 }
0x132d   : > { %v8213_v13 = vpack.c.bf16 %v2489_v63, %v2488_v6  ;;  %v8245_v63 = vpack.c.bf16 %v9058_v55, %v9055_v24  ;;  %v9064_v6 = vld [vmem:[%s8715_s20 + $0x48] sm:$0xff] }
0x132f   : > { %8214 = vmatprep.subr.bf16.mxu1 %v8213_v13 }
0x1330   : > { %8216 = vmatpush3.bf16.msra.mxu1 %v8213_v13  ;;  %v9067_v13 = vld [vmem:[%s8715_s20 + $0x58] sm:$0xff] }
0x1333   : > { %7701 = vmatmul.mubr.msk.f32.vlgmr.msra.gmra.mrb[28].mxu1 %vm752_vm11, %v7695_v3 }
0x1334   : > { %7714 = vmatprep.mubr.msk.f32.mxu1 %vm752_vm11, %v2411_v21  ;;  %v8241_v21 = vpack.c.bf16 %v9049_v18, %v9046_v30 }
0x1406   : > { %v7702_v5 = vpop.f32.mrb[28].mxu1 }
0x1407   : > { %v2572_v29 = vsub.f32 %v8890_v49, %v7702_v5  ;;  %v2562_v32 = vpop.f32.mrb[29].mxu1  ;;  %v8249_v5 = vpack.c.bf16 %v9067_v13, %v9064_v6 }
0x1408   : > { %v2571_v36 = vsub.f32 %v8893_v50, %v2562_v32 }
0x140a   : > { %v8217_v8 = vpack.c.bf16 %v2572_v29, %v2571_v36  ;;  %v9075_v29 = vld [vmem:[%s8715_s20 + $0x68] sm:$0xff] }
0x140c   : > { %8218 = vmatprep.subr.bf16.mxu0 %v8217_v8 }
0x140d   : > { %8220 = vmatpush3.bf16.msra.mxu0 %v8217_v8  ;;  %v8624_v8 = vld [vmem:[%s8715_s20] sm:$0xff] }
0x1410   : > { %7708 = vmatmul.mubr.msk.f32.vlgmr.msra.gmra.mrb[22].mxu0 %vm752_vm11, %v7695_v3  ;;  %v8555_v3 = vpop.eup %8554 }
0x1411   : > { %7721 = vmatprep.mubr.msk.f32.mxu0 %vm752_vm11, %v8849_v37  ;;  %v1055_v28 = vmul.f32 %v8555_v3, %v8868_v25  ;;  %v9078_v25 = vld [vmem:[%s8715_s20 + $0x78] sm:$0xff]  ;;  %v8557_v32 = vpop.eup %8556 }
0x1412   : > { %v8253_v58 = vpack.c.bf16 %v9078_v25, %v9075_v29  ;;  %v1056_v36 = vmul.f32 %v8557_v32, %v8872_v27  ;;  %v8630_v27 = vld [vmem:[%s8715_s20 + $0x60] sm:$0xff] }
0x14e3   : > { %v7709_v40 = vpop.f32.mrb[22].mxu0 }
0x14e4   : > { %v2649_v44 = vsub.f32 %v8900_v56, %v7709_v40  ;;  %v2639_v45 = vpop.f32.mrb[23].mxu0  ;;  %v8625_v40 = vld [vmem:[%s8715_s20 + $0x10] sm:$0xff] }
0x14e5   : > { %v2648_v7 = vsub.f32 %v8903_v57, %v2639_v45  ;;  %v8626_v45 = vld [vmem:[%s8715_s20 + $0x20] sm:$0xff] }
0x14e7   : > { %v8221_v47 = vpack.c.bf16 %v2649_v44, %v2648_v7  ;;  %v8504_v44 = vpack.i.bf16 %v8625_v40, %v8624_v8  ;;  %v8627_v7 = vld [vmem:[%s8715_s20 + $0x30] sm:$0xff] }
0x14e9   : > { %8222 = vmatprep.subr.bf16.mxu1 %v8221_v47  ;;  %8505 = vrot.lane.b32.xlu1 %v8504_v44, %s8670_s25 }
0x14ea   : > { %8224 = vmatpush3.bf16.msra.mxu1 %v8221_v47  ;;  %v8509_v47 = vpack.i.bf16 %v8627_v7, %v8626_v45 }
0x14ec   : > { %8510 = vrot.lane.b32.xlu0 %v8509_v47, %s8670_s25 }
0x14ed   : > { %7715 = vmatmul.mubr.msk.f32.vlgmr.msra.gmra.mrb[30].mxu1 %vm752_vm11, %v2412_v19 }
0x14f0   : > { %3636 = vrot.lane.b32.xlu0 %v8740_v23, %s8671_s26 }
0x14f4   : > { %3640 = vrot.lane.b32.xlu0 %v8763_v34, %s8671_s26 }
0x15c0   : > { %v7716_v48 = vpop.f32.mrb[30].mxu1 }
0x15c1   : > { %v9032_v51 = vmul.f32 0.25, %v7716_v48  ;;  %v2722_v10 = vpop.f32.mrb[31].mxu1  ;;  %v8628_v48 = vld [vmem:[%s8715_s20 + $0x40] sm:$0xff] }
0x15c2   : > { %v2731_v54 = vmul.f32 0.25, %v2722_v10  ;;  %v8629_v10 = vld [vmem:[%s8715_s20 + $0x50] sm:$0xff] }
0x15c4   : > { %v8225_v59 = vpack.c.bf16 %v9032_v51, %v2731_v54 }
0x15c6   : > { %8226 = vmatprep.subr.bf16.mxu0 %v8225_v59 }
0x15c7   : > { %8228 = vmatpush3.bf16.msra.mxu0 %v8225_v59  ;;  %v8631_v59 = vld [vmem:[%s8715_s20 + $0x70] sm:$0xff] }
0x15ca   : > { %7722 = vmatmul.mubr.msk.f32.vlgmr.msra.gmra.mrb[24].mxu0 %vm752_vm11, %v8856_v41 }
0x169d   : > { %v7723_v37 = vpop.f32.mrb[24].mxu0 }
0x169e   : > { %v2809_v61 = vsub.f32 %v8879_v42, %v7723_v37  ;;  %v2799_v62 = vpop.f32.mrb[25].mxu0 }
0x169f   : > { %v2808_v0 = vsub.f32 %v8882_v43, %v2799_v62  ;;  %7728 = vmatprep.mubr.msk.f32.mxu1 %vm752_vm11, %v2799_v62  ;;  %7735 = vmatprep.mubr.msk.f32.mxu0 %vm752_vm11, %v2799_v62 }
0x16a1   : > { %v8229_v2 = vpack.c.bf16 %v2809_v61, %v2808_v0 }
0x16a3   : > { %8230 = vmatprep.subr.bf16.mxu1 %v8229_v2 }
0x16a4   : > { %8232 = vmatpush3.bf16.msra.mxu1 %v8229_v2 }
0x16a7   : > { %7729 = vmatmul.mubr.msk.f32.vlgmr.msra.gmra.mrb[32].mxu1 %vm752_vm11, %v7723_v37 }
0x16a8   : > { %7742 = vmatprep.mubr.msk.f32.mxu1 %vm752_vm11, %v2731_v54  ;;  %v8514_v54 = vpack.i.bf16 %v8629_v10, %v8628_v48 }
0x16aa   : > { %8515 = vrot.lane.b32.xlu1 %v8514_v54, %s8670_s25 }
0x16ae   : > { %3628 = vrot.lane.b32.xlu1 %v8725_v9, %s8671_s26 }
0x16b2   : > { %3630 = vrot.lane.b32.xlu1 %v8730_v15, %s8671_s26 }
0x177a   : > { %v7730_v41 = vpop.f32.mrb[32].mxu1 }
0x177b   : > { %v2892_v4 = vsub.f32 %v8890_v49, %v7730_v41  ;;  %v2882_v14 = vpop.f32.mrb[33].mxu1 }
0x177c   : > { %v2891_v19 = vsub.f32 %v8893_v50, %v2882_v14 }
0x177e   : > { %v8233_v31 = vpack.c.bf16 %v2892_v4, %v2891_v19  ;;  %v803_v19 = vpop.xlane.xlu0 %802 }
0x177f   : > { %8558 = vrcp.f32 %v803_v19 }
0x1780   : > { %8234 = vmatprep.subr.bf16.mxu0 %v8233_v31 }
0x1781   : > { %8236 = vmatpush3.bf16.msra.mxu0 %v8233_v31 }
0x1782   : > { %8242 = vmatprep.subr.bf16.mxu0 %v8241_v21 }
0x1784   : > { %7736 = vmatmul.mubr.msk.f32.vlgmr.msra.gmra.mrb[26].mxu0 %vm752_vm11, %v7723_v37  ;;  %v8519_v37 = vpack.i.bf16 %v8631_v59, %v8630_v27 }
0x1785   : > { %8244 = vmatpush3.bf16.msra.mxu0 %v8241_v21  ;;  %7761 = vmatprep.mubr.msk.f32.mxu0 %vm427_vm4, %v1055_v28 }
0x1786   : > { %8246 = vmatprep.subr.bf16.mxu0 %v8245_v63  ;;  %8520 = vrot.lane.b32.xlu1 %v8519_v37, %s8670_s25 }
0x1789   : > { %8248 = vmatpush3.bf16.msra.mxu0 %v8245_v63  ;;  %v8511_v63 = vpop.permute.xlu0 %8510  ;;  %v8559_v27 = vpop.eup %8558 }
0x178a   : > { %8250 = vmatprep.subr.bf16.mxu0 %v8249_v5  ;;  %3632 = vrot.lane.b32.xlu1 %v8732_v16, %s8671_s26  ;;  %v8513_v28 = vunpack.i.h.bf16 %v8511_v63 }
0x178d   : > { %8252 = vmatpush3.bf16.msra.mxu0 %v8249_v5  ;;  %v8512_v5 = vunpack.i.l.bf16 %v8511_v63  ;;  %v3637_v63 = vpop.permute.xlu0 %3636 }
0x178e   : > { %8254 = vmatprep.subr.bf16.mxu0 %v8253_v58  ;;  %3634 = vrot.lane.b32.xlu1 %v8734_v17, %s8671_s26 }
0x178f   : > { %v9120_v32 = vpack.c.bf16 %v8513_v28, %v8512_v5 }
0x1791   : > { %8256 = vmatpush3.bf16.msra.mxu0 %v8253_v58 }
0x1792   : > { %3638 = vrot.lane.b32.xlu1 %v8738_v22, %s8671_s26  ;;  %v806_v22 = vpop.xlane.xlu1 %805 }
0x1793   : > { %8560 = vrcp.f32 %v806_v22 }
0x1794   : > { %7762 = vmatmul.mubr.msk.f32.vlgmr.msra.gmra.mrb[28].mxu0 %vm427_vm4, %v1056_v36 }
0x1795   : > { %7822 = vmatprep.mubr.msk.f32.mxu0 %vm427_vm4, %v8759_v33 }
0x1796   : > { %3642 = vrot.lane.b32.xlu1 %v8765_v35, %s8671_s26  ;;  %v809_v0 = vpop.xlane.xlu1 %808 }
0x1797   : > { %8562 = vrcp.f32 %v809_v0 }
0x179a   : > { %v812_v35 = vpop.xlane.xlu1 %811 }
0x179b   : > { %8564 = vrcp.f32 %v812_v35 }
0x179e   : > { %v815_v2 = vpop.xlane.xlu1 %814 }
0x179f   : > { %8566 = vrcp.f32 %v815_v2 }
0x17a2   : > { %v818_v41 = vpop.xlane.xlu1 %817 }
0x17a3   : > { %8568 = vrcp.f32 %v818_v41 }
0x17a6   : > { %v821_v4 = vpop.xlane.xlu1 %820 }
0x17a7   : > { %8570 = vrcp.f32 %v821_v4 }
0x17aa   : > { %v824_v14 = vpop.xlane.xlu1 %823 }
0x17ab   : > { %8572 = vrcp.f32 %v824_v14 }
0x17ae   : > { %v8506_v31 = vpop.permute.xlu1 %8505 }
0x17af   : > { %v8508_v21 = vunpack.i.h.bf16 %v8506_v31  ;;  %v8507_v3 = vunpack.i.l.bf16 %v8506_v31  ;;  %v8561_v31 = vpop.eup %8560 }
0x17b0   : > { %v834_v0 = vmul.f32 %v8561_v31, %v8953_v26 }
0x17b2   : > { %v8516_v58 = vpop.permute.xlu1 %8515 }
0x17b3   : > { %v8518_v36 = vunpack.i.h.bf16 %v8516_v58  ;;  %v8517_v8 = vunpack.i.l.bf16 %v8516_v58 }
0x17b5   : > { %v9124_v40 = vpack.c.bf16 %v8518_v36, %v8517_v8  ;;  %v3641_v36 = vpop.permute.xlu0 %3640 }
0x17b6   : > { %v9127_v44 = vpop.permute.xlu1 %3628 }
0x17ba   : > { %v9131_v45 = vpop.permute.xlu1 %3630 }
0x17f8   : > { %v8521_v7 = vpop.permute.xlu1 %8520 }
0x17f9   : > { %v8523_v47 = vunpack.i.h.bf16 %v8521_v7  ;;  %v8522_v48 = vunpack.i.l.bf16 %v8521_v7 }
0x17fb   : > { %v9134_v10 = vpack.c.bf16 %v8523_v47, %v8522_v48 }
0x1857   : > { %v7737_v9 = vpop.f32.mrb[26].mxu0 }
0x1858   : > { %v2969_v15 = vsub.f32 %v8900_v56, %v7737_v9  ;;  %v2959_v23 = vpop.f32.mrb[27].mxu0 }
0x1859   : > { %v2968_v34 = vsub.f32 %v8903_v57, %v2959_v23 }
0x185b   : > { %v8237_v61 = vpack.c.bf16 %v2969_v15, %v2968_v34  ;;  %v833_v15 = vmul.f32 %v8559_v27, %v8948_v20 }
0x185d   : > { %8238 = vmatprep.subr.bf16.mxu1 %v8237_v61 }
0x185e   : > { %8240 = vmatpush3.bf16.msra.mxu1 %v8237_v61 }
0x1861   : > { %7743 = vmatmul.mubr.msk.f32.vlgmr.msra.gmra.mrb[34].mxu1 %vm752_vm11, %v9032_v51  ;;  %v9118_v51 = vpack.c.bf16 %v8508_v21, %v8507_v3  ;;  %v8563_v21 = vpop.eup %8562  ;;  %v8265_v3 = vpack.c.bf16 %v9131_v45, %v9127_v44 }
0x1862   : > { %v8565_v35 = vpop.eup %8564  ;;  %v835_v2 = vmul.f32 %v8563_v21, %v8958_v12 }
0x1863   : > { %8282 = vmatprep.subr.bf16.mxu0 %v9118_v51  ;;  %v8567_v41 = vpop.eup %8566  ;;  %v836_v4 = vmul.f32 %v8565_v35, %v8963_v38 }
0x1864   : > { %8284 = vmatpush3.bf16.msra.mxu0 %v9118_v51  ;;  %v8569_v5 = vpop.eup %8568  ;;  %v837_v58 = vmul.f32 %v8567_v41, %v8968_v46 }
0x1865   : > { %8286 = vmatprep.subr.bf16.mxu0 %v9120_v32  ;;  %v8571_v8 = vpop.eup %8570  ;;  %v838_v12 = vmul.f32 %v8569_v5, %v8972_v11 }
0x1866   : > { %v8573_v47 = vpop.eup %8572  ;;  %v839_v48 = vmul.f32 %v8571_v8, %v8976_v52 }
0x1867   : > { %v7763_v16 = vpop.f32.mrb[28].mxu0  ;;  %v840_v38 = vmul.f32 %v8573_v47, %v8980_v53 }
0x1868   : > { %v3125_v17 = vpop.f32.mrb[29].mxu0  ;;  %8288 = vmatpush3.bf16.msra.mxu0 %v9120_v32 }
0x1869   : > { %v8257_v62 = vpack.c.bf16 %v7763_v16, %v3125_v17  ;;  %8290 = vmatprep.subr.bf16.mxu0 %v9124_v40  ;;  %v3633_v16 = vpop.permute.xlu1 %3632 }
0x186b   : > { %8258 = vmatprep.subr.bf16.mxu1 %v8257_v62 }
0x186c   : > { %8260 = vmatpush3.bf16.msra.mxu1 %v8257_v62  ;;  %8292 = vmatpush3.bf16.msra.mxu0 %v9124_v40 }
0x186d   : > { %8294 = vmatprep.subr.bf16.mxu0 %v9134_v10  ;;  %v3635_v62 = vpop.permute.xlu1 %3634 }
0x186e   : > { %v8269_v28 = vpack.c.bf16 %v3635_v62, %v3633_v16 }
0x1870   : > { %8296 = vmatpush3.bf16.msra.mxu0 %v9134_v10 }
0x1871   : > { %v3639_v22 = vpop.permute.xlu1 %3638 }
0x1872   : > { %v8273_v14 = vpack.c.bf16 %v3639_v22, %v3637_v63 }
0x1873   : > { %7823 = vmatmul.mubr.msk.f32.vlgmr.msra.gmra.mrb[30].mxu0 %vm427_vm4, %v8771_v39 }
0x1875   : > { %v3643_v26 = vpop.permute.xlu1 %3642 }
0x1876   : > { %v8277_v7 = vpack.c.bf16 %v3643_v26, %v3641_v36 }
0x1934   : > { %v7744_v54 = vpop.f32.mrb[34].mxu1 }
0x1935   : > { %v3042_v59 = vpop.f32.mrb[35].mxu1  ;;  %v3052_v9 = vmul.f32 0.25, %v7744_v54 }
0x1936   : > { %v3051_v37 = vmul.f32 0.25, %v3042_v59 }
0x1938   : > { %7768 = vmatprep.mubr.msk.f32.mxu1 %vm752_vm11, %v3051_v37 }
0x1939   : > { %7769 = vmatmul.mubr.msk.f32.vlgmr.msra.gmra.mrb[36].mxu1 %vm752_vm11, %v3052_v9 }
0x193a   : > { %7775 = vmatprep.mubr.msk.f32.mxu1 %vm752_vm11, %v833_v15 }
0x1946   : > { %v7824_v23 = vpop.f32.mrb[30].mxu0 }
0x1947   : > { %v3817_v34 = vpop.f32.mrb[31].mxu0 }
0x1948   : > { %v8297_v61 = vpack.c.bf16 %v7824_v23, %v3817_v34 }
0x194a   : > { %8305 = vmatprep.subr.msk.bf16.mxu0 %vm8782_vm10, %v8297_v61 }
0x194b   : > { %8308 = vmatpush3.bf16.xpose.msk.msra.mxu0 %vm8782_vm10, %v8297_v61 }
0x1a0c   : > { %v7770_v17 = vpop.f32.mrb[36].mxu1 }
0x1a0d   : > { %v3206_v20 = vpop.f32.mrb[37].mxu1 }
0x1a0e   : > { %v8261_v19 = vpack.c.bf16 %v7770_v17, %v3206_v20 }
0x1a10   : > { %8262 = vmatprep.subr.bf16.mxu1 %v8261_v19 }
0x1a11   : > { %8264 = vmatpush3.bf16.msra.mxu1 %v8261_v19 }
0x1a12   : > { %8266 = vmatprep.subr.bf16.mxu1 %v8265_v3 }
0x1a14   : > { %7776 = vmatmul.mubr.msk.f32.vlgmr.msra.gmra.mrb[38].mxu1 %vm752_vm11, %v834_v0 }
0x1a15   : > { %7778 = vmatprep.mubr.msk.f32.mxu1 %vm752_vm11, %v835_v2  ;;  %8268 = vmatpush3.bf16.msra.mxu1 %v8265_v3 }
0x1a16   : > { %8270 = vmatprep.subr.bf16.mxu1 %v8269_v28 }
0x1a18   : > { %7779 = vmatmul.mubr.msk.f32.gmra.mrb[40].mxu1 %vm752_vm11, %v836_v4 }
0x1a19   : > { %7781 = vmatprep.mubr.msk.f32.mxu1 %vm752_vm11, %v837_v58  ;;  %8272 = vmatpush3.bf16.msra.mxu1 %v8269_v28 }
0x1a1a   : > { %8274 = vmatprep.subr.bf16.mxu1 %v8273_v14 }
0x1a1c   : > { %7782 = vmatmul.mubr.msk.f32.gmra.mrb[42].mxu1 %vm752_vm11, %v838_v12 }
0x1a1d   : > { %7784 = vmatprep.mubr.msk.f32.mxu1 %vm752_vm11, %v839_v48  ;;  %8276 = vmatpush3.bf16.msra.mxu1 %v8273_v14 }
0x1a1e   : > { %8278 = vmatprep.subr.bf16.mxu1 %v8277_v7 }
0x1a20   : > { %7785 = vmatmul.mubr.msk.f32.gmra.mrb[44].mxu1 %vm752_vm11, %v840_v38 }
0x1a21   : > { %8280 = vmatpush3.bf16.msra.mxu1 %v8277_v7  ;;  %7803 = vmatprep.mubr.msk.f32.mxu1 %vm427_vm4, %v8759_v33 }
0x1a22   : > { %8299 = vmatprep.subr.msk.bf16.mxu1 %vm8782_vm10, %v8297_v61 }
0x1a24   : > { %7804 = vmatmul.mubr.msk.f32.vlgmr.msra.gmra.mrb[46].mxu1 %vm427_vm4, %v8771_v39 }
0x1a25   : > { %7829 = vmatprep.mubr.msk.f32.mxu1 %vm616_vm9, %v9127_v44 }
0x1a2a   : > { %8302 = vmatpush3.bf16.xpose.msk.msra.mxu1 %vm8782_vm10, %v8297_v61 }
0x1a2b   : > { %8311 = vmatprep.subr.msk.bf16.mxu1 %vm8782_vm10, %v9118_v51 }
0x1a31   : > { %7830 = vmatmul.mubr.msk.f32.vlgmr.msra.gmra.mrb[48].mxu1 %vm616_vm9, %v9131_v45 }
0x1a32   : > { %7832 = vmatprep.mubr.msk.f32.mxu1 %vm616_vm9, %v3633_v16  ;;  %8314 = vmatpush3.bf16.xpose.msk.msra.mxu1 %vm8782_vm10, %v9118_v51 }
0x1a33   : > { %8317 = vmatprep.subr.msk.bf16.mxu1 %vm8782_vm10, %v9120_v32 }
0x1a35   : > { %7833 = vmatmul.mubr.msk.f32.gmra.mrb[50].mxu1 %vm616_vm9, %v3635_v62 }
0x1a36   : > { %7835 = vmatprep.mubr.msk.f32.mxu1 %vm616_vm9, %v3637_v63 }
0x1a39   : > { %7836 = vmatmul.mubr.msk.f32.gmra.mrb[52].mxu1 %vm616_vm9, %v3639_v22 }
0x1a3a   : > { %7838 = vmatprep.mubr.msk.f32.mxu1 %vm616_vm9, %v3641_v36  ;;  %8320 = vmatpush3.bf16.xpose.msk.msra.mxu1 %vm8782_vm10, %v9120_v32 }
0x1a3b   : > { %8323 = vmatprep.subr.msk.bf16.mxu1 %vm8782_vm10, %v9124_v40 }
0x1a3d   : > { %7839 = vmatmul.mubr.msk.f32.gmra.mrb[54].mxu1 %vm616_vm9, %v3643_v26 }
0x1a42   : > { %8326 = vmatpush3.bf16.xpose.msk.msra.mxu1 %vm8782_vm10, %v9124_v40 }
0x1a43   : > { %8329 = vmatprep.subr.msk.bf16.mxu1 %vm8782_vm10, %v9134_v10 }
0x1a4a   : > { %8332 = vmatpush3.bf16.xpose.msk.msra.mxu1 %vm8782_vm10, %v9134_v10 }
0x1ae7   : > { %v9206_v33 = vpop.f32.mrb[38].mxu1 }
0x1ae8   : > { %v9208_v39 = vpop.f32.mrb[39].mxu1 }
0x1aeb   : > { %v9210_v46 = vpop.f32.mrb[40].mxu1 }
0x1aec   : > { %v9212_v11 = vpop.f32.mrb[41].mxu1 }
0x1aef   : > { %v9214_v52 = vpop.f32.mrb[42].mxu1 }
0x1af0   : > { %v9216_v53 = vpop.f32.mrb[43].mxu1 }
0x1af3   : > { %v9218_v51 = vpop.f32.mrb[44].mxu1 }
0x1af4   : > { %v9220_v32 = vpop.f32.mrb[45].mxu1 }
0x1af7   : > { %v7805_v40 = vpop.f32.mrb[46].mxu1 }
0x1af8   : > { %v3718_v44 = vpop.f32.mrb[47].mxu1 }
0x1af9   : > { %7845 = vmatprep.mubr.msk.f32.mxu0 %vm616_vm9, %v3718_v44  ;;  %7864 = vmatprep.mubr.msk.f32.mxu1 %vm616_vm9, %v3718_v44 }
0x1afa   : > { %7846 = vmatmul.mubr.msk.f32.vlgmr.msra.gmra.mrb[32].mxu0 %vm616_vm9, %v7805_v40  ;;  %7865 = vmatmul.mubr.msk.f32.vlgmr.msra.gmra.mrb[56].mxu1 %vm616_vm9, %v7805_v40 }
0x1b04   : > { %v9226_v60 = vpop.f32.mrb[48].mxu1 }
0x1b05   : > { %v9228_v45 = vpop.f32.mrb[49].mxu1 }
0x1b08   : > { %v9230_v10 = vpop.f32.mrb[50].mxu1 }
0x1b09   : > { %v9232_v54 = vpop.f32.mrb[51].mxu1 }
0x1b0c   : > { %v9234_v27 = vpop.f32.mrb[52].mxu1 }
0x1b0d   : > { %v9236_v59 = vpop.f32.mrb[53].mxu1 }
0x1b10   : > { %v9238_v37 = vpop.f32.mrb[54].mxu1 }
0x1b11   : > { %v9240_v9 = vpop.f32.mrb[55].mxu1 }
0x1bcd   : > { %v7847_v15 = vpop.f32.mrb[32].mxu0  ;;  %v9242_v23 = vpop.f32.mrb[56].mxu1 }
0x1bce   : > { %v4113_v34 = vpop.f32.mrb[33].mxu0  ;;  %v9244_v61 = vpop.f32.mrb[57].mxu1  ;;  %v4125_v16 = vsel %vm752_vm11, %v7847_v15, -inf }
0x1bcf   : > { %4126 = vmax.xlane.f32.xlu1 %v4125_v16  ;;  %v4122_v17 = vsel %vm752_vm11, %v4113_v34, -inf  ;;  %v4238_v16 = vsel %vm427_vm4, %v9242_v23, -inf }
0x1bd0   : > { %4123 = vmax.xlane.f32.xlu0 %v4122_v17  ;;  %v3956_v17 = vsel %vm752_vm11, %v9226_v60, -inf }
0x1c5c   : > { %v4127_v20 = vpop.xlane.xlu1 %4126 }
0x1c5d   : > { %v4129_v62 = vsub.f32 %v7847_v15, %v4127_v20  ;;  %v4124_v19 = vpop.xlane.xlu0 %4123 }
0x1c5e   : > { %v4128_v31 = vsub.f32 %v4113_v34, %v4124_v19  ;;  %v4235_v34 = vsel %vm427_vm4, %v9244_v61, -inf }
0x1c5f   : > { %v4132_v21 = vmul.f32 1.442695, %v4129_v62 }
0x1c60   : > { %v4130_v3 = vmul.f32 1.442695, %v4128_v31 }
0x1c62   : > { %8574 = vpow2.f32 %v4130_v3 }
0x1c63   : > { %8576 = vpow2.f32 %v4132_v21 }
0x1c6c   : > { %v8575_v63 = vpop.eup %8574 }
0x1c6d   : > { %v4134_v22 = vsel %vm752_vm11, %v8575_v63, 0.0  ;;  %v8577_v0 = vpop.eup %8576 }
0x1c6e   : > { %4135 = vadd.xlane.f32.xlu0 %v4134_v22  ;;  %v4137_v35 = vsel %vm752_vm11, %v8577_v0, 0.0 }
0x1c72   : > { %4138 = vadd.xlane.f32.xlu0 %v4137_v35 }
0x1cfb   : > { %v4136_v2 = vpop.xlane.xlu0 %4135 }
0x1cfc   : > { %8578 = vrcp.f32 %v4136_v2 }
0x1cff   : > { %v4139_v41 = vpop.xlane.xlu0 %4138 }
0x1d00   : > { %8580 = vrcp.f32 %v4139_v41 }
0x1d06   : > { %v8579_v28 = vpop.eup %8578 }
0x1d07   : > { %v9250_v4 = vmul.f32 %v8579_v28, %v8575_v63 }
0x1d09   : > { %7871 = vmatprep.mubr.msk.f32.mxu0 %vm752_vm11, %v9250_v4  ;;  %v4257_v14 = vand.u32 2147483647, %v9250_v4 }
0x1d0a   : > { %v8581_v5 = vpop.eup %8580 }
0x1d0b   : > { %v9255_v58 = vmul.f32 %v8581_v5, %v8577_v0  ;;  %v4259_v36 = vsel %vm752_vm11, %v4257_v14, 0.0 }
0x1d0c   : > { %4260 = vadd.xlane.f32.xlu1 %v4259_v36 }
0x1d0d   : > { %v4258_v26 = vand.u32 2147483647, %v9255_v58 }
0x1d0f   : > { %v4262_v8 = vsel %vm752_vm11, %v4258_v26, 0.0 }
0x1d10   : > { %4263 = vadd.xlane.f32.xlu0 %v4262_v8  ;;  %v4273_v12 = vadd.f32 %v4262_v8, %v4259_v36 }
0x1d12   : > { %v4274_v7 = vrot.slane %v4273_v12, 4 }
0x1d14   : > { %v4275_v47 = vadd.f32 %v4274_v7, %v4273_v12 }
0x1d16   : > { %v4276_v48 = vrot.slane %v4275_v47, 2 }
0x1d18   : > { %v4277_v38 = vadd.f32 %v4276_v48, %v4275_v47 }
0x1d1a   : > { %v4278_v40 = vrot.slane %v4277_v38, 1 }
0x1d1c   : > { %v4279_v44 = vadd.f32 %v4278_v40, %v4277_v38  ;;  %v3962_v40 = vsel %vm752_vm11, %v9230_v10, -inf }
0x1d1e   : > { %v4280_v15 = vsel %vm752_vm11, %v4279_v44, -inf  ;;  %v3965_v44 = vsel %vm752_vm11, %v9236_v59, -inf }
0x1d1f   : > { %4281 = vmax.xlane.f32.xlu1 %v4280_v15  ;;  %v3968_v15 = vsel %vm752_vm11, %v9234_v27, -inf }
0x1d23   : > { %4236 = vmax.xlane.f32.xlu1 %v4235_v34 }
0x1d27   : > { %4239 = vmax.xlane.f32.xlu1 %v4238_v16  ;;  %v3971_v16 = vsel %vm752_vm11, %v9240_v9, -inf }
0x1d3d   : > { %4285 = vxpose.xlu0.b32.start [1/2] (short) (narrow) %v9250_v4, 16 }
0x1d41   : > { %4286 = vxpose.xlu0.b32.end [2/2] (short) (narrow) %v9255_v58, 16 }
0x1d6a   : > { %6265 = vrot.lane.b32.xlu0 %v9067_v13, %s8671_s26 }
0x1d89   : > { %3957 = vmax.xlane.f32.xlu0 %v3956_v17  ;;  %v3974_v17 = vsel %vm752_vm11, %v9238_v37, -inf }
0x1d99   : > { %v4261_v20 = vpop.xlane.xlu1 %4260 }
0x1d9d   : > { %v4264_v62 = vpop.xlane.xlu0 %4263 }
0x1d9e   : > { %v4265_v19 = vmax.f32 %v4261_v20, %v4264_v62 }
0x1da0   : > { %v4266_v31 = vrot.slane %v4265_v19, 4 }
0x1da2   : > { %v4267_v21 = vmax.f32 %v4265_v19, %v4266_v31 }
0x1da4   : > { %v4268_v3 = vrot.slane %v4267_v21, 2 }
0x1da6   : > { %v4269_v63 = vmax.f32 %v4267_v21, %v4268_v3 }
0x1da8   : > { %v4270_v22 = vrot.slane %v4269_v63, 1 }
0x1daa   : > { %v4271_v0 = vmax.f32 %v4269_v63, %v4270_v22 }
0x1dac   : > { %8457 = vpush %v4271_v0  ;;  %v4282_v35 = vpop.xlane.xlu1 %4281 }
0x1dad   : > { %8459 = vpush %v4282_v35 }
0x1db0   : > { %v4237_v2 = vpop.xlane.xlu1 %4236 }
0x1db1   : > { %v4241_v41 = vsub.f32 %v9244_v61, %v4237_v2 }
0x1db3   : > { %v4243_v13 = vmul.f32 1.442695, %v4241_v41 }
0x1db4   : > { %v4240_v28 = vpop.xlane.xlu1 %4239 }
0x1db5   : > { %8582 = vpow2.f32 %v4243_v13  ;;  %v4242_v14 = vsub.f32 %v9242_v23, %v4240_v28 }
0x1db7   : > { %v4245_v5 = vmul.f32 1.442695, %v4242_v14 }
0x1db9   : > { %8584 = vpow2.f32 %v4245_v5 }
0x1dbd   : > { %v4301_v61 = vpop.trf.xlu0 }
0x1dbf   : > { %v9273_v36 = vpop.eup %8582 }
0x1dc0   : > { %v4247_v26 = vsel %vm427_vm4, %v9273_v36, 0.0 }
0x1dc1   : > { %4248 = vadd.xlane.f32.xlu1 %v4247_v26 }
0x1dc3   : > { %v9277_v8 = vpop.eup %8584 }
0x1dc4   : > { %v4250_v12 = vsel %vm427_vm4, %v9277_v8, 0.0 }
0x1dc5   : > { %4251 = vadd.xlane.f32.xlu1 %v4250_v12 }
0x1dd6   : > { %6255 = vrot.lane.b32.xlu1 %v9046_v30, %s8671_s26  ;;  %v4302_v30 = vpop.trf.xlu0 }
0x1dda   : > { %6257 = vrot.lane.b32.xlu1 %v9049_v18, %s8671_s26 }
0x1ddd   : > { %s8458_s27 = spop %8457 }
0x1dde   : > { %s8460_s28 = spop %8459  ;;  %6259 = vrot.lane.b32.xlu1 %v9055_v24, %s8671_s26 }
0x1ddf   : > { %s4284_s29 = smul.f32 %s8460_s28, %s8458_s27 }
0x1de1   : > { %v4317_v23 = vstv %s4284_s29 }
0x1de2   : > { %8586 = vrcp.f32 %v4317_v23  ;;  %6261 = vrot.lane.b32.xlu1 %v9058_v55, %s8671_s26  ;;  %v9303_v55 = vpop.permute.xlu0 %6265 }
0x1de6   : > { %6263 = vrot.lane.b32.xlu1 %v9064_v6, %s8671_s26  ;;  %v3953_v6 = vsel %vm752_vm11, %v9228_v45, -inf }
0x1dea   : > { %6267 = vrot.lane.b32.xlu1 %v9075_v29, %s8671_s26  ;;  %v3959_v29 = vsel %vm752_vm11, %v9232_v54, -inf }
0x1dec   : > { %v8587_v18 = vpop.eup %8586 }
0x1ded   : > { %v9293_v7 = vmul.f32 %v8587_v18, %v4301_v61  ;;  %v9295_v47 = vmul.f32 %v8587_v18, %v4302_v30 }
0x1dee   : > { %6269 = vrot.lane.b32.xlu1 %v9078_v25, %s8671_s26 }
0x1def   : > { %v8333_v24 = vpack.c.bf16 %v9295_v47, %v9293_v7 }
0x1df1   : > { %8334 = vmatprep.subr.bf16.mxu0 %v8333_v24 }
0x1df2   : > { %8336 = vmatpush3.bf16.msra.mxu0 %v8333_v24 }
0x1df5   : > { %7872 = vmatmul.mubr.msk.f32.vlgmr.msra.gmra.mrb[34].mxu0 %vm752_vm11, %v9255_v58 }
0x1e12   : > { %3954 = vmax.xlane.f32.xlu1 %v3953_v6 }
0x1e16   : > { %v3958_v48 = vpop.xlane.xlu0 %3957  ;;  %3960 = vmax.xlane.f32.xlu1 %v3959_v29 }
0x1e17   : > { %v3978_v25 = vsub.f32 %v9226_v60, %v3958_v48 }
0x1e19   : > { %v3987_v38 = vmul.f32 1.442695, %v3978_v25 }
0x1e1a   : > { %3963 = vmax.xlane.f32.xlu1 %v3962_v40 }
0x1e1b   : > { %8588 = vpow2.f32 %v3987_v38 }
0x1e1e   : > { %3966 = vmax.xlane.f32.xlu1 %v3965_v44 }
0x1e22   : > { %3969 = vmax.xlane.f32.xlu1 %v3968_v15 }
0x1e25   : > { %v9316_v34 = vpop.eup %8588 }
0x1e26   : > { %3972 = vmax.xlane.f32.xlu1 %v3971_v16  ;;  %v4004_v60 = vsel %vm752_vm11, %v9316_v34, 0.0 }
0x1e27   : > { %4005 = vadd.xlane.f32.xlu0 %v4004_v60 }
0x1e2a   : > { %3975 = vmax.xlane.f32.xlu1 %v3974_v17 }
0x1e4e   : > { %v9324_v20 = vpop.xlane.xlu1 %4248 }
0x1e52   : > { %v9326_v62 = vpop.xlane.xlu1 %4251 }
0x1e56   : > { %v9328_v19 = vpop.permute.xlu1 %6255 }
0x1e5a   : > { %v9330_v31 = vpop.permute.xlu1 %6257 }
0x1e5e   : > { %v9332_v21 = vpop.permute.xlu1 %6259 }
0x1e62   : > { %v9334_v3 = vpop.permute.xlu1 %6261 }
0x1e66   : > { %v9336_v63 = vpop.permute.xlu1 %6263 }
0x1e6a   : > { %v9338_v22 = vpop.permute.xlu1 %6267 }
0x1e6e   : > { %v9340_v0 = vpop.permute.xlu1 %6269 }
0x1e9f   : > { %v3955_v35 = vpop.xlane.xlu1 %3954 }
0x1ea0   : > { %v3977_v2 = vsub.f32 %v9228_v45, %v3955_v35 }
0x1ea2   : > { %v3985_v41 = vmul.f32 1.442695, %v3977_v2 }
0x1ea3   : > { %v3961_v13 = vpop.xlane.xlu1 %3960 }
0x1ea4   : > { %8590 = vpow2.f32 %v3985_v41  ;;  %v3979_v28 = vsub.f32 %v9232_v54, %v3961_v13 }
0x1ea6   : > { %v3989_v14 = vmul.f32 1.442695, %v3979_v28 }
0x1ea7   : > { %v3964_v5 = vpop.xlane.xlu1 %3963 }
0x1ea8   : > { %8592 = vpow2.f32 %v3989_v14  ;;  %v3980_v26 = vsub.f32 %v9230_v10, %v3964_v5 }
0x1eaa   : > { %v3991_v12 = vmul.f32 1.442695, %v3980_v26 }
0x1eab   : > { %v3967_v23 = vpop.xlane.xlu1 %3966 }
0x1eac   : > { %8594 = vpow2.f32 %v3991_v12  ;;  %v3981_v61 = vsub.f32 %v9236_v59, %v3967_v23 }
0x1eae   : > { %v9346_v30 = vpop.eup %8590  ;;  %v3993_v18 = vmul.f32 1.442695, %v3981_v61 }
0x1eaf   : > { %v3970_v24 = vpop.xlane.xlu1 %3969  ;;  %v4001_v45 = vsel %vm752_vm11, %v9346_v30, 0.0 }
0x1eb0   : > { %8596 = vpow2.f32 %v3993_v18  ;;  %v3982_v54 = vsub.f32 %v9234_v27, %v3970_v24  ;;  %4002 = vadd.xlane.f32.xlu1 %v4001_v45 }
0x1eb2   : > { %v9351_v6 = vpop.eup %8592  ;;  %v3995_v29 = vmul.f32 1.442695, %v3982_v54 }
0x1eb3   : > { %v3973_v10 = vpop.xlane.xlu1 %3972  ;;  %v4007_v48 = vsel %vm752_vm11, %v9351_v6, 0.0 }
0x1eb4   : > { %8598 = vpow2.f32 %v3995_v29  ;;  %v3983_v59 = vsub.f32 %v9240_v9, %v3973_v10  ;;  %4008 = vadd.xlane.f32.xlu1 %v4007_v48 }
0x1eb6   : > { %v9356_v25 = vpop.eup %8594  ;;  %v3997_v38 = vmul.f32 1.442695, %v3983_v59 }
0x1eb7   : > { %v3976_v40 = vpop.xlane.xlu1 %3975  ;;  %v4010_v44 = vsel %vm752_vm11, %v9356_v25, 0.0 }
0x1eb8   : > { %8600 = vpow2.f32 %v3997_v38  ;;  %v3984_v27 = vsub.f32 %v9238_v37, %v3976_v40  ;;  %4011 = vadd.xlane.f32.xlu0 %v4010_v44 }
0x1eba   : > { %v9361_v15 = vpop.eup %8596  ;;  %v3999_v16 = vmul.f32 1.442695, %v3984_v27 }
0x1ebb   : > { %v4013_v60 = vsel %vm752_vm11, %v9361_v15, 0.0 }
0x1ebc   : > { %8602 = vpow2.f32 %v3999_v16  ;;  %4014 = vadd.xlane.f32.xlu1 %v4013_v60 }
0x1ebd   : > { %8604 = vrcp.f32 %v9324_v20 }
0x1ebe   : > { %v9365_v9 = vpop.eup %8598  ;;  %8606 = vrcp.f32 %v9326_v62 }
0x1ebf   : > { %v4016_v17 = vsel %vm752_vm11, %v9365_v9, 0.0 }
0x1ec0   : > { %4017 = vadd.xlane.f32.xlu0 %v4016_v17 }
0x1ec2   : > { %v9369_v35 = vpop.eup %8600 }
0x1ec3   : > { %v4019_v37 = vsel %vm752_vm11, %v9369_v35, 0.0 }
0x1ec4   : > { %4020 = vadd.xlane.f32.xlu1 %v4019_v37 }
0x1ec6   : > { %v9373_v2 = vpop.eup %8602 }
0x1ec7   : > { %v4022_v41 = vsel %vm752_vm11, %v9373_v2, 0.0 }
0x1ec8   : > { %v7873_v13 = vpop.f32.mrb[34].mxu0  ;;  %4023 = vadd.xlane.f32.xlu0 %v4022_v41 }
0x1ec9   : > { %v4403_v28 = vsub.f32 %v8879_v42, %v7873_v13  ;;  %v4393_v14 = vpop.f32.mrb[35].mxu0 }
0x1eca   : > { %v4402_v5 = vsub.f32 %v8882_v43, %v4393_v14  ;;  %7878 = vmatprep.mubr.msk.f32.mxu0 %vm752_vm11, %v4393_v14 }
0x1ecc   : > { %v8337_v26 = vpack.c.bf16 %v4403_v28, %v4402_v5 }
0x1ece   : > { %8338 = vmatprep.subr.bf16.mxu0 %v8337_v26 }
0x1ecf   : > { %8340 = vmatpush3.bf16.msra.mxu0 %v8337_v26 }
0x1ed2   : > { %7879 = vmatmul.mubr.msk.f32.vlgmr.msra.gmra.mrb[36].mxu0 %vm752_vm11, %v7873_v13 }
0x1ed3   : > { %7885 = vmatprep.mubr.msk.f32.mxu0 %vm752_vm11, %v4393_v14 }
0x1fa5   : > { %v7880_v12 = vpop.f32.mrb[36].mxu0 }
0x1fa6   : > { %v4486_v23 = vsub.f32 %v8890_v49, %v7880_v12  ;;  %v4476_v61 = vpop.f32.mrb[37].mxu0 }
0x1fa7   : > { %v4485_v18 = vsub.f32 %v8893_v50, %v4476_v61 }
0x1fa9   : > { %v8341_v24 = vpack.c.bf16 %v4486_v23, %v4485_v18 }
0x1fab   : > { %8342 = vmatprep.subr.bf16.mxu0 %v8341_v24 }
0x1fac   : > { %8344 = vmatpush3.bf16.msra.mxu0 %v8341_v24 }
0x1faf   : > { %7886 = vmatmul.mubr.msk.f32.vlgmr.msra.gmra.mrb[38].mxu0 %vm752_vm11, %v7873_v13 }
0x1fb0   : > { %7892 = vmatprep.mubr.msk.f32.mxu0 %vm752_vm11, %v9293_v7 }
0x2082   : > { %v7887_v45 = vpop.f32.mrb[38].mxu0 }
0x2083   : > { %v4563_v54 = vsub.f32 %v8900_v56, %v7887_v45  ;;  %v4553_v29 = vpop.f32.mrb[39].mxu0 }
0x2084   : > { %v4562_v10 = vsub.f32 %v8903_v57, %v4553_v29 }
0x2086   : > { %v8345_v48 = vpack.c.bf16 %v4563_v54, %v4562_v10 }
0x2088   : > { %8346 = vmatprep.subr.bf16.mxu0 %v8345_v48 }
0x2089   : > { %8348 = vmatpush3.bf16.msra.mxu0 %v8345_v48 }
0x208c   : > { %7893 = vmatmul.mubr.msk.f32.vlgmr.msra.gmra.mrb[40].mxu0 %vm752_vm11, %v9295_v47 }
0x208d   : > { %7899 = vmatprep.mubr.msk.f32.mxu0 %vm752_vm11, %v9250_v4 }
0x215f   : > { %v7894_v59 = vpop.f32.mrb[40].mxu0 }
0x2160   : > { %v4646_v38 = vmul.f32 0.25, %v7894_v59  ;;  %v4636_v40 = vpop.f32.mrb[41].mxu0 }
0x2161   : > { %v4645_v44 = vmul.f32 0.25, %v4636_v40 }
0x2163   : > { %v8349_v7 = vpack.c.bf16 %v4646_v38, %v4645_v44  ;;  %7920 = vmatprep.mubr.msk.f32.mxu1 %vm752_vm11, %v4645_v44 }
0x2165   : > { %8350 = vmatprep.subr.bf16.mxu0 %v8349_v7 }
0x2166   : > { %8352 = vmatpush3.bf16.msra.mxu0 %v8349_v7 }
0x2169   : > { %7900 = vmatmul.mubr.msk.f32.vlgmr.msra.gmra.mrb[42].mxu0 %vm752_vm11, %v9255_v58 }
0x223c   : > { %v7901_v27 = vpop.f32.mrb[42].mxu0 }
0x223d   : > { %v4723_v16 = vsub.f32 %v8879_v42, %v7901_v27  ;;  %v4713_v60 = vpop.f32.mrb[43].mxu0 }
0x223e   : > { %v4722_v47 = vsub.f32 %v8882_v43, %v4713_v60  ;;  %7906 = vmatprep.mubr.msk.f32.mxu0 %vm752_vm11, %v4713_v60 }
0x2240   : > { %v8353_v17 = vpack.c.bf16 %v4723_v16, %v4722_v47 }
0x2242   : > { %8354 = vmatprep.subr.bf16.mxu0 %v8353_v17 }
0x2243   : > { %8356 = vmatpush3.bf16.msra.mxu0 %v8353_v17 }
0x2246   : > { %7907 = vmatmul.mubr.msk.f32.vlgmr.msra.gmra.mrb[44].mxu0 %vm752_vm11, %v7901_v27 }
0x2247   : > { %7913 = vmatprep.mubr.msk.f32.mxu0 %vm752_vm11, %v4713_v60 }
0x2319   : > { %v7908_v37 = vpop.f32.mrb[44].mxu0 }
0x231a   : > { %v4806_v41 = vsub.f32 %v8890_v49, %v7908_v37  ;;  %v4796_v13 = vpop.f32.mrb[45].mxu0 }
0x231b   : > { %v4805_v28 = vsub.f32 %v8893_v50, %v4796_v13 }
0x231d   : > { %v8357_v14 = vpack.c.bf16 %v4806_v41, %v4805_v28 }
0x231f   : > { %8358 = vmatprep.subr.bf16.mxu0 %v8357_v14 }
0x2320   : > { %8360 = vmatpush3.bf16.msra.mxu0 %v8357_v14 }
0x2323   : > { %7914 = vmatmul.mubr.msk.f32.vlgmr.msra.gmra.mrb[46].mxu0 %vm752_vm11, %v7901_v27 }
0x2324   : > { %7927 = vmatprep.mubr.msk.f32.mxu0 %vm752_vm11, %v9250_v4 }
0x23f6   : > { %v7915_v5 = vpop.f32.mrb[46].mxu0 }
0x23f7   : > { %v4883_v26 = vsub.f32 %v8900_v56, %v7915_v5  ;;  %v4873_v12 = vpop.f32.mrb[47].mxu0 }
0x23f8   : > { %v4882_v23 = vsub.f32 %v8903_v57, %v4873_v12 }
0x23fa   : > { %v8361_v61 = vpack.c.bf16 %v4883_v26, %v4882_v23 }
0x23fc   : > { %8362 = vmatprep.subr.bf16.mxu1 %v8361_v61 }
0x23fd   : > { %8364 = vmatpush3.bf16.msra.mxu1 %v8361_v61 }
0x2400   : > { %7921 = vmatmul.mubr.msk.f32.vlgmr.msra.gmra.mrb[58].mxu1 %vm752_vm11, %v4646_v38 }
0x24d3   : > { %v7922_v18 = vpop.f32.mrb[58].mxu1 }
0x24d4   : > { %v4966_v24 = vmul.f32 0.25, %v7922_v18  ;;  %v4956_v45 = vpop.f32.mrb[59].mxu1 }
0x24d5   : > { %v4965_v54 = vmul.f32 0.25, %v4956_v45 }
0x24d7   : > { %v8365_v29 = vpack.c.bf16 %v4966_v24, %v4965_v54 }
0x24d9   : > { %8366 = vmatprep.subr.bf16.mxu0 %v8365_v29 }
0x24da   : > { %8368 = vmatpush3.bf16.msra.mxu0 %v8365_v29 }
0x24dd   : > { %7928 = vmatmul.mubr.msk.f32.vlgmr.msra.gmra.mrb[48].mxu0 %vm752_vm11, %v9255_v58 }
0x25b0   : > { %v7929_v10 = vpop.f32.mrb[48].mxu0 }
0x25b1   : > { %v5043_v48 = vsub.f32 %v8879_v42, %v7929_v10  ;;  %v5033_v59 = vpop.f32.mrb[49].mxu0 }
0x25b2   : > { %v5042_v40 = vsub.f32 %v8882_v43, %v5033_v59  ;;  %7934 = vmatprep.mubr.msk.f32.mxu1 %vm752_vm11, %v5033_v59  ;;  %7941 = vmatprep.mubr.msk.f32.mxu0 %vm752_vm11, %v5033_v59 }
0x25b4   : > { %v8369_v38 = vpack.c.bf16 %v5043_v48, %v5042_v40 }
0x25b6   : > { %8370 = vmatprep.subr.bf16.mxu1 %v8369_v38 }
0x25b7   : > { %8372 = vmatpush3.bf16.msra.mxu1 %v8369_v38 }
0x25ba   : > { %7935 = vmatmul.mubr.msk.f32.vlgmr.msra.gmra.mrb[60].mxu1 %vm752_vm11, %v7929_v10 }
0x25bb   : > { %7948 = vmatprep.mubr.msk.f32.mxu1 %vm752_vm11, %v4965_v54 }
0x268d   : > { %v7936_v44 = vpop.f32.mrb[60].mxu1 }
0x268e   : > { %v5126_v7 = vsub.f32 %v8890_v49, %v7936_v44  ;;  %v5116_v27 = vpop.f32.mrb[61].mxu1 }
0x268f   : > { %v5125_v16 = vsub.f32 %v8893_v50, %v5116_v27 }
0x2691   : > { %v8373_v60 = vpack.c.bf16 %v5126_v7, %v5125_v16 }
0x2693   : > { %8374 = vmatprep.subr.bf16.mxu0 %v8373_v60 }
0x2694   : > { %8376 = vmatpush3.bf16.msra.mxu0 %v8373_v60 }
0x2697   : > { %7942 = vmatmul.mubr.msk.f32.vlgmr.msra.gmra.mrb[50].mxu0 %vm752_vm11, %v7929_v10 }
0x2698   : > { %7955 = vmatprep.mubr.msk.f32.mxu0 %vm752_vm11, %v9250_v4 }
0x276a   : > { %v7943_v47 = vpop.f32.mrb[50].mxu0 }
0x276b   : > { %v5203_v17 = vsub.f32 %v8900_v56, %v7943_v47  ;;  %v5193_v37 = vpop.f32.mrb[51].mxu0 }
0x276c   : > { %v5202_v41 = vsub.f32 %v8903_v57, %v5193_v37 }
0x276e   : > { %v8377_v13 = vpack.c.bf16 %v5203_v17, %v5202_v41 }
0x2770   : > { %8378 = vmatprep.subr.bf16.mxu1 %v8377_v13 }
0x2771   : > { %8380 = vmatpush3.bf16.msra.mxu1 %v8377_v13 }
0x2774   : > { %7949 = vmatmul.mubr.msk.f32.vlgmr.msra.gmra.mrb[62].mxu1 %vm752_vm11, %v4966_v24 }
0x2847   : > { %v7950_v28 = vpop.f32.mrb[62].mxu1 }
0x2848   : > { %v5286_v14 = vmul.f32 0.25, %v7950_v28  ;;  %v5276_v5 = vpop.f32.mrb[63].mxu1 }
0x2849   : > { %v5285_v26 = vmul.f32 0.25, %v5276_v5 }
0x284b   : > { %v8381_v12 = vpack.c.bf16 %v5286_v14, %v5285_v26 }
0x284d   : > { %8382 = vmatprep.subr.bf16.mxu0 %v8381_v12 }
0x284e   : > { %8384 = vmatpush3.bf16.msra.mxu0 %v8381_v12 }
0x2851   : > { %7956 = vmatmul.mubr.msk.f32.vlgmr.msra.gmra.mrb[52].mxu0 %vm752_vm11, %v9255_v58 }
0x2924   : > { %v7957_v23 = vpop.f32.mrb[52].mxu0 }
0x2925   : > { %v5363_v61 = vsub.f32 %v8879_v42, %v7957_v23  ;;  %v5353_v18 = vpop.f32.mrb[53].mxu0 }
0x2926   : > { %v5362_v45 = vsub.f32 %v8882_v43, %v5353_v18  ;;  %7962 = vmatprep.mubr.msk.f32.mxu1 %vm752_vm11, %v5353_v18  ;;  %7969 = vmatprep.mubr.msk.f32.mxu0 %vm752_vm11, %v5353_v18 }
0x2928   : > { %v8385_v24 = vpack.c.bf16 %v5363_v61, %v5362_v45 }
0x292a   : > { %8386 = vmatprep.subr.bf16.mxu1 %v8385_v24 }
0x292b   : > { %8388 = vmatpush3.bf16.msra.mxu1 %v8385_v24 }
0x292e   : > { %7963 = vmatmul.mubr.msk.f32.vlgmr.msra.gmra.mrb[64].mxu1 %vm752_vm11, %v7957_v23 }
0x292f   : > { %7976 = vmatprep.mubr.msk.f32.mxu1 %vm752_vm11, %v5285_v26 }
0x2a01   : > { %v7964_v54 = vpop.f32.mrb[64].mxu1 }
0x2a02   : > { %v5446_v29 = vsub.f32 %v8890_v49, %v7964_v54  ;;  %v5436_v10 = vpop.f32.mrb[65].mxu1 }
0x2a03   : > { %v5445_v48 = vsub.f32 %v8893_v50, %v5436_v10 }
0x2a05   : > { %v8389_v59 = vpack.c.bf16 %v5446_v29, %v5445_v48 }
0x2a07   : > { %8390 = vmatprep.subr.bf16.mxu0 %v8389_v59 }
0x2a08   : > { %8392 = vmatpush3.bf16.msra.mxu0 %v8389_v59 }
0x2a0b   : > { %7970 = vmatmul.mubr.msk.f32.vlgmr.msra.gmra.mrb[54].mxu0 %vm752_vm11, %v7957_v23 }
0x2a0c   : > { %7983 = vmatprep.mubr.msk.f32.mxu0 %vm752_vm11, %v9250_v4 }
0x2ade   : > { %v7971_v40 = vpop.f32.mrb[54].mxu0 }
0x2adf   : > { %v5523_v38 = vsub.f32 %v8900_v56, %v7971_v40  ;;  %v5513_v44 = vpop.f32.mrb[55].mxu0 }
0x2ae0   : > { %v5522_v7 = vsub.f32 %v8903_v57, %v5513_v44 }
0x2ae2   : > { %v8393_v27 = vpack.c.bf16 %v5523_v38, %v5522_v7 }
0x2ae4   : > { %8394 = vmatprep.subr.bf16.mxu1 %v8393_v27 }
0x2ae5   : > { %8396 = vmatpush3.bf16.msra.mxu1 %v8393_v27 }
0x2ae8   : > { %7977 = vmatmul.mubr.msk.f32.vlgmr.msra.gmra.mrb[66].mxu1 %vm752_vm11, %v5286_v14 }
0x2bbb   : > { %v7978_v16 = vpop.f32.mrb[66].mxu1 }
0x2bbc   : > { %v5606_v60 = vmul.f32 0.25, %v7978_v16  ;;  %v5596_v47 = vpop.f32.mrb[67].mxu1 }
0x2bbd   : > { %v5605_v17 = vmul.f32 0.25, %v5596_v47 }
0x2bbf   : > { %v8397_v37 = vpack.c.bf16 %v5606_v60, %v5605_v17 }
0x2bc1   : > { %8398 = vmatprep.subr.bf16.mxu0 %v8397_v37 }
0x2bc2   : > { %8400 = vmatpush3.bf16.msra.mxu0 %v8397_v37  ;;  %v8429_v37 = vpack.c.bf16 %v9330_v31, %v9328_v19 }
0x2bc5   : > { %7984 = vmatmul.mubr.msk.f32.vlgmr.msra.gmra.mrb[56].mxu0 %vm752_vm11, %v9255_v58 }
0x2c98   : > { %v7985_v41 = vpop.f32.mrb[56].mxu0 }
0x2c99   : > { %v5683_v13 = vsub.f32 %v8879_v42, %v7985_v41  ;;  %v5673_v28 = vpop.f32.mrb[57].mxu0 }
0x2c9a   : > { %v5682_v5 = vsub.f32 %v8882_v43, %v5673_v28  ;;  %7990 = vmatprep.mubr.msk.f32.mxu1 %vm752_vm11, %v5673_v28  ;;  %7997 = vmatprep.mubr.msk.f32.mxu0 %vm752_vm11, %v5673_v28 }
0x2c9c   : > { %v8401_v14 = vpack.c.bf16 %v5683_v13, %v5682_v5  ;;  %v8433_v13 = vpack.c.bf16 %v9334_v3, %v9332_v21 }
0x2c9e   : > { %8402 = vmatprep.subr.bf16.mxu1 %v8401_v14 }
0x2c9f   : > { %8404 = vmatpush3.bf16.msra.mxu1 %v8401_v14 }
0x2ca2   : > { %7991 = vmatmul.mubr.msk.f32.vlgmr.msra.gmra.mrb[68].mxu1 %vm752_vm11, %v7985_v41 }
0x2ca3   : > { %8004 = vmatprep.mubr.msk.f32.mxu1 %vm752_vm11, %v5605_v17 }
0x2d75   : > { %v7992_v26 = vpop.f32.mrb[68].mxu1 }
0x2d76   : > { %v5766_v12 = vsub.f32 %v8890_v49, %v7992_v26  ;;  %v5756_v23 = vpop.f32.mrb[69].mxu1 }
0x2d77   : > { %v5765_v61 = vsub.f32 %v8893_v50, %v5756_v23 }
0x2d79   : > { %v8405_v18 = vpack.c.bf16 %v5766_v12, %v5765_v61 }
0x2d7b   : > { %8406 = vmatprep.subr.bf16.mxu0 %v8405_v18 }
0x2d7c   : > { %8408 = vmatpush3.bf16.msra.mxu0 %v8405_v18 }
0x2d7f   : > { %7998 = vmatmul.mubr.msk.f32.vlgmr.msra.gmra.mrb[58].mxu0 %vm752_vm11, %v7985_v41  ;;  %v8605_v41 = vpop.eup %8604 }
0x2d80   : > { %8011 = vmatprep.mubr.msk.f32.mxu0 %vm752_vm11, %v9250_v4  ;;  %v4255_v28 = vmul.f32 %v8605_v41, %v9273_v36  ;;  %v8607_v20 = vpop.eup %8606 }
0x2d81   : > { %v4256_v36 = vmul.f32 %v8607_v20, %v9277_v8  ;;  %v6485_v20 = vrot.slane %v9330_v31, 6 }
0x2e52   : > { %v7999_v45 = vpop.f32.mrb[58].mxu0 }
0x2e53   : > { %v5843_v24 = vsub.f32 %v8900_v56, %v7999_v45  ;;  %v5833_v54 = vpop.f32.mrb[59].mxu0  ;;  %v4003_v45 = vpop.xlane.xlu1 %4002 }
0x2e54   : > { %v5842_v29 = vsub.f32 %v8903_v57, %v5833_v54  ;;  %8608 = vrcp.f32 %v4003_v45  ;;  %v9538_v45 = vadd.s32 4294967294, %v8717_v1 }
0x2e56   : > { %v8409_v10 = vpack.c.bf16 %v5843_v24, %v5842_v29  ;;  %vm229_vm0 = vcmp.ge.s32.totalorder %v9538_v45, 0 }
0x2e58   : > { %8410 = vmatprep.subr.bf16.mxu1 %v8409_v10 }
0x2e59   : > { %8412 = vmatpush3.bf16.msra.mxu1 %v8409_v10  ;;  %v4006_v10 = vpop.xlane.xlu0 %4005 }
0x2e5a   : > { %8610 = vrcp.f32 %v4006_v10 }
0x2e5c   : > { %8005 = vmatmul.mubr.msk.f32.vlgmr.msra.gmra.mrb[70].mxu1 %vm752_vm11, %v5606_v60 }
0x2e5e   : > { %v8609_v24 = vpop.eup %8608 }
0x2f2f   : > { %v8006_v48 = vpop.f32.mrb[70].mxu1 }
0x2f30   : > { %v5926_v59 = vmul.f32 0.25, %v8006_v48  ;;  %v5916_v40 = vpop.f32.mrb[71].mxu1  ;;  %v4009_v48 = vpop.xlane.xlu1 %4008 }
0x2f31   : > { %v5925_v38 = vmul.f32 0.25, %v5916_v40  ;;  %8612 = vrcp.f32 %v4009_v48  ;;  %v9558_v48 = vadd.s32 4294967295, %v8717_v1 }
0x2f33   : > { %v8413_v44 = vpack.c.bf16 %v5926_v59, %v5925_v38  ;;  %vm261_vm2 = vcmp.ge.s32.totalorder %v9558_v48, 0 }
0x2f34   : > { %v4015_v40 = vpop.xlane.xlu1 %4014 }
0x2f35   : > { %8414 = vmatprep.subr.bf16.mxu0 %v8413_v44 }
0x2f36   : > { %8416 = vmatpush3.bf16.msra.mxu0 %v8413_v44 }
0x2f38   : > { %v4021_v44 = vpop.xlane.xlu1 %4020 }
0x2f39   : > { %8012 = vmatmul.mubr.msk.f32.vlgmr.msra.gmra.mrb[60].mxu0 %vm752_vm11, %v9255_v58 }
0x300c   : > { %v8013_v4 = vpop.f32.mrb[60].mxu0 }
0x300d   : > { %v6003_v7 = vsub.f32 %v8879_v42, %v8013_v4  ;;  %v5993_v27 = vpop.f32.mrb[61].mxu0 }
0x300e   : > { %v6002_v16 = vsub.f32 %v8882_v43, %v5993_v27  ;;  %8018 = vmatprep.mubr.msk.f32.mxu1 %vm752_vm11, %v5993_v27  ;;  %8025 = vmatprep.mubr.msk.f32.mxu0 %vm752_vm11, %v5993_v27 }
0x3010   : > { %v8417_v60 = vpack.c.bf16 %v6003_v7, %v6002_v16  ;;  %v8611_v16 = vpop.eup %8610 }
0x3012   : > { %8418 = vmatprep.subr.bf16.mxu1 %v8417_v60 }
0x3013   : > { %8420 = vmatpush3.bf16.msra.mxu1 %v8417_v60  ;;  %v8613_v60 = vpop.eup %8612 }
0x3016   : > { %8019 = vmatmul.mubr.msk.f32.vlgmr.msra.gmra.mrb[72].mxu1 %vm752_vm11, %v8013_v4 }
0x3017   : > { %8032 = vmatprep.mubr.msk.f32.mxu1 %vm752_vm11, %v5925_v38 }
0x30e9   : > { %v8020_v58 = vpop.f32.mrb[72].mxu1 }
0x30ea   : > { %v6086_v47 = vsub.f32 %v8890_v49, %v8020_v58  ;;  %v6076_v42 = vpop.f32.mrb[73].mxu1  ;;  %v8437_v49 = vpack.c.bf16 %v9303_v55, %v9336_v63  ;;  %v4034_v58 = vmul.f32 %v8611_v16, %v9316_v34  ;;  %v6595_v16 = vrot.slane %v9330_v31, 1 }
0x30eb   : > { %v6085_v17 = vsub.f32 %v8893_v50, %v6076_v42  ;;  %v8441_v50 = vpack.c.bf16 %v9340_v0, %v9338_v22  ;;  %v4035_v42 = vmul.f32 %v8613_v60, %v9351_v6 }
0x30ed   : > { %v8421_v43 = vpack.c.bf16 %v6086_v47, %v6085_v17 }
0x30ef   : > { %8422 = vmatprep.subr.bf16.mxu0 %v8421_v43 }
0x30f0   : > { %8424 = vmatpush3.bf16.msra.mxu0 %v8421_v43 }
0x30f1   : > { %8430 = vmatprep.subr.bf16.mxu0 %v8429_v37 }
0x30f3   : > { %8026 = vmatmul.mubr.msk.f32.vlgmr.msra.gmra.mrb[62].mxu0 %vm752_vm11, %v8013_v4 }
0x30f4   : > { %8432 = vmatpush3.bf16.msra.mxu0 %v8429_v37  ;;  %8051 = vmatprep.mubr.msk.f32.mxu0 %vm427_vm4, %v4255_v28 }
0x30f5   : > { %8434 = vmatprep.subr.bf16.mxu0 %v8433_v13 }
0x30f8   : > { %8436 = vmatpush3.bf16.msra.mxu0 %v8433_v13 }
0x30f9   : > { %8438 = vmatprep.subr.bf16.mxu0 %v8437_v49 }
0x30fc   : > { %8440 = vmatpush3.bf16.msra.mxu0 %v8437_v49 }
0x30fd   : > { %8442 = vmatprep.subr.bf16.mxu0 %v8441_v50 }
0x3100   : > { %8444 = vmatpush3.bf16.msra.mxu0 %v8441_v50  ;;  %v6449_v50 = vrot.slane %v9340_v0, 5 }
0x3103   : > { %8052 = vmatmul.mubr.msk.f32.vlgmr.msra.gmra.mrb[64].mxu0 %vm427_vm4, %v4256_v36  ;;  %v9513_v36 = vstv %s7151_s3 }
0x31c6   : > { %v8027_v62 = vpop.f32.mrb[62].mxu0 }
0x31c7   : > { %v6163_v5 = vsub.f32 %v8900_v56, %v8027_v62  ;;  %v6153_v14 = vpop.f32.mrb[63].mxu0  ;;  %v6526_v62 = vrot.slane %v9328_v19, 7 }
0x31c8   : > { %v6162_v26 = vsub.f32 %v8903_v57, %v6153_v14  ;;  %v4033_v57 = vmul.f32 %v8609_v24, %v9346_v30 }
0x31ca   : > { %v8425_v12 = vpack.c.bf16 %v6163_v5, %v6162_v26 }
0x31cc   : > { %8426 = vmatprep.subr.bf16.mxu1 %v8425_v12 }
0x31cd   : > { %8428 = vmatpush3.bf16.msra.mxu1 %v8425_v12 }
0x31d0   : > { %8033 = vmatmul.mubr.msk.f32.vlgmr.msra.gmra.mrb[74].mxu1 %vm752_vm11, %v5926_v59  ;;  %v4012_v59 = vpop.xlane.xlu0 %4011 }
0x31d1   : > { %8614 = vrcp.f32 %v4012_v59 }
0x31d2   : > { %8616 = vrcp.f32 %v4015_v40 }
0x31d4   : > { %v4018_v38 = vpop.xlane.xlu0 %4017 }
0x31d5   : > { %8618 = vrcp.f32 %v4018_v38 }
0x31d6   : > { %v8053_v23 = vpop.f32.mrb[64].mxu0  ;;  %8620 = vrcp.f32 %v4021_v44 }
0x31d7   : > { %v6351_v61 = vpop.f32.mrb[65].mxu0 }
0x31d8   : > { %v8445_v18 = vpack.c.bf16 %v8053_v23, %v6351_v61  ;;  %v4024_v27 = vpop.xlane.xlu0 %4023  ;;  %v6527_v23 = vrot.slane %v9330_v31, 7  ;;  %v10258_v61 = vrot.slane %v9340_v0, 7 }
0x31d9   : > { %8622 = vrcp.f32 %v4024_v27  ;;  %v9569_v27 = vadd.s32 56, %v8717_v1 }
0x31da   : > { %8446 = vmatprep.subr.bf16.mxu1 %v8445_v18  ;;  %v6541_v10 = vsel %vm3310_vm14, %v10258_v61, %v6526_v62 }
0x31db   : > { %8448 = vmatpush3.bf16.msra.mxu1 %v8445_v18  ;;  %v8615_v47 = vpop.eup %8614  ;;  %v9535_v18 = vadd.s32 4294967293, %v8717_v1 }
0x31dc   : > { %v8617_v17 = vpop.eup %8616  ;;  %v4036_v43 = vmul.f32 %v8615_v47, %v9356_v25  ;;  %v6442_v25 = vrot.slane %v9328_v19, 5 }
0x31dd   : > { %v4037_v41 = vmul.f32 %v8617_v17, %v9361_v15  ;;  %v6484_v15 = vrot.slane %v9328_v19, 6  ;;  %vm197_vm15 = vcmp.ge.s32.totalorder %v9535_v18, 0  ;;  %v10257_v17 = vrot.slane %v9328_v19, 1 }
0x31de   : > { %v6457_v5 = vsel %vm3224_vm12, %v6449_v50, %v6442_v25 }
0x31df   : > { %v8619_v37 = vpop.eup %8618  ;;  %v6498_v12 = vsel %vm3267_vm13, %v6484_v15, %v6485_v20 }
0x31e0   : > { %v8621_v13 = vpop.eup %8620  ;;  %v4038_v34 = vmul.f32 %v8619_v37, %v9365_v9  ;;  %v6491_v9 = vrot.slane %v9340_v0, 6  ;;  %v9587_v37 = vadd.s32 1, %v9569_v27 }
0x31e1   : > { %v4039_v6 = vmul.f32 %v8621_v13, %v9369_v35  ;;  %v6443_v35 = vrot.slane %v9330_v31, 5  ;;  %v10260_v13 = vrot.slane %v9332_v21, 2 }
0x31e2   : > { %v6499_v14 = vsel %vm3267_vm13, %v6491_v9, %v6484_v15  ;;  %vm330_vm6 = vcmp.lt.s32.totalorder %v9587_v37, 64 }
0x31e3   : > { %v8623_v28 = vpop.eup %8622  ;;  %v6456_v26 = vsel %vm3224_vm12, %v6442_v25, %v6443_v35 }
0x31e4   : > { %v4040_v49 = vmul.f32 %v8623_v28, %v9373_v2  ;;  %v9511_v2 = vstv %s7150_s30  ;;  %v6637_v28 = vrot.slane %v9330_v31, 2 }
0x31e5   : > { %v6460_v24 = vmul.f32 %v9511_v2, %v6456_v26  ;;  %v6444_v26 = vrot.slane %v9332_v21, 5 }
0x32a3   : > { %v8034_v8 = vpop.f32.mrb[74].mxu1 }
0x32a4   : > { %v6236_v54 = vpop.f32.mrb[75].mxu1  ;;  %v6246_v56 = vmul.f32 0.25, %v8034_v8  ;;  %v6459_v8 = vmul.f32 %v9511_v2, %v6457_v5  ;;  %v10256_v5 = vrot.slane %v9328_v19, 2 }
0x32a5   : > { %v6245_v29 = vmul.f32 0.25, %v6236_v54  ;;  %v6502_v54 = vmul.f32 %v9513_v36, %v6498_v12  ;;  %v6445_v12 = vrot.slane %v9334_v3, 5 }
0x32a6   : > { %v6467_v59 = vsel %vm197_vm15, %v6459_v8, 0.0  ;;  %v6487_v8 = vrot.slane %v9334_v3, 6 }
0x32a7   : > { %8058 = vmatprep.mubr.msk.f32.mxu1 %vm752_vm11, %v6245_v29  ;;  %v6501_v29 = vmul.f32 %v9513_v36, %v6499_v14  ;;  %v6518_v40 = vadd.f32 %v6502_v54, %v6460_v24  ;;  %v6447_v14 = vrot.slane %v9303_v55, 5  ;;  %v6486_v24 = vrot.slane %v9332_v21, 6 }
0x32a8   : > { %8059 = vmatmul.mubr.msk.f32.vlgmr.msra.gmra.mrb[76].mxu1 %vm752_vm11, %v6246_v56  ;;  %v6540_v56 = vsel %vm3310_vm14, %v6526_v62, %v6527_v23  ;;  %v6608_v62 = vsel %vm3379_vm1, %v10257_v17, %v6595_v16  ;;  %v10264_v54 = vrot.slane %v9338_v22, 5  ;;  %v9654_v17 = vstv %s9599_s8 }
0x32a9   : > { %8065 = vmatprep.mubr.msk.f32.mxu1 %vm752_vm11, %v4033_v57  ;;  %v9549_v57 = vstv %s7152_s4  ;;  %v6509_v44 = vsel %vm229_vm0, %v6501_v29, 0.0  ;;  %v6649_v29 = vsel %vm3422_vm3, %v6637_v28, %v10260_v13  ;;  %v10267_v13 = vrot.slane %v9336_v63, 1 }
0x32aa   : > { %v6544_v38 = vmul.f32 %v9549_v57, %v6540_v56  ;;  %v6517_v60 = vadd.f32 %v6509_v44, %v6467_v59  ;;  %v10259_v56 = vrot.slane %v9332_v21, 3  ;;  %v9618_v59 = vstv %s7155_s7 }
0x337b   : > { %v8060_v4 = vpop.f32.mrb[76].mxu1 }
0x337c   : > { %v6432_v7 = vpop.f32.mrb[77].mxu1 }
0x337d   : > { %v8449_v30 = vpack.c.bf16 %v8060_v4, %v6432_v7  ;;  %v6543_v4 = vmul.f32 %v9549_v57, %v6541_v10  ;;  %v10261_v7 = vrot.slane %v9332_v21, 1  ;;  %v10262_v10 = vrot.slane %v9338_v22, 6 }
0x337f   : > { %8450 = vmatprep.subr.bf16.mxu1 %v8449_v30 }
0x3380   : > { %8452 = vmatpush3.bf16.msra.mxu1 %v8449_v30  ;;  %v9572_v30 = vstv %s7153_s5 }
0x3381   : > { %v6570_v47 = vmul.f32 %v9572_v30, %v9330_v31 }
0x3383   : > { %8066 = vmatmul.mubr.msk.f32.vlgmr.msra.gmra.mrb[78].mxu1 %vm752_vm11, %v4034_v58  ;;  %v6560_v58 = vadd.f32 %v6544_v38, %v6518_v40 }
0x3384   : > { %8068 = vmatprep.mubr.msk.f32.mxu1 %vm752_vm11, %v4035_v42  ;;  %v6551_v42 = vsel %vm261_vm2, %v6543_v4, 0.0  ;;  %v6679_v4 = vrot.slane %v9330_v31, 3 }
0x3385   : > { %v6586_v25 = vadd.f32 %v6570_v47, %v6560_v58  ;;  %v6654_v58 = vmul.f32 %v9618_v59, %v6649_v29  ;;  %v6454_v47 = vsel %vm3224_vm12, %v6444_v26, %v6445_v12  ;;  %v6528_v29 = vrot.slane %v9332_v21, 7 }
0x3387   : > { %8069 = vmatmul.mubr.msk.f32.gmra.mrb[80].mxu1 %vm752_vm11, %v4036_v43  ;;  %v6607_v43 = vsel %vm3379_vm1, %v6595_v16, %v10261_v7  ;;  %v6650_v16 = vsel %vm3422_vm3, %v10256_v5, %v6637_v28  ;;  %v6691_v28 = vsel %vm3465_vm5, %v6679_v4, %v10259_v56  ;;  %v6492_v5 = vsel %vm3267_vm13, %v10262_v10, %v6491_v9 }
0x3388   : > { %8071 = vmatprep.mubr.msk.f32.mxu1 %vm752_vm11, %v4037_v41  ;;  %v9590_v41 = vadd.s32 2, %v9569_v27  ;;  %v6488_v9 = vrot.slane %v9336_v63, 6  ;;  %v10265_v7 = vrot.slane %v9336_v63, 2 }
0x338a   : > { %vm362_vm7 = vcmp.lt.s32.totalorder %v9590_v41, 64 }
0x338b   : > { %8072 = vmatmul.mubr.msk.f32.gmra.mrb[82].mxu1 %vm752_vm11, %v4038_v34  ;;  %v9593_v34 = vstv %s7154_s6 }
0x338c   : > { %8074 = vmatprep.mubr.msk.f32.mxu1 %vm752_vm11, %v4039_v6  ;;  %v6559_v6 = vadd.f32 %v6551_v42, %v6517_v60  ;;  %v6612_v15 = vmul.f32 %v9593_v34, %v6607_v43  ;;  %v6611_v38 = vmul.f32 %v9593_v34, %v6608_v62  ;;  %v10263_v60 = vrot.slane %v9328_v19, 3 }
0x338d   : > { %v6496_v42 = vsel %vm3267_vm13, %v6486_v24, %v6487_v8  ;;  %v6529_v43 = vrot.slane %v9334_v3, 7  ;;  %v6653_v62 = vmul.f32 %v9618_v59, %v6650_v16  ;;  %v6696_v16 = vmul.f32 %v9654_v17, %v6691_v28 }
0x338e   : > { %v6628_v44 = vadd.f32 %v6612_v15, %v6586_v25  ;;  %v6450_v25 = vsel %vm3224_vm12, %v10264_v54, %v6449_v50  ;;  %v6692_v61 = vsel %vm3465_vm5, %v10263_v60, %v6679_v4  ;;  %v6462_v50 = vmul.f32 %v9511_v2, %v6454_v47 }
0x338f   : > { %8075 = vmatmul.mubr.msk.f32.gmra.mrb[84].mxu1 %vm752_vm11, %v4040_v49  ;;  %v6569_v49 = vmul.f32 %v9572_v30, %v9328_v19  ;;  %v6538_v56 = vsel %vm3310_vm14, %v6528_v29, %v6529_v43  ;;  %v9669_v10 = vmul.f32 %v9511_v2, %v6450_v25  ;;  %v9672_v4 = vmul.f32 %v9513_v36, %v6492_v5 }
0x3390   : > { %v6546_v60 = vmul.f32 %v9549_v57, %v6538_v56  ;;  %v6639_v54 = vrot.slane %v9334_v3, 2  ;;  %v6497_v5 = vsel %vm3267_vm13, %v6485_v20, %v6486_v24  ;;  %v6681_v56 = vrot.slane %v9334_v3, 3 }
0x3391   : > { %v6585_v40 = vadd.f32 %v6569_v49, %v6559_v6  ;;  %v6489_v6 = vrot.slane %v9303_v55, 6  ;;  %v6446_v49 = vrot.slane %v9336_v63, 5  ;;  %v6539_v24 = vsel %vm3310_vm14, %v6527_v23, %v6528_v29 }
0x3393   : > { %v6627_v15 = vadd.f32 %v6611_v38, %v6585_v40  ;;  %v6504_v40 = vmul.f32 %v9513_v36, %v6496_v42  ;;  %v6670_v38 = vadd.f32 %v6654_v58, %v6628_v44  ;;  %v6695_v44 = vmul.f32 %v9654_v17, %v6692_v61 }
0x3394   : > { %v6597_v58 = vrot.slane %v9334_v3, 1  ;;  %v6455_v42 = vsel %vm3224_vm12, %v6443_v35, %v6444_v26  ;;  %v6532_v35 = vrot.slane %v9338_v22, 7  ;;  %v6647_v26 = vsel %vm3422_vm3, %v6639_v54, %v10265_v7 }
0x3395   : > { %v6669_v47 = vadd.f32 %v6653_v62, %v6627_v15  ;;  %v6520_v28 = vadd.f32 %v6504_v40, %v6462_v50  ;;  %v9686_v25 = vadd.f32 %v6696_v16, %v6670_v38  ;;  %v10266_v15 = vrot.slane %v9336_v63, 3 }
0x3396   : > { %v6605_v61 = vsel %vm3379_vm1, %v6597_v58, %v10267_v13  ;;  %v6461_v20 = vmul.f32 %v9511_v2, %v6455_v42  ;;  %v6503_v62 = vmul.f32 %v9513_v36, %v6497_v5  ;;  %v6530_v50 = vrot.slane %v9336_v63, 7 }
0x3397   : > { %v6453_v40 = vsel %vm3224_vm12, %v6445_v12, %v6446_v49  ;;  %v6495_v38 = vsel %vm3267_vm13, %v6487_v8, %v6488_v9  ;;  %v9710_v16 = vadd.f32 %v6695_v44, %v6669_v47  ;;  %v6562_v7 = vadd.f32 %v6546_v60, %v6520_v28 }
0x3398   : > { %v6572_v42 = vmul.f32 %v9572_v30, %v9334_v3  ;;  %v6614_v31 = vmul.f32 %v9593_v34, %v6605_v61  ;;  %v6656_v23 = vmul.f32 %v9618_v59, %v6647_v26  ;;  %v6689_v29 = vsel %vm3465_vm5, %v6681_v56, %v10266_v15 }
0x3399   : > { %v6545_v12 = vmul.f32 %v9549_v57, %v6539_v24  ;;  %v6531_v5 = vrot.slane %v9303_v55, 7  ;;  %v6452_v8 = vsel %vm3224_vm12, %v6446_v49, %v6447_v14  ;;  %v6494_v3 = vsel %vm3267_vm13, %v6488_v9, %v6489_v6 }
0x339a   : > { %v6463_v60 = vmul.f32 %v9511_v2, %v6453_v40  ;;  %v6505_v47 = vmul.f32 %v9513_v36, %v6495_v38  ;;  %v6519_v44 = vadd.f32 %v6503_v62, %v6461_v20  ;;  %v6537_v28 = vsel %vm3310_vm14, %v6529_v43, %v6530_v50 }
0x339b   : > { %v10280_v61 = vrot.slane %v9338_v22, 5  ;;  %v10281_v49 = vrot.slane %v9338_v22, 6  ;;  %v6588_v24 = vadd.f32 %v6572_v42, %v6562_v7  ;;  %v6571_v40 = vmul.f32 %v9572_v30, %v9332_v21 }
0x339c   : > { %v10282_v20 = vrot.slane %v9332_v21, 1  ;;  %v10283_v62 = vrot.slane %v9332_v21, 2  ;;  %v6536_v7 = vsel %vm3310_vm14, %v6530_v50, %v6531_v5  ;;  %v6521_v42 = vadd.f32 %v6505_v47, %v6463_v60 }
0x339d   : > { %v6451_v26 = vsel %vm3224_vm12, %v6447_v14, %v10280_v61  ;;  %v6493_v9 = vsel %vm3267_vm13, %v6489_v6, %v10281_v49  ;;  %v6464_v14 = vmul.f32 %v9511_v2, %v6452_v8  ;;  %v6506_v61 = vmul.f32 %v9513_v36, %v6494_v3 }
0x339e   : > { %v6606_v43 = vsel %vm3379_vm1, %v10282_v20, %v6597_v58  ;;  %v6648_v38 = vsel %vm3422_vm3, %v10283_v62, %v6639_v54  ;;  %v6599_v6 = vrot.slane %v9303_v55, 1  ;;  %v6547_v49 = vmul.f32 %v9549_v57, %v6537_v28 }
0x339f   : > { %v6465_v15 = vmul.f32 %v9511_v2, %v6451_v26  ;;  %v6507_v58 = vmul.f32 %v9513_v36, %v6493_v9  ;;  %v6698_v20 = vmul.f32 %v9654_v17, %v6689_v29  ;;  %v6561_v13 = vadd.f32 %v6545_v12, %v6519_v44 }
0x33a0   : > { %v6613_v54 = vmul.f32 %v9593_v34, %v6606_v43  ;;  %v6535_v8 = vsel %vm3310_vm14, %v6531_v5, %v6532_v35  ;;  %v6630_v3 = vadd.f32 %v6614_v31, %v6588_v24  ;;  %v6655_v50 = vmul.f32 %v9618_v59, %v6648_v38 }
0x33a1   : > { %v10284_v62 = vrot.slane %v9332_v21, 3  ;;  %v6600_v2 = vrot.slane %v9338_v22, 1  ;;  %v6522_v47 = vadd.f32 %v6506_v61, %v6464_v14  ;;  %v6548_v36 = vmul.f32 %v9549_v57, %v6536_v7 }
0x33a2   : > { %v6641_v29 = vrot.slane %v9303_v55, 2  ;;  %v6573_v12 = vmul.f32 %v9572_v30, %v9336_v63  ;;  %v6563_v44 = vadd.f32 %v6547_v49, %v6521_v42  ;;  %v10285_v31 = vrot.slane %v9336_v63, 1 }
0x33a3   : > { %v6690_v60 = vsel %vm3465_vm5, %v10284_v62, %v6681_v56  ;;  %v6523_v21 = vadd.f32 %v6507_v58, %v6465_v15  ;;  %v6549_v28 = vmul.f32 %v9549_v57, %v6535_v8  ;;  %v6587_v56 = vadd.f32 %v6571_v40, %v6561_v13 }
0x33a4   : > { %v6604_v5 = vsel %vm3379_vm1, %v10285_v31, %v6599_v6  ;;  %v6697_v26 = vmul.f32 %v9654_v17, %v6690_v60  ;;  %v6574_v9 = vmul.f32 %v9572_v30, %v9303_v55  ;;  %v10286_v24 = vrot.slane %v9340_v0, 7 }
0x33a5   : > { %v6603_v38 = vsel %vm3379_vm1, %v6599_v6, %v6600_v2  ;;  %v6642_v14 = vrot.slane %v9338_v22, 2  ;;  %v6683_v15 = vrot.slane %v9303_v55, 3  ;;  %v6601_v61 = vrot.slane %v9340_v0, 1 }
0x33a6   : > { %v6534_v43 = vsel %vm3310_vm14, %v6532_v35, %v10286_v24  ;;  %v6564_v13 = vadd.f32 %v6548_v36, %v6522_v47  ;;  %v6615_v40 = vmul.f32 %v9593_v34, %v6604_v5  ;;  %v10287_v7 = vrot.slane %v9336_v63, 2 }
0x33a7   : > { %v6524_v35 = vadd.f32 %v9672_v4, %v9669_v10  ;;  %v6589_v6 = vadd.f32 %v6573_v12, %v6563_v44  ;;  %v6550_v49 = vmul.f32 %v9549_v57, %v6534_v43  ;;  %v6565_v58 = vadd.f32 %v6549_v28, %v6523_v21 }
0x33a8   : > { %v6646_v42 = vsel %vm3422_vm3, %v10287_v7, %v6641_v29  ;;  %v6575_v55 = vmul.f32 %v9572_v30, %v9338_v22  ;;  %v6672_v8 = vadd.f32 %v6656_v23, %v6630_v3  ;;  %v6629_v62 = vadd.f32 %v6613_v54, %v6587_v56 }
0x33a9   : > { %v6684_v60 = vrot.slane %v9338_v22, 3  ;;  %v6602_v47 = vsel %vm3379_vm1, %v6600_v2, %v6601_v61  ;;  %v6616_v36 = vmul.f32 %v9593_v34, %v6603_v38  ;;  %v6645_v10 = vsel %vm3422_vm3, %v6641_v29, %v6642_v14 }
0x33aa   : > { %v10288_v4 = vrot.slane %v9328_v19, 1  ;;  %v6643_v12 = vrot.slane %v9340_v0, 2  ;;  %v6590_v44 = vadd.f32 %v6574_v9, %v6564_v13  ;;  %v6657_v23 = vmul.f32 %v9618_v59, %v6646_v42 }
0x33ab   : > { %v10289_v22 = vrot.slane %v9336_v63, 3  ;;  %v6576_v3 = vmul.f32 %v9572_v30, %v9340_v0  ;;  %v6631_v29 = vadd.f32 %v6615_v40, %v6589_v6  ;;  %v6566_v31 = vadd.f32 %v6550_v49, %v6524_v35 }
0x33ac   : > { %v6609_v57 = vsel %vm3379_vm1, %v6601_v61, %v10288_v4  ;;  %v6591_v5 = vadd.f32 %v6575_v55, %v6565_v58  ;;  %v6617_v21 = vmul.f32 %v9593_v34, %v6602_v47  ;;  %v6714_v9 = vadd.f32 %v6698_v20, %v6672_v8 }
0x33ad   : > { %v6688_v54 = vsel %vm3465_vm5, %v10289_v22, %v6683_v15  ;;  %v6618_v24 = vmul.f32 %v9593_v34, %v6609_v57  ;;  %v6644_v63 = vsel %vm3422_vm3, %v6642_v14, %v6643_v12  ;;  %v6671_v38 = vadd.f32 %v6655_v50, %v6629_v62 }
0x33ae   : > { %v10290_v30 = vrot.slane %v9328_v19, 2  ;;  %v6685_v13 = vrot.slane %v9340_v0, 3  ;;  %v6658_v20 = vmul.f32 %v9618_v59, %v6645_v10  ;;  %v6687_v34 = vsel %vm3465_vm5, %v6683_v15, %v6684_v60 }
0x33af   : > { %v6699_v14 = vmul.f32 %v9654_v17, %v6688_v54  ;;  %v6673_v50 = vadd.f32 %v6657_v23, %v6631_v29  ;;  %v6592_v40 = vadd.f32 %v6576_v3, %v6566_v31  ;;  %v6633_v7 = vadd.f32 %v6617_v21, %v6591_v5 }
0x33b0   : > { %v6651_v61 = vsel %vm3422_vm3, %v6643_v12, %v10290_v30  ;;  %v6659_v42 = vmul.f32 %v9618_v59, %v6644_v63  ;;  %v6626_v6 = vsel %vm330_vm6, %v6618_v24, 0.0  ;;  %v6686_v15 = vsel %vm3465_vm5, %v6684_v60, %v6685_v13  ;;  %v9871_v24 = vld [vmem:[%s8715_s20 + $0x78] sm:$0xff] }
0x33b1   : > { %v6660_v49 = vmul.f32 %v9618_v59, %v6651_v61  ;;  %v9844_v58 = vadd.s32 3, %v9569_v27  ;;  %v10291_v55 = vrot.slane %v9328_v19, 3  ;;  %v6713_v62 = vadd.f32 %v6697_v26, %v6671_v38  ;;  %v9876_v38 = vld [vmem:[%s8715_s20 + $0x18] sm:$0xff] }
0x33b2   : > { %v6715_v10 = vadd.f32 %v6699_v14, %v6673_v50  ;;  %v6634_v4 = vadd.f32 %v6626_v6, %v6592_v40  ;;  %v6675_v60 = vadd.f32 %v6659_v42, %v6633_v7  ;;  %v6701_v27 = vmul.f32 %v9654_v17, %v6686_v15 }
0x33b3   : > { %v6693_v8 = vsel %vm3465_vm5, %v6685_v13, %v10291_v55  ;;  %v6668_v19 = vsel %vm362_vm7, %v6660_v49, 0.0  ;;  %vm394_vm8 = vcmp.lt.s32.totalorder %v9844_v58, 64  ;;  %v3223_v63 = vrot.slane %v9871_v24, 5 }
0x33b4   : > { %v6702_v12 = vmul.f32 %v9654_v17, %v6693_v8  ;;  %v6676_v22 = vadd.f32 %v6668_v19, %v6634_v4  ;;  %v6717_v3 = vadd.f32 %v6701_v27, %v6675_v60  ;;  %v3217_v30 = vrot.slane %v9876_v38, 5 }
0x33b5   : > { %v9879_v61 = vstv %s3215_s11  ;;  %v3260_v13 = vrot.slane %v9876_v38, 6  ;;  %v3303_v7 = vrot.slane %v9876_v38, 7  ;;  %v3372_v18 = vrot.slane %v9876_v38, 1 }
0x3456   : > { %v8067_v2 = vpop.f32.mrb[78].mxu1 }
0x3457   : > { %v6815_v28 = vadd.f32 %v8067_v2, %v9686_v25  ;;  %v6809_v56 = vpop.f32.mrb[79].mxu1  ;;  %v6632_v25 = vadd.f32 %v6616_v36, %v6590_v44  ;;  %v6700_v36 = vmul.f32 %v9654_v17, %v6687_v34  ;;  %v6710_v2 = vsel %vm394_vm8, %v6702_v12, 0.0 }
0x3458   : > { %v6810_v43 = vadd.f32 %v6809_v56, %v9710_v16  ;;  %v6718_v5 = vadd.f32 %v6710_v2, %v6676_v22  ;;  %v9935_v12 = vstv %s7058_s14 }
0x3459   : > { %6858 = vrot.lane.b32.xlu0 %v6815_v28, %s8670_s25  ;;  %v6674_v47 = vadd.f32 %v6658_v20, %v6632_v25  ;;  %v9866_v28 = vld [vmem:[%s8715_s20 + $0x8] sm:$0xff]  ;;  %v9883_v20 = vstv %s7056_s12  ;;  %v3347_v48 = vmul.f32 %v9876_v38, %v9935_v12 }
0x345a   : > { %6856 = vrot.lane.b32.xlu1 %v6810_v43, %s8670_s25  ;;  %v8070_v16 = vpop.f32.mrb[80].mxu1  ;;  %v3216_v56 = vrot.slane %v9866_v28, 5  ;;  %v3266_v43 = vrot.slane %v9871_v24, 6  ;;  %v3302_v25 = vrot.slane %v9866_v28, 7 }
0x345b   : > { %v6825_v35 = vadd.f32 %v8070_v16, %v6714_v9  ;;  %v6819_v0 = vpop.f32.mrb[81].mxu1  ;;  %v6716_v26 = vadd.f32 %v6700_v36, %v6674_v47  ;;  %v3259_v9 = vrot.slane %v9866_v28, 6  ;;  %v10271_v16 = vrot.slane %v9871_v24, 7  ;;  %v9923_v36 = vld [vmem:[%s8715_s20 + $0x28] sm:$0xff] }
0x345c   : > { %v6820_v44 = vadd.f32 %v6819_v0, %v6713_v62  ;;  %v3232_v34 = vsel %vm3224_vm12, %v3223_v63, %v3216_v56  ;;  %v3231_v50 = vsel %vm3224_vm12, %v3216_v56, %v3217_v30  ;;  %v9905_v0 = vstv %s7057_s13 }
0x345d   : > { %v3275_v14 = vsel %vm3267_vm13, %v3266_v43, %v3259_v9  ;;  %v3274_v40 = vsel %vm3267_vm13, %v3259_v9, %v3260_v13  ;;  %v3234_v42 = vmul.f32 %v9879_v61, %v3232_v34  ;;  %v3318_v6 = vsel %vm3310_vm14, %v10271_v16, %v3302_v25 }
0x345e   : > { %6862 = vrot.lane.b32.xlu1 %v6825_v35, %s8670_s25  ;;  %v8073_v59 = vpop.f32.mrb[82].mxu1  ;;  %v3277_v35 = vmul.f32 %v9883_v20, %v3275_v14  ;;  %v3235_v49 = vmul.f32 %v9879_v61, %v3231_v50  ;;  %v3278_v15 = vmul.f32 %v9883_v20, %v3274_v40  ;;  %v3317_v55 = vsel %vm3310_vm14, %v3302_v25, %v3303_v7 }
0x345f   : > { %v6829_v57 = vpop.f32.mrb[83].mxu1  ;;  %v6835_v31 = vadd.f32 %v8073_v59, %v6716_v26  ;;  %v3242_v8 = vsel %vm197_vm15, %v3234_v42, 0.0  ;;  %v3320_v47 = vmul.f32 %v9905_v0, %v3318_v6  ;;  %v3218_v59 = vrot.slane %v9923_v36, 5 }
0x3460   : > { %v6830_v23 = vadd.f32 %v6829_v57, %v6715_v10  ;;  %v3285_v62 = vsel %vm229_vm0, %v3277_v35, 0.0  ;;  %v9927_v10 = vld [vmem:[%s8715_s20 + $0x38] sm:$0xff]  ;;  %v3261_v60 = vrot.slane %v9923_v36, 6  ;;  %v3373_v57 = vrot.slane %v9923_v36, 1 }
0x3461   : > { %v3219_v4 = vrot.slane %v9927_v10, 5  ;;  %v3262_v27 = vrot.slane %v9927_v10, 6  ;;  %v3294_v45 = vadd.f32 %v3278_v15, %v3235_v49  ;;  %v3321_v19 = vmul.f32 %v9905_v0, %v3317_v55 }
0x3462   : > { %6860 = vrot.lane.b32.xlu1 %v6820_v44, %s8670_s25  ;;  %6864 = vrot.lane.b32.xlu0 %v6830_v23, %s8670_s25  ;;  %v8076_v54 = vpop.f32.mrb[84].mxu1  ;;  %v3293_v44 = vadd.f32 %v3285_v62, %v3242_v8  ;;  %v3328_v23 = vsel %vm261_vm2, %v3320_v47, 0.0  ;;  %v10270_v26 = vrot.slane %v9866_v28, 1  ;;  %v3305_v2 = vrot.slane %v9927_v10, 7 }
0x3463   : > { %v6839_v29 = vpop.f32.mrb[85].mxu1  ;;  %v6845_v21 = vadd.f32 %v8076_v54, %v6718_v5  ;;  %v3229_v22 = vsel %vm3224_vm12, %v3218_v59, %v3219_v4  ;;  %v3272_v54 = vsel %vm3267_vm13, %v3261_v60, %v3262_v27  ;;  %v3337_v5 = vadd.f32 %v3321_v19, %v3294_v45 }
0x3464   : > { %v6840_v17 = vadd.f32 %v6839_v29, %v6717_v3  ;;  %v3304_v3 = vrot.slane %v9923_v36, 7  ;;  %v3385_v29 = vsel %vm3379_vm1, %v3372_v18, %v3373_v57  ;;  %v3336_v56 = vadd.f32 %v3328_v23, %v3293_v44  ;;  %v9993_v23 = vld [vmem:[%s8715_s20 + $0x48] sm:$0xff] }
0x3465   : > { %v3346_v9 = vmul.f32 %v9866_v28, %v9935_v12  ;;  %v3386_v25 = vsel %vm3379_vm1, %v10270_v26, %v3372_v18  ;;  %v10269_v34 = vrot.slane %v9866_v28, 2  ;;  %v3237_v14 = vmul.f32 %v9879_v61, %v3229_v22 }
0x3466   : > { %6866 = vrot.lane.b32.xlu1 %v6835_v31, %s8670_s25  ;;  %6868 = vrot.lane.b32.xlu0 %v6840_v17, %s8670_s25  ;;  %v3415_v31 = vrot.slane %v9876_v38, 2  ;;  %v3416_v17 = vrot.slane %v9923_v36, 2  ;;  %v3280_v50 = vmul.f32 %v9883_v20, %v3272_v54  ;;  %v3315_v40 = vsel %vm3310_vm14, %v3304_v3, %v3305_v2 }
0x3467   : > { %v3458_v6 = vrot.slane %v9876_v38, 3  ;;  %v10274_v49 = vrot.slane %v9923_v36, 3  ;;  %v3363_v15 = vadd.f32 %v3347_v48, %v3337_v5  ;;  %v9982_v55 = vstv %s7060_s16 }
0x3468   : > { %v3428_v35 = vsel %vm3422_vm3, %v3415_v31, %v3416_v17  ;;  %v3362_v8 = vadd.f32 %v3346_v9, %v3336_v56  ;;  %v3429_v47 = vsel %vm3422_vm3, %v10269_v34, %v3415_v31  ;;  %v10268_v18 = vrot.slane %v9866_v28, 3 }
0x3469   : > { %v3296_v45 = vadd.f32 %v3280_v50, %v3237_v14  ;;  %v3323_v19 = vmul.f32 %v9905_v0, %v3315_v40  ;;  %v3374_v44 = vrot.slane %v9927_v10, 1  ;;  %v3375_v22 = vrot.slane %v9993_v23, 1 }
0x346a   : > { %6870 = vrot.lane.b32.xlu1 %v6845_v21, %s8670_s25  ;;  %v9958_v21 = vstv %s7059_s15  ;;  %v3433_v54 = vmul.f32 %v9982_v55, %v3428_v35  ;;  %v3471_v48 = vsel %vm3465_vm5, %v3458_v6, %v10274_v49  ;;  %v3432_v56 = vmul.f32 %v9982_v55, %v3429_v47 }
0x346b   : > { %v3390_v42 = vmul.f32 %v9958_v21, %v3385_v29  ;;  %v3389_v62 = vmul.f32 %v9958_v21, %v3386_v25  ;;  %v10001_v29 = vstv %s7061_s17  ;;  %v3349_v9 = vmul.f32 %v9927_v10, %v9935_v12 }
0x346c   : > { %v3472_v25 = vsel %vm3465_vm5, %v10268_v18, %v3458_v6  ;;  %v3339_v14 = vadd.f32 %v3323_v19, %v3296_v45  ;;  %v3417_v50 = vrot.slane %v9927_v10, 2  ;;  %v10273_v40 = vrot.slane %v9993_v23, 2 }
0x346d   : > { %v3406_v31 = vadd.f32 %v3390_v42, %v3363_v15  ;;  %v3405_v5 = vadd.f32 %v3389_v62, %v3362_v8  ;;  %v3383_v42 = vsel %vm3379_vm1, %v3374_v44, %v3375_v22  ;;  %v3460_v35 = vrot.slane %v9927_v10, 3 }
0x346e   : > { %v10272_v15 = vrot.slane %v9993_v23, 3  ;;  %v3230_v6 = vsel %vm3224_vm12, %v3217_v30, %v3218_v59  ;;  %v3273_v8 = vsel %vm3267_vm13, %v3260_v13, %v3261_v60  ;;  %v3220_v62 = vrot.slane %v9993_v23, 5 }
0x346f   : > { %v3263_v47 = vrot.slane %v9993_v23, 6  ;;  %v3449_v45 = vadd.f32 %v3433_v54, %v3406_v31  ;;  %v3476_v19 = vmul.f32 %v10001_v29, %v3471_v48  ;;  %v3475_v18 = vmul.f32 %v10001_v29, %v3472_v25  ;;  %v10044_v54 = vld [vmem:[%s8715_s20 + $0x58] sm:$0xff] }
0x3470   : > { %v3448_v34 = vadd.f32 %v3432_v56, %v3405_v5  ;;  %v3365_v26 = vadd.f32 %v3349_v9, %v3339_v14  ;;  %v3392_v16 = vmul.f32 %v9958_v21, %v3383_v42  ;;  %v3426_v30 = vsel %vm3422_vm3, %v3417_v50, %v10273_v40  ;;  %v10066_v42 = vld [vmem:[%s8715_s20 + $0x68] sm:$0xff]  ;;  %s10199_s20 = scalar_lea.vmem %s10255_s2, %s7168_s18 }
0x3471   : > { %v3469_v13 = vsel %vm3465_vm5, %v3460_v35, %v10272_v15  ;;  %v3236_v59 = vmul.f32 %v9879_v61, %v3230_v6  ;;  %v3279_v60 = vmul.f32 %v9883_v20, %v3273_v8  ;;  %v3221_v48 = vrot.slane %v10044_v54, 5 }
0x3472   : > { %v3264_v31 = vrot.slane %v10044_v54, 6  ;;  %v3306_v5 = vrot.slane %v9993_v23, 7  ;;  %v3228_v56 = vsel %vm3224_vm12, %v3219_v4, %v3220_v62  ;;  %v3271_v9 = vsel %vm3267_vm13, %v3262_v27, %v3263_v47 }
0x3473   : > { %v10057_v25 = vadd.f32 %v3476_v19, %v3449_v45  ;;  %v3316_v14 = vsel %vm3310_vm14, %v3303_v7, %v3304_v3  ;;  %v3222_v6 = vrot.slane %v10066_v42, 5  ;;  %v3265_v4 = vrot.slane %v10066_v42, 6 }
0x3474   : > { %v10070_v8 = vadd.f32 %v3475_v18, %v3448_v34  ;;  %v3408_v15 = vadd.f32 %v3392_v16, %v3365_v26  ;;  %v3435_v27 = vmul.f32 %v9982_v55, %v3426_v30  ;;  %v10074_v45 = vmul.f32 %v10001_v29, %v3469_v13 }
0x3475   : > { %v3227_v38 = vsel %vm3224_vm12, %v3220_v62, %v3221_v48  ;;  %v3307_v19 = vrot.slane %v10044_v54, 7  ;;  %v3238_v7 = vmul.f32 %v9879_v61, %v3228_v56  ;;  %v3281_v3 = vmul.f32 %v9883_v20, %v3271_v9 }
0x3476   : > { %v3295_v40 = vadd.f32 %v3279_v60, %v3236_v59  ;;  %v3322_v49 = vmul.f32 %v9905_v0, %v3316_v14  ;;  %v3270_v16 = vsel %vm3267_vm13, %v3263_v47, %v3264_v31  ;;  %v3314_v26 = vsel %vm3310_vm14, %v3305_v2, %v3306_v5 }
0x3477   : > { %v3384_v34 = vsel %vm3379_vm1, %v3373_v57, %v3374_v44  ;;  %v3308_v18 = vrot.slane %v10066_v42, 7  ;;  %v3226_v62 = vsel %vm3224_vm12, %v3221_v48, %v3222_v6  ;;  %v3269_v30 = vsel %vm3267_vm13, %v3264_v31, %v3265_v4 }
0x3478   : > { %v3348_v47 = vmul.f32 %v9923_v36, %v9935_v12  ;;  %v3427_v2 = vsel %vm3422_vm3, %v3416_v17, %v3417_v50  ;;  %v3239_v13 = vmul.f32 %v9879_v61, %v3227_v38  ;;  %v3376_v57 = vrot.slane %v10044_v54, 1 }
0x3479   : > { %v3282_v44 = vmul.f32 %v9883_v20, %v3270_v16  ;;  %v3313_v59 = vsel %vm3310_vm14, %v3306_v5, %v3307_v19  ;;  %v3297_v60 = vadd.f32 %v3281_v3, %v3238_v7  ;;  %v3324_v48 = vmul.f32 %v9905_v0, %v3314_v26 }
0x347a   : > { %v3451_v31 = vadd.f32 %v3435_v27, %v3408_v15  ;;  %v3391_v56 = vmul.f32 %v9958_v21, %v3384_v34  ;;  %v3240_v9 = vmul.f32 %v9879_v61, %v3226_v62  ;;  %v3283_v14 = vmul.f32 %v9883_v20, %v3269_v30 }
0x347b   : > { %v3338_v17 = vadd.f32 %v3322_v49, %v3295_v40  ;;  %v3225_v50 = vsel %vm3224_vm12, %v3222_v6, %v3223_v63  ;;  %v3268_v5 = vsel %vm3267_vm13, %v3265_v4, %v3266_v43  ;;  %v3312_v15 = vsel %vm3310_vm14, %v3307_v19, %v3308_v18 }
0x347c   : > { %v3434_v27 = vmul.f32 %v9982_v55, %v3427_v2  ;;  %v3325_v38 = vmul.f32 %v9905_v0, %v3313_v59  ;;  %v3377_v7 = vrot.slane %v10066_v42, 1  ;;  %v3419_v49 = vrot.slane %v10044_v54, 2 }
0x347d   : > { %v3298_v40 = vadd.f32 %v3282_v44, %v3239_v13  ;;  %v3340_v3 = vadd.f32 %v3324_v48, %v3297_v60  ;;  %v3350_v63 = vmul.f32 %v9993_v23, %v9935_v12  ;;  %v3382_v43 = vsel %vm3379_vm1, %v3375_v22, %v3376_v57 }
0x347e   : > { %v3241_v6 = vmul.f32 %v9879_v61, %v3225_v50  ;;  %v3284_v4 = vmul.f32 %v9883_v20, %v3268_v5  ;;  %v3299_v19 = vadd.f32 %v3283_v14, %v3240_v9  ;;  %v3326_v16 = vmul.f32 %v9905_v0, %v3312_v15 }
0x347f   : > { %v3364_v26 = vadd.f32 %v3348_v47, %v3338_v17  ;;  %v10292_v34 = vrot.slane %v9923_v36, 3  ;;  %v3351_v30 = vmul.f32 %v10044_v54, %v9935_v12  ;;  %v10293_v22 = vrot.slane %v9871_v24, 7 }
0x3480   : > { %v3381_v20 = vsel %vm3379_vm1, %v3376_v57, %v3377_v7  ;;  %v3420_v47 = vrot.slane %v10066_v42, 2  ;;  %v3462_v10 = vrot.slane %v10044_v54, 3  ;;  %v3378_v36 = vrot.slane %v9871_v24, 1 }
0x3481   : > { %v3470_v62 = vsel %vm3465_vm5, %v10292_v34, %v3460_v35  ;;  %v3311_v61 = vsel %vm3310_vm14, %v3308_v18, %v10293_v22  ;;  %v3341_v2 = vadd.f32 %v3325_v38, %v3298_v40  ;;  %v3366_v13 = vadd.f32 %v3350_v63, %v3340_v3 }
0x3482   : > { %v3393_v35 = vmul.f32 %v9958_v21, %v3382_v43  ;;  %v10294_v44 = vrot.slane %v9993_v23, 2  ;;  %v3300_v60 = vadd.f32 %v3284_v4, %v3241_v6  ;;  %v3327_v18 = vmul.f32 %v9905_v0, %v3311_v61 }
0x3483   : > { %v3342_v48 = vadd.f32 %v3326_v16, %v3299_v19  ;;  %v3352_v57 = vmul.f32 %v10066_v42, %v9935_v12  ;;  %v3407_v9 = vadd.f32 %v3391_v56, %v3364_v26  ;;  %v3477_v54 = vmul.f32 %v10001_v29, %v3470_v62 }
0x3484   : > { %v3425_v59 = vsel %vm3422_vm3, %v10294_v44, %v3419_v49  ;;  %v3394_v14 = vmul.f32 %v9958_v21, %v3381_v20  ;;  %v3380_v17 = vsel %vm3379_vm1, %v3377_v7, %v3378_v36  ;;  %v3424_v50 = vsel %vm3422_vm3, %v3419_v49, %v3420_v47 }
0x3485   : > { %v3463_v5 = vrot.slane %v10066_v42, 3  ;;  %v10295_v0 = vrot.slane %v9866_v28, 1  ;;  %v3421_v56 = vrot.slane %v9871_v24, 2  ;;  %v3367_v38 = vadd.f32 %v3351_v30, %v3341_v2 }
0x3486   : > { %v3409_v40 = vadd.f32 %v3393_v35, %v3366_v13  ;;  %v3436_v3 = vmul.f32 %v9982_v55, %v3425_v59  ;;  %v10296_v63 = vrot.slane %v9993_v23, 3  ;;  %v3343_v43 = vadd.f32 %v3327_v18, %v3300_v60 }
0x3487   : > { %v3387_v15 = vsel %vm3379_vm1, %v3378_v36, %v10295_v0  ;;  %v3353_v42 = vmul.f32 %v9871_v24, %v9935_v12  ;;  %v3368_v49 = vadd.f32 %v3352_v57, %v3342_v48  ;;  %v3395_v6 = vmul.f32 %v9958_v21, %v3380_v17 }
0x3488   : > { %v3468_v7 = vsel %vm3465_vm5, %v10296_v63, %v3462_v10  ;;  %v3494_v4 = vadd.f32 %v10074_v45, %v3451_v31  ;;  %v3450_v19 = vadd.f32 %v3434_v27, %v3407_v9  ;;  %v3396_v16 = vmul.f32 %v9958_v21, %v3387_v15 }
0x3489   : > { %v3423_v26 = vsel %vm3422_vm3, %v3420_v47, %v3421_v56  ;;  %v3437_v23 = vmul.f32 %v9982_v55, %v3424_v50  ;;  %v3467_v34 = vsel %vm3465_vm5, %v3462_v10, %v3463_v5  ;;  %v10297_v62 = vrot.slane %v9866_v28, 2 }
0x348a   : > { %v3464_v30 = vrot.slane %v9871_v24, 3  ;;  %v3595_v45 = vadd.f32 %v9206_v33, %v10057_v25  ;;  %v3410_v31 = vadd.f32 %v3394_v14, %v3367_v38  ;;  %v3452_v21 = vadd.f32 %v3436_v3, %v3409_v40 }
0x348b   : > { %v3430_v12 = vsel %vm3422_vm3, %v3421_v56, %v10297_v62  ;;  %v3479_v27 = vmul.f32 %v10001_v29, %v3468_v7  ;;  %v3590_v22 = vadd.f32 %v9208_v39, %v10070_v8  ;;  %v3369_v61 = vadd.f32 %v3353_v42, %v3343_v43 }
0x348c   : > { %v3411_v20 = vadd.f32 %v3395_v6, %v3368_v49  ;;  %v3438_v24 = vmul.f32 %v9982_v55, %v3423_v26  ;;  %v3404_v33 = vsel %vm330_vm6, %v3396_v16, 0.0  ;;  %v3439_v25 = vmul.f32 %v9982_v55, %v3430_v12 }
0x348d   : > { %v3466_v10 = vsel %vm3465_vm5, %v3463_v5, %v3464_v30  ;;  %v10298_v13 = vrot.slane %v9866_v28, 3  ;;  %v3493_v37 = vadd.f32 %v3477_v54, %v3450_v19  ;;  %v3453_v35 = vadd.f32 %v3437_v23, %v3410_v31 }
0x348e   : > { %v3480_v55 = vmul.f32 %v10001_v29, %v3467_v34  ;;  %v3495_v44 = vadd.f32 %v3479_v27, %v3452_v21  ;;  %v3605_v59 = vadd.f32 %v9210_v46, %v3494_v4  ;;  %v3412_v60 = vadd.f32 %v3404_v33, %v3369_v61 }
0x348f   : > { %v3473_v39 = vsel %vm3465_vm5, %v3464_v30, %v10298_v13  ;;  %v3454_v18 = vadd.f32 %v3438_v24, %v3411_v20  ;;  %v3481_v28 = vmul.f32 %v10001_v29, %v3466_v10  ;;  %v3447_v1 = vsel %vm362_vm7, %v3439_v25, 0.0 }
0x3490   : > { %v3482_v48 = vmul.f32 %v10001_v29, %v3473_v39  ;;  %v3496_v54 = vadd.f32 %v3480_v55, %v3453_v35  ;;  %v3600_v14 = vadd.f32 %v9212_v11, %v3493_v37  ;;  %v3610_v46 = vadd.f32 %v9216_v53, %v3495_v44 }
0x3491   : > { %v3455_v17 = vadd.f32 %v3447_v1, %v3412_v60  ;;  %v3497_v50 = vadd.f32 %v3481_v28, %v3454_v18 }
0x3492   : > { %v3490_v41 = vsel %vm394_vm8, %v3482_v48, 0.0  ;;  %v3615_v11 = vadd.f32 %v9214_v52, %v3496_v54 }
0x3493   : > { %v3498_v53 = vadd.f32 %v3490_v41, %v3455_v17  ;;  %v3620_v56 = vadd.f32 %v9220_v32, %v3497_v50 }
0x3495   : > { %v3625_v63 = vadd.f32 %v9218_v51, %v3498_v53 }
0x34cb   : > { %v6859_v47 = vpop.permute.xlu0 %6858 }
0x34cc   : > { %v6881_v36 = vsel %vm616_vm9, %v3595_v45, %v6859_v47  ;;  %v6857_v2 = vpop.permute.xlu1 %6856 }
0x34cd   : > { %6889 = vst.msk [vmem:[%s10199_s20 + $0x8] sm:$0xff] %vm427_vm4, %v6881_v36  ;;  %v6880_v8 = vsel %vm616_vm9, %v3590_v22, %v6857_v2 }
0x34ce   : > { %6888 = vst.msk [vmem:[%s10199_s20] sm:$0xff] %vm427_vm4, %v6880_v8 }
0x34d0   : > { %v6863_v57 = vpop.permute.xlu1 %6862 }
0x34d1   : > { %v6883_v9 = vsel %vm616_vm9, %v3605_v59, %v6863_v57 }
0x34d2   : > { %6891 = vst.msk [vmem:[%s10199_s20 + $0x18] sm:$0xff] %vm427_vm4, %v6883_v9 }
0x34d4   : > { %v6865_v5 = vpop.permute.xlu0 %6864  ;;  %v6861_v0 = vpop.permute.xlu1 %6860 }
0x34d5   : > { %v6884_v29 = vsel %vm616_vm9, %v3610_v46, %v6865_v5  ;;  %v6882_v15 = vsel %vm616_vm9, %v3600_v14, %v6861_v0 }
0x34d6   : > { %6892 = vst.msk [vmem:[%s10199_s20 + $0x20] sm:$0xff] %vm427_vm4, %v6884_v29  ;;  %6890 = vst.msk [vmem:[%s10199_s20 + $0x10] sm:$0xff] %vm427_vm4, %v6882_v15 }
0x34d8   : > { %v6869_v38 = vpop.permute.xlu0 %6868  ;;  %v6867_v58 = vpop.permute.xlu1 %6866 }
0x34d9   : > { %v6886_v40 = vsel %vm616_vm9, %v3620_v56, %v6869_v38  ;;  %v6885_v3 = vsel %vm616_vm9, %v3615_v11, %v6867_v58 }
0x34da   : > { %6894 = vst.msk [vmem:[%s10199_s20 + $0x30] sm:$0xff] %vm427_vm4, %v6886_v40  ;;  %6893 = vst.msk [vmem:[%s10199_s20 + $0x28] sm:$0xff] %vm427_vm4, %v6885_v3 }
0x34dc   : > { %v6871_v7 = vpop.permute.xlu1 %6870 }
0x34dd   : > { %v6887_v43 = vsel %vm616_vm9, %v3625_v63, %v6871_v7 }
0x34de   : > { %6895 = vst.msk [vmem:[%s10199_s20 + $0x38] sm:$0xff] %vm427_vm4, %v6887_v43 }
0x34df PF: > { %s13_s9 = sadd.s32 1, %s8665_s9  }
0x34e0   : > { %p10_p1 = scmp.ge.s32.totalorder %s13_s9, 4  }
0x34e2   :  { %12 = sbr.rel (!%p10_p1) target bundleno = 1 (0x1), region = 63 }
0x34e9   :  { %6917 = vsyncpa [#allocation3], 1 }
0x34ea   :  { %6919 = vsyncpa [#allocation3 + $0x1], 1 }

</bundles_post_ra>
